<compile_context>
chip_gen: v6e
topology: v6e:2x2x1
jax: 0.10.0
libtpu: 0.0.40
codegen_flags: <defaults>
</compile_context>

<pallas_src>
import functools

import jax
import jax.numpy as jnp
from jax import lax
from jax.experimental import pallas as pl
from jax.experimental.pallas import tpu as pltpu


def _round_up(x, m):
    return (x + m - 1) // m * m


def _multi_tc_chip():
    """True only for multi-TensorCore chips (v7x); enables the 2-way N split."""
    try:
        kind = jax.devices()[0].device_kind.lower()
    except Exception:
        return False
    return ("v7" in kind) or ("7x" in kind)


# ----------------------------- Pallas kernels ------------------------------

def _conv_bias_kernel(x_ref, w_ref, b_ref, o_ref, *, act):
    """o = x @ w + b, optionally LeakyReLU(0.2).  Grid = (Np // tn,)."""
    acc = jnp.dot(x_ref[...], w_ref[...], preferred_element_type=jnp.float32)
    out = acc + b_ref[...]
    if act:
        out = jnp.where(out >= 0, out, 0.2 * out)
    o_ref[...] = out.astype(o_ref.dtype)


def _conv_bn_lrelu_kernel(x_ref, w_ref, g_ref, b_ref, o_ref, *, m_actual):
    """Conv (no bias) + BatchNorm2d (train-mode batch stats) + LeakyReLU(0.2).

    The full M (= N*Ho*Wo) dimension lives in this one tile, so per-channel
    batch statistics are computed directly on the f32 matmul accumulator.
    Rows >= m_actual are zero padding; the mask is only emitted when padding
    rows actually exist (statically known).
    """
    acc = jnp.dot(x_ref[...], w_ref[...], preferred_element_type=jnp.float32)
    mp = acc.shape[0]
    inv_n = 1.0 / float(m_actual)
    if m_actual == mp:
        mean = jnp.sum(acc, axis=0, keepdims=True) * inv_n
        cen = acc - mean
    else:
        row = lax.broadcasted_iota(jnp.int32, (mp, 1), 0)
        mask = (row < m_actual).astype(jnp.float32)
        mean = jnp.sum(acc * mask, axis=0, keepdims=True) * inv_n
        cen = (acc - mean) * mask
    var = jnp.sum(cen * cen, axis=0, keepdims=True) * inv_n  # biased, like torch BN
    y = (acc - mean) * lax.rsqrt(var + 1e-5) * g_ref[...] + b_ref[...]
    o_ref[...] = jnp.where(y >= 0, y, 0.2 * y).astype(o_ref.dtype)


# ------------------------------ JAX wrappers --------------------------------

def conv_layer(patches, layer, *, mode, out_dtype, n_split):
    """patches: (M, K) bf16 im2col matrix.  layer: packed arrays (pack_params).

    mode: 'lrelu' (bias + LeakyReLU), 'bn' (BatchNorm + LeakyReLU, bias
          dropped), 'none' (bias only).
    Returns the padded (Mp, Np) result; the caller slices rows/channels with
    STATIC Python ints.
    """
    M, K = patches.shape
    Kp, Np = layer["w"].shape
    Mp = _round_up(max(M, 16), 16)       # bf16 packs 16 sublanes per vreg

    xp = patches
    if (Mp, Kp) != (M, K):
        xp = jnp.pad(patches, ((0, Mp - M), (0, Kp - K)))

    # 2-way N split only where two TensorCores can consume disjoint panels.
    tn = Np // 2 if (n_split and Np >= 256) else Np
    grid = (Np // tn,)

    x_spec = pl.BlockSpec((Mp, Kp), lambda j: (0, 0))
    w_spec = pl.BlockSpec((Kp, tn), lambda j: (0, j))
    v_spec = pl.BlockSpec((1, tn), lambda j: (0, j))
    o_spec = pl.BlockSpec((Mp, tn), lambda j: (0, j))

    if mode == "bn":
        kernel = functools.partial(_conv_bn_lrelu_kernel, m_actual=M)
        ins = (xp, layer["w"], layer["gamma"], layer["beta"])
        in_specs = [x_spec, w_spec, v_spec, v_spec]
    else:
        kernel = functools.partial(_conv_bias_kernel, act=(mode == "lrelu"))
        ins = (xp, layer["w"], layer["b"])
        in_specs = [x_spec, w_spec, v_spec]

    return pl.pallas_call(
        kernel,
        out_shape=jax.ShapeDtypeStruct((Mp, Np), out_dtype),
        grid=grid,
        in_specs=in_specs,
        out_specs=o_spec,
        compiler_params=pltpu.CompilerParams(
            dimension_semantics=("parallel",),
            vmem_limit_bytes=32 * 1024 * 1024),
    )(*ins)


def im2col(x, kh, kw, stride, pad):
    """x: (N, H, W, C) NHWC -> (N*Ho*Wo, kh*kw*C) with (kh, kw, C) ordering."""
    # TODO(synk): at large resolutions generate the patch rows inside the
    # kernel instead of materializing the im2col matrix in HBM.
    n, h, w, c = x.shape
    xp = jnp.pad(x, ((0, 0), (pad, pad), (pad, pad), (0, 0)))
    ho = (h + 2 * pad - kh) // stride + 1
    wo = (w + 2 * pad - kw) // stride + 1
    cols = []
    for i in range(kh):
        for j in range(kw):
            cols.append(xp[:, i:i + stride * (ho - 1) + 1:stride,
                           j:j + stride * (wo - 1) + 1:stride, :])
    patches = jnp.concatenate(cols, axis=-1)  # (N, Ho, Wo, kh*kw*C)
    return patches.reshape(n * ho * wo, kh * kw * c), (n, ho, wo)


# ------------------------------ Parameters -----------------------------------

def init_params(key, input_nc, output_nc):
    specs = [(64, input_nc), (128, 64), (256, 128), (512, 256), (output_nc, 512)]
    params = {}
    for idx, (oc, ic) in enumerate(specs):
        key, k1, k2 = jax.random.split(key, 3)
        params[f"w{idx}"] = jax.random.normal(k1, (oc, ic, 4, 4), jnp.float32) * 0.05
        params[f"b{idx}"] = jax.random.normal(k2, (oc,), jnp.float32) * 0.01
    # BatchNorm affine params (PyTorch default init: gamma=1, beta=0)
    for idx, c in [(1, 128), (2, 256), (3, 512)]:
        params[f"gamma{idx}"] = jnp.ones((c,), jnp.float32)
        params[f"beta{idx}"] = jnp.zeros((c,), jnp.float32)
    return params


def _pack_weight(w_oihw, cin_padded):
    oc, ic, kh, kw = w_oihw.shape
    Np = _round_up(oc, 128)
    # (Cout, Cin, kh, kw) -> (kh, kw, Cin, Cout) to match im2col's (kh, kw, C)
    # flattening; Cin padded to the carried (lane-padded) channel width so the
    # next layer's activations never need slicing/re-padding.
    w = jnp.transpose(w_oihw, (2, 3, 1, 0))
    w = jnp.pad(w, ((0, 0), (0, 0), (0, cin_padded - ic), (0, Np - oc)))
    K = kh * kw * cin_padded
    Kp = _round_up(K, 128)
    w2d = w.reshape(K, Np)
    if Kp != K:
        w2d = jnp.pad(w2d, ((0, Kp - K), (0, 0)))
    return w2d.astype(jnp.bfloat16), oc, Np


def pack_params(params, input_nc):
    """One-time repack: transpose + Cin/Cout pad + bf16 cast, hoisted out of
    the forward.  The returned pytree contains ONLY arrays (jit-safe)."""
    packed = []
    cin = input_nc                       # channel width carried into layer idx
    for idx in range(5):
        w2d, oc, Np = _pack_weight(params[f"w{idx}"], cin)
        layer = {"w": w2d}
        if idx in (1, 2, 3):
            # Conv bias dropped: exactly cancelled by the BN mean subtraction.
            layer["gamma"] = jnp.pad(params[f"gamma{idx}"].astype(jnp.float32),
                                     (0, Np - oc)).reshape(1, Np)
            layer["beta"] = jnp.pad(params[f"beta{idx}"].astype(jnp.float32),
                                    (0, Np - oc)).reshape(1, Np)
        else:
            layer["b"] = jnp.pad(params[f"b{idx}"].astype(jnp.float32),
                                 (0, Np - oc)).reshape(1, Np)
        packed.append(layer)
        cin = Np                         # next layer consumes the padded width
    return packed


# ------------------------------ Discriminator -------------------------------

def discriminator_forward(x_nchw, packed, *, output_nc, n_split=False):
    x = jnp.transpose(x_nchw, (0, 2, 3, 1)).astype(jnp.bfloat16)  # NHWC, bf16

    # Block 1: Conv(k4,s2,p1) + LeakyReLU(0.2)   (no norm).  Padded output
    # channels carry exact zeros, so they are inert in the next layer.
    p, (n, ho, wo) = im2col(x, 4, 4, 2, 1)
    y = conv_layer(p, packed[0], mode="lrelu", out_dtype=jnp.bfloat16,
                   n_split=n_split)
    x = y[:p.shape[0]].reshape(n, ho, wo, -1)

    # Blocks 2-4: Conv(k4,s2,p1) + BatchNorm(batch stats) + LeakyReLU(0.2)
    for i in range(1, 4):
        p, (n, ho, wo) = im2col(x, 4, 4, 2, 1)
        y = conv_layer(p, packed[i], mode="bn", out_dtype=jnp.bfloat16,
                       n_split=n_split)
        x = y[:p.shape[0]].reshape(n, ho, wo, -1)

    # ZeroPad2d((left=1, right=0, top=1, bottom=0))
    x = jnp.pad(x, ((0, 0), (1, 0), (1, 0), (0, 0)))

    # Final Conv(512 -> output_nc, k4, s1, p1) + bias, no activation, f32 out.
    p, (n, ho, wo) = im2col(x, 4, 4, 1, 1)
    y = conv_layer(p, packed[4], mode="none", out_dtype=jnp.float32,
                   n_split=n_split)
    out = y[:p.shape[0], :output_nc].reshape(n, ho, wo, output_nc)
    return jnp.transpose(out, (0, 3, 1, 2))  # back to NCHW


# TODO(synk): BatchNorm running-mean/var tracking (stateful training
# bookkeeping) is not reproduced; forward uses current batch statistics
# (train-mode behavior of a freshly constructed nn.BatchNorm2d).


if __name__ == "__main__":
    key = jax.random.PRNGKey(0)
    input_nc, output_nc = 4, 1
    batch, H, W = 2, 32, 32

    kp, kx = jax.random.split(key)
    params = init_params(kp, input_nc, output_nc)
    packed = pack_params(params, input_nc)   # weight prep hoisted out of forward
    x = jax.random.normal(kx, (batch, input_nc, H, W), jnp.float32)

    fwd = jax.jit(functools.partial(discriminator_forward,
                                    output_nc=output_nc,
                                    n_split=_multi_tc_chip()))
    out = jax.block_until_ready(fwd(x, packed))

    # 32 -> 16 -> 8 -> 4 -> 2 -> ZeroPad2d -> 3x3 -> final conv (k4,s1,p1) -> 2x2
    assert out.shape == (batch, output_nc, 2, 2), out.shape
    assert jnp.all(jnp.isfinite(out))
    print("KERNEL_OK")
</pallas_src>

<mosaic_0001>
module attributes {stable_mosaic.version = 11 : i64} {
  func.func @_conv_bias_kernel(%arg0: i32, %arg1: memref<512x128xbf16, #tpu.memory_space<vmem>>, %arg2: memref<128x128xbf16, #tpu.memory_space<vmem>>, %arg3: memref<1x128xf32, #tpu.memory_space<vmem>>, %arg4: memref<512x128xbf16, #tpu.memory_space<vmem>>) attributes {dimension_semantics = [#tpu.dimension_semantics<parallel>], iteration_bounds = array<i64: 1>, scalar_prefetch = 0 : i64, scratch_operands = 0 : i64, tpu.core_type = #tpu.core_type<tc>, window_params = [{pipeline_mode = #tpu.pipeline_mode<synchronous>, transform_indices = @transform_0, window_bounds = array<i64: 512, 128>}, {transform_indices = @transform_1, window_bounds = array<i64: 128, 128>}, {transform_indices = @transform_2, window_bounds = array<i64: 1, 128>}, {transform_indices = @transform_3, window_bounds = array<i64: 512, 128>}]} {
    %c0 = arith.constant 0 : index
    %c0_0 = arith.constant 0 : index
    %0 = vector.load %arg1[%c0, %c0_0] : memref<512x128xbf16, #tpu.memory_space<vmem>>, vector<512x128xbf16>
    %c0_1 = arith.constant 0 : index
    %c0_2 = arith.constant 0 : index
    %1 = vector.load %arg2[%c0_1, %c0_2] : memref<128x128xbf16, #tpu.memory_space<vmem>>, vector<128x128xbf16>
    %cst = arith.constant dense<0.000000e+00> : vector<512x128xf32>
    %2 = tpu.matmul %0, %1, %cst {dimension_numbers = #tpu.dot_dimension_numbers<[1], [0], [0], [1], [0, 0, 1, 1], [], []>} : vector<512x128xbf16>, vector<128x128xbf16>, vector<512x128xf32> -> vector<512x128xf32>
    %c0_3 = arith.constant 0 : index
    %c0_4 = arith.constant 0 : index
    %3 = vector.load %arg3[%c0_3, %c0_4] : memref<1x128xf32, #tpu.memory_space<vmem>>, vector<1x128xf32>
    %4 = vector.broadcast %3 : vector<1x128xf32> to vector<512x128xf32>
    %5 = arith.addf %2, %4 : vector<512x128xf32>
    %cst_5 = arith.constant 0.000000e+00 : f32
    %6 = vector.broadcast %cst_5 : f32 to vector<512x128xf32>
    %7 = arith.cmpf oge, %5, %6 : vector<512x128xf32>
    %cst_6 = arith.constant 2.000000e-01 : f32
    %8 = vector.broadcast %cst_6 : f32 to vector<512x128xf32>
    %9 = arith.mulf %8, %5 : vector<512x128xf32>
    %10 = arith.select %7, %5, %9 : vector<512x128xi1>, vector<512x128xf32>
    %11 = arith.truncf %10 : vector<512x128xf32> to vector<512x128xbf16>
    %c0_7 = arith.constant 0 : index
    %c0_8 = arith.constant 0 : index
    %12 = vector.load %arg4[%c0_7, %c0_8] : memref<512x128xbf16, #tpu.memory_space<vmem>>, vector<512x128xbf16>
    tpu.vector_store %arg4[%c0_7, %c0_8], %11 {strides = array<i32>} : memref<512x128xbf16, #tpu.memory_space<vmem>>, vector<512x128xbf16>,
    return
  }
  func.func @transform_0(%arg0: i32) -> (i32, i32) {
    %c0_i32 = arith.constant 0 : i32
    %c0_i32_0 = arith.constant 0 : i32
    %c0_i32_1 = arith.constant 0 : i32
    return %c0_i32, %c0_i32_0 : i32, i32
  }
  func.func @transform_1(%arg0: i32) -> (i32, i32) {
    %c0_i32 = arith.constant 0 : i32
    %c0_i32_0 = arith.constant 0 : i32
    return %c0_i32, %arg0 : i32, i32
  }
  func.func @transform_2(%arg0: i32) -> (i32, i32) {
    %c0_i32 = arith.constant 0 : i32
    %c0_i32_0 = arith.constant 0 : i32
    return %c0_i32, %arg0 : i32, i32
  }
  func.func @transform_3(%arg0: i32) -> (i32, i32) {
    %c0_i32 = arith.constant 0 : i32
    %c0_i32_0 = arith.constant 0 : i32
    return %c0_i32, %arg0 : i32, i32
  }
}

module attributes {stable_mosaic.version = 11 : i64} {
  func.func @_conv_bn_lrelu_kernel(%arg0: i32, %arg1: memref<128x2048xbf16, #tpu.memory_space<vmem>>, %arg2: memref<2048x128xbf16, #tpu.memory_space<vmem>>, %arg3: memref<1x128xf32, #tpu.memory_space<vmem>>, %arg4: memref<1x128xf32, #tpu.memory_space<vmem>>, %arg5: memref<128x128xbf16, #tpu.memory_space<vmem>>) attributes {dimension_semantics = [#tpu.dimension_semantics<parallel>], iteration_bounds = array<i64: 1>, scalar_prefetch = 0 : i64, scratch_operands = 0 : i64, tpu.core_type = #tpu.core_type<tc>, window_params = [{pipeline_mode = #tpu.pipeline_mode<synchronous>, transform_indices = @transform_0, window_bounds = array<i64: 128, 2048>}, {transform_indices = @transform_1, window_bounds = array<i64: 2048, 128>}, {transform_indices = @transform_2, window_bounds = array<i64: 1, 128>}, {transform_indices = @transform_3, window_bounds = array<i64: 1, 128>}, {transform_indices = @transform_4, window_bounds = array<i64: 128, 128>}]} {
    %c0 = arith.constant 0 : index
    %c0_0 = arith.constant 0 : index
    %0 = vector.load %arg1[%c0, %c0_0] : memref<128x2048xbf16, #tpu.memory_space<vmem>>, vector<128x2048xbf16>
    %c0_1 = arith.constant 0 : index
    %c0_2 = arith.constant 0 : index
    %1 = vector.load %arg2[%c0_1, %c0_2] : memref<2048x128xbf16, #tpu.memory_space<vmem>>, vector<2048x128xbf16>
    %cst = arith.constant dense<0.000000e+00> : vector<128x128xf32>
    %2 = tpu.matmul %0, %1, %cst {dimension_numbers = #tpu.dot_dimension_numbers<[1], [0], [0], [1], [0, 0, 1, 1], [], []>} : vector<128x2048xbf16>, vector<2048x128xbf16>, vector<128x128xf32> -> vector<128x128xf32>
    %cst_3 = arith.constant dense<0.000000e+00> : vector<128xf32>
    %3 = vector.multi_reduction <add>, %2, %cst_3 [0] : vector<128x128xf32> to vector<128xf32>
    %4 = vector.shape_cast %3 : vector<128xf32> to vector<1x128xf32>
    %cst_4 = arith.constant 7.812500e-03 : f32
    %5 = vector.broadcast %cst_4 : f32 to vector<1x128xf32>
    %6 = arith.mulf %4, %5 : vector<1x128xf32>
    %7 = vector.broadcast %6 : vector<1x128xf32> to vector<128x128xf32>
    %8 = arith.subf %2, %7 : vector<128x128xf32>
    %9 = arith.mulf %8, %8 : vector<128x128xf32>
    %cst_5 = arith.constant dense<0.000000e+00> : vector<128xf32>
    %10 = vector.multi_reduction <add>, %9, %cst_5 [0] : vector<128x128xf32> to vector<128xf32>
    %11 = vector.shape_cast %10 : vector<128xf32> to vector<1x128xf32>
    %cst_6 = arith.constant 7.812500e-03 : f32
    %12 = vector.broadcast %cst_6 : f32 to vector<1x128xf32>
    %13 = arith.mulf %11, %12 : vector<1x128xf32>
    %14 = vector.broadcast %6 : vector<1x128xf32> to vector<128x128xf32>
    %15 = arith.subf %2, %14 : vector<128x128xf32>
    %cst_7 = arith.constant 9.99999974E-6 : f32
    %16 = vector.broadcast %cst_7 : f32 to vector<1x128xf32>
    %17 = arith.addf %13, %16 : vector<1x128xf32>
    %18 = math.rsqrt %17 : vector<1x128xf32>
    %19 = vector.broadcast %18 : vector<1x128xf32> to vector<128x128xf32>
    %20 = arith.mulf %15, %19 : vector<128x128xf32>
    %c0_8 = arith.constant 0 : index
    %c0_9 = arith.constant 0 : index
    %21 = vector.load %arg3[%c0_8, %c0_9] : memref<1x128xf32, #tpu.memory_space<vmem>>, vector<1x128xf32>
    %22 = vector.broadcast %21 : vector<1x128xf32> to vector<128x128xf32>
    %23 = arith.mulf %20, %22 : vector<128x128xf32>
    %c0_10 = arith.constant 0 : index
    %c0_11 = arith.constant 0 : index
    %24 = vector.load %arg4[%c0_10, %c0_11] : memref<1x128xf32, #tpu.memory_space<vmem>>, vector<1x128xf32>
    %25 = vector.broadcast %24 : vector<1x128xf32> to vector<128x128xf32>
    %26 = arith.addf %23, %25 : vector<128x128xf32>
    %cst_12 = arith.constant 0.000000e+00 : f32
    %27 = vector.broadcast %cst_12 : f32 to vector<128x128xf32>
    %28 = arith.cmpf oge, %26, %27 : vector<128x128xf32>
    %cst_13 = arith.constant 2.000000e-01 : f32
    %29 = vector.broadcast %cst_13 : f32 to vector<128x128xf32>
    %30 = arith.mulf %29, %26 : vector<128x128xf32>
    %31 = arith.select %28, %26, %30 : vector<128x128xi1>, vector<128x128xf32>
    %32 = arith.truncf %31 : vector<128x128xf32> to vector<128x128xbf16>
    %c0_14 = arith.constant 0 : index
    %c0_15 = arith.constant 0 : index
    %33 = vector.load %arg5[%c0_14, %c0_15] : memref<128x128xbf16, #tpu.memory_space<vmem>>, vector<128x128xbf16>
    tpu.vector_store %arg5[%c0_14, %c0_15], %32 {strides = array<i32>} : memref<128x128xbf16, #tpu.memory_space<vmem>>, vector<128x128xbf16>,
    return
  }
  func.func @transform_0(%arg0: i32) -> (i32, i32) {
    %c0_i32 = arith.constant 0 : i32
    %c0_i32_0 = arith.constant 0 : i32
    %c0_i32_1 = arith.constant 0 : i32
    return %c0_i32, %c0_i32_0 : i32, i32
  }
  func.func @transform_1(%arg0: i32) -> (i32, i32) {
    %c0_i32 = arith.constant 0 : i32
    %c0_i32_0 = arith.constant 0 : i32
    return %c0_i32, %arg0 : i32, i32
  }
  func.func @transform_2(%arg0: i32) -> (i32, i32) {
    %c0_i32 = arith.constant 0 : i32
    %c0_i32_0 = arith.constant 0 : i32
    return %c0_i32, %arg0 : i32, i32
  }
  func.func @transform_3(%arg0: i32) -> (i32, i32) {
    %c0_i32 = arith.constant 0 : i32
    %c0_i32_0 = arith.constant 0 : i32
    return %c0_i32, %arg0 : i32, i32
  }
  func.func @transform_4(%arg0: i32) -> (i32, i32) {
    %c0_i32 = arith.constant 0 : i32
    %c0_i32_0 = arith.constant 0 : i32
    return %c0_i32, %arg0 : i32, i32
  }
}

module attributes {stable_mosaic.version = 11 : i64} {
  func.func @_conv_bn_lrelu_kernel(%arg0: i32, %arg1: memref<32x2048xbf16, #tpu.memory_space<vmem>>, %arg2: memref<2048x256xbf16, #tpu.memory_space<vmem>>, %arg3: memref<1x256xf32, #tpu.memory_space<vmem>>, %arg4: memref<1x256xf32, #tpu.memory_space<vmem>>, %arg5: memref<32x256xbf16, #tpu.memory_space<vmem>>) attributes {dimension_semantics = [#tpu.dimension_semantics<parallel>], iteration_bounds = array<i64: 1>, scalar_prefetch = 0 : i64, scratch_operands = 0 : i64, tpu.core_type = #tpu.core_type<tc>, window_params = [{pipeline_mode = #tpu.pipeline_mode<synchronous>, transform_indices = @transform_0, window_bounds = array<i64: 32, 2048>}, {transform_indices = @transform_1, window_bounds = array<i64: 2048, 256>}, {transform_indices = @transform_2, window_bounds = array<i64: 1, 256>}, {transform_indices = @transform_3, window_bounds = array<i64: 1, 256>}, {transform_indices = @transform_4, window_bounds = array<i64: 32, 256>}]} {
    %c0 = arith.constant 0 : index
    %c0_0 = arith.constant 0 : index
    %0 = vector.load %arg1[%c0, %c0_0] : memref<32x2048xbf16, #tpu.memory_space<vmem>>, vector<32x2048xbf16>
    %c0_1 = arith.constant 0 : index
    %c0_2 = arith.constant 0 : index
    %1 = vector.load %arg2[%c0_1, %c0_2] : memref<2048x256xbf16, #tpu.memory_space<vmem>>, vector<2048x256xbf16>
    %cst = arith.constant dense<0.000000e+00> : vector<32x256xf32>
    %2 = tpu.matmul %0, %1, %cst {dimension_numbers = #tpu.dot_dimension_numbers<[1], [0], [0], [1], [0, 0, 1, 1], [], []>} : vector<32x2048xbf16>, vector<2048x256xbf16>, vector<32x256xf32> -> vector<32x256xf32>
    %cst_3 = arith.constant dense<0.000000e+00> : vector<256xf32>
    %3 = vector.multi_reduction <add>, %2, %cst_3 [0] : vector<32x256xf32> to vector<256xf32>
    %4 = vector.shape_cast %3 : vector<256xf32> to vector<1x256xf32>
    %cst_4 = arith.constant 3.125000e-02 : f32
    %5 = vector.broadcast %cst_4 : f32 to vector<1x256xf32>
    %6 = arith.mulf %4, %5 : vector<1x256xf32>
    %7 = vector.broadcast %6 : vector<1x256xf32> to vector<32x256xf32>
    %8 = arith.subf %2, %7 : vector<32x256xf32>
    %9 = arith.mulf %8, %8 : vector<32x256xf32>
    %cst_5 = arith.constant dense<0.000000e+00> : vector<256xf32>
    %10 = vector.multi_reduction <add>, %9, %cst_5 [0] : vector<32x256xf32> to vector<256xf32>
    %11 = vector.shape_cast %10 : vector<256xf32> to vector<1x256xf32>
    %cst_6 = arith.constant 3.125000e-02 : f32
    %12 = vector.broadcast %cst_6 : f32 to vector<1x256xf32>
    %13 = arith.mulf %11, %12 : vector<1x256xf32>
    %14 = vector.broadcast %6 : vector<1x256xf32> to vector<32x256xf32>
    %15 = arith.subf %2, %14 : vector<32x256xf32>
    %cst_7 = arith.constant 9.99999974E-6 : f32
    %16 = vector.broadcast %cst_7 : f32 to vector<1x256xf32>
    %17 = arith.addf %13, %16 : vector<1x256xf32>
    %18 = math.rsqrt %17 : vector<1x256xf32>
    %19 = vector.broadcast %18 : vector<1x256xf32> to vector<32x256xf32>
    %20 = arith.mulf %15, %19 : vector<32x256xf32>
    %c0_8 = arith.constant 0 : index
    %c0_9 = arith.constant 0 : index
    %21 = vector.load %arg3[%c0_8, %c0_9] : memref<1x256xf32, #tpu.memory_space<vmem>>, vector<1x256xf32>
    %22 = vector.broadcast %21 : vector<1x256xf32> to vector<32x256xf32>
    %23 = arith.mulf %20, %22 : vector<32x256xf32>
    %c0_10 = arith.constant 0 : index
    %c0_11 = arith.constant 0 : index
    %24 = vector.load %arg4[%c0_10, %c0_11] : memref<1x256xf32, #tpu.memory_space<vmem>>, vector<1x256xf32>
    %25 = vector.broadcast %24 : vector<1x256xf32> to vector<32x256xf32>
    %26 = arith.addf %23, %25 : vector<32x256xf32>
    %cst_12 = arith.constant 0.000000e+00 : f32
    %27 = vector.broadcast %cst_12 : f32 to vector<32x256xf32>
    %28 = arith.cmpf oge, %26, %27 : vector<32x256xf32>
    %cst_13 = arith.constant 2.000000e-01 : f32
    %29 = vector.broadcast %cst_13 : f32 to vector<32x256xf32>
    %30 = arith.mulf %29, %26 : vector<32x256xf32>
    %31 = arith.select %28, %26, %30 : vector<32x256xi1>, vector<32x256xf32>
    %32 = arith.truncf %31 : vector<32x256xf32> to vector<32x256xbf16>
    %c0_14 = arith.constant 0 : index
    %c0_15 = arith.constant 0 : index
    %33 = vector.load %arg5[%c0_14, %c0_15] : memref<32x256xbf16, #tpu.memory_space<vmem>>, vector<32x256xbf16>
    tpu.vector_store %arg5[%c0_14, %c0_15], %32 {strides = array<i32>} : memref<32x256xbf16, #tpu.memory_space<vmem>>, vector<32x256xbf16>,
    return
  }
  func.func @transform_0(%arg0: i32) -> (i32, i32) {
    %c0_i32 = arith.constant 0 : i32
    %c0_i32_0 = arith.constant 0 : i32
    %c0_i32_1 = arith.constant 0 : i32
    return %c0_i32, %c0_i32_0 : i32, i32
  }
  func.func @transform_1(%arg0: i32) -> (i32, i32) {
    %c0_i32 = arith.constant 0 : i32
    %c0_i32_0 = arith.constant 0 : i32
    return %c0_i32, %arg0 : i32, i32
  }
  func.func @transform_2(%arg0: i32) -> (i32, i32) {
    %c0_i32 = arith.constant 0 : i32
    %c0_i32_0 = arith.constant 0 : i32
    return %c0_i32, %arg0 : i32, i32
  }
  func.func @transform_3(%arg0: i32) -> (i32, i32) {
    %c0_i32 = arith.constant 0 : i32
    %c0_i32_0 = arith.constant 0 : i32
    return %c0_i32, %arg0 : i32, i32
  }
  func.func @transform_4(%arg0: i32) -> (i32, i32) {
    %c0_i32 = arith.constant 0 : i32
    %c0_i32_0 = arith.constant 0 : i32
    return %c0_i32, %arg0 : i32, i32
  }
}

module attributes {stable_mosaic.version = 11 : i64} {
  func.func @_conv_bn_lrelu_kernel(%arg0: i32, %arg1: memref<16x4096xbf16, #tpu.memory_space<vmem>>, %arg2: memref<4096x512xbf16, #tpu.memory_space<vmem>>, %arg3: memref<1x512xf32, #tpu.memory_space<vmem>>, %arg4: memref<1x512xf32, #tpu.memory_space<vmem>>, %arg5: memref<16x512xbf16, #tpu.memory_space<vmem>>) attributes {dimension_semantics = [#tpu.dimension_semantics<parallel>], iteration_bounds = array<i64: 1>, scalar_prefetch = 0 : i64, scratch_operands = 0 : i64, tpu.core_type = #tpu.core_type<tc>, window_params = [{pipeline_mode = #tpu.pipeline_mode<synchronous>, transform_indices = @transform_0, window_bounds = array<i64: 16, 4096>}, {transform_indices = @transform_1, window_bounds = array<i64: 4096, 512>}, {transform_indices = @transform_2, window_bounds = array<i64: 1, 512>}, {transform_indices = @transform_3, window_bounds = array<i64: 1, 512>}, {transform_indices = @transform_4, window_bounds = array<i64: 16, 512>}]} {
    %c0 = arith.constant 0 : index
    %c0_0 = arith.constant 0 : index
    %0 = vector.load %arg1[%c0, %c0_0] : memref<16x4096xbf16, #tpu.memory_space<vmem>>, vector<16x4096xbf16>
    %c0_1 = arith.constant 0 : index
    %c0_2 = arith.constant 0 : index
    %1 = vector.load %arg2[%c0_1, %c0_2] : memref<4096x512xbf16, #tpu.memory_space<vmem>>, vector<4096x512xbf16>
    %cst = arith.constant dense<0.000000e+00> : vector<16x512xf32>
    %2 = tpu.matmul %0, %1, %cst {dimension_numbers = #tpu.dot_dimension_numbers<[1], [0], [0], [1], [0, 0, 1, 1], [], []>} : vector<16x4096xbf16>, vector<4096x512xbf16>, vector<16x512xf32> -> vector<16x512xf32>
    %3 = tpu.iota {dimensions = array<i32: 0>} : vector<16x1xi32>
    %c8_i32 = arith.constant 8 : i32
    %4 = vector.broadcast %c8_i32 : i32 to vector<16x1xi32>
    %5 = arith.cmpi slt, %3, %4 : vector<16x1xi32>
    %6 = arith.extui %5 : vector<16x1xi1> to vector<16x1xi32>
    %7 = arith.sitofp %6 : vector<16x1xi32> to vector<16x1xf32>
    %8 = vector.broadcast %7 : vector<16x1xf32> to vector<16x512xf32>
    %9 = arith.mulf %2, %8 : vector<16x512xf32>
    %cst_3 = arith.constant dense<0.000000e+00> : vector<512xf32>
    %10 = vector.multi_reduction <add>, %9, %cst_3 [0] : vector<16x512xf32> to vector<512xf32>
    %11 = vector.shape_cast %10 : vector<512xf32> to vector<1x512xf32>
    %cst_4 = arith.constant 1.250000e-01 : f32
    %12 = vector.broadcast %cst_4 : f32 to vector<1x512xf32>
    %13 = arith.mulf %11, %12 : vector<1x512xf32>
    %14 = vector.broadcast %13 : vector<1x512xf32> to vector<16x512xf32>
    %15 = arith.subf %2, %14 : vector<16x512xf32>
    %16 = vector.broadcast %7 : vector<16x1xf32> to vector<16x512xf32>
    %17 = arith.mulf %15, %16 : vector<16x512xf32>
    %18 = arith.mulf %17, %17 : vector<16x512xf32>
    %cst_5 = arith.constant dense<0.000000e+00> : vector<512xf32>
    %19 = vector.multi_reduction <add>, %18, %cst_5 [0] : vector<16x512xf32> to vector<512xf32>
    %20 = vector.shape_cast %19 : vector<512xf32> to vector<1x512xf32>
    %cst_6 = arith.constant 1.250000e-01 : f32
    %21 = vector.broadcast %cst_6 : f32 to vector<1x512xf32>
    %22 = arith.mulf %20, %21 : vector<1x512xf32>
    %23 = vector.broadcast %13 : vector<1x512xf32> to vector<16x512xf32>
    %24 = arith.subf %2, %23 : vector<16x512xf32>
    %cst_7 = arith.constant 9.99999974E-6 : f32
    %25 = vector.broadcast %cst_7 : f32 to vector<1x512xf32>
    %26 = arith.addf %22, %25 : vector<1x512xf32>
    %27 = math.rsqrt %26 : vector<1x512xf32>
    %28 = vector.broadcast %27 : vector<1x512xf32> to vector<16x512xf32>
    %29 = arith.mulf %24, %28 : vector<16x512xf32>
    %c0_8 = arith.constant 0 : index
    %c0_9 = arith.constant 0 : index
    %30 = vector.load %arg3[%c0_8, %c0_9] : memref<1x512xf32, #tpu.memory_space<vmem>>, vector<1x512xf32>
    %31 = vector.broadcast %30 : vector<1x512xf32> to vector<16x512xf32>
    %32 = arith.mulf %29, %31 : vector<16x512xf32>
    %c0_10 = arith.constant 0 : index
    %c0_11 = arith.constant 0 : index
    %33 = vector.load %arg4[%c0_10, %c0_11] : memref<1x512xf32, #tpu.memory_space<vmem>>, vector<1x512xf32>
    %34 = vector.broadcast %33 : vector<1x512xf32> to vector<16x512xf32>
    %35 = arith.addf %32, %34 : vector<16x512xf32>
    %cst_12 = arith.constant 0.000000e+00 : f32
    %36 = vector.broadcast %cst_12 : f32 to vector<16x512xf32>
    %37 = arith.cmpf oge, %35, %36 : vector<16x512xf32>
    %cst_13 = arith.constant 2.000000e-01 : f32
    %38 = vector.broadcast %cst_13 : f32 to vector<16x512xf32>
    %39 = arith.mulf %38, %35 : vector<16x512xf32>
    %40 = arith.select %37, %35, %39 : vector<16x512xi1>, vector<16x512xf32>
    %41 = arith.truncf %40 : vector<16x512xf32> to vector<16x512xbf16>
    %c0_14 = arith.constant 0 : index
    %c0_15 = arith.constant 0 : index
    %42 = vector.load %arg5[%c0_14, %c0_15] : memref<16x512xbf16, #tpu.memory_space<vmem>>, vector<16x512xbf16>
    tpu.vector_store %arg5[%c0_14, %c0_15], %41 {strides = array<i32>} : memref<16x512xbf16, #tpu.memory_space<vmem>>, vector<16x512xbf16>,
    return
  }
  func.func @transform_0(%arg0: i32) -> (i32, i32) {
    %c0_i32 = arith.constant 0 : i32
    %c0_i32_0 = arith.constant 0 : i32
    %c0_i32_1 = arith.constant 0 : i32
    return %c0_i32, %c0_i32_0 : i32, i32
  }
  func.func @transform_1(%arg0: i32) -> (i32, i32) {
    %c0_i32 = arith.constant 0 : i32
    %c0_i32_0 = arith.constant 0 : i32
    return %c0_i32, %arg0 : i32, i32
  }
  func.func @transform_2(%arg0: i32) -> (i32, i32) {
    %c0_i32 = arith.constant 0 : i32
    %c0_i32_0 = arith.constant 0 : i32
    return %c0_i32, %arg0 : i32, i32
  }
  func.func @transform_3(%arg0: i32) -> (i32, i32) {
    %c0_i32 = arith.constant 0 : i32
    %c0_i32_0 = arith.constant 0 : i32
    return %c0_i32, %arg0 : i32, i32
  }
  func.func @transform_4(%arg0: i32) -> (i32, i32) {
    %c0_i32 = arith.constant 0 : i32
    %c0_i32_0 = arith.constant 0 : i32
    return %c0_i32, %arg0 : i32, i32
  }
}

module attributes {stable_mosaic.version = 11 : i64} {
  func.func @_conv_bias_kernel(%arg0: i32, %arg1: memref<16x8192xbf16, #tpu.memory_space<vmem>>, %arg2: memref<8192x128xbf16, #tpu.memory_space<vmem>>, %arg3: memref<1x128xf32, #tpu.memory_space<vmem>>, %arg4: memref<16x128xf32, #tpu.memory_space<vmem>>) attributes {dimension_semantics = [#tpu.dimension_semantics<parallel>], iteration_bounds = array<i64: 1>, scalar_prefetch = 0 : i64, scratch_operands = 0 : i64, tpu.core_type = #tpu.core_type<tc>, window_params = [{pipeline_mode = #tpu.pipeline_mode<synchronous>, transform_indices = @transform_0, window_bounds = array<i64: 16, 8192>}, {transform_indices = @transform_1, window_bounds = array<i64: 8192, 128>}, {transform_indices = @transform_2, window_bounds = array<i64: 1, 128>}, {transform_indices = @transform_3, window_bounds = array<i64: 16, 128>}]} {
    %c0 = arith.constant 0 : index
    %c0_0 = arith.constant 0 : index
    %0 = vector.load %arg1[%c0, %c0_0] : memref<16x8192xbf16, #tpu.memory_space<vmem>>, vector<16x8192xbf16>
    %c0_1 = arith.constant 0 : index
    %c0_2 = arith.constant 0 : index
    %1 = vector.load %arg2[%c0_1, %c0_2] : memref<8192x128xbf16, #tpu.memory_space<vmem>>, vector<8192x128xbf16>
    %cst = arith.constant dense<0.000000e+00> : vector<16x128xf32>
    %2 = tpu.matmul %0, %1, %cst {dimension_numbers = #tpu.dot_dimension_numbers<[1], [0], [0], [1], [0, 0, 1, 1], [], []>} : vector<16x8192xbf16>, vector<8192x128xbf16>, vector<16x128xf32> -> vector<16x128xf32>
    %c0_3 = arith.constant 0 : index
    %c0_4 = arith.constant 0 : index
    %3 = vector.load %arg3[%c0_3, %c0_4] : memref<1x128xf32, #tpu.memory_space<vmem>>, vector<1x128xf32>
    %4 = vector.broadcast %3 : vector<1x128xf32> to vector<16x128xf32>
    %5 = arith.addf %2, %4 : vector<16x128xf32>
    %c0_5 = arith.constant 0 : index
    %c0_6 = arith.constant 0 : index
    %6 = vector.load %arg4[%c0_5, %c0_6] : memref<16x128xf32, #tpu.memory_space<vmem>>, vector<16x128xf32>
    tpu.vector_store %arg4[%c0_5, %c0_6], %5 {strides = array<i32>} : memref<16x128xf32, #tpu.memory_space<vmem>>, vector<16x128xf32>,
    return
  }
  func.func @transform_0(%arg0: i32) -> (i32, i32) {
    %c0_i32 = arith.constant 0 : i32
    %c0_i32_0 = arith.constant 0 : i32
    %c0_i32_1 = arith.constant 0 : i32
    return %c0_i32, %c0_i32_0 : i32, i32
  }
  func.func @transform_1(%arg0: i32) -> (i32, i32) {
    %c0_i32 = arith.constant 0 : i32
    %c0_i32_0 = arith.constant 0 : i32
    return %c0_i32, %arg0 : i32, i32
  }
  func.func @transform_2(%arg0: i32) -> (i32, i32) {
    %c0_i32 = arith.constant 0 : i32
    %c0_i32_0 = arith.constant 0 : i32
    return %c0_i32, %arg0 : i32, i32
  }
  func.func @transform_3(%arg0: i32) -> (i32, i32) {
    %c0_i32 = arith.constant 0 : i32
    %c0_i32_0 = arith.constant 0 : i32
    return %c0_i32, %arg0 : i32, i32
  }
}

</mosaic_0001>

<bundles_post_ra>
// kernel: discriminator_forward.5
= control target key start
LH: loop header
LB: loop body
LE: loop exit
PB: predicated region body
PF: predicated region fallthrough
CT: control target
= control target key end

     0   :  { %s1991_s1 = inlined_call_operand.vmem [shape: bf16[128,128], index: 1, kind: input, shape index: {}]   ;;  %s1992_s0 = inlined_call_operand.vmem [shape: bf16[512,128], index: 0, kind: input, shape index: {}]   ;;  %s1993_s2 = inlined_call_operand.vmem [shape: f32[1,128], index: 2, kind: input, shape index: {}]   ;;  %s1994_s3 = inlined_call_operand.vmem [shape: bf16[512,128], index: 3, kind: output, shape index: {}]  }
   0x1   :  { %v1643_v0 = vld [vmem:[%s1991_s1 + $0x38] sm:$0xff]   ;;  %v1644_v1 = vld [vmem:[%s1991_s1 + $0x30] sm:$0xff]   ;;  %v1645_v2 = vld [vmem:[%s1991_s1 + $0x28] sm:$0xff]  }
   0x2   :  { %1547 = vmatprep.subr.bf16.mxu0 %v1643_v0  ;;  %1627 = vmatprep.subr.bf16.mxu1 %v1643_v0  ;;  %v1646_v3 = vld [vmem:[%s1991_s1 + $0x20] sm:$0xff]   ;;  %v1647_v6 = vld [vmem:[%s1991_s1 + $0x18] sm:$0xff]   ;;  %v1648_v7 = vld [vmem:[%s1991_s1 + $0x10] sm:$0xff]  }
   0x3   :  { %1548 = vmatpush3.bf16.msra.mxu0 %v1643_v0  ;;  %1635 = vmatpush3.bf16.msra.mxu1 %v1643_v0  ;;  %v1651_v4 = vld [vmem:[%s1992_s0] sm:$0xff]   ;;  %v1649_v8 = vld [vmem:[%s1991_s1 + $0x8] sm:$0xff]   ;;  %v1655_v12 = vld [vmem:[%s1992_s0 + $0x10] sm:$0xff]  }
   0x4   :  { %1549 = vmatprep.subr.bf16.mxu0 %v1644_v1  ;;  %1628 = vmatprep.subr.bf16.mxu1 %v1644_v1  ;;  %v1652_v5 = vld [vmem:[%s1992_s0 + $0x80] sm:$0xff]   ;;  %v1653_v10 = vld [vmem:[%s1992_s0 + $0x8] sm:$0xff]   ;;  %v1656_v13 = vld [vmem:[%s1992_s0 + $0x90] sm:$0xff]  }
   0x5   :  { %1563 = vmatprep.mubr.bf16.mxu0 %v1651_v4  ;;  %1595 = vmatprep.mubr.bf16.mxu1 %v1652_v5  ;;  %v1650_v9 = vld [vmem:[%s1991_s1] sm:$0xff]   ;;  %v1654_v11 = vld [vmem:[%s1992_s0 + $0x88] sm:$0xff]   ;;  %v1657_v14 = vld [vmem:[%s1992_s0 + $0x18] sm:$0xff]  }
   0x6   :  { %v1658_v15 = vld [vmem:[%s1992_s0 + $0x98] sm:$0xff]   ;;  %v1659_v16 = vld [vmem:[%s1992_s0 + $0x20] sm:$0xff]   ;;  %v1661_v18 = vld [vmem:[%s1992_s0 + $0x28] sm:$0xff]  }
   0x7   :  { %1550 = vmatpush3.bf16.msra.mxu0 %v1644_v1  ;;  %1636 = vmatpush3.bf16.msra.mxu1 %v1644_v1  ;;  %v1660_v17 = vld [vmem:[%s1992_s0 + $0xa0] sm:$0xff]   ;;  %v1662_v19 = vld [vmem:[%s1992_s0 + $0xa8] sm:$0xff]   ;;  %v1663_v20 = vld [vmem:[%s1992_s0 + $0x30] sm:$0xff]  }
   0x8   :  { %1551 = vmatprep.subr.bf16.mxu0 %v1645_v2  ;;  %1629 = vmatprep.subr.bf16.mxu1 %v1645_v2  ;;  %v1664_v21 = vld [vmem:[%s1992_s0 + $0xb0] sm:$0xff]   ;;  %v1665_v22 = vld [vmem:[%s1992_s0 + $0x38] sm:$0xff]   ;;  %v1667_v24 = vld [vmem:[%s1992_s0 + $0x40] sm:$0xff]  }
   0x9   :  { %v1666_v23 = vld [vmem:[%s1992_s0 + $0xb8] sm:$0xff]   ;;  %v1668_v25 = vld [vmem:[%s1992_s0 + $0xc0] sm:$0xff]   ;;  %v1669_v26 = vld [vmem:[%s1992_s0 + $0x48] sm:$0xff]  }
   0xa   :  { %v1670_v27 = vld [vmem:[%s1992_s0 + $0xc8] sm:$0xff]   ;;  %v1671_v28 = vld [vmem:[%s1992_s0 + $0x50] sm:$0xff]   ;;  %v1673_v30 = vld [vmem:[%s1992_s0 + $0x58] sm:$0xff]  }
   0xb   :  { %1552 = vmatpush3.bf16.msra.mxu0 %v1645_v2  ;;  %1637 = vmatpush3.bf16.msra.mxu1 %v1645_v2  ;;  %v1672_v29 = vld [vmem:[%s1992_s0 + $0xd0] sm:$0xff]   ;;  %v1674_v31 = vld [vmem:[%s1992_s0 + $0xd8] sm:$0xff]   ;;  %v1675_v32 = vld [vmem:[%s1992_s0 + $0x60] sm:$0xff]  }
   0xc   :  { %1553 = vmatprep.subr.bf16.mxu0 %v1646_v3  ;;  %1630 = vmatprep.subr.bf16.mxu1 %v1646_v3  ;;  %v1676_v33 = vld [vmem:[%s1992_s0 + $0xe0] sm:$0xff]   ;;  %v1677_v34 = vld [vmem:[%s1992_s0 + $0x68] sm:$0xff]   ;;  %v1679_v36 = vld [vmem:[%s1992_s0 + $0x70] sm:$0xff]  }
   0xd   :  { %v1678_v35 = vld [vmem:[%s1992_s0 + $0xe8] sm:$0xff]   ;;  %v1680_v37 = vld [vmem:[%s1992_s0 + $0xf0] sm:$0xff]   ;;  %v1681_v38 = vld [vmem:[%s1992_s0 + $0x78] sm:$0xff]  }
   0xe   :  { %v1682_v39 = vld [vmem:[%s1992_s0 + $0xf8] sm:$0xff]   ;;  %v1826_v40 = vld [vmem:[%s1993_s2] ss:$0 sm:$0xff] }
   0xf   :  { %1554 = vmatpush3.bf16.msra.mxu0 %v1646_v3  ;;  %1638 = vmatpush3.bf16.msra.mxu1 %v1646_v3 }
  0x10   :  { %1555 = vmatprep.subr.bf16.mxu0 %v1647_v6  ;;  %1631 = vmatprep.subr.bf16.mxu1 %v1647_v6 }
  0x13   :  { %1556 = vmatpush3.bf16.msra.mxu0 %v1647_v6  ;;  %1639 = vmatpush3.bf16.msra.mxu1 %v1647_v6 }
  0x14   :  { %1557 = vmatprep.subr.bf16.mxu0 %v1648_v7  ;;  %1632 = vmatprep.subr.bf16.mxu1 %v1648_v7 }
  0x17   :  { %1558 = vmatpush3.bf16.msra.mxu0 %v1648_v7  ;;  %1640 = vmatpush3.bf16.msra.mxu1 %v1648_v7 }
  0x18   :  { %1559 = vmatprep.subr.bf16.mxu0 %v1649_v8  ;;  %1633 = vmatprep.subr.bf16.mxu1 %v1649_v8 }
  0x1b   :  { %1560 = vmatpush3.bf16.msra.mxu0 %v1649_v8  ;;  %1641 = vmatpush3.bf16.msra.mxu1 %v1649_v8 }
  0x1c   :  { %1561 = vmatprep.subr.bf16.mxu0 %v1650_v9  ;;  %1634 = vmatprep.subr.bf16.mxu1 %v1650_v9 }
  0x1f   :  { %1562 = vmatpush3.bf16.msra.mxu0 %v1650_v9  ;;  %1642 = vmatpush3.bf16.msra.mxu1 %v1650_v9 }
  0x22   :  { %1564 = vmatmul.mubr.bf16.vlgmr.msra.gmra.mxu0 %v1653_v10  ;;  %1596 = vmatmul.mubr.bf16.vlgmr.msra.gmra.mxu1 %v1654_v11 }
  0x23   :  { %1567 = vmatprep.mubr.bf16.mxu0 %v1655_v12  ;;  %1599 = vmatprep.mubr.bf16.mxu1 %v1656_v13 }
  0x2a   :  { %1568 = vmatmul.mubr.bf16.gmra.mxu0 %v1657_v14  ;;  %1600 = vmatmul.mubr.bf16.gmra.mxu1 %v1658_v15 }
  0x2b   :  { %1571 = vmatprep.mubr.bf16.mxu0 %v1659_v16  ;;  %1603 = vmatprep.mubr.bf16.mxu1 %v1660_v17 }
  0x32   :  { %1572 = vmatmul.mubr.bf16.gmra.mxu0 %v1661_v18  ;;  %1604 = vmatmul.mubr.bf16.gmra.mxu1 %v1662_v19 }
  0x33   :  { %1575 = vmatprep.mubr.bf16.mxu0 %v1663_v20  ;;  %1607 = vmatprep.mubr.bf16.mxu1 %v1664_v21 }
  0x3a   :  { %1576 = vmatmul.mubr.bf16.gmra.mxu0 %v1665_v22  ;;  %1608 = vmatmul.mubr.bf16.gmra.mxu1 %v1666_v23 }
  0x3b   :  { %1579 = vmatprep.mubr.bf16.mxu0 %v1667_v24  ;;  %1611 = vmatprep.mubr.bf16.mxu1 %v1668_v25 }
  0x42   :  { %1580 = vmatmul.mubr.bf16.gmra.mxu0 %v1669_v26  ;;  %1612 = vmatmul.mubr.bf16.gmra.mxu1 %v1670_v27 }
  0x43   :  { %1583 = vmatprep.mubr.bf16.mxu0 %v1671_v28  ;;  %1615 = vmatprep.mubr.bf16.mxu1 %v1672_v29 }
  0x4a   :  { %1584 = vmatmul.mubr.bf16.gmra.mxu0 %v1673_v30  ;;  %1616 = vmatmul.mubr.bf16.gmra.mxu1 %v1674_v31 }
  0x4b   :  { %1587 = vmatprep.mubr.bf16.mxu0 %v1675_v32  ;;  %1619 = vmatprep.mubr.bf16.mxu1 %v1676_v33 }
  0x52   :  { %1588 = vmatmul.mubr.bf16.gmra.mxu0 %v1677_v34  ;;  %1620 = vmatmul.mubr.bf16.gmra.mxu1 %v1678_v35 }
  0x53   :  { %1591 = vmatprep.mubr.bf16.mxu0 %v1679_v36  ;;  %1623 = vmatprep.mubr.bf16.mxu1 %v1680_v37 }
  0x5a   :  { %1592 = vmatmul.mubr.bf16.gmra.mxu0 %v1681_v38  ;;  %1624 = vmatmul.mubr.bf16.gmra.mxu1 %v1682_v39 }
  0xe2   :  { %v1565_v41 = vpop.f32.mrf.mxu0  ;;  %v1597_v42 = vpop.f32.mrf.mxu1 }
  0xe3   :  { %v385_v43 = vadd.f32 %v1565_v41, %v1826_v40  ;;  %v513_v44 = vadd.f32 %v1597_v42, %v1826_v40 }
  0xe4   :  { %v376_v45 = vpop.f32.mrf.mxu0  ;;  %v504_v46 = vpop.f32.mrf.mxu1 }
  0xe5   :  { %vm633_vm0 = vcmp.ge.f32.partialorder %v385_v43, 0.0  ;;  %v697_v47 = vmul.f32 0.2, %v385_v43  ;;  %vm665_vm1 = vcmp.ge.f32.partialorder %v513_v44, 0.0  ;;  %v729_v48 = vmul.f32 0.2, %v513_v44 }
  0xe6   :  { %v377_v49 = vadd.f32 %v1826_v40, %v376_v45  ;;  %v505_v50 = vadd.f32 %v1826_v40, %v504_v46  ;;  %v1566_v51 = vpop.f32.mrf.mxu0  ;;  %v1598_v52 = vpop.f32.mrf.mxu1 }
  0xe7   :  { %v761_v53 = vsel %vm633_vm0, %v385_v43, %v697_v47  ;;  %v388_v54 = vadd.f32 %v1566_v51, %v1826_v40  ;;  %v516_v55 = vadd.f32 %v1598_v52, %v1826_v40  ;;  %v793_v56 = vsel %vm665_vm1, %v513_v44, %v729_v48 }
  0xe8   :  { %vm631_vm2 = vcmp.ge.f32.partialorder %v377_v49, 0.0  ;;  %v695_v57 = vmul.f32 0.2, %v377_v49  ;;  %vm663_vm3 = vcmp.ge.f32.partialorder %v505_v50, 0.0  ;;  %v379_v58 = vpop.f32.mrf.mxu0  ;;  %v507_v59 = vpop.f32.mrf.mxu1  ;;  %v727_v63 = vmul.f32 0.2, %v505_v50 }
  0xe9   :  { %vm634_vm4 = vcmp.ge.f32.partialorder %v388_v54, 0.0  ;;  %v698_v60 = vmul.f32 0.2, %v388_v54  ;;  %vm666_vm5 = vcmp.ge.f32.partialorder %v516_v55, 0.0  ;;  %v730_v61 = vmul.f32 0.2, %v516_v55 }
  0xea   :  { %v759_v62 = vsel %vm631_vm2, %v377_v49, %v695_v57  ;;  %v380_v0 = vadd.f32 %v1826_v40, %v379_v58  ;;  %v508_v1 = vadd.f32 %v1826_v40, %v507_v59  ;;  %v1569_v2 = vpop.f32.mrf.mxu0  ;;  %v1601_v3 = vpop.f32.mrf.mxu1  ;;  %v791_v15 = vsel %vm663_vm3, %v505_v50, %v727_v63 }
  0xeb   :  { %v762_v4 = vsel %vm634_vm4, %v388_v54, %v698_v60  ;;  %v794_v5 = vsel %vm666_vm5, %v516_v55, %v730_v61  ;;  %v401_v6 = vadd.f32 %v1569_v2, %v1826_v40  ;;  %v529_v7 = vadd.f32 %v1601_v3, %v1826_v40 }
  0xec   :  { %v1324_v8 = vpack.c.bf16 %v762_v4, %v761_v53  ;;  %v1404_v9 = vpack.c.bf16 %v794_v5, %v793_v56  ;;  %vm632_vm6 = vcmp.ge.f32.partialorder %v380_v0, 0.0  ;;  %v696_v10 = vmul.f32 0.2, %v380_v0  ;;  %v392_v11 = vpop.f32.mrf.mxu0  ;;  %v520_v12 = vpop.f32.mrf.mxu1 }
  0xed   :  { %vm664_vm7 = vcmp.ge.f32.partialorder %v508_v1, 0.0  ;;  %v728_v13 = vmul.f32 0.2, %v508_v1  ;;  %vm637_vm8 = vcmp.ge.f32.partialorder %v401_v6, 0.0  ;;  %v701_v14 = vmul.f32 0.2, %v401_v6 }
  0xee   :  { %1476 = vst [vmem:[%s1994_s3 + $0x8] sm:$0xff] %v1324_v8   ;;  %1492 = vst [vmem:[%s1994_s3 + $0x88] sm:$0xff] %v1404_v9   ;;  %v760_v16 = vsel %vm632_vm6, %v380_v0, %v696_v10  ;;  %v733_v17 = vmul.f32 0.2, %v529_v7  ;;  %v393_v18 = vadd.f32 %v1826_v40, %v392_v11  ;;  %v1570_v19 = vpop.f32.mrf.mxu0  ;;  %v1602_v20 = vpop.f32.mrf.mxu1  ;;  %vm669_vm9 = vcmp.ge.f32.partialorder %v529_v7, 0.0 }
  0xef   :  { %v1319_v21 = vpack.c.bf16 %v760_v16, %v759_v62  ;;  %v792_v22 = vsel %vm664_vm7, %v508_v1, %v728_v13  ;;  %v521_v23 = vadd.f32 %v1826_v40, %v520_v12  ;;  %v765_v25 = vsel %vm637_vm8, %v401_v6, %v701_v14 }
  0xf0   :  { %v1399_v24 = vpack.c.bf16 %v792_v22, %v791_v15  ;;  %vm635_vm10 = vcmp.ge.f32.partialorder %v393_v18, 0.0  ;;  %v699_v26 = vmul.f32 0.2, %v393_v18  ;;  %v395_v27 = vpop.f32.mrf.mxu0  ;;  %v523_v28 = vpop.f32.mrf.mxu1  ;;  %v404_v30 = vadd.f32 %v1570_v19, %v1826_v40 }
  0xf1   :  { %1320 = vst [vmem:[%s1994_s3] sm:$0xff] %v1319_v21   ;;  %vm667_vm11 = vcmp.ge.f32.partialorder %v521_v23, 0.0  ;;  %v731_v29 = vmul.f32 0.2, %v521_v23  ;;  %v532_v31 = vadd.f32 %v1602_v20, %v1826_v40  ;;  %v797_v32 = vsel %vm669_vm9, %v529_v7, %v733_v17 }
  0xf2   :  { %1491 = vst [vmem:[%s1994_s3 + $0x80] sm:$0xff] %v1399_v24   ;;  %v763_v33 = vsel %vm635_vm10, %v393_v18, %v699_v26  ;;  %v396_v34 = vadd.f32 %v1826_v40, %v395_v27  ;;  %v524_v35 = vadd.f32 %v1826_v40, %v523_v28  ;;  %v1573_v36 = vpop.f32.mrf.mxu0  ;;  %v1605_v37 = vpop.f32.mrf.mxu1  ;;  %vm638_vm12 = vcmp.ge.f32.partialorder %v404_v30, 0.0 }
  0xf3   :  { %v795_v38 = vsel %vm667_vm11, %v521_v23, %v731_v29  ;;  %v702_v39 = vmul.f32 0.2, %v404_v30  ;;  %vm670_vm13 = vcmp.ge.f32.partialorder %v532_v31, 0.0  ;;  %v734_v41 = vmul.f32 0.2, %v532_v31 }
  0xf4   :  { %vm636_vm14 = vcmp.ge.f32.partialorder %v396_v34, 0.0  ;;  %v700_v42 = vmul.f32 0.2, %v396_v34  ;;  %vm668_vm15 = vcmp.ge.f32.partialorder %v524_v35, 0.0  ;;  %v408_v43 = vpop.f32.mrf.mxu0  ;;  %v536_v44 = vpop.f32.mrf.mxu1  ;;  %v732_v46 = vmul.f32 0.2, %v524_v35 }
  0xf5   :  { %v766_v45 = vsel %vm638_vm12, %v404_v30, %v702_v39  ;;  %v417_v47 = vadd.f32 %v1573_v36, %v1826_v40  ;;  %v545_v48 = vadd.f32 %v1605_v37, %v1826_v40  ;;  %v798_v50 = vsel %vm670_vm13, %v532_v31, %v734_v41 }
  0xf6   :  { %v1334_v49 = vpack.c.bf16 %v766_v45, %v765_v25  ;;  %v764_v51 = vsel %vm636_vm14, %v396_v34, %v700_v42  ;;  %v409_v52 = vadd.f32 %v1826_v40, %v408_v43  ;;  %v1574_v53 = vpop.f32.mrf.mxu0  ;;  %v1606_v54 = vpop.f32.mrf.mxu1  ;;  %v1414_v55 = vpack.c.bf16 %v798_v50, %v797_v32 }
  0xf7   :  { %v1329_v56 = vpack.c.bf16 %v764_v51, %v763_v33  ;;  %v796_v57 = vsel %vm668_vm15, %v524_v35, %v732_v46  ;;  %vm641_vm0 = vcmp.ge.f32.partialorder %v417_v47, 0.0  ;;  %v705_v59 = vmul.f32 0.2, %v417_v47 }
  0xf8   :  { %1478 = vst [vmem:[%s1994_s3 + $0x18] sm:$0xff] %v1334_v49   ;;  %v1409_v58 = vpack.c.bf16 %v796_v57, %v795_v38  ;;  %vm673_vm1 = vcmp.ge.f32.partialorder %v545_v48, 0.0  ;;  %v737_v60 = vmul.f32 0.2, %v545_v48  ;;  %v411_v61 = vpop.f32.mrf.mxu0  ;;  %v539_v62 = vpop.f32.mrf.mxu1  ;;  %1494 = vst [vmem:[%s1994_s3 + $0x98] sm:$0xff] %v1414_v55   ;;  %vm639_vm2 = vcmp.ge.f32.partialorder %v409_v52, 0.0 }
  0xf9   :  { %1477 = vst [vmem:[%s1994_s3 + $0x10] sm:$0xff] %v1329_v56   ;;  %v703_v63 = vmul.f32 0.2, %v409_v52  ;;  %v537_v0 = vadd.f32 %v1826_v40, %v536_v44  ;;  %v420_v1 = vadd.f32 %v1574_v53, %v1826_v40  ;;  %v769_v2 = vsel %vm641_vm0, %v417_v47, %v705_v59 }
  0xfa   :  { %1493 = vst [vmem:[%s1994_s3 + $0x90] sm:$0xff] %v1409_v58   ;;  %v801_v3 = vsel %vm673_vm1, %v545_v48, %v737_v60  ;;  %v548_v4 = vadd.f32 %v1606_v54, %v1826_v40  ;;  %v412_v5 = vadd.f32 %v1826_v40, %v411_v61  ;;  %v1577_v6 = vpop.f32.mrf.mxu0  ;;  %v1609_v7 = vpop.f32.mrf.mxu1  ;;  %v540_v16 = vadd.f32 %v1826_v40, %v539_v62 }
  0xfb   :  { %v767_v8 = vsel %vm639_vm2, %v409_v52, %v703_v63  ;;  %vm671_vm3 = vcmp.ge.f32.partialorder %v537_v0, 0.0  ;;  %v735_v9 = vmul.f32 0.2, %v537_v0  ;;  %vm642_vm4 = vcmp.ge.f32.partialorder %v420_v1, 0.0 }
  0xfc   :  { %v706_v10 = vmul.f32 0.2, %v420_v1  ;;  %vm674_vm5 = vcmp.ge.f32.partialorder %v548_v4, 0.0  ;;  %v738_v11 = vmul.f32 0.2, %v548_v4  ;;  %vm640_vm6 = vcmp.ge.f32.partialorder %v412_v5, 0.0  ;;  %v424_v12 = vpop.f32.mrf.mxu0  ;;  %v552_v13 = vpop.f32.mrf.mxu1 }
  0xfd   :  { %v799_v14 = vsel %vm671_vm3, %v537_v0, %v735_v9  ;;  %v704_v15 = vmul.f32 0.2, %v412_v5  ;;  %v433_v17 = vadd.f32 %v1577_v6, %v1826_v40  ;;  %v561_v20 = vadd.f32 %v1609_v7, %v1826_v40 }
  0xfe   :  { %v770_v18 = vsel %vm642_vm4, %v420_v1, %v706_v10  ;;  %v802_v19 = vsel %vm674_vm5, %v548_v4, %v738_v11  ;;  %v425_v21 = vadd.f32 %v1826_v40, %v424_v12  ;;  %v1578_v22 = vpop.f32.mrf.mxu0  ;;  %v1610_v23 = vpop.f32.mrf.mxu1  ;;  %vm672_vm7 = vcmp.ge.f32.partialorder %v540_v16, 0.0 }
  0xff   :  { %v1344_v24 = vpack.c.bf16 %v770_v18, %v769_v2  ;;  %v1424_v25 = vpack.c.bf16 %v802_v19, %v801_v3  ;;  %v768_v26 = vsel %vm640_vm6, %v412_v5, %v704_v15  ;;  %v736_v28 = vmul.f32 0.2, %v540_v16 }
 0x100   :  { %v1339_v27 = vpack.c.bf16 %v768_v26, %v767_v8  ;;  %vm645_vm8 = vcmp.ge.f32.partialorder %v433_v17, 0.0  ;;  %v709_v29 = vmul.f32 0.2, %v433_v17  ;;  %v427_v30 = vpop.f32.mrf.mxu0  ;;  %v555_v31 = vpop.f32.mrf.mxu1  ;;  %vm677_vm9 = vcmp.ge.f32.partialorder %v561_v20, 0.0 }
 0x101   :  { %1480 = vst [vmem:[%s1994_s3 + $0x28] sm:$0xff] %v1344_v24   ;;  %1496 = vst [vmem:[%s1994_s3 + $0xa8] sm:$0xff] %v1424_v25   ;;  %v741_v32 = vmul.f32 0.2, %v561_v20  ;;  %vm643_vm10 = vcmp.ge.f32.partialorder %v425_v21, 0.0  ;;  %v800_v34 = vsel %vm672_vm7, %v540_v16, %v736_v28  ;;  %v553_v36 = vadd.f32 %v1826_v40, %v552_v13 }
 0x102   :  { %v707_v33 = vmul.f32 0.2, %v425_v21  ;;  %1479 = vst [vmem:[%s1994_s3 + $0x20] sm:$0xff] %v1339_v27   ;;  %v773_v35 = vsel %vm645_vm8, %v433_v17, %v709_v29  ;;  %v436_v37 = vadd.f32 %v1578_v22, %v1826_v40  ;;  %v1581_v38 = vpop.f32.mrf.mxu0  ;;  %v1613_v39 = vpop.f32.mrf.mxu1  ;;  %v1419_v41 = vpack.c.bf16 %v800_v34, %v799_v14 }
 0x103   :  { %v805_v42 = vsel %vm677_vm9, %v561_v20, %v741_v32  ;;  %v564_v44 = vadd.f32 %v1610_v23, %v1826_v40  ;;  %vm675_vm11 = vcmp.ge.f32.partialorder %v553_v36, 0.0  ;;  %v739_v45 = vmul.f32 0.2, %v553_v36 }
 0x104   :  { %v771_v43 = vsel %vm643_vm10, %v425_v21, %v707_v33  ;;  %vm646_vm12 = vcmp.ge.f32.partialorder %v436_v37, 0.0  ;;  %v710_v46 = vmul.f32 0.2, %v436_v37  ;;  %v440_v47 = vpop.f32.mrf.mxu0  ;;  %v568_v48 = vpop.f32.mrf.mxu1  ;;  %1495 = vst [vmem:[%s1994_s3 + $0xa0] sm:$0xff] %v1419_v41   ;;  %v428_v50 = vadd.f32 %v1826_v40, %v427_v30 }
 0x105   :  { %vm678_vm13 = vcmp.ge.f32.partialorder %v564_v44, 0.0  ;;  %v742_v49 = vmul.f32 0.2, %v564_v44  ;;  %v556_v51 = vadd.f32 %v1826_v40, %v555_v31  ;;  %v803_v52 = vsel %vm675_vm11, %v553_v36, %v739_v45 }
 0x106   :  { %v774_v53 = vsel %vm646_vm12, %v436_v37, %v710_v46  ;;  %v449_v54 = vadd.f32 %v1581_v38, %v1826_v40  ;;  %v577_v55 = vadd.f32 %v1613_v39, %v1826_v40  ;;  %v1582_v56 = vpop.f32.mrf.mxu0  ;;  %v1614_v57 = vpop.f32.mrf.mxu1  ;;  %vm644_vm14 = vcmp.ge.f32.partialorder %v428_v50, 0.0 }
 0x107   :  { %v1354_v58 = vpack.c.bf16 %v774_v53, %v773_v35  ;;  %v806_v59 = vsel %vm678_vm13, %v564_v44, %v742_v49  ;;  %v708_v60 = vmul.f32 0.2, %v428_v50  ;;  %vm676_vm15 = vcmp.ge.f32.partialorder %v556_v51, 0.0 }
 0x108   :  { %v1434_v61 = vpack.c.bf16 %v806_v59, %v805_v42  ;;  %v740_v62 = vmul.f32 0.2, %v556_v51  ;;  %vm649_vm0 = vcmp.ge.f32.partialorder %v449_v54, 0.0  ;;  %v443_v63 = vpop.f32.mrf.mxu0  ;;  %v571_v0 = vpop.f32.mrf.mxu1  ;;  %v713_v2 = vmul.f32 0.2, %v449_v54 }
 0x109   :  { %1482 = vst [vmem:[%s1994_s3 + $0x38] sm:$0xff] %v1354_v58   ;;  %v772_v1 = vsel %vm644_vm14, %v428_v50, %v708_v60  ;;  %vm681_vm1 = vcmp.ge.f32.partialorder %v577_v55, 0.0  ;;  %v745_v3 = vmul.f32 0.2, %v577_v55  ;;  %v441_v6 = vadd.f32 %v1826_v40, %v440_v47 }
 0x10a   :  { %1498 = vst [vmem:[%s1994_s3 + $0xb8] sm:$0xff] %v1434_v61   ;;  %v1349_v4 = vpack.c.bf16 %v772_v1, %v771_v43  ;;  %v804_v5 = vsel %vm676_vm15, %v556_v51, %v740_v62  ;;  %v569_v7 = vadd.f32 %v1826_v40, %v568_v48  ;;  %v1585_v8 = vpop.f32.mrf.mxu0  ;;  %v1617_v9 = vpop.f32.mrf.mxu1  ;;  %v777_v11 = vsel %vm649_vm0, %v449_v54, %v713_v2 }
 0x10b   :  { %v1429_v10 = vpack.c.bf16 %v804_v5, %v803_v52  ;;  %v809_v12 = vsel %vm681_vm1, %v577_v55, %v745_v3  ;;  %v452_v13 = vadd.f32 %v1582_v56, %v1826_v40  ;;  %vm647_vm2 = vcmp.ge.f32.partialorder %v441_v6, 0.0 }
 0x10c   :  { %1481 = vst [vmem:[%s1994_s3 + $0x30] sm:$0xff] %v1349_v4   ;;  %v711_v14 = vmul.f32 0.2, %v441_v6  ;;  %vm679_vm3 = vcmp.ge.f32.partialorder %v569_v7, 0.0  ;;  %v743_v15 = vmul.f32 0.2, %v569_v7  ;;  %v456_v16 = vpop.f32.mrf.mxu0  ;;  %v584_v17 = vpop.f32.mrf.mxu1  ;;  %v580_v19 = vadd.f32 %v1614_v57, %v1826_v40 }
 0x10d   :  { %1497 = vst [vmem:[%s1994_s3 + $0xb0] sm:$0xff] %v1429_v10   ;;  %vm650_vm4 = vcmp.ge.f32.partialorder %v452_v13, 0.0  ;;  %v714_v18 = vmul.f32 0.2, %v452_v13  ;;  %v444_v20 = vadd.f32 %v1826_v40, %v443_v63  ;;  %v572_v23 = vadd.f32 %v1826_v40, %v571_v0 }
 0x10e   :  { %v775_v21 = vsel %vm647_vm2, %v441_v6, %v711_v14  ;;  %v807_v22 = vsel %vm679_vm3, %v569_v7, %v743_v15  ;;  %v465_v24 = vadd.f32 %v1585_v8, %v1826_v40  ;;  %v1586_v25 = vpop.f32.mrf.mxu0  ;;  %v1618_v26 = vpop.f32.mrf.mxu1  ;;  %vm682_vm5 = vcmp.ge.f32.partialorder %v580_v19, 0.0 }
 0x10f   :  { %v778_v27 = vsel %vm650_vm4, %v452_v13, %v714_v18  ;;  %v746_v28 = vmul.f32 0.2, %v580_v19  ;;  %vm648_vm6 = vcmp.ge.f32.partialorder %v444_v20, 0.0  ;;  %v712_v30 = vmul.f32 0.2, %v444_v20 }
 0x110   :  { %v1364_v29 = vpack.c.bf16 %v778_v27, %v777_v11  ;;  %vm680_vm7 = vcmp.ge.f32.partialorder %v572_v23, 0.0  ;;  %v744_v31 = vmul.f32 0.2, %v572_v23  ;;  %v459_v32 = vpop.f32.mrf.mxu0  ;;  %v587_v33 = vpop.f32.mrf.mxu1  ;;  %vm653_vm8 = vcmp.ge.f32.partialorder %v465_v24, 0.0 }
 0x111   :  { %v810_v34 = vsel %vm682_vm5, %v580_v19, %v746_v28  ;;  %v717_v35 = vmul.f32 0.2, %v465_v24  ;;  %v593_v36 = vadd.f32 %v1617_v9, %v1826_v40  ;;  %v776_v38 = vsel %vm648_vm6, %v444_v20, %v712_v30 }
 0x112   :  { %1484 = vst [vmem:[%s1994_s3 + $0x48] sm:$0xff] %v1364_v29   ;;  %v1444_v37 = vpack.c.bf16 %v810_v34, %v809_v12  ;;  %v808_v39 = vsel %vm680_vm7, %v572_v23, %v744_v31  ;;  %v457_v41 = vadd.f32 %v1826_v40, %v456_v16  ;;  %v1589_v42 = vpop.f32.mrf.mxu0  ;;  %v1621_v43 = vpop.f32.mrf.mxu1  ;;  %v1359_v44 = vpack.c.bf16 %v776_v38, %v775_v21 }
 0x113   :  { %v1439_v45 = vpack.c.bf16 %v808_v39, %v807_v22  ;;  %v781_v46 = vsel %vm653_vm8, %v465_v24, %v717_v35  ;;  %vm685_vm9 = vcmp.ge.f32.partialorder %v593_v36, 0.0  ;;  %v749_v47 = vmul.f32 0.2, %v593_v36 }
 0x114   :  { %1500 = vst [vmem:[%s1994_s3 + $0xc8] sm:$0xff] %v1444_v37   ;;  %vm651_vm10 = vcmp.ge.f32.partialorder %v457_v41, 0.0  ;;  %v715_v48 = vmul.f32 0.2, %v457_v41  ;;  %v585_v49 = vadd.f32 %v1826_v40, %v584_v17  ;;  %v472_v50 = vpop.f32.mrf.mxu0  ;;  %v600_v51 = vpop.f32.mrf.mxu1  ;;  %1483 = vst [vmem:[%s1994_s3 + $0x40] sm:$0xff] %v1359_v44   ;;  %v468_v52 = vadd.f32 %v1586_v25, %v1826_v40 }
 0x115   :  { %1499 = vst [vmem:[%s1994_s3 + $0xc0] sm:$0xff] %v1439_v45   ;;  %v596_v53 = vadd.f32 %v1618_v26, %v1826_v40  ;;  %v460_v54 = vadd.f32 %v1826_v40, %v459_v32  ;;  %v588_v55 = vadd.f32 %v1826_v40, %v587_v33  ;;  %v813_v56 = vsel %vm685_vm9, %v593_v36, %v749_v47 }
 0x116   :  { %v779_v57 = vsel %vm651_vm10, %v457_v41, %v715_v48  ;;  %vm683_vm11 = vcmp.ge.f32.partialorder %v585_v49, 0.0  ;;  %v747_v58 = vmul.f32 0.2, %v585_v49  ;;  %v1590_v59 = vpop.f32.mrf.mxu0  ;;  %v1622_v60 = vpop.f32.mrf.mxu1  ;;  %vm654_vm12 = vcmp.ge.f32.partialorder %v468_v52, 0.0 }
 0x117   :  { %v718_v61 = vmul.f32 0.2, %v468_v52  ;;  %vm686_vm13 = vcmp.ge.f32.partialorder %v596_v53, 0.0  ;;  %v750_v62 = vmul.f32 0.2, %v596_v53  ;;  %vm652_vm14 = vcmp.ge.f32.partialorder %v460_v54, 0.0 }
 0x118   :  { %v811_v63 = vsel %vm683_vm11, %v585_v49, %v747_v58  ;;  %v716_v0 = vmul.f32 0.2, %v460_v54  ;;  %vm684_vm15 = vcmp.ge.f32.partialorder %v588_v55, 0.0  ;;  %v475_v1 = vpop.f32.mrf.mxu0  ;;  %v603_v2 = vpop.f32.mrf.mxu1  ;;  %v748_v5 = vmul.f32 0.2, %v588_v55 }
 0x119   :  { %v782_v3 = vsel %vm654_vm12, %v468_v52, %v718_v61  ;;  %v814_v4 = vsel %vm686_vm13, %v596_v53, %v750_v62  ;;  %v481_v6 = vadd.f32 %v1589_v42, %v1826_v40  ;;  %v609_v10 = vadd.f32 %v1621_v43, %v1826_v40 }
 0x11a   :  { %v1374_v7 = vpack.c.bf16 %v782_v3, %v781_v46  ;;  %v1454_v8 = vpack.c.bf16 %v814_v4, %v813_v56  ;;  %v780_v9 = vsel %vm652_vm14, %v460_v54, %v716_v0  ;;  %v1593_v11 = vpop.f32.mrf.mxu0  ;;  %v1625_v12 = vpop.f32.mrf.mxu1  ;;  %v812_v14 = vsel %vm684_vm15, %v588_v55, %v748_v5 }
 0x11b   :  { %v1369_v13 = vpack.c.bf16 %v780_v9, %v779_v57  ;;  %vm657_vm0 = vcmp.ge.f32.partialorder %v481_v6, 0.0  ;;  %v721_v15 = vmul.f32 0.2, %v481_v6  ;;  %v1449_v16 = vpack.c.bf16 %v812_v14, %v811_v63 }
 0x11c   :  { %1486 = vst [vmem:[%s1994_s3 + $0x58] sm:$0xff] %v1374_v7   ;;  %1502 = vst [vmem:[%s1994_s3 + $0xd8] sm:$0xff] %v1454_v8   ;;  %vm689_vm1 = vcmp.ge.f32.partialorder %v609_v10, 0.0  ;;  %v753_v17 = vmul.f32 0.2, %v609_v10  ;;  %v473_v18 = vadd.f32 %v1826_v40, %v472_v50  ;;  %v601_v19 = vadd.f32 %v1826_v40, %v600_v51  ;;  %v488_v25 = vpop.f32.mrf.mxu0  ;;  %v616_v26 = vpop.f32.mrf.mxu1 }
 0x11d   :  { %1485 = vst [vmem:[%s1994_s3 + $0x50] sm:$0xff] %v1369_v13   ;;  %v484_v20 = vadd.f32 %v1590_v59, %v1826_v40  ;;  %v612_v21 = vadd.f32 %v1622_v60, %v1826_v40  ;;  %1501 = vst [vmem:[%s1994_s3 + $0xd0] sm:$0xff] %v1449_v16   ;;  %v785_v22 = vsel %vm657_vm0, %v481_v6, %v721_v15 }
 0x11e   :  { %vm655_vm2 = vcmp.ge.f32.partialorder %v473_v18, 0.0  ;;  %v719_v23 = vmul.f32 0.2, %v473_v18  ;;  %v476_v24 = vadd.f32 %v1826_v40, %v475_v1  ;;  %v817_v27 = vsel %vm689_vm1, %v609_v10, %v753_v17  ;;  %v1594_v39 = vpop.f32.mrf.mxu0  ;;  %v1626_v41 = vpop.f32.mrf.mxu1 }
 0x11f   :  { %vm687_vm3 = vcmp.ge.f32.partialorder %v601_v19, 0.0  ;;  %vm658_vm4 = vcmp.ge.f32.partialorder %v484_v20, 0.0  ;;  %v722_v28 = vmul.f32 0.2, %v484_v20  ;;  %v751_v29 = vmul.f32 0.2, %v601_v19 }
 0x120   :  { %vm690_vm5 = vcmp.ge.f32.partialorder %v612_v21, 0.0  ;;  %v754_v30 = vmul.f32 0.2, %v612_v21  ;;  %vm656_vm6 = vcmp.ge.f32.partialorder %v476_v24, 0.0  ;;  %v783_v31 = vsel %vm655_vm2, %v473_v18, %v719_v23  ;;  %v491_v55 = vpop.f32.mrf.mxu0  ;;  %v619_v56 = vpop.f32.mrf.mxu1 }
 0x121   :  { %v786_v32 = vsel %vm658_vm4, %v484_v20, %v722_v28  ;;  %v720_v33 = vmul.f32 0.2, %v476_v24  ;;  %v604_v34 = vadd.f32 %v1826_v40, %v603_v2  ;;  %v497_v37 = vadd.f32 %v1593_v11, %v1826_v40 }
 0x122   :  { %v1384_v35 = vpack.c.bf16 %v786_v32, %v785_v22  ;;  %v818_v36 = vsel %vm690_vm5, %v612_v21, %v754_v30  ;;  %v625_v38 = vadd.f32 %v1625_v12, %v1826_v40  ;;  %v815_v45 = vsel %vm687_vm3, %v601_v19, %v751_v29 }
 0x123   :  { %v1464_v42 = vpack.c.bf16 %v818_v36, %v817_v27  ;;  %v784_v43 = vsel %vm656_vm6, %v476_v24, %v720_v33  ;;  %vm688_vm7 = vcmp.ge.f32.partialorder %v604_v34, 0.0  ;;  %v752_v44 = vmul.f32 0.2, %v604_v34 }
 0x124   :  { %1488 = vst [vmem:[%s1994_s3 + $0x68] sm:$0xff] %v1384_v35   ;;  %v1379_v46 = vpack.c.bf16 %v784_v43, %v783_v31  ;;  %vm661_vm8 = vcmp.ge.f32.partialorder %v497_v37, 0.0  ;;  %v725_v47 = vmul.f32 0.2, %v497_v37  ;;  %vm693_vm9 = vcmp.ge.f32.partialorder %v625_v38, 0.0 }
 0x125   :  { %1504 = vst [vmem:[%s1994_s3 + $0xe8] sm:$0xff] %v1464_v42   ;;  %v816_v48 = vsel %vm688_vm7, %v604_v34, %v752_v44  ;;  %v757_v49 = vmul.f32 0.2, %v625_v38  ;;  %v489_v50 = vadd.f32 %v1826_v40, %v488_v25  ;;  %v617_v52 = vadd.f32 %v1826_v40, %v616_v26 }
 0x126   :  { %1487 = vst [vmem:[%s1994_s3 + $0x60] sm:$0xff] %v1379_v46   ;;  %v1459_v51 = vpack.c.bf16 %v816_v48, %v815_v45  ;;  %v500_v53 = vadd.f32 %v1594_v39, %v1826_v40  ;;  %v628_v54 = vadd.f32 %v1626_v41, %v1826_v40  ;;  %v789_v57 = vsel %vm661_vm8, %v497_v37, %v725_v47 }
 0x127   :  { %v821_v58 = vsel %vm693_vm9, %v625_v38, %v757_v49  ;;  %v723_v60 = vmul.f32 0.2, %v489_v50  ;;  %v492_v62 = vadd.f32 %v1826_v40, %v491_v55  ;;  %v620_v63 = vadd.f32 %v1826_v40, %v619_v56 }
 0x128   :  { %1503 = vst [vmem:[%s1994_s3 + $0xe0] sm:$0xff] %v1459_v51   ;;  %vm662_vm10 = vcmp.ge.f32.partialorder %v500_v53, 0.0  ;;  %v726_v59 = vmul.f32 0.2, %v500_v53  ;;  %vm694_vm11 = vcmp.ge.f32.partialorder %v628_v54, 0.0  ;;  %vm659_vm12 = vcmp.ge.f32.partialorder %v489_v50, 0.0 }
 0x129   :  { %v758_v61 = vmul.f32 0.2, %v628_v54  ;;  %vm691_vm13 = vcmp.ge.f32.partialorder %v617_v52, 0.0  ;;  %v755_v0 = vmul.f32 0.2, %v617_v52  ;;  %vm660_vm14 = vcmp.ge.f32.partialorder %v492_v62, 0.0 }
 0x12a   :  { %v790_v1 = vsel %vm662_vm10, %v500_v53, %v726_v59  ;;  %v724_v4 = vmul.f32 0.2, %v492_v62  ;;  %vm692_vm15 = vcmp.ge.f32.partialorder %v620_v63, 0.0  ;;  %v756_v6 = vmul.f32 0.2, %v620_v63 }
 0x12b   :  { %v1394_v2 = vpack.c.bf16 %v790_v1, %v789_v57  ;;  %v822_v3 = vsel %vm694_vm11, %v628_v54, %v758_v61  ;;  %v787_v7 = vsel %vm659_vm12, %v489_v50, %v723_v60  ;;  %v819_v9 = vsel %vm691_vm13, %v617_v52, %v755_v0 }
 0x12c   :  { %v1474_v5 = vpack.c.bf16 %v822_v3, %v821_v58  ;;  %v788_v8 = vsel %vm660_vm14, %v492_v62, %v724_v4  ;;  %v820_v10 = vsel %vm692_vm15, %v620_v63, %v756_v6 }
 0x12d   :  { %1490 = vst [vmem:[%s1994_s3 + $0x78] sm:$0xff] %v1394_v2   ;;  %v1389_v40 = vpack.c.bf16 %v788_v8, %v787_v7  ;;  %v1469_v11 = vpack.c.bf16 %v820_v10, %v819_v9 }
 0x12e   :  { %1506 = vst [vmem:[%s1994_s3 + $0xf8] sm:$0xff] %v1474_v5  }
 0x12f   :  { %1489 = vst [vmem:[%s1994_s3 + $0x70] sm:$0xff] %v1389_v40   ;;  %1505 = vst [vmem:[%s1994_s3 + $0xf0] sm:$0xff] %v1469_v11  }

// kernel: discriminator_forward.6
= control target key start
LH: loop header
LB: loop body
LE: loop exit
PB: predicated region body
PF: predicated region fallthrough
CT: control target
= control target key end

     0   :  { %s4873_s1 = inlined_call_operand.vmem [shape: bf16[2048,128], index: 1, kind: input, shape index: {}]   ;;  %s4874_s0 = inlined_call_operand.vmem [shape: bf16[128,2048], index: 0, kind: input, shape index: {}]   ;;  %s4875_s2 = inlined_call_operand.vmem [shape: f32[1,128], index: 2, kind: input, shape index: {}]   ;;  %s4876_s3 = inlined_call_operand.vmem [shape: f32[1,128], index: 3, kind: input, shape index: {}]   ;;  %s4877_s4 = inlined_call_operand.vmem [shape: bf16[128,128], index: 4, kind: output, shape index: {}]  }
   0x1   :  { %v3707_v0 = vld [vmem:[%s4873_s1 + $0x78] sm:$0xff]   ;;  %v3711_v4 = vld [vmem:[%s4873_s1 + $0x70] sm:$0xff]   ;;  %v3715_v8 = vld [vmem:[%s4873_s1 + $0x68] sm:$0xff]  }
   0x2   :  { %v3708_v1 = vld [vmem:[%s4873_s1 + $0xf8] sm:$0xff]   ;;  %3195 = vmatprep.subr.bf16.mxu0 %v3707_v0  ;;  %v3712_v5 = vld [vmem:[%s4873_s1 + $0xf0] sm:$0xff]   ;;  %v3716_v9 = vld [vmem:[%s4873_s1 + $0xe8] sm:$0xff]  }
   0x3   :  { %v3709_v2 = vld [vmem:[%s4873_s1 + $0x38] sm:$0xff]   ;;  %3259 = vmatprep.subr.bf16.mxu1 %v3708_v1  ;;  %v3713_v6 = vld [vmem:[%s4873_s1 + $0x30] sm:$0xff]   ;;  %v3717_v10 = vld [vmem:[%s4873_s1 + $0x28] sm:$0xff]  }
   0x4   :  { %v3710_v3 = vld [vmem:[%s4873_s1 + $0xb8] sm:$0xff]   ;;  %3196 = vmatpush3.bf16.msra.mxu0 %v3709_v2  ;;  %v3714_v7 = vld [vmem:[%s4873_s1 + $0xb0] sm:$0xff]   ;;  %v3718_v11 = vld [vmem:[%s4873_s1 + $0xa8] sm:$0xff]  }
   0x5   :  { %3260 = vmatpush3.bf16.msra.mxu1 %v3710_v3  ;;  %3197 = vmatprep.subr.bf16.mxu0 %v3711_v4  ;;  %v3719_v12 = vld [vmem:[%s4873_s1 + $0x60] sm:$0xff]   ;;  %v3723_v16 = vld [vmem:[%s4873_s1 + $0x58] sm:$0xff]   ;;  %v3727_v20 = vld [vmem:[%s4873_s1 + $0x50] sm:$0xff]  }
   0x6   :  { %3261 = vmatprep.subr.bf16.mxu1 %v3712_v5  ;;  %v3720_v13 = vld [vmem:[%s4873_s1 + $0xe0] sm:$0xff]   ;;  %v3724_v17 = vld [vmem:[%s4873_s1 + $0xd8] sm:$0xff]   ;;  %v3728_v21 = vld [vmem:[%s4873_s1 + $0xd0] sm:$0xff]  }
   0x7   :  { %v3721_v14 = vld [vmem:[%s4873_s1 + $0x20] sm:$0xff]   ;;  %v3725_v18 = vld [vmem:[%s4873_s1 + $0x18] sm:$0xff]   ;;  %v3729_v22 = vld [vmem:[%s4873_s1 + $0x10] sm:$0xff]  }
   0x8   :  { %3198 = vmatpush3.bf16.msra.mxu0 %v3713_v6  ;;  %v3722_v15 = vld [vmem:[%s4873_s1 + $0xa0] sm:$0xff]   ;;  %v3726_v19 = vld [vmem:[%s4873_s1 + $0x98] sm:$0xff]   ;;  %v3730_v23 = vld [vmem:[%s4873_s1 + $0x90] sm:$0xff]  }
   0x9   :  { %3262 = vmatpush3.bf16.msra.mxu1 %v3714_v7  ;;  %3199 = vmatprep.subr.bf16.mxu0 %v3715_v8  ;;  %v3731_v24 = vld [vmem:[%s4873_s1 + $0x48] sm:$0xff]   ;;  %v3735_v28 = vld [vmem:[%s4873_s1 + $0x40] sm:$0xff]   ;;  %v3739_v40 = vld [vmem:[%s4873_s1 + $0x178] sm:$0xff]  }
   0xa   :  { %3263 = vmatprep.subr.bf16.mxu1 %v3716_v9  ;;  %v3732_v25 = vld [vmem:[%s4873_s1 + $0xc8] sm:$0xff]   ;;  %v3736_v29 = vld [vmem:[%s4873_s1 + $0xc0] sm:$0xff]   ;;  %v3740_v41 = vld [vmem:[%s4873_s1 + $0x138] sm:$0xff]  }
   0xb   :  { %v3733_v26 = vld [vmem:[%s4873_s1 + $0x8] sm:$0xff]   ;;  %v3737_v30 = vld [vmem:[%s4873_s1] sm:$0xff]   ;;  %v3741_v42 = vld [vmem:[%s4873_s1 + $0x1f8] sm:$0xff]  }
   0xc   :  { %3200 = vmatpush3.bf16.msra.mxu0 %v3717_v10  ;;  %v3734_v27 = vld [vmem:[%s4873_s1 + $0x88] sm:$0xff]   ;;  %v3738_v31 = vld [vmem:[%s4873_s1 + $0x80] sm:$0xff]   ;;  %v3742_v43 = vld [vmem:[%s4873_s1 + $0x1b8] sm:$0xff]  }
   0xd   :  { %3264 = vmatpush3.bf16.msra.mxu1 %v3718_v11  ;;  %3201 = vmatprep.subr.bf16.mxu0 %v3719_v12  ;;  %v18_v32 = vld [vmem:[%s4874_s0] sm:$0xff]  ;;  %v19_v34 = vld [vmem:[%s4874_s0 + $0x8] sm:$0xff]  ;;  %v3743_v50 = vld [vmem:[%s4873_s1 + $0x170] sm:$0xff]  }
   0xe   :  { %3265 = vmatprep.subr.bf16.mxu1 %v3720_v13  ;;  %v26_v33 = vld [vmem:[%s4874_s0 + $0x40] sm:$0xff]  ;;  %v27_v37 = vld [vmem:[%s4874_s0 + $0x48] sm:$0xff]  ;;  %v3744_v52 = vld [vmem:[%s4873_s1 + $0x130] sm:$0xff]  }
   0xf   :  { %v2858_v35 = vcombine.low %v18_v32, %v26_v33  ;;  %v2859_v36 = vcombine.high %v18_v32, %v26_v33  ;;  %v2860_v38 = vcombine.low %v19_v34, %v27_v37  ;;  %v2861_v39 = vcombine.high %v19_v34, %v27_v37  ;;  %v34_v44 = vld [vmem:[%s4874_s0 + $0x80] sm:$0xff]  ;;  %v35_v47 = vld [vmem:[%s4874_s0 + $0x88] sm:$0xff]  ;;  %v3745_v54 = vld [vmem:[%s4873_s1 + $0x1f0] sm:$0xff]  }
  0x10   :  { %3202 = vmatpush3.bf16.msra.mxu0 %v3721_v14  ;;  %v42_v45 = vld [vmem:[%s4874_s0 + $0xc0] sm:$0xff]  ;;  %v43_v48 = vld [vmem:[%s4874_s0 + $0xc8] sm:$0xff]  ;;  %v3746_v55 = vld [vmem:[%s4873_s1 + $0x1b0] sm:$0xff]  }
  0x11   :  { %3266 = vmatpush3.bf16.msra.mxu1 %v3722_v15  ;;  %3203 = vmatprep.subr.bf16.mxu0 %v3723_v16  ;;  %v2875_v46 = vcombine.high %v34_v44, %v42_v45  ;;  %v2877_v49 = vcombine.high %v35_v47, %v43_v48  ;;  %v2874_v51 = vcombine.low %v34_v44, %v42_v45  ;;  %v50_v56 = vld [vmem:[%s4874_s0 + $0x100] sm:$0xff]  ;;  %v51_v58 = vld [vmem:[%s4874_s0 + $0x108] sm:$0xff]  ;;  %v3761_v32 = vld [vmem:[%s4873_s1 + $0x1d0] sm:$0xff]  }
  0x12   :  { %3267 = vmatprep.subr.bf16.mxu1 %v3724_v17  ;;  %1842 = vmatprep.mubr.bf16.mxu0 %v2859_v36  ;;  %v2876_v53 = vcombine.low %v35_v47, %v43_v48  ;;  %v58_v57 = vld [vmem:[%s4874_s0 + $0x140] sm:$0xff]  ;;  %v59_v59 = vld [vmem:[%s4874_s0 + $0x148] sm:$0xff]  ;;  %v3762_v33 = vld [vmem:[%s4873_s1 + $0x190] sm:$0xff]  }
  0x13   :  { %1939 = vmatprep.mubr.bf16.mxu1 %v2861_v39  ;;  %v2891_v60 = vcombine.high %v50_v56, %v58_v57  ;;  %v2893_v61 = vcombine.high %v51_v58, %v59_v59  ;;  %v3747_v62 = vld [vmem:[%s4873_s1 + $0x168] sm:$0xff]   ;;  %v2890_v2 = vcombine.low %v50_v56, %v58_v57  ;;  %v66_v3 = vld [vmem:[%s4874_s0 + $0x180] sm:$0xff]  ;;  %v2892_v6 = vcombine.low %v51_v58, %v59_v59  ;;  %v3771_v56 = vld [vmem:[%s4873_s1 + $0x278] sm:$0xff]  }
  0x14   :  { %3204 = vmatpush3.bf16.msra.mxu0 %v3725_v18  ;;  %v3748_v63 = vld [vmem:[%s4873_s1 + $0x128] sm:$0xff]   ;;  %v74_v4 = vld [vmem:[%s4874_s0 + $0x1c0] sm:$0xff]  ;;  %v3755_v18 = vld [vmem:[%s4873_s1 + $0x158] sm:$0xff]  }
  0x15   :  { %3268 = vmatpush3.bf16.msra.mxu1 %v3726_v19  ;;  %3205 = vmatprep.subr.bf16.mxu0 %v3727_v20  ;;  %v3749_v0 = vld [vmem:[%s4873_s1 + $0x1e8] sm:$0xff]   ;;  %v2907_v7 = vcombine.high %v66_v3, %v74_v4  ;;  %v3751_v10 = vld [vmem:[%s4873_s1 + $0x160] sm:$0xff]   ;;  %v2906_v19 = vcombine.low %v66_v3, %v74_v4  ;;  %v3756_v20 = vld [vmem:[%s4873_s1 + $0x118] sm:$0xff]  }
  0x16   :  { %3269 = vmatprep.subr.bf16.mxu1 %v3728_v21  ;;  %v3750_v1 = vld [vmem:[%s4873_s1 + $0x1a8] sm:$0xff]   ;;  %v3752_v11 = vld [vmem:[%s4873_s1 + $0x120] sm:$0xff]   ;;  %v3773_v58 = vld [vmem:[%s4873_s1 + $0x2f8] sm:$0xff]  }
  0x17   :  { %v67_v5 = vld [vmem:[%s4874_s0 + $0x188] sm:$0xff]  ;;  %v3753_v12 = vld [vmem:[%s4873_s1 + $0x1e0] sm:$0xff]   ;;  %v29_v3 = vld [vmem:[%s4874_s0 + $0x58] sm:$0xff] }
  0x18   :  { %3206 = vmatpush3.bf16.msra.mxu0 %v3729_v22  ;;  %v75_v8 = vld [vmem:[%s4874_s0 + $0x1c8] sm:$0xff]  ;;  %v3754_v13 = vld [vmem:[%s4873_s1 + $0x1a0] sm:$0xff]  }
  0x19   :  { %3270 = vmatpush3.bf16.msra.mxu1 %v3730_v23  ;;  %3207 = vmatprep.subr.bf16.mxu0 %v3731_v24  ;;  %v2909_v9 = vcombine.high %v67_v5, %v75_v8  ;;  %v82_v14 = vld [vmem:[%s4874_s0 + $0x200] sm:$0xff]  ;;  %v83_v16 = vld [vmem:[%s4874_s0 + $0x208] sm:$0xff]  ;;  %v2908_v21 = vcombine.low %v67_v5, %v75_v8  ;;  %v3757_v23 = vld [vmem:[%s4873_s1 + $0x1d8] sm:$0xff]  }
  0x1a   :  { %3271 = vmatprep.subr.bf16.mxu1 %v3732_v25  ;;  %v90_v15 = vld [vmem:[%s4874_s0 + $0x240] sm:$0xff]  ;;  %v91_v17 = vld [vmem:[%s4874_s0 + $0x248] sm:$0xff]  ;;  %v3758_v25 = vld [vmem:[%s4873_s1 + $0x198] sm:$0xff]  }
  0x1b   :  { %v2923_v22 = vcombine.high %v82_v14, %v90_v15  ;;  %v2925_v24 = vcombine.high %v83_v16, %v91_v17  ;;  %v2922_v34 = vcombine.low %v82_v14, %v90_v15  ;;  %v3764_v39 = vld [vmem:[%s4873_s1 + $0x108] sm:$0xff]   ;;  %v3768_v48 = vld [vmem:[%s4873_s1 + $0x100] sm:$0xff]   ;;  %v36_v8 = vld [vmem:[%s4874_s0 + $0x90] sm:$0xff] }
  0x1c   :  { %3208 = vmatpush3.bf16.msra.mxu0 %v3733_v26  ;;  %v98_v26 = vld [vmem:[%s4874_s0 + $0x280] sm:$0xff]  ;;  %v115_v44 = vld [vmem:[%s4874_s0 + $0x308] sm:$0xff]  ;;  %v3774_v15 = vld [vmem:[%s4873_s1 + $0x2b8] sm:$0xff]  }
  0x1d   :  { %3272 = vmatpush3.bf16.msra.mxu1 %v3734_v27  ;;  %3209 = vmatprep.subr.bf16.mxu0 %v3735_v28  ;;  %v106_v27 = vld [vmem:[%s4874_s0 + $0x2c0] sm:$0xff]  ;;  %v3759_v28 = vld [vmem:[%s4873_s1 + $0x150] sm:$0xff]   ;;  %v123_v45 = vld [vmem:[%s4874_s0 + $0x348] sm:$0xff] }
  0x1e   :  { %3273 = vmatprep.subr.bf16.mxu1 %v3736_v29  ;;  %v99_v29 = vld [vmem:[%s4874_s0 + $0x288] sm:$0xff]  ;;  %v2939_v36 = vcombine.high %v98_v26, %v106_v27  ;;  %v2938_v47 = vcombine.low %v98_v26, %v106_v27 }
  0x1f   :  { %v131_v57 = vld [vmem:[%s4874_s0 + $0x388] sm:$0xff] }
  0x20   :  { %3210 = vmatpush3.bf16.msra.mxu0 %v3737_v30  ;;  %v107_v30 = vld [vmem:[%s4874_s0 + $0x2c8] sm:$0xff] }
  0x21   :  { %3274 = vmatpush3.bf16.msra.mxu1 %v3738_v31  ;;  %3323 = vmatprep.subr.bf16.mxu0 %v3739_v40  ;;  %v3760_v31 = vld [vmem:[%s4873_s1 + $0x110] sm:$0xff]   ;;  %v2941_v37 = vcombine.high %v99_v29, %v107_v30  ;;  %v3765_v40 = vld [vmem:[%s4873_s1 + $0x1c8] sm:$0xff]  }
  0x22   :  { %3387 = vmatprep.subr.bf16.mxu1 %v3741_v42  ;;  %v122_v42 = vld [vmem:[%s4874_s0 + $0x340] sm:$0xff]  ;;  %v139_v59 = vld [vmem:[%s4874_s0 + $0x3c8] sm:$0xff] }
  0x23   :  { %1843 = vmatmul.mubr.bf16.vlgmr.msra.gmra.mxu0 %v2858_v35  ;;  %v2924_v35 = vcombine.low %v83_v16, %v91_v17  ;;  %v2972_v5 = vcombine.low %v131_v57, %v139_v59  ;;  %v3775_v17 = vld [vmem:[%s4873_s1 + $0x270] sm:$0xff]   ;;  %v3779_v26 = vld [vmem:[%s4873_s1 + $0x268] sm:$0xff]  }
  0x24   :  { %1940 = vmatmul.mubr.bf16.vlgmr.msra.gmra.mxu1 %v2860_v38  ;;  %3324 = vmatpush3.bf16.msra.mxu0 %v3740_v41  ;;  %v3763_v38 = vld [vmem:[%s4873_s1 + $0x148] sm:$0xff]   ;;  %v114_v41 = vld [vmem:[%s4874_s0 + $0x300] sm:$0xff] }
  0x25   :  { %3388 = vmatpush3.bf16.msra.mxu1 %v3742_v43  ;;  %1850 = vmatprep.mubr.bf16.mxu0 %v2875_v46  ;;  %v3766_v43 = vld [vmem:[%s4873_s1 + $0x188] sm:$0xff]   ;;  %v3767_v46 = vld [vmem:[%s4873_s1 + $0x140] sm:$0xff]  }
  0x26   :  { %1947 = vmatprep.mubr.bf16.mxu1 %v2877_v49  ;;  %3325 = vmatprep.subr.bf16.mxu0 %v3743_v50  ;;  %v2940_v49 = vcombine.low %v99_v29, %v107_v30  ;;  %v2955_v50 = vcombine.high %v114_v41, %v122_v42  ;;  %v3781_v27 = vld [vmem:[%s4873_s1 + $0x2e8] sm:$0xff]  }
  0x27   :  { %3389 = vmatprep.subr.bf16.mxu1 %v3745_v54  ;;  %v130_v54 = vld [vmem:[%s4874_s0 + $0x380] sm:$0xff] }
  0x28   :  { %3326 = vmatpush3.bf16.msra.mxu0 %v3744_v52  ;;  %v2957_v52 = vcombine.high %v115_v44, %v123_v45 }
  0x29   :  { %3390 = vmatpush3.bf16.msra.mxu1 %v3746_v55  ;;  %3327 = vmatprep.subr.bf16.mxu0 %v3747_v62  ;;  %v138_v55 = vld [vmem:[%s4874_s0 + $0x3c0] sm:$0xff] }
  0x2a   :  { %3391 = vmatprep.subr.bf16.mxu1 %v3749_v0  ;;  %v2971_v62 = vcombine.high %v130_v54, %v138_v55  ;;  %v20_v0 = vld [vmem:[%s4874_s0 + $0x10] sm:$0xff]  ;;  %v2970_v4 = vcombine.low %v130_v54, %v138_v55  ;;  %v85_v54 = vld [vmem:[%s4874_s0 + $0x218] sm:$0xff] }
  0x2b   :  { %1851 = vmatmul.mubr.bf16.gmra.mxu0 %v2874_v51  ;;  %v3769_v51 = vld [vmem:[%s4873_s1 + $0x1c0] sm:$0xff]   ;;  %v93_v55 = vld [vmem:[%s4874_s0 + $0x258] sm:$0xff] }
  0x2c   :  { %1948 = vmatmul.mubr.bf16.gmra.mxu1 %v2876_v53  ;;  %1858 = vmatprep.mubr.bf16.mxu0 %v2891_v60  ;;  %v3770_v53 = vld [vmem:[%s4873_s1 + $0x180] sm:$0xff]   ;;  %v2954_v60 = vcombine.low %v114_v41, %v122_v42  ;;  %v3787_v42 = vld [vmem:[%s4873_s1 + $0x258] sm:$0xff]  }
  0x2d   :  { %1955 = vmatprep.mubr.bf16.mxu1 %v2893_v61  ;;  %3328 = vmatpush3.bf16.msra.mxu0 %v3748_v63  ;;  %v2956_v61 = vcombine.low %v115_v44, %v123_v45  ;;  %v2973_v63 = vcombine.high %v131_v57, %v139_v59  ;;  %v3786_v41 = vld [vmem:[%s4873_s1 + $0x2a0] sm:$0xff]   ;;  %v3789_v44 = vld [vmem:[%s4873_s1 + $0x2d8] sm:$0xff]   ;;  %v3794_v57 = vld [vmem:[%s4873_s1 + $0x290] sm:$0xff]  }
  0x2e   :  { %3392 = vmatpush3.bf16.msra.mxu1 %v3750_v1  ;;  %3329 = vmatprep.subr.bf16.mxu0 %v3751_v10  ;;  %v28_v1 = vld [vmem:[%s4874_s0 + $0x50] sm:$0xff] }
  0x2f   :  { %3393 = vmatprep.subr.bf16.mxu1 %v3753_v12  ;;  %v2862_v10 = vcombine.low %v20_v0, %v28_v1  ;;  %v37_v12 = vld [vmem:[%s4874_s0 + $0x98] sm:$0xff] }
  0x31   :  { %3330 = vmatpush3.bf16.msra.mxu0 %v3752_v11  ;;  %v3772_v11 = vld [vmem:[%s4873_s1 + $0x238] sm:$0xff]  }
  0x32   :  { %3394 = vmatpush3.bf16.msra.mxu1 %v3754_v13  ;;  %3331 = vmatprep.subr.bf16.mxu0 %v3755_v18  ;;  %v45_v13 = vld [vmem:[%s4874_s0 + $0xd8] sm:$0xff] }
  0x33   :  { %1859 = vmatmul.mubr.bf16.gmra.mxu0 %v2890_v2  ;;  %3395 = vmatprep.subr.bf16.mxu1 %v3757_v23  ;;  %v21_v2 = vld [vmem:[%s4874_s0 + $0x18] sm:$0xff]  ;;  %v2881_v18 = vcombine.high %v37_v12, %v45_v13  ;;  %v60_v23 = vld [vmem:[%s4874_s0 + $0x150] sm:$0xff]  ;;  %v2880_v29 = vcombine.low %v37_v12, %v45_v13  ;;  %v2928_v13 = vcombine.low %v85_v54, %v93_v55 }
  0x34   :  { %1956 = vmatmul.mubr.bf16.gmra.mxu1 %v2892_v6  ;;  %1866 = vmatprep.mubr.bf16.mxu0 %v2907_v7  ;;  %v2863_v6 = vcombine.high %v20_v0, %v28_v1  ;;  %v2865_v7 = vcombine.high %v21_v2, %v29_v3  ;;  %v2864_v14 = vcombine.low %v21_v2, %v29_v3  ;;  %v3796_v0 = vld [vmem:[%s4873_s1 + $0x208] sm:$0xff]   ;;  %v3799_v2 = vld [vmem:[%s4873_s1 + $0x240] sm:$0xff]   ;;  %v100_v3 = vld [vmem:[%s4874_s0 + $0x290] sm:$0xff] }
  0x35   :  { %1963 = vmatprep.mubr.bf16.mxu1 %v2909_v9  ;;  %3332 = vmatpush3.bf16.msra.mxu0 %v3756_v20  ;;  %v44_v9 = vld [vmem:[%s4874_s0 + $0xd0] sm:$0xff]  ;;  %v3798_v1 = vld [vmem:[%s4873_s1 + $0x288] sm:$0xff]   ;;  %v3805_v12 = vld [vmem:[%s4873_s1 + $0x3f8] sm:$0xff]  }
  0x36   :  { %3396 = vmatpush3.bf16.msra.mxu1 %v3758_v25  ;;  %3333 = vmatprep.subr.bf16.mxu0 %v3759_v28  ;;  %v2879_v16 = vcombine.high %v36_v8, %v44_v9  ;;  %v3777_v20 = vld [vmem:[%s4873_s1 + $0x2f0] sm:$0xff]   ;;  %v61_v25 = vld [vmem:[%s4874_s0 + $0x158] sm:$0xff]  ;;  %v2878_v28 = vcombine.low %v36_v8, %v44_v9  ;;  %v3800_v8 = vld [vmem:[%s4873_s1 + $0x200] sm:$0xff]  }
  0x37   :  { %3397 = vmatprep.subr.bf16.mxu1 %v3761_v32  ;;  %v3780_v32 = vld [vmem:[%s4873_s1 + $0x228] sm:$0xff]   ;;  %v3802_v9 = vld [vmem:[%s4873_s1 + $0x280] sm:$0xff]  }
  0x39   :  { %3334 = vmatpush3.bf16.msra.mxu0 %v3760_v31 }
  0x3a   :  { %3398 = vmatpush3.bf16.msra.mxu1 %v3762_v33  ;;  %3335 = vmatprep.subr.bf16.mxu0 %v3763_v38  ;;  %v3782_v33 = vld [vmem:[%s4873_s1 + $0x2a8] sm:$0xff]   ;;  %v69_v38 = vld [vmem:[%s4874_s0 + $0x198] sm:$0xff] }
  0x3b   :  { %1867 = vmatmul.mubr.bf16.gmra.mxu0 %v2906_v19  ;;  %3399 = vmatprep.subr.bf16.mxu1 %v3765_v40  ;;  %v3776_v19 = vld [vmem:[%s4873_s1 + $0x230] sm:$0xff]   ;;  %v3784_v40 = vld [vmem:[%s4873_s1 + $0x220] sm:$0xff]  }
  0x3c   :  { %1964 = vmatmul.mubr.bf16.gmra.mxu1 %v2908_v21  ;;  %1874 = vmatprep.mubr.bf16.mxu0 %v2923_v22  ;;  %v3778_v21 = vld [vmem:[%s4873_s1 + $0x2b0] sm:$0xff]  }
  0x3d   :  { %1971 = vmatprep.mubr.bf16.mxu1 %v2925_v24  ;;  %3336 = vmatpush3.bf16.msra.mxu0 %v3764_v39  ;;  %v52_v22 = vld [vmem:[%s4874_s0 + $0x110] sm:$0xff]  ;;  %v53_v24 = vld [vmem:[%s4874_s0 + $0x118] sm:$0xff] }
  0x3e   :  { %3400 = vmatpush3.bf16.msra.mxu1 %v3766_v43  ;;  %3337 = vmatprep.subr.bf16.mxu0 %v3767_v46  ;;  %v2895_v30 = vcombine.high %v52_v22, %v60_v23  ;;  %v2897_v31 = vcombine.high %v53_v24, %v61_v25  ;;  %v77_v39 = vld [vmem:[%s4874_s0 + $0x1d8] sm:$0xff]  ;;  %v2894_v43 = vcombine.low %v52_v22, %v60_v23 }
  0x3f   :  { %3401 = vmatprep.subr.bf16.mxu1 %v3769_v51  ;;  %v2896_v45 = vcombine.low %v53_v24, %v61_v25  ;;  %v84_v51 = vld [vmem:[%s4874_s0 + $0x210] sm:$0xff] }
  0x40   :  { %v132_v24 = vld [vmem:[%s4874_s0 + $0x390] sm:$0xff] }
  0x41   :  { %3338 = vmatpush3.bf16.msra.mxu0 %v3768_v48  ;;  %v2913_v48 = vcombine.high %v69_v38, %v77_v39  ;;  %v140_v25 = vld [vmem:[%s4874_s0 + $0x3d0] sm:$0xff] }
  0x42   :  { %3402 = vmatpush3.bf16.msra.mxu1 %v3770_v53  ;;  %3451 = vmatprep.subr.bf16.mxu0 %v3771_v56  ;;  %v92_v53 = vld [vmem:[%s4874_s0 + $0x250] sm:$0xff] }
  0x43   :  { %1875 = vmatmul.mubr.bf16.gmra.mxu0 %v2922_v34  ;;  %3515 = vmatprep.subr.bf16.mxu1 %v3773_v58  ;;  %v3783_v34 = vld [vmem:[%s4873_s1 + $0x260] sm:$0xff]   ;;  %v3792_v56 = vld [vmem:[%s4873_s1 + $0x210] sm:$0xff]   ;;  %v3795_v58 = vld [vmem:[%s4873_s1 + $0x248] sm:$0xff]  }
  0x44   :  { %1972 = vmatmul.mubr.bf16.gmra.mxu1 %v2924_v35  ;;  %1882 = vmatprep.mubr.bf16.mxu0 %v2939_v36  ;;  %v68_v35 = vld [vmem:[%s4874_s0 + $0x190] sm:$0xff] }
  0x45   :  { %1979 = vmatprep.mubr.bf16.mxu1 %v2941_v37  ;;  %v76_v36 = vld [vmem:[%s4874_s0 + $0x1d0] sm:$0xff]  ;;  %v3785_v37 = vld [vmem:[%s4873_s1 + $0x2e0] sm:$0xff]  }
  0x46   :  { %v2911_v46 = vcombine.high %v68_v35, %v76_v36  ;;  %v2910_v59 = vcombine.low %v68_v35, %v76_v36  ;;  %v31_v35 = vld [vmem:[%s4874_s0 + $0x68] sm:$0xff]  ;;  %v2974_v36 = vcombine.low %v132_v24, %v140_v25 }
  0x4b   :  { %1883 = vmatmul.mubr.bf16.gmra.mxu0 %v2938_v47  ;;  %v3788_v47 = vld [vmem:[%s4873_s1 + $0x218] sm:$0xff]  }
  0x4c   :  { %1980 = vmatmul.mubr.bf16.gmra.mxu1 %v2940_v49  ;;  %1890 = vmatprep.mubr.bf16.mxu0 %v2955_v50  ;;  %v3790_v49 = vld [vmem:[%s4873_s1 + $0x298] sm:$0xff]   ;;  %v3791_v50 = vld [vmem:[%s4873_s1 + $0x250] sm:$0xff]  }
  0x4d   :  { %1987 = vmatprep.mubr.bf16.mxu1 %v2957_v52  ;;  %v3793_v52 = vld [vmem:[%s4873_s1 + $0x2d0] sm:$0xff]  }
  0x53   :  { %1891 = vmatmul.mubr.bf16.gmra.mxu0 %v2954_v60  ;;  %v3797_v60 = vld [vmem:[%s4873_s1 + $0x2c8] sm:$0xff]  }
  0x54   :  { %1988 = vmatmul.mubr.bf16.gmra.mxu1 %v2956_v61  ;;  %1898 = vmatprep.mubr.bf16.mxu0 %v2971_v62  ;;  %v2912_v61 = vcombine.low %v69_v38, %v77_v39  ;;  %v2927_v62 = vcombine.high %v84_v51, %v92_v53 }
  0x55   :  { %1995 = vmatprep.mubr.bf16.mxu1 %v2973_v63  ;;  %v2929_v63 = vcombine.high %v85_v54, %v93_v55  ;;  %v54_v54 = vld [vmem:[%s4874_s0 + $0x120] sm:$0xff] }
  0x56   :  { %v62_v55 = vld [vmem:[%s4874_s0 + $0x160] sm:$0xff] }
  0x5b   :  { %1899 = vmatmul.mubr.bf16.gmra.mxu0 %v2970_v4  ;;  %v108_v4 = vld [vmem:[%s4874_s0 + $0x2d0] sm:$0xff] }
  0x5c   :  { %1996 = vmatmul.mubr.bf16.gmra.mxu1 %v2972_v5  ;;  %2036 = vmatprep.mubr.bf16.mxu0 %v2863_v6  ;;  %v3801_v5 = vld [vmem:[%s4873_s1 + $0x2c0] sm:$0xff]   ;;  %v101_v6 = vld [vmem:[%s4874_s0 + $0x298] sm:$0xff] }
  0x5d   :  { %2133 = vmatprep.mubr.bf16.mxu1 %v2865_v7  ;;  %v109_v7 = vld [vmem:[%s4874_s0 + $0x2d8] sm:$0xff] }
  0x63   :  { %2037 = vmatmul.mubr.bf16.vlgmr.msra.gmra.mxu0 %v2862_v10  ;;  %v3803_v10 = vld [vmem:[%s4873_s1 + $0x378] sm:$0xff]  }
  0x64   :  { %2134 = vmatmul.mubr.bf16.vlgmr.msra.gmra.mxu1 %v2864_v14  ;;  %3452 = vmatpush3.bf16.msra.mxu0 %v3772_v11  ;;  %v2926_v11 = vcombine.low %v84_v51, %v92_v53  ;;  %v2943_v14 = vcombine.high %v100_v3, %v108_v4  ;;  %v3809_v51 = vld [vmem:[%s4873_s1 + $0x3f0] sm:$0xff]  }
  0x65   :  { %3516 = vmatpush3.bf16.msra.mxu1 %v3774_v15  ;;  %2044 = vmatprep.mubr.bf16.mxu0 %v2879_v16  ;;  %v2945_v15 = vcombine.high %v101_v6, %v109_v7  ;;  %v116_v16 = vld [vmem:[%s4874_s0 + $0x310] sm:$0xff] }
  0x66   :  { %2141 = vmatprep.mubr.bf16.mxu1 %v2881_v18  ;;  %3453 = vmatprep.subr.bf16.mxu0 %v3775_v17  ;;  %v124_v17 = vld [vmem:[%s4874_s0 + $0x350] sm:$0xff]  ;;  %v117_v18 = vld [vmem:[%s4874_s0 + $0x318] sm:$0xff] }
  0x67   :  { %3517 = vmatprep.subr.bf16.mxu1 %v3777_v20  ;;  %v2942_v20 = vcombine.low %v100_v3, %v108_v4  ;;  %v2959_v22 = vcombine.high %v116_v16, %v124_v17  ;;  %v3810_v53 = vld [vmem:[%s4873_s1 + $0x3b0] sm:$0xff]   ;;  %v3817_v3 = vld [vmem:[%s4873_s1 + $0x3e0] sm:$0xff]  }
  0x68   :  { %3454 = vmatpush3.bf16.msra.mxu0 %v3776_v19  ;;  %v125_v19 = vld [vmem:[%s4874_s0 + $0x358] sm:$0xff]  ;;  %v70_v4 = vld [vmem:[%s4874_s0 + $0x1a0] sm:$0xff] }
  0x69   :  { %3518 = vmatpush3.bf16.msra.mxu1 %v3778_v21  ;;  %3455 = vmatprep.subr.bf16.mxu0 %v3779_v26  ;;  %v2944_v21 = vcombine.low %v101_v6, %v109_v7  ;;  %v2961_v23 = vcombine.high %v117_v18, %v125_v19  ;;  %v133_v26 = vld [vmem:[%s4874_s0 + $0x398] sm:$0xff]  ;;  %v71_v6 = vld [vmem:[%s4874_s0 + $0x1a8] sm:$0xff]  ;;  %v3816_v7 = vld [vmem:[%s4873_s1 + $0x320] sm:$0xff]  }
  0x6a   :  { %3519 = vmatprep.subr.bf16.mxu1 %v3781_v27  ;;  %v141_v27 = vld [vmem:[%s4874_s0 + $0x3d8] sm:$0xff] }
  0x6b   :  { %2045 = vmatmul.mubr.bf16.gmra.mxu0 %v2878_v28  ;;  %v2958_v28 = vcombine.low %v116_v16, %v124_v17  ;;  %v3820_v16 = vld [vmem:[%s4873_s1 + $0x318] sm:$0xff]  }
  0x6c   :  { %2142 = vmatmul.mubr.bf16.gmra.mxu1 %v2880_v29  ;;  %2052 = vmatprep.mubr.bf16.mxu0 %v2895_v30  ;;  %v2960_v29 = vcombine.low %v117_v18, %v125_v19  ;;  %v2975_v30 = vcombine.high %v132_v24, %v140_v25  ;;  %v3822_v17 = vld [vmem:[%s4873_s1 + $0x398] sm:$0xff]   ;;  %v3823_v18 = vld [vmem:[%s4873_s1 + $0x350] sm:$0xff]   ;;  %v95_v24 = vld [vmem:[%s4874_s0 + $0x268] sm:$0xff] }
  0x6d   :  { %2149 = vmatprep.mubr.bf16.mxu1 %v2897_v31  ;;  %3456 = vmatpush3.bf16.msra.mxu0 %v3780_v32  ;;  %v2977_v31 = vcombine.high %v133_v26, %v141_v27  ;;  %v22_v32 = vld [vmem:[%s4874_s0 + $0x20] sm:$0xff]  ;;  %v3825_v19 = vld [vmem:[%s4873_s1 + $0x3d0] sm:$0xff]  }
  0x6e   :  { %3520 = vmatpush3.bf16.msra.mxu1 %v3782_v33  ;;  %3457 = vmatprep.subr.bf16.mxu0 %v3783_v34  ;;  %v30_v33 = vld [vmem:[%s4874_s0 + $0x60] sm:$0xff]  ;;  %v23_v34 = vld [vmem:[%s4874_s0 + $0x28] sm:$0xff]  ;;  %v3826_v25 = vld [vmem:[%s4873_s1 + $0x390] sm:$0xff]  }
  0x6f   :  { %3521 = vmatprep.subr.bf16.mxu1 %v3785_v37  ;;  %v2976_v37 = vcombine.low %v133_v26, %v141_v27  ;;  %v2867_v38 = vcombine.high %v22_v32, %v30_v33  ;;  %v2869_v39 = vcombine.high %v23_v34, %v31_v35  ;;  %v3827_v26 = vld [vmem:[%s4873_s1 + $0x348] sm:$0xff]  }
  0x71   :  { %3458 = vmatpush3.bf16.msra.mxu0 %v3784_v40  ;;  %v38_v40 = vld [vmem:[%s4874_s0 + $0xa0] sm:$0xff] }
  0x72   :  { %3522 = vmatpush3.bf16.msra.mxu1 %v3786_v41  ;;  %3459 = vmatprep.subr.bf16.mxu0 %v3787_v42  ;;  %v46_v41 = vld [vmem:[%s4874_s0 + $0xe0] sm:$0xff]  ;;  %v2866_v42 = vcombine.low %v22_v32, %v30_v33  ;;  %v3828_v32 = vld [vmem:[%s4873_s1 + $0x308] sm:$0xff]  }
  0x73   :  { %2053 = vmatmul.mubr.bf16.gmra.mxu0 %v2894_v43  ;;  %3523 = vmatprep.subr.bf16.mxu1 %v3789_v44  ;;  %v39_v43 = vld [vmem:[%s4874_s0 + $0xa8] sm:$0xff] }
  0x74   :  { %2150 = vmatmul.mubr.bf16.gmra.mxu1 %v2896_v45  ;;  %2060 = vmatprep.mubr.bf16.mxu0 %v2911_v46  ;;  %v47_v44 = vld [vmem:[%s4874_s0 + $0xe8] sm:$0xff]  ;;  %v2868_v45 = vcombine.low %v23_v34, %v31_v35  ;;  %v3804_v46 = vld [vmem:[%s4873_s1 + $0x338] sm:$0xff]   ;;  %v3831_v34 = vld [vmem:[%s4873_s1 + $0x340] sm:$0xff]  }
  0x75   :  { %2157 = vmatprep.mubr.bf16.mxu1 %v2913_v48  ;;  %3460 = vmatpush3.bf16.msra.mxu0 %v3788_v47  ;;  %v3806_v47 = vld [vmem:[%s4873_s1 + $0x3b8] sm:$0xff]   ;;  %v2883_v48 = vcombine.high %v38_v40, %v46_v41  ;;  %v3830_v33 = vld [vmem:[%s4873_s1 + $0x388] sm:$0xff]   ;;  %v3833_v35 = vld [vmem:[%s4873_s1 + $0x3c0] sm:$0xff]  }
  0x76   :  { %3524 = vmatpush3.bf16.msra.mxu1 %v3790_v49  ;;  %3461 = vmatprep.subr.bf16.mxu0 %v3791_v50  ;;  %v2885_v49 = vcombine.high %v39_v43, %v47_v44  ;;  %v3807_v50 = vld [vmem:[%s4873_s1 + $0x370] sm:$0xff]  }
  0x77   :  { %3525 = vmatprep.subr.bf16.mxu1 %v3793_v52  ;;  %v3808_v52 = vld [vmem:[%s4873_s1 + $0x330] sm:$0xff]  }
  0x79   :  { %3462 = vmatpush3.bf16.msra.mxu0 %v3792_v56  ;;  %v3811_v56 = vld [vmem:[%s4873_s1 + $0x368] sm:$0xff]  }
  0x7a   :  { %3526 = vmatpush3.bf16.msra.mxu1 %v3794_v57  ;;  %3463 = vmatprep.subr.bf16.mxu0 %v3795_v58  ;;  %v55_v57 = vld [vmem:[%s4874_s0 + $0x128] sm:$0xff] }
  0x7b   :  { %2061 = vmatmul.mubr.bf16.gmra.mxu0 %v2910_v59  ;;  %3527 = vmatprep.subr.bf16.mxu1 %v3797_v60  ;;  %v63_v58 = vld [vmem:[%s4874_s0 + $0x168] sm:$0xff]  ;;  %v2882_v60 = vcombine.low %v38_v40, %v46_v41  ;;  %v3834_v41 = vld [vmem:[%s4873_s1 + $0x380] sm:$0xff]  }
  0x7c   :  { %2158 = vmatmul.mubr.bf16.gmra.mxu1 %v2912_v61  ;;  %2068 = vmatprep.mubr.bf16.mxu0 %v2927_v62  ;;  %v3813_v59 = vld [vmem:[%s4873_s1 + $0x3e8] sm:$0xff]   ;;  %v2884_v61 = vcombine.low %v39_v43, %v47_v44  ;;  %v2899_v62 = vcombine.high %v54_v54, %v62_v55 }
  0x7d   :  { %2165 = vmatprep.mubr.bf16.mxu1 %v2929_v63  ;;  %3464 = vmatpush3.bf16.msra.mxu0 %v3796_v0  ;;  %v2901_v63 = vcombine.high %v55_v57, %v63_v58  ;;  %v3812_v0 = vld [vmem:[%s4873_s1 + $0x328] sm:$0xff]  }
  0x7e   :  { %3528 = vmatpush3.bf16.msra.mxu1 %v3798_v1  ;;  %3465 = vmatprep.subr.bf16.mxu0 %v3799_v2  ;;  %v3814_v1 = vld [vmem:[%s4873_s1 + $0x3a8] sm:$0xff]   ;;  %v3815_v2 = vld [vmem:[%s4873_s1 + $0x360] sm:$0xff]  }
  0x7f   :  { %3529 = vmatprep.subr.bf16.mxu1 %v3801_v5  ;;  %v78_v5 = vld [vmem:[%s4874_s0 + $0x1e0] sm:$0xff]  ;;  %v111_v40 = vld [vmem:[%s4874_s0 + $0x2e8] sm:$0xff] }
  0x80   :  { %v2914_v27 = vcombine.low %v70_v4, %v78_v5 }
  0x81   :  { %3466 = vmatpush3.bf16.msra.mxu0 %v3800_v8  ;;  %v79_v8 = vld [vmem:[%s4874_s0 + $0x1e8] sm:$0xff] }
  0x82   :  { %3530 = vmatpush3.bf16.msra.mxu1 %v3802_v9  ;;  %3579 = vmatprep.subr.bf16.mxu0 %v3803_v10  ;;  %v3818_v9 = vld [vmem:[%s4873_s1 + $0x3a0] sm:$0xff]   ;;  %v3819_v10 = vld [vmem:[%s4873_s1 + $0x358] sm:$0xff]  }
  0x83   :  { %2069 = vmatmul.mubr.bf16.gmra.mxu0 %v2926_v11  ;;  %3643 = vmatprep.subr.bf16.mxu1 %v3805_v12  ;;  %v2898_v11 = vcombine.low %v54_v54, %v62_v55  ;;  %v3821_v12 = vld [vmem:[%s4873_s1 + $0x3d8] sm:$0xff]   ;;  %v134_v54 = vld [vmem:[%s4874_s0 + $0x3a0] sm:$0xff] }
  0x84   :  { %2166 = vmatmul.mubr.bf16.gmra.mxu1 %v2928_v13  ;;  %2076 = vmatprep.mubr.bf16.mxu0 %v2943_v14  ;;  %v2900_v13 = vcombine.low %v55_v57, %v63_v58  ;;  %v2915_v14 = vcombine.high %v70_v4, %v78_v5  ;;  %v142_v55 = vld [vmem:[%s4874_s0 + $0x3e0] sm:$0xff]  ;;  %v143_v57 = vld [vmem:[%s4874_s0 + $0x3e8] sm:$0xff] }
  0x85   :  { %2173 = vmatprep.mubr.bf16.mxu1 %v2945_v15  ;;  %v2917_v15 = vcombine.high %v71_v6, %v79_v8 }
  0x8b   :  { %2077 = vmatmul.mubr.bf16.gmra.mxu0 %v2942_v20  ;;  %v86_v20 = vld [vmem:[%s4874_s0 + $0x220] sm:$0xff] }
  0x8c   :  { %2174 = vmatmul.mubr.bf16.gmra.mxu1 %v2944_v21  ;;  %2084 = vmatprep.mubr.bf16.mxu0 %v2959_v22  ;;  %v94_v21 = vld [vmem:[%s4874_s0 + $0x260] sm:$0xff]  ;;  %v87_v22 = vld [vmem:[%s4874_s0 + $0x228] sm:$0xff] }
  0x8d   :  { %2181 = vmatprep.mubr.bf16.mxu1 %v2961_v23  ;;  %v3824_v23 = vld [vmem:[%s4873_s1 + $0x310] sm:$0xff]   ;;  %v2932_v43 = vcombine.low %v87_v22, %v95_v24 }
  0x93   :  { %2085 = vmatmul.mubr.bf16.gmra.mxu0 %v2958_v28  ;;  %v3829_v28 = vld [vmem:[%s4873_s1 + $0x3c8] sm:$0xff]  }
  0x94   :  { %2182 = vmatmul.mubr.bf16.gmra.mxu1 %v2960_v29  ;;  %2092 = vmatprep.mubr.bf16.mxu0 %v2975_v30  ;;  %v2916_v29 = vcombine.low %v71_v6, %v79_v8  ;;  %v2931_v30 = vcombine.high %v86_v20, %v94_v21  ;;  %v40_v6 = vld [vmem:[%s4874_s0 + $0xb0] sm:$0xff]  ;;  %v41_v8 = vld [vmem:[%s4874_s0 + $0xb8] sm:$0xff] }
  0x95   :  { %2189 = vmatprep.mubr.bf16.mxu1 %v2977_v31  ;;  %v2933_v31 = vcombine.high %v87_v22, %v95_v24  ;;  %v65_v22 = vld [vmem:[%s4874_s0 + $0x178] sm:$0xff] }
  0x9b   :  { %2093 = vmatmul.mubr.bf16.gmra.mxu0 %v2974_v36  ;;  %v102_v36 = vld [vmem:[%s4874_s0 + $0x2a0] sm:$0xff] }
  0x9c   :  { %2190 = vmatmul.mubr.bf16.gmra.mxu1 %v2976_v37  ;;  %2230 = vmatprep.mubr.bf16.mxu0 %v2867_v38  ;;  %v110_v37 = vld [vmem:[%s4874_s0 + $0x2e0] sm:$0xff] }
  0x9d   :  { %2327 = vmatprep.mubr.bf16.mxu1 %v2869_v39  ;;  %v3832_v38 = vld [vmem:[%s4873_s1 + $0x300] sm:$0xff]   ;;  %v103_v39 = vld [vmem:[%s4874_s0 + $0x2a8] sm:$0xff]  ;;  %v2947_v44 = vcombine.high %v102_v36, %v110_v37 }
  0xa3   :  { %2231 = vmatmul.mubr.bf16.vlgmr.msra.gmra.mxu0 %v2866_v42  ;;  %v2930_v42 = vcombine.low %v86_v20, %v94_v21  ;;  %v57_v21 = vld [vmem:[%s4874_s0 + $0x138] sm:$0xff] }
  0xa4   :  { %2328 = vmatmul.mubr.bf16.vlgmr.msra.gmra.mxu1 %v2868_v45  ;;  %3580 = vmatpush3.bf16.msra.mxu0 %v3804_v46  ;;  %v2949_v45 = vcombine.high %v103_v39, %v111_v40  ;;  %v118_v46 = vld [vmem:[%s4874_s0 + $0x320] sm:$0xff] }
  0xa5   :  { %3644 = vmatpush3.bf16.msra.mxu1 %v3806_v47  ;;  %2238 = vmatprep.mubr.bf16.mxu0 %v2883_v48  ;;  %v126_v47 = vld [vmem:[%s4874_s0 + $0x360] sm:$0xff]  ;;  %v119_v48 = vld [vmem:[%s4874_s0 + $0x328] sm:$0xff] }
  0xa6   :  { %2335 = vmatprep.mubr.bf16.mxu1 %v2885_v49  ;;  %3581 = vmatprep.subr.bf16.mxu0 %v3807_v50  ;;  %v127_v49 = vld [vmem:[%s4874_s0 + $0x368] sm:$0xff]  ;;  %v2946_v50 = vcombine.low %v102_v36, %v110_v37  ;;  %v2962_v58 = vcombine.low %v118_v46, %v126_v47 }
  0xa7   :  { %3645 = vmatprep.subr.bf16.mxu1 %v3809_v51  ;;  %v2948_v51 = vcombine.low %v103_v39, %v111_v40  ;;  %v72_v39 = vld [vmem:[%s4874_s0 + $0x1b0] sm:$0xff] }
  0xa8   :  { %3582 = vmatpush3.bf16.msra.mxu0 %v3808_v52  ;;  %v2963_v52 = vcombine.high %v118_v46, %v126_v47  ;;  %v80_v40 = vld [vmem:[%s4874_s0 + $0x1f0] sm:$0xff] }
  0xa9   :  { %3646 = vmatpush3.bf16.msra.mxu1 %v3810_v53  ;;  %3583 = vmatprep.subr.bf16.mxu0 %v3811_v56  ;;  %v2965_v53 = vcombine.high %v119_v48, %v127_v49  ;;  %v135_v56 = vld [vmem:[%s4874_s0 + $0x3a8] sm:$0xff] }
  0xaa   :  { %3647 = vmatprep.subr.bf16.mxu1 %v3813_v59  ;;  %v2964_v59 = vcombine.low %v119_v48, %v127_v49  ;;  %v2904_v49 = vcombine.low %v57_v21, %v65_v22 }
  0xab   :  { %2239 = vmatmul.mubr.bf16.gmra.mxu0 %v2882_v60  ;;  %v2979_v60 = vcombine.high %v134_v54, %v142_v55 }
  0xac   :  { %2336 = vmatmul.mubr.bf16.gmra.mxu1 %v2884_v61  ;;  %2246 = vmatprep.mubr.bf16.mxu0 %v2899_v62  ;;  %v2981_v61 = vcombine.high %v135_v56, %v143_v57  ;;  %v24_v62 = vld [vmem:[%s4874_s0 + $0x30] sm:$0xff] }
  0xad   :  { %2343 = vmatprep.mubr.bf16.mxu1 %v2901_v63  ;;  %3584 = vmatpush3.bf16.msra.mxu0 %v3812_v0  ;;  %v32_v63 = vld [vmem:[%s4874_s0 + $0x70] sm:$0xff]  ;;  %v25_v0 = vld [vmem:[%s4874_s0 + $0x38] sm:$0xff] }
  0xae   :  { %3648 = vmatpush3.bf16.msra.mxu1 %v3814_v1  ;;  %3585 = vmatprep.subr.bf16.mxu0 %v3815_v2  ;;  %v33_v1 = vld [vmem:[%s4874_s0 + $0x78] sm:$0xff]  ;;  %v2978_v2 = vcombine.low %v134_v54, %v142_v55  ;;  %v2871_v4 = vcombine.high %v24_v62, %v32_v63 }
  0xaf   :  { %3649 = vmatprep.subr.bf16.mxu1 %v3817_v3  ;;  %v2980_v3 = vcombine.low %v135_v56, %v143_v57  ;;  %v2873_v5 = vcombine.high %v25_v0, %v33_v1 }
  0xb1   :  { %3586 = vmatpush3.bf16.msra.mxu0 %v3816_v7  ;;  %v48_v7 = vld [vmem:[%s4874_s0 + $0xf0] sm:$0xff] }
  0xb2   :  { %3650 = vmatpush3.bf16.msra.mxu1 %v3818_v9  ;;  %3587 = vmatprep.subr.bf16.mxu0 %v3819_v10  ;;  %v49_v9 = vld [vmem:[%s4874_s0 + $0xf8] sm:$0xff]  ;;  %v2870_v10 = vcombine.low %v24_v62, %v32_v63  ;;  %v96_v62 = vld [vmem:[%s4874_s0 + $0x270] sm:$0xff] }
  0xb3   :  { %2247 = vmatmul.mubr.bf16.gmra.mxu0 %v2898_v11  ;;  %3651 = vmatprep.subr.bf16.mxu1 %v3821_v12  ;;  %v2872_v11 = vcombine.low %v25_v0, %v33_v1  ;;  %v2887_v12 = vcombine.high %v40_v6, %v48_v7  ;;  %v89_v1 = vld [vmem:[%s4874_s0 + $0x238] sm:$0xff] }
  0xb4   :  { %2344 = vmatmul.mubr.bf16.gmra.mxu1 %v2900_v13  ;;  %2254 = vmatprep.mubr.bf16.mxu0 %v2915_v14  ;;  %v2889_v13 = vcombine.high %v41_v8, %v49_v9 }
  0xb5   :  { %2351 = vmatprep.mubr.bf16.mxu1 %v2917_v15  ;;  %3588 = vmatpush3.bf16.msra.mxu0 %v3820_v16 }
  0xb6   :  { %3652 = vmatpush3.bf16.msra.mxu1 %v3822_v17  ;;  %3589 = vmatprep.subr.bf16.mxu0 %v3823_v18  ;;  %v56_v17 = vld [vmem:[%s4874_s0 + $0x130] sm:$0xff] }
  0xb7   :  { %3653 = vmatprep.subr.bf16.mxu1 %v3825_v19  ;;  %v64_v18 = vld [vmem:[%s4874_s0 + $0x170] sm:$0xff] }
  0xb8   :  { %v2902_v47 = vcombine.low %v56_v17, %v64_v18 }
  0xb9   :  { %3590 = vmatpush3.bf16.msra.mxu0 %v3824_v23 }
  0xba   :  { %3654 = vmatpush3.bf16.msra.mxu1 %v3826_v25  ;;  %3591 = vmatprep.subr.bf16.mxu0 %v3827_v26  ;;  %v2886_v25 = vcombine.low %v40_v6, %v48_v7 }
  0xbb   :  { %2255 = vmatmul.mubr.bf16.gmra.mxu0 %v2914_v27  ;;  %3655 = vmatprep.subr.bf16.mxu1 %v3829_v28  ;;  %v2888_v27 = vcombine.low %v41_v8, %v49_v9  ;;  %v2903_v28 = vcombine.high %v56_v17, %v64_v18 }
  0xbc   :  { %2352 = vmatmul.mubr.bf16.gmra.mxu1 %v2916_v29  ;;  %2262 = vmatprep.mubr.bf16.mxu0 %v2931_v30 }
  0xbd   :  { %2359 = vmatprep.mubr.bf16.mxu1 %v2933_v31  ;;  %3592 = vmatpush3.bf16.msra.mxu0 %v3828_v32  ;;  %v2905_v31 = vcombine.high %v57_v21, %v65_v22 }
  0xbe   :  { %3656 = vmatpush3.bf16.msra.mxu1 %v3830_v33  ;;  %3593 = vmatprep.subr.bf16.mxu0 %v3831_v34 }
  0xbf   :  { %3657 = vmatprep.subr.bf16.mxu1 %v3833_v35 }
  0xc1   :  { %3594 = vmatpush3.bf16.msra.mxu0 %v3832_v38 }
  0xc2   :  { %3658 = vmatpush3.bf16.msra.mxu1 %v3834_v41 }
  0xc3   :  { %2263 = vmatmul.mubr.bf16.gmra.mxu0 %v2930_v42 }
  0xc4   :  { %2360 = vmatmul.mubr.bf16.gmra.mxu1 %v2932_v43  ;;  %2270 = vmatprep.mubr.bf16.mxu0 %v2947_v44  ;;  %v73_v43 = vld [vmem:[%s4874_s0 + $0x1b8] sm:$0xff] }
  0xc5   :  { %2367 = vmatprep.mubr.bf16.mxu1 %v2949_v45  ;;  %v81_v44 = vld [vmem:[%s4874_s0 + $0x1f8] sm:$0xff] }
  0xc6   :  { %v2920_v7 = vcombine.low %v73_v43, %v81_v44 }
  0xcb   :  { %2271 = vmatmul.mubr.bf16.gmra.mxu0 %v2946_v50  ;;  %v2919_v50 = vcombine.high %v72_v39, %v80_v40 }
  0xcc   :  { %2368 = vmatmul.mubr.bf16.gmra.mxu1 %v2948_v51  ;;  %2278 = vmatprep.mubr.bf16.mxu0 %v2963_v52 }
  0xcd   :  { %2375 = vmatprep.mubr.bf16.mxu1 %v2965_v53  ;;  %v2921_v53 = vcombine.high %v73_v43, %v81_v44  ;;  %v120_v43 = vld [vmem:[%s4874_s0 + $0x330] sm:$0xff] }
  0xce   :  { %v128_v44 = vld [vmem:[%s4874_s0 + $0x370] sm:$0xff] }
  0xd3   :  { %2279 = vmatmul.mubr.bf16.gmra.mxu0 %v2962_v58 }
  0xd4   :  { %2376 = vmatmul.mubr.bf16.gmra.mxu1 %v2964_v59  ;;  %2286 = vmatprep.mubr.bf16.mxu0 %v2979_v60 }
  0xd5   :  { %2383 = vmatprep.mubr.bf16.mxu1 %v2981_v61  ;;  %v88_v61 = vld [vmem:[%s4874_s0 + $0x230] sm:$0xff] }
  0xd6   :  { %v2935_v8 = vcombine.high %v88_v61, %v96_v62 }
  0xdb   :  { %2287 = vmatmul.mubr.bf16.gmra.mxu0 %v2978_v2  ;;  %v97_v2 = vld [vmem:[%s4874_s0 + $0x278] sm:$0xff] }
  0xdc   :  { %2384 = vmatmul.mubr.bf16.gmra.mxu1 %v2980_v3  ;;  %2424 = vmatprep.mubr.bf16.mxu0 %v2871_v4 }
  0xdd   :  { %2521 = vmatprep.mubr.bf16.mxu1 %v2873_v5  ;;  %v2918_v5 = vcombine.low %v72_v39, %v80_v40 }
  0xe3   :  { %v3211_v14 = vpop.f32.mrf.mxu0  ;;  %2425 = vmatmul.mubr.bf16.vlgmr.msra.gmra.mxu0 %v2870_v10 }
  0xe4   :  { %v3275_v15 = vpop.f32.mrf.mxu1  ;;  %2522 = vmatmul.mubr.bf16.vlgmr.msra.gmra.mxu1 %v2872_v11  ;;  %2432 = vmatprep.mubr.bf16.mxu0 %v2887_v12  ;;  %v2937_v11 = vcombine.high %v89_v1, %v97_v2 }
  0xe5   :  { %v3212_v16 = vpop.f32.mrf.mxu0  ;;  %2529 = vmatprep.mubr.bf16.mxu1 %v2889_v13 }
  0xe6   :  { %v3213_v19 = vadd.f32 %v3212_v16, %v3211_v14  ;;  %v3276_v20 = vpop.f32.mrf.mxu1 }
  0xe7   :  { %v3277_v23 = vadd.f32 %v3276_v20, %v3275_v15  ;;  %v3214_v24 = vpop.f32.mrf.mxu0  ;;  %v112_v20 = vld [vmem:[%s4874_s0 + $0x2f0] sm:$0xff] }
  0xe8   :  { %v3278_v26 = vpop.f32.mrf.mxu1 }
  0xe9   :  { %v4570_v29 = vadd.f32 %v3277_v23, %v3213_v19  ;;  %v3215_v30 = vpop.f32.mrf.mxu0  ;;  %v104_v19 = vld [vmem:[%s4874_s0 + $0x2b0] sm:$0xff]  ;;  %v105_v23 = vld [vmem:[%s4874_s0 + $0x2b8] sm:$0xff] }
  0xea   :  { %v3216_v32 = vadd.f32 %v3215_v30, %v3214_v24  ;;  %v3279_v33 = vpop.f32.mrf.mxu1  ;;  %v113_v24 = vld [vmem:[%s4874_s0 + $0x2f8] sm:$0xff]  ;;  %v2936_v30 = vcombine.low %v89_v1, %v97_v2 }
  0xeb   :  { %v3280_v34 = vadd.f32 %v3279_v33, %v3278_v26  ;;  %v3217_v35 = vpop.f32.mrf.mxu0  ;;  %2433 = vmatmul.mubr.bf16.gmra.mxu0 %v2886_v25 }
  0xec   :  { %v3281_v36 = vpop.f32.mrf.mxu1  ;;  %2530 = vmatmul.mubr.bf16.gmra.mxu1 %v2888_v27  ;;  %2440 = vmatprep.mubr.bf16.mxu0 %v2903_v28  ;;  %v2934_v27 = vcombine.low %v88_v61, %v96_v62 }
  0xed   :  { %v4572_v37 = vadd.f32 %v3280_v34, %v3216_v32  ;;  %v3218_v38 = vpop.f32.mrf.mxu0  ;;  %2537 = vmatprep.mubr.bf16.mxu1 %v2905_v31  ;;  %v2951_v31 = vcombine.high %v104_v19, %v112_v20  ;;  %v2953_v34 = vcombine.high %v105_v23, %v113_v24 }
  0xee   :  { %v3219_v41 = vadd.f32 %v3218_v38, %v3217_v35  ;;  %v3282_v42 = vpop.f32.mrf.mxu1 }
  0xef   :  { %v3283_v45 = vadd.f32 %v3282_v42, %v3281_v36  ;;  %v3220_v46 = vpop.f32.mrf.mxu0 }
  0xf0   :  { %v3284_v48 = vpop.f32.mrf.mxu1 }
  0xf1   :  { %v4586_v51 = vadd.f32 %v3283_v45, %v3219_v41  ;;  %v3221_v52 = vpop.f32.mrf.mxu0 }
  0xf2   :  { %v3222_v54 = vadd.f32 %v3221_v52, %v3220_v46  ;;  %v3285_v55 = vpop.f32.mrf.mxu1  ;;  %v2950_v52 = vcombine.low %v104_v19, %v112_v20 }
  0xf3   :  { %v3286_v56 = vadd.f32 %v3285_v55, %v3284_v48  ;;  %v3223_v57 = vpop.f32.mrf.mxu0  ;;  %2441 = vmatmul.mubr.bf16.gmra.mxu0 %v2902_v47  ;;  %v121_v47 = vld [vmem:[%s4874_s0 + $0x338] sm:$0xff]  ;;  %v2967_v55 = vcombine.high %v120_v43, %v128_v44 }
  0xf4   :  { %v3287_v58 = vpop.f32.mrf.mxu1  ;;  %2538 = vmatmul.mubr.bf16.gmra.mxu1 %v2904_v49  ;;  %2448 = vmatprep.mubr.bf16.mxu0 %v2919_v50  ;;  %v129_v48 = vld [vmem:[%s4874_s0 + $0x378] sm:$0xff] }
  0xf5   :  { %v4588_v59 = vadd.f32 %v3286_v56, %v3222_v54  ;;  %v3224_v60 = vpop.f32.mrf.mxu0  ;;  %2545 = vmatprep.mubr.bf16.mxu1 %v2921_v53  ;;  %v2952_v54 = vcombine.low %v105_v23, %v113_v24 }
  0xf6   :  { %v3225_v63 = vadd.f32 %v3224_v60, %v3223_v57  ;;  %v3288_v0 = vpop.f32.mrf.mxu1 }
  0xf7   :  { %v3289_v3 = vadd.f32 %v3288_v0, %v3287_v58  ;;  %v3226_v4 = vpop.f32.mrf.mxu0  ;;  %v2969_v58 = vcombine.high %v121_v47, %v129_v48 }
  0xf8   :  { %v3290_v6 = vpop.f32.mrf.mxu1 }
  0xf9   :  { %v4602_v9 = vadd.f32 %v3289_v3, %v3225_v63  ;;  %v3227_v10 = vpop.f32.mrf.mxu0  ;;  %v136_v3 = vld [vmem:[%s4874_s0 + $0x3b0] sm:$0xff] }
  0xfa   :  { %v3228_v12 = vadd.f32 %v3227_v10, %v3226_v4  ;;  %v3291_v13 = vpop.f32.mrf.mxu1  ;;  %v144_v4 = vld [vmem:[%s4874_s0 + $0x3f0] sm:$0xff] }
  0xfb   :  { %v3292_v14 = vadd.f32 %v3291_v13, %v3290_v6  ;;  %v3229_v15 = vpop.f32.mrf.mxu0  ;;  %2449 = vmatmul.mubr.bf16.gmra.mxu0 %v2918_v5 }
  0xfc   :  { %v3293_v16 = vpop.f32.mrf.mxu1  ;;  %2546 = vmatmul.mubr.bf16.gmra.mxu1 %v2920_v7  ;;  %2456 = vmatprep.mubr.bf16.mxu0 %v2935_v8  ;;  %v137_v7 = vld [vmem:[%s4874_s0 + $0x3b8] sm:$0xff] }
  0xfd   :  { %v4604_v17 = vadd.f32 %v3292_v14, %v3228_v12  ;;  %v3230_v18 = vpop.f32.mrf.mxu0  ;;  %2553 = vmatprep.mubr.bf16.mxu1 %v2937_v11  ;;  %v145_v8 = vld [vmem:[%s4874_s0 + $0x3f8] sm:$0xff]  ;;  %v2966_v12 = vcombine.low %v120_v43, %v128_v44  ;;  %v2968_v14 = vcombine.low %v121_v47, %v129_v48 }
  0xfe   :  { %v3231_v21 = vadd.f32 %v3230_v18, %v3229_v15  ;;  %v3294_v22 = vpop.f32.mrf.mxu1  ;;  %v2983_v15 = vcombine.high %v136_v3, %v144_v4  ;;  %v2985_v19 = vcombine.high %v137_v7, %v145_v8 }
  0xff   :  { %v3295_v25 = vadd.f32 %v3294_v22, %v3293_v16  ;;  %v3232_v26 = vpop.f32.mrf.mxu0 }
 0x100   :  { %v3296_v28 = vpop.f32.mrf.mxu1 }
 0x101   :  { %v4618_v32 = vadd.f32 %v3295_v25, %v3231_v21  ;;  %v3233_v33 = vpop.f32.mrf.mxu0 }
 0x102   :  { %v3234_v35 = vadd.f32 %v3233_v33, %v3232_v26  ;;  %v3297_v36 = vpop.f32.mrf.mxu1  ;;  %v2982_v33 = vcombine.low %v136_v3, %v144_v4 }
 0x103   :  { %v3298_v38 = vadd.f32 %v3297_v36, %v3296_v28  ;;  %v3235_v39 = vpop.f32.mrf.mxu0  ;;  %2457 = vmatmul.mubr.bf16.gmra.mxu0 %v2934_v27 }
 0x104   :  { %v3299_v40 = vpop.f32.mrf.mxu1  ;;  %2554 = vmatmul.mubr.bf16.gmra.mxu1 %v2936_v30  ;;  %2464 = vmatprep.mubr.bf16.mxu0 %v2951_v31 }
 0x105   :  { %v4620_v41 = vadd.f32 %v3298_v38, %v3234_v35  ;;  %v3236_v42 = vpop.f32.mrf.mxu0  ;;  %2561 = vmatprep.mubr.bf16.mxu1 %v2953_v34  ;;  %v2984_v35 = vcombine.low %v137_v7, %v145_v8 }
 0x106   :  { %v3237_v45 = vadd.f32 %v3236_v42, %v3235_v39  ;;  %v3300_v46 = vpop.f32.mrf.mxu1 }
 0x107   :  { %v3301_v49 = vadd.f32 %v3300_v46, %v3299_v40  ;;  %v3238_v50 = vpop.f32.mrf.mxu0 }
 0x108   :  { %v3302_v53 = vpop.f32.mrf.mxu1 }
 0x109   :  { %v4634_v56 = vadd.f32 %v3301_v49, %v3237_v45  ;;  %v3239_v57 = vpop.f32.mrf.mxu0 }
 0x10a   :  { %v3240_v60 = vadd.f32 %v3239_v57, %v3238_v50  ;;  %v3303_v61 = vpop.f32.mrf.mxu1 }
 0x10b   :  { %v3304_v62 = vadd.f32 %v3303_v61, %v3302_v53  ;;  %v3241_v63 = vpop.f32.mrf.mxu0  ;;  %2465 = vmatmul.mubr.bf16.gmra.mxu0 %v2950_v52 }
 0x10c   :  { %v3305_v0 = vpop.f32.mrf.mxu1  ;;  %2562 = vmatmul.mubr.bf16.gmra.mxu1 %v2952_v54  ;;  %2472 = vmatprep.mubr.bf16.mxu0 %v2967_v55 }
 0x10d   :  { %v4636_v1 = vadd.f32 %v3304_v62, %v3240_v60  ;;  %v3242_v2 = vpop.f32.mrf.mxu0  ;;  %2569 = vmatprep.mubr.bf16.mxu1 %v2969_v58 }
 0x10e   :  { %v3243_v5 = vadd.f32 %v3242_v2, %v3241_v63  ;;  %v3306_v6 = vpop.f32.mrf.mxu1 }
 0x10f   :  { %v3307_v10 = vadd.f32 %v3306_v6, %v3305_v0  ;;  %v3244_v11 = vpop.f32.mrf.mxu0 }
 0x110   :  { %v3308_v13 = vpop.f32.mrf.mxu1 }
 0x111   :  { %v4650_v16 = vadd.f32 %v3307_v10, %v3243_v5  ;;  %v3245_v18 = vpop.f32.mrf.mxu0 }
 0x112   :  { %v3246_v20 = vadd.f32 %v3245_v18, %v3244_v11  ;;  %v3309_v21 = vpop.f32.mrf.mxu1 }
 0x113   :  { %v3310_v22 = vadd.f32 %v3309_v21, %v3308_v13  ;;  %v3247_v23 = vpop.f32.mrf.mxu0  ;;  %2473 = vmatmul.mubr.bf16.gmra.mxu0 %v2966_v12 }
 0x114   :  { %v3311_v24 = vpop.f32.mrf.mxu1  ;;  %2570 = vmatmul.mubr.bf16.gmra.mxu1 %v2968_v14  ;;  %2480 = vmatprep.mubr.bf16.mxu0 %v2983_v15 }
 0x115   :  { %v4652_v25 = vadd.f32 %v3310_v22, %v3246_v20  ;;  %v3248_v26 = vpop.f32.mrf.mxu0  ;;  %2577 = vmatprep.mubr.bf16.mxu1 %v2985_v19 }
 0x116   :  { %v3249_v27 = vadd.f32 %v3248_v26, %v3247_v23  ;;  %v3312_v28 = vpop.f32.mrf.mxu1 }
 0x117   :  { %v3313_v30 = vadd.f32 %v3312_v28, %v3311_v24  ;;  %v3250_v31 = vpop.f32.mrf.mxu0 }
 0x118   :  { %v3314_v34 = vpop.f32.mrf.mxu1 }
 0x119   :  { %v4654_v36 = vadd.f32 %v3313_v30, %v3249_v27  ;;  %v3251_v38 = vpop.f32.mrf.mxu0 }
 0x11a   :  { %v3252_v39 = vadd.f32 %v3251_v38, %v3250_v31  ;;  %v3315_v40 = vpop.f32.mrf.mxu1 }
 0x11b   :  { %v3316_v42 = vadd.f32 %v3315_v40, %v3314_v34  ;;  %v3253_v43 = vpop.f32.mrf.mxu0  ;;  %2481 = vmatmul.mubr.bf16.gmra.mxu0 %v2982_v33 }
 0x11c   :  { %v3317_v44 = vpop.f32.mrf.mxu1  ;;  %2578 = vmatmul.mubr.bf16.gmra.mxu1 %v2984_v35 }
 0x11d   :  { %v4656_v45 = vadd.f32 %v3316_v42, %v3252_v39  ;;  %v3254_v46 = vpop.f32.mrf.mxu0 }
 0x11e   :  { %v3255_v47 = vadd.f32 %v3254_v46, %v3253_v43  ;;  %v3318_v48 = vpop.f32.mrf.mxu1 }
 0x11f   :  { %v3319_v49 = vadd.f32 %v3318_v48, %v3317_v44  ;;  %v3256_v50 = vpop.f32.mrf.mxu0 }
 0x120   :  { %v3320_v52 = vpop.f32.mrf.mxu1 }
 0x121   :  { %v4658_v53 = vadd.f32 %v3319_v49, %v3255_v47  ;;  %v3257_v54 = vpop.f32.mrf.mxu0 }
 0x122   :  { %v3258_v55 = vadd.f32 %v3257_v54, %v3256_v50  ;;  %v3321_v57 = vpop.f32.mrf.mxu1 }
 0x123   :  { %v3322_v58 = vadd.f32 %v3321_v57, %v3320_v52  ;;  %v3339_v60 = vpop.f32.mrf.mxu0 }
 0x124   :  { %v3403_v61 = vpop.f32.mrf.mxu1 }
 0x125   :  { %v4660_v62 = vadd.f32 %v3322_v58, %v3258_v55  ;;  %v3340_v63 = vpop.f32.mrf.mxu0 }
 0x126   :  { %v3341_v0 = vadd.f32 %v3340_v63, %v3339_v60  ;;  %v3404_v2 = vpop.f32.mrf.mxu1 }
 0x127   :  { %v3405_v3 = vadd.f32 %v3404_v2, %v3403_v61  ;;  %v3342_v4 = vpop.f32.mrf.mxu0 }
 0x128   :  { %v2039_v5 = vadd.f32 %v3341_v0, %v4570_v29  ;;  %v3406_v6 = vpop.f32.mrf.mxu1 }
 0x129   :  { %v3343_v7 = vpop.f32.mrf.mxu0 }
 0x12a   :  { %v4663_v8 = vadd.f32 %v3405_v3, %v2039_v5  ;;  %v3344_v10 = vadd.f32 %v3343_v7, %v3342_v4  ;;  %v3407_v11 = vpop.f32.mrf.mxu1 }
 0x12b   :  { %v3408_v12 = vadd.f32 %v3407_v11, %v3406_v6  ;;  %v3345_v13 = vpop.f32.mrf.mxu0 }
 0x12c   :  { %v2042_v14 = vadd.f32 %v3344_v10, %v4572_v37  ;;  %v3409_v15 = vpop.f32.mrf.mxu1 }
 0x12d   :  { %v3346_v18 = vpop.f32.mrf.mxu0 }
 0x12e   :  { %v4666_v19 = vadd.f32 %v3408_v12, %v2042_v14  ;;  %v3347_v20 = vadd.f32 %v3346_v18, %v3345_v13  ;;  %v3410_v21 = vpop.f32.mrf.mxu1 }
 0x12f   :  { %v3411_v22 = vadd.f32 %v3410_v21, %v3409_v15  ;;  %v3348_v23 = vpop.f32.mrf.mxu0 }
 0x130   :  { %v2047_v29 = vadd.f32 %v3347_v20, %v4586_v51  ;;  %v3412_v24 = vpop.f32.mrf.mxu1 }
 0x131   :  { %v3349_v26 = vpop.f32.mrf.mxu0 }
 0x132   :  { %v4669_v27 = vadd.f32 %v3411_v22, %v2047_v29  ;;  %v3350_v28 = vadd.f32 %v3349_v26, %v3348_v23  ;;  %v3413_v30 = vpop.f32.mrf.mxu1 }
 0x133   :  { %v3414_v31 = vadd.f32 %v3413_v30, %v3412_v24  ;;  %v3351_v33 = vpop.f32.mrf.mxu0 }
 0x134   :  { %v2050_v37 = vadd.f32 %v3350_v28, %v4588_v59  ;;  %v3415_v34 = vpop.f32.mrf.mxu1 }
 0x135   :  { %v3352_v35 = vpop.f32.mrf.mxu0 }
 0x136   :  { %v4672_v38 = vadd.f32 %v3414_v31, %v2050_v37  ;;  %v3353_v39 = vadd.f32 %v3352_v35, %v3351_v33  ;;  %v3416_v40 = vpop.f32.mrf.mxu1 }
 0x137   :  { %v3417_v42 = vadd.f32 %v3416_v40, %v3415_v34  ;;  %v3354_v43 = vpop.f32.mrf.mxu0 }
 0x138   :  { %v2055_v51 = vadd.f32 %v3353_v39, %v4602_v9  ;;  %v3418_v44 = vpop.f32.mrf.mxu1 }
 0x139   :  { %v3355_v46 = vpop.f32.mrf.mxu0 }
 0x13a   :  { %v4675_v47 = vadd.f32 %v3417_v42, %v2055_v51  ;;  %v3356_v48 = vadd.f32 %v3355_v46, %v3354_v43  ;;  %v3419_v49 = vpop.f32.mrf.mxu1 }
 0x13b   :  { %v3420_v50 = vadd.f32 %v3419_v49, %v3418_v44  ;;  %v3357_v52 = vpop.f32.mrf.mxu0 }
 0x13c   :  { %v2058_v59 = vadd.f32 %v3356_v48, %v4604_v17  ;;  %v3421_v54 = vpop.f32.mrf.mxu1 }
 0x13d   :  { %v3358_v55 = vpop.f32.mrf.mxu0 }
 0x13e   :  { %v4678_v57 = vadd.f32 %v3420_v50, %v2058_v59  ;;  %v3359_v58 = vadd.f32 %v3358_v55, %v3357_v52  ;;  %v3422_v60 = vpop.f32.mrf.mxu1 }
 0x13f   :  { %v3423_v61 = vadd.f32 %v3422_v60, %v3421_v54  ;;  %v3360_v63 = vpop.f32.mrf.mxu0 }
 0x140   :  { %v2063_v9 = vadd.f32 %v3359_v58, %v4618_v32  ;;  %v3424_v0 = vpop.f32.mrf.mxu1 }
 0x141   :  { %v3361_v2 = vpop.f32.mrf.mxu0 }
 0x142   :  { %v4681_v3 = vadd.f32 %v3423_v61, %v2063_v9  ;;  %v3362_v4 = vadd.f32 %v3361_v2, %v3360_v63  ;;  %v3425_v5 = vpop.f32.mrf.mxu1 }
 0x143   :  { %v3426_v6 = vadd.f32 %v3425_v5, %v3424_v0  ;;  %v3363_v7 = vpop.f32.mrf.mxu0 }
 0x144   :  { %v2066_v17 = vadd.f32 %v3362_v4, %v4620_v41  ;;  %v3427_v10 = vpop.f32.mrf.mxu1 }
 0x145   :  { %v3364_v11 = vpop.f32.mrf.mxu0 }
 0x146   :  { %v4684_v12 = vadd.f32 %v3426_v6, %v2066_v17  ;;  %v3365_v13 = vadd.f32 %v3364_v11, %v3363_v7  ;;  %v3428_v14 = vpop.f32.mrf.mxu1 }
 0x147   :  { %v3429_v15 = vadd.f32 %v3428_v14, %v3427_v10  ;;  %v3366_v18 = vpop.f32.mrf.mxu0 }
 0x148   :  { %v2071_v32 = vadd.f32 %v3365_v13, %v4634_v56  ;;  %v3430_v20 = vpop.f32.mrf.mxu1 }
 0x149   :  { %v3367_v21 = vpop.f32.mrf.mxu0 }
 0x14a   :  { %v4687_v22 = vadd.f32 %v3429_v15, %v2071_v32  ;;  %v3368_v23 = vadd.f32 %v3367_v21, %v3366_v18  ;;  %v3431_v29 = vpop.f32.mrf.mxu1 }
 0x14b   :  { %v3432_v24 = vadd.f32 %v3431_v29, %v3430_v20  ;;  %v3369_v26 = vpop.f32.mrf.mxu0 }
 0x14c   :  { %v2074_v41 = vadd.f32 %v3368_v23, %v4636_v1  ;;  %v3433_v28 = vpop.f32.mrf.mxu1 }
 0x14d   :  { %v3370_v30 = vpop.f32.mrf.mxu0 }
 0x14e   :  { %v4690_v31 = vadd.f32 %v3432_v24, %v2074_v41  ;;  %v3371_v33 = vadd.f32 %v3370_v30, %v3369_v26  ;;  %v3434_v37 = vpop.f32.mrf.mxu1 }
 0x14f   :  { %v3435_v34 = vadd.f32 %v3434_v37, %v3433_v28  ;;  %v3372_v35 = vpop.f32.mrf.mxu0 }
 0x150   :  { %v2079_v56 = vadd.f32 %v3371_v33, %v4650_v16  ;;  %v3436_v39 = vpop.f32.mrf.mxu1 }
 0x151   :  { %v3373_v40 = vpop.f32.mrf.mxu0 }
 0x152   :  { %v4693_v42 = vadd.f32 %v3435_v34, %v2079_v56  ;;  %v3374_v43 = vadd.f32 %v3373_v40, %v3372_v35  ;;  %v3437_v51 = vpop.f32.mrf.mxu1 }
 0x153   :  { %v3438_v44 = vadd.f32 %v3437_v51, %v3436_v39  ;;  %v3375_v46 = vpop.f32.mrf.mxu0 }
 0x154   :  { %v2082_v1 = vadd.f32 %v3374_v43, %v4652_v25  ;;  %v3439_v48 = vpop.f32.mrf.mxu1 }
 0x155   :  { %v3376_v49 = vpop.f32.mrf.mxu0 }
 0x156   :  { %v4696_v50 = vadd.f32 %v3438_v44, %v2082_v1  ;;  %v3377_v52 = vadd.f32 %v3376_v49, %v3375_v46  ;;  %v3440_v59 = vpop.f32.mrf.mxu1 }
 0x157   :  { %v3441_v54 = vadd.f32 %v3440_v59, %v3439_v48  ;;  %v3378_v55 = vpop.f32.mrf.mxu0 }
 0x158   :  { %v2087_v16 = vadd.f32 %v3377_v52, %v4654_v36  ;;  %v3442_v58 = vpop.f32.mrf.mxu1 }
 0x159   :  { %v3379_v60 = vpop.f32.mrf.mxu0 }
 0x15a   :  { %v4699_v61 = vadd.f32 %v3441_v54, %v2087_v16  ;;  %v3380_v63 = vadd.f32 %v3379_v60, %v3378_v55  ;;  %v3443_v9 = vpop.f32.mrf.mxu1 }
 0x15b   :  { %v3444_v0 = vadd.f32 %v3443_v9, %v3442_v58  ;;  %v3381_v2 = vpop.f32.mrf.mxu0 }
 0x15c   :  { %v2090_v25 = vadd.f32 %v3380_v63, %v4656_v45  ;;  %v3445_v4 = vpop.f32.mrf.mxu1 }
 0x15d   :  { %v3382_v5 = vpop.f32.mrf.mxu0 }
 0x15e   :  { %v4702_v6 = vadd.f32 %v3444_v0, %v2090_v25  ;;  %v3383_v7 = vadd.f32 %v3382_v5, %v3381_v2  ;;  %v3446_v17 = vpop.f32.mrf.mxu1 }
 0x15f   :  { %v3447_v10 = vadd.f32 %v3446_v17, %v3445_v4  ;;  %v3384_v11 = vpop.f32.mrf.mxu0 }
 0x160   :  { %v2095_v36 = vadd.f32 %v3383_v7, %v4658_v53  ;;  %v3448_v13 = vpop.f32.mrf.mxu1 }
 0x161   :  { %v3385_v14 = vpop.f32.mrf.mxu0 }
 0x162   :  { %v4705_v15 = vadd.f32 %v3447_v10, %v2095_v36  ;;  %v3386_v18 = vadd.f32 %v3385_v14, %v3384_v11  ;;  %v3449_v32 = vpop.f32.mrf.mxu1 }
 0x163   :  { %v3450_v20 = vadd.f32 %v3449_v32, %v3448_v13  ;;  %v3467_v21 = vpop.f32.mrf.mxu0 }
 0x164   :  { %v2098_v45 = vadd.f32 %v3386_v18, %v4660_v62  ;;  %v3531_v23 = vpop.f32.mrf.mxu1 }
 0x165   :  { %v3468_v29 = vpop.f32.mrf.mxu0 }
 0x166   :  { %v4708_v24 = vadd.f32 %v3450_v20, %v2098_v45  ;;  %v3469_v26 = vadd.f32 %v3468_v29, %v3467_v21  ;;  %v3532_v41 = vpop.f32.mrf.mxu1 }
 0x167   :  { %v3533_v28 = vadd.f32 %v3532_v41, %v3531_v23  ;;  %v3470_v30 = vpop.f32.mrf.mxu0 }
 0x168   :  { %v2233_v53 = vadd.f32 %v3469_v26, %v4663_v8  ;;  %v3534_v33 = vpop.f32.mrf.mxu1 }
 0x169   :  { %v3471_v37 = vpop.f32.mrf.mxu0 }
 0x16a   :  { %v4711_v34 = vadd.f32 %v3533_v28, %v2233_v53  ;;  %v3472_v35 = vadd.f32 %v3471_v37, %v3470_v30  ;;  %v3535_v56 = vpop.f32.mrf.mxu1 }
 0x16b   :  { %v3536_v39 = vadd.f32 %v3535_v56, %v3534_v33  ;;  %v3473_v40 = vpop.f32.mrf.mxu0 }
 0x16c   :  { %v2236_v62 = vadd.f32 %v3472_v35, %v4666_v19  ;;  %v3537_v43 = vpop.f32.mrf.mxu1 }
 0x16d   :  { %v3474_v51 = vpop.f32.mrf.mxu0 }
 0x16e   :  { %v4714_v44 = vadd.f32 %v3536_v39, %v2236_v62  ;;  %v3475_v46 = vadd.f32 %v3474_v51, %v3473_v40  ;;  %v3538_v1 = vpop.f32.mrf.mxu1 }
 0x16f   :  { %v3539_v48 = vadd.f32 %v3538_v1, %v3537_v43  ;;  %v3476_v49 = vpop.f32.mrf.mxu0 }
 0x170   :  { %v2241_v8 = vadd.f32 %v3475_v46, %v4669_v27  ;;  %v3540_v52 = vpop.f32.mrf.mxu1 }
 0x171   :  { %v3477_v59 = vpop.f32.mrf.mxu0 }
 0x172   :  { %v4717_v54 = vadd.f32 %v3539_v48, %v2241_v8  ;;  %v3478_v55 = vadd.f32 %v3477_v59, %v3476_v49  ;;  %v3541_v16 = vpop.f32.mrf.mxu1 }
 0x173   :  { %v3542_v58 = vadd.f32 %v3541_v16, %v3540_v52  ;;  %v3479_v60 = vpop.f32.mrf.mxu0 }
 0x174   :  { %v2244_v19 = vadd.f32 %v3478_v55, %v4672_v38  ;;  %v3543_v63 = vpop.f32.mrf.mxu1 }
 0x175   :  { %v3480_v9 = vpop.f32.mrf.mxu0 }
 0x176   :  { %v4720_v0 = vadd.f32 %v3542_v58, %v2244_v19  ;;  %v3481_v2 = vadd.f32 %v3480_v9, %v3479_v60  ;;  %v3544_v25 = vpop.f32.mrf.mxu1 }
 0x177   :  { %v3545_v4 = vadd.f32 %v3544_v25, %v3543_v63  ;;  %v3482_v5 = vpop.f32.mrf.mxu0 }
 0x178   :  { %v2249_v27 = vadd.f32 %v3481_v2, %v4675_v47  ;;  %v3546_v7 = vpop.f32.mrf.mxu1 }
 0x179   :  { %v3483_v17 = vpop.f32.mrf.mxu0 }
 0x17a   :  { %v4723_v10 = vadd.f32 %v3545_v4, %v2249_v27  ;;  %v3484_v11 = vadd.f32 %v3483_v17, %v3482_v5  ;;  %v3547_v36 = vpop.f32.mrf.mxu1 }
 0x17b   :  { %v3548_v13 = vadd.f32 %v3547_v36, %v3546_v7  ;;  %v3485_v14 = vpop.f32.mrf.mxu0 }
 0x17c   :  { %v2252_v38 = vadd.f32 %v3484_v11, %v4678_v57  ;;  %v3549_v18 = vpop.f32.mrf.mxu1 }
 0x17d   :  { %v3486_v32 = vpop.f32.mrf.mxu0 }
 0x17e   :  { %v4726_v20 = vadd.f32 %v3548_v13, %v2252_v38  ;;  %v3487_v21 = vadd.f32 %v3486_v32, %v3485_v14  ;;  %v3550_v45 = vpop.f32.mrf.mxu1 }
 0x17f   :  { %v3551_v23 = vadd.f32 %v3550_v45, %v3549_v18  ;;  %v3488_v29 = vpop.f32.mrf.mxu0 }
 0x180   :  { %v2257_v47 = vadd.f32 %v3487_v21, %v4681_v3  ;;  %v3552_v26 = vpop.f32.mrf.mxu1 }
 0x181   :  { %v3489_v41 = vpop.f32.mrf.mxu0 }
 0x182   :  { %v4729_v28 = vadd.f32 %v3551_v23, %v2257_v47  ;;  %v3490_v30 = vadd.f32 %v3489_v41, %v3488_v29  ;;  %v3553_v53 = vpop.f32.mrf.mxu1 }
 0x183   :  { %v3554_v33 = vadd.f32 %v3553_v53, %v3552_v26  ;;  %v3491_v37 = vpop.f32.mrf.mxu0 }
 0x184   :  { %v2260_v57 = vadd.f32 %v3490_v30, %v4684_v12  ;;  %v3555_v35 = vpop.f32.mrf.mxu1 }
 0x185   :  { %v3492_v56 = vpop.f32.mrf.mxu0 }
 0x186   :  { %v4732_v39 = vadd.f32 %v3554_v33, %v2260_v57  ;;  %v3493_v40 = vadd.f32 %v3492_v56, %v3491_v37  ;;  %v3556_v62 = vpop.f32.mrf.mxu1 }
 0x187   :  { %v3557_v43 = vadd.f32 %v3556_v62, %v3555_v35  ;;  %v3494_v51 = vpop.f32.mrf.mxu0 }
 0x188   :  { %v2265_v3 = vadd.f32 %v3493_v40, %v4687_v22  ;;  %v3558_v46 = vpop.f32.mrf.mxu1 }
 0x189   :  { %v3495_v1 = vpop.f32.mrf.mxu0 }
 0x18a   :  { %v4735_v48 = vadd.f32 %v3557_v43, %v2265_v3  ;;  %v3496_v49 = vadd.f32 %v3495_v1, %v3494_v51  ;;  %v3559_v8 = vpop.f32.mrf.mxu1 }
 0x18b   :  { %v3560_v52 = vadd.f32 %v3559_v8, %v3558_v46  ;;  %v3497_v59 = vpop.f32.mrf.mxu0 }
 0x18c   :  { %v2268_v12 = vadd.f32 %v3496_v49, %v4690_v31  ;;  %v3561_v55 = vpop.f32.mrf.mxu1 }
 0x18d   :  { %v3498_v16 = vpop.f32.mrf.mxu0 }
 0x18e   :  { %v4738_v58 = vadd.f32 %v3560_v52, %v2268_v12  ;;  %v3499_v60 = vadd.f32 %v3498_v16, %v3497_v59  ;;  %v3562_v19 = vpop.f32.mrf.mxu1 }
 0x18f   :  { %v3563_v63 = vadd.f32 %v3562_v19, %v3561_v55  ;;  %v3500_v9 = vpop.f32.mrf.mxu0 }
 0x190   :  { %v2273_v22 = vadd.f32 %v3499_v60, %v4693_v42  ;;  %v3564_v2 = vpop.f32.mrf.mxu1 }
 0x191   :  { %v3501_v25 = vpop.f32.mrf.mxu0 }
 0x192   :  { %v4741_v4 = vadd.f32 %v3563_v63, %v2273_v22  ;;  %v3502_v5 = vadd.f32 %v3501_v25, %v3500_v9  ;;  %v3565_v27 = vpop.f32.mrf.mxu1 }
 0x193   :  { %v3566_v7 = vadd.f32 %v3565_v27, %v3564_v2  ;;  %v3503_v17 = vpop.f32.mrf.mxu0 }
 0x194   :  { %v2276_v31 = vadd.f32 %v3502_v5, %v4696_v50  ;;  %v3567_v11 = vpop.f32.mrf.mxu1 }
 0x195   :  { %v3504_v36 = vpop.f32.mrf.mxu0 }
 0x196   :  { %v4744_v13 = vadd.f32 %v3566_v7, %v2276_v31  ;;  %v3505_v14 = vadd.f32 %v3504_v36, %v3503_v17  ;;  %v3568_v38 = vpop.f32.mrf.mxu1 }
 0x197   :  { %v3569_v18 = vadd.f32 %v3568_v38, %v3567_v11  ;;  %v3506_v32 = vpop.f32.mrf.mxu0 }
 0x198   :  { %v2281_v42 = vadd.f32 %v3505_v14, %v4699_v61  ;;  %v3570_v21 = vpop.f32.mrf.mxu1 }
 0x199   :  { %v3507_v45 = vpop.f32.mrf.mxu0 }
 0x19a   :  { %v4747_v23 = vadd.f32 %v3569_v18, %v2281_v42  ;;  %v3508_v29 = vadd.f32 %v3507_v45, %v3506_v32  ;;  %v3571_v47 = vpop.f32.mrf.mxu1 }
 0x19b   :  { %v3572_v26 = vadd.f32 %v3571_v47, %v3570_v21  ;;  %v3509_v41 = vpop.f32.mrf.mxu0 }
 0x19c   :  { %v2284_v50 = vadd.f32 %v3508_v29, %v4702_v6  ;;  %v3573_v30 = vpop.f32.mrf.mxu1 }
 0x19d   :  { %v3510_v53 = vpop.f32.mrf.mxu0 }
 0x19e   :  { %v4750_v33 = vadd.f32 %v3572_v26, %v2284_v50  ;;  %v3511_v37 = vadd.f32 %v3510_v53, %v3509_v41  ;;  %v3574_v57 = vpop.f32.mrf.mxu1 }
 0x19f   :  { %v4752_v35 = vpop.f32.mrf.mxu0  ;;  %v3575_v56 = vadd.f32 %v3574_v57, %v3573_v30 }
 0x1a0   :  { %v2289_v61 = vadd.f32 %v3511_v37, %v4705_v15  ;;  %v4755_v40 = vpop.f32.mrf.mxu1 }
 0x1a1   :  { %v4757_v62 = vpop.f32.mrf.mxu0 }
 0x1a2   :  { %v4759_v43 = vadd.f32 %v3575_v56, %v2289_v61  ;;  %v4761_v51 = vpop.f32.mrf.mxu1 }
 0x1a3   :  { %v3595_v6 = vpop.f32.mrf.mxu0 }
 0x1a4   :  { %v3659_v3 = vpop.f32.mrf.mxu1 }
 0x1a5   :  { %v3596_v46 = vpop.f32.mrf.mxu0 }
 0x1a6   :  { %v3597_v1 = vadd.f32 %v3596_v46, %v3595_v6  ;;  %v3660_v49 = vpop.f32.mrf.mxu1 }
 0x1a7   :  { %v3598_v8 = vpop.f32.mrf.mxu0  ;;  %v3661_v60 = vadd.f32 %v3660_v49, %v3659_v3 }
 0x1a8   :  { %v3662_v52 = vpop.f32.mrf.mxu1  ;;  %v2427_v12 = vadd.f32 %v3597_v1, %v4711_v34 }
 0x1a9   :  { %v3599_v59 = vpop.f32.mrf.mxu0 }
 0x1aa   :  { %v3600_v15 = vadd.f32 %v3599_v59, %v3598_v8  ;;  %v3663_v55 = vpop.f32.mrf.mxu1  ;;  %v4765_v2 = vadd.f32 %v3661_v60, %v2427_v12 }
 0x1ab   :  { %v3601_v16 = vpop.f32.mrf.mxu0  ;;  %v3664_v63 = vadd.f32 %v3663_v55, %v3662_v52 }
 0x1ac   :  { %v2430_v19 = vadd.f32 %v3600_v15, %v4714_v44  ;;  %v3665_v9 = vpop.f32.mrf.mxu1 }
 0x1ad   :  { %v3602_v22 = vpop.f32.mrf.mxu0 }
 0x1ae   :  { %v4767_v25 = vadd.f32 %v3664_v63, %v2430_v19  ;;  %v3603_v5 = vadd.f32 %v3602_v22, %v3601_v16  ;;  %v3666_v27 = vpop.f32.mrf.mxu1 }
 0x1af   :  { %v3604_v7 = vpop.f32.mrf.mxu0  ;;  %v3667_v31 = vadd.f32 %v3666_v27, %v3665_v9 }
 0x1b0   :  { %v2586_v17 = vadd.f32 %v4767_v25, %v4765_v2  ;;  %v2435_v34 = vadd.f32 %v3603_v5, %v4717_v54  ;;  %v3668_v11 = vpop.f32.mrf.mxu1 }
 0x1b1   :  { %v3605_v36 = vpop.f32.mrf.mxu0 }
 0x1b2   :  { %v4772_v14 = vadd.f32 %v3667_v31, %v2435_v34  ;;  %v3606_v44 = vadd.f32 %v3605_v36, %v3604_v7  ;;  %v3669_v38 = vpop.f32.mrf.mxu1 }
 0x1b3   :  { %v3607_v18 = vpop.f32.mrf.mxu0  ;;  %v3670_v21 = vadd.f32 %v3669_v38, %v3668_v11 }
 0x1b4   :  { %v2587_v32 = vadd.f32 %v2586_v17, %v4772_v14  ;;  %v2438_v42 = vadd.f32 %v3606_v44, %v4720_v0  ;;  %v3671_v45 = vpop.f32.mrf.mxu1 }
 0x1b5   :  { %v3608_v29 = vpop.f32.mrf.mxu0 }
 0x1b6   :  { %v4776_v47 = vadd.f32 %v3670_v21, %v2438_v42  ;;  %v3609_v26 = vadd.f32 %v3608_v29, %v3607_v18  ;;  %v3672_v41 = vpop.f32.mrf.mxu1 }
 0x1b7   :  { %v3610_v54 = vpop.f32.mrf.mxu0  ;;  %v3673_v53 = vadd.f32 %v3672_v41, %v3671_v45 }
 0x1b8   :  { %v2588_v50 = vadd.f32 %v2587_v32, %v4776_v47  ;;  %v2443_v30 = vadd.f32 %v3609_v26, %v4723_v10  ;;  %v3674_v37 = vpop.f32.mrf.mxu1 }
 0x1b9   :  { %v3611_v57 = vpop.f32.mrf.mxu0 }
 0x1ba   :  { %v4780_v61 = vadd.f32 %v3673_v53, %v2443_v30  ;;  %v3612_v56 = vadd.f32 %v3611_v57, %v3610_v54  ;;  %v3675_v6 = vpop.f32.mrf.mxu1 }
 0x1bb   :  { %v3613_v0 = vpop.f32.mrf.mxu0  ;;  %v3676_v1 = vadd.f32 %v3675_v6, %v3674_v37 }
 0x1bc   :  { %v2589_v3 = vadd.f32 %v2588_v50, %v4780_v61  ;;  %v2446_v46 = vadd.f32 %v3612_v56, %v4726_v20  ;;  %v3677_v49 = vpop.f32.mrf.mxu1 }
 0x1bd   :  { %v3614_v8 = vpop.f32.mrf.mxu0 }
 0x1be   :  { %v4784_v52 = vadd.f32 %v3676_v1, %v2446_v46  ;;  %v3615_v59 = vadd.f32 %v3614_v8, %v3613_v0  ;;  %v3678_v12 = vpop.f32.mrf.mxu1 }
 0x1bf   :  { %v3616_v10 = vpop.f32.mrf.mxu0  ;;  %v3679_v16 = vadd.f32 %v3678_v12, %v3677_v49 }
 0x1c0   :  { %v2590_v15 = vadd.f32 %v2589_v3, %v4784_v52  ;;  %v2451_v55 = vadd.f32 %v3615_v59, %v4729_v28  ;;  %v3680_v60 = vpop.f32.mrf.mxu1 }
 0x1c1   :  { %v3617_v19 = vpop.f32.mrf.mxu0 }
 0x1c2   :  { %v4788_v63 = vadd.f32 %v3679_v16, %v2451_v55  ;;  %v3618_v9 = vadd.f32 %v3617_v19, %v3616_v10  ;;  %v3681_v22 = vpop.f32.mrf.mxu1 }
 0x1c3   :  { %v3619_v20 = vpop.f32.mrf.mxu0  ;;  %v3682_v7 = vadd.f32 %v3681_v22, %v3680_v60 }
 0x1c4   :  { %v2591_v5 = vadd.f32 %v2590_v15, %v4788_v63  ;;  %v2454_v27 = vadd.f32 %v3618_v9, %v4732_v39  ;;  %v3683_v17 = vpop.f32.mrf.mxu1 }
 0x1c5   :  { %v3620_v34 = vpop.f32.mrf.mxu0 }
 0x1c6   :  { %v4792_v31 = vadd.f32 %v3682_v7, %v2454_v27  ;;  %v3621_v11 = vadd.f32 %v3620_v34, %v3619_v20  ;;  %v3684_v36 = vpop.f32.mrf.mxu1  ;;  %v3514_v7 = vadd.f32 %v4757_v62, %v4752_v35 }
 0x1c7   :  { %v3622_v28 = vpop.f32.mrf.mxu0  ;;  %v3685_v18 = vadd.f32 %v3684_v36, %v3683_v17 }
 0x1c8   :  { %v2592_v44 = vadd.f32 %v2591_v5, %v4792_v31  ;;  %v2459_v38 = vadd.f32 %v3621_v11, %v4735_v48  ;;  %v3686_v32 = vpop.f32.mrf.mxu1 }
 0x1c9   :  { %v3623_v42 = vpop.f32.mrf.mxu0 }
 0x1ca   :  { %v4796_v21 = vadd.f32 %v3685_v18, %v2459_v38  ;;  %v3624_v45 = vadd.f32 %v3623_v42, %v3622_v28  ;;  %v3687_v29 = vpop.f32.mrf.mxu1 }
 0x1cb   :  { %v3625_v39 = vpop.f32.mrf.mxu0  ;;  %v3688_v54 = vadd.f32 %v3687_v29, %v3686_v32  ;;  %v2292_v32 = vadd.f32 %v3514_v7, %v4708_v24 }
 0x1cc   :  { %v2593_v26 = vadd.f32 %v2592_v44, %v4796_v21  ;;  %v2462_v41 = vadd.f32 %v3624_v45, %v4738_v58  ;;  %v3689_v50 = vpop.f32.mrf.mxu1 }
 0x1cd   :  { %v3626_v30 = vpop.f32.mrf.mxu0 }
 0x1ce   :  { %v4800_v53 = vadd.f32 %v3688_v54, %v2462_v41  ;;  %v3627_v37 = vadd.f32 %v3626_v30, %v3625_v39  ;;  %v3690_v57 = vpop.f32.mrf.mxu1  ;;  %v3578_v39 = vadd.f32 %v4761_v51, %v4755_v40 }
 0x1cf   :  { %v3628_v48 = vpop.f32.mrf.mxu0  ;;  %v3691_v0 = vadd.f32 %v3690_v57, %v3689_v50 }
 0x1d0   :  { %v2594_v56 = vadd.f32 %v2593_v26, %v4800_v53  ;;  %v2467_v6 = vadd.f32 %v3627_v37, %v4741_v4  ;;  %v3692_v3 = vpop.f32.mrf.mxu1  ;;  %v2389_v50 = vadd.f32 %v3578_v39, %v2292_v32 }
 0x1d1   :  { %v3629_v46 = vpop.f32.mrf.mxu0 }
 0x1d2   :  { %v4804_v1 = vadd.f32 %v3691_v0, %v2467_v6  ;;  %v3630_v49 = vadd.f32 %v3629_v46, %v3628_v48  ;;  %v3693_v8 = vpop.f32.mrf.mxu1 }
 0x1d3   :  { %v3631_v58 = vpop.f32.mrf.mxu0  ;;  %v3694_v10 = vadd.f32 %v3693_v8, %v3692_v3 }
 0x1d4   :  { %v2595_v59 = vadd.f32 %v2594_v56, %v4804_v1  ;;  %v2470_v12 = vadd.f32 %v3630_v49, %v4744_v13  ;;  %v3695_v15 = vpop.f32.mrf.mxu1 }
 0x1d5   :  { %v3632_v55 = vpop.f32.mrf.mxu0 }
 0x1d6   :  { %v2567_v16 = vadd.f32 %v3694_v10, %v2470_v12  ;;  %v3633_v60 = vadd.f32 %v3632_v55, %v3631_v58  ;;  %v3696_v19 = vpop.f32.mrf.mxu1 }
 0x1d7   :  { %v3634_v9 = vpop.f32.mrf.mxu0  ;;  %v3697_v20 = vadd.f32 %v3696_v19, %v3695_v15 }
 0x1d8   :  { %v2596_v4 = vadd.f32 %v2595_v59, %v2567_v16  ;;  %v2475_v22 = vadd.f32 %v3633_v60, %v4747_v23  ;;  %v3698_v5 = vpop.f32.mrf.mxu1 }
 0x1d9   :  { %v3635_v27 = vpop.f32.mrf.mxu0 }
 0x1da   :  { %v2572_v17 = vadd.f32 %v3697_v20, %v2475_v22  ;;  %v3636_v34 = vadd.f32 %v3635_v27, %v3634_v9  ;;  %v3699_v11 = vpop.f32.mrf.mxu1 }
 0x1db   :  { %v3637_v13 = vpop.f32.mrf.mxu0  ;;  %v3700_v44 = vadd.f32 %v3699_v11, %v3698_v5 }
 0x1dc   :  { %v2597_v36 = vadd.f32 %v2596_v4, %v2572_v17  ;;  %v2478_v28 = vadd.f32 %v3636_v34, %v4750_v33  ;;  %v3701_v38 = vpop.f32.mrf.mxu1 }
 0x1dd   :  { %v3638_v18 = vpop.f32.mrf.mxu0 }
 0x1de   :  { %v2575_v42 = vadd.f32 %v3700_v44, %v2478_v28  ;;  %v3639_v23 = vadd.f32 %v3638_v18, %v3637_v13  ;;  %v3702_v45 = vpop.f32.mrf.mxu1 }
 0x1df   :  { %v3640_v29 = vpop.f32.mrf.mxu0  ;;  %v3703_v26 = vadd.f32 %v3702_v45, %v3701_v38 }
 0x1e0   :  { %v2598_v35 = vadd.f32 %v2597_v36, %v2575_v42  ;;  %v2483_v62 = vadd.f32 %v3639_v23, %v4759_v43  ;;  %v3704_v41 = vpop.f32.mrf.mxu1 }
 0x1e1   :  { %v3641_v54 = vpop.f32.mrf.mxu0 }
 0x1e2   :  { %v2580_v33 = vadd.f32 %v3703_v26, %v2483_v62  ;;  %v3642_v30 = vadd.f32 %v3641_v54, %v3640_v29  ;;  %v3705_v37 = vpop.f32.mrf.mxu1 }
 0x1e3   :  { %v3706_v24 = vadd.f32 %v3705_v37, %v3704_v41 }
 0x1e4   :  { %v2599_v57 = vadd.f32 %v2598_v35, %v2580_v33  ;;  %v2486_v48 = vadd.f32 %v3642_v30, %v2389_v50 }
 0x1e6   :  { %v2583_v56 = vadd.f32 %v3706_v24, %v2486_v48 }
 0x1e8   :  { %v2600_v6 = vadd.f32 %v2599_v57, %v2583_v56 }
 0x1ea   :  { %v2601_v0 = vrot.slane %v2600_v6, 4 }
 0x1ec   :  { %v2602_v3 = vadd.f32 %v2601_v0, %v2600_v6 }
 0x1ee   :  { %v2603_v46 = vrot.slane %v2602_v3, 2 }
 0x1f0   :  { %v2604_v49 = vadd.f32 %v2603_v46, %v2602_v3 }
 0x1f2   :  { %v2605_v40 = vrot.slane %v2604_v49, 1 }
 0x1f4   :  { %v2606_v51 = vadd.f32 %v2605_v40, %v2604_v49 }
 0x1f6   :  { %v2607_v8 = vmul.f32 0.0078125, %v2606_v51 }
 0x1f8   :  { %v2608_v43 = vsub.f32 %v4765_v2, %v2607_v8  ;;  %v2609_v58 = vsub.f32 %v4767_v25, %v2607_v8  ;;  %v2610_v59 = vsub.f32 %v4772_v14, %v2607_v8  ;;  %v2611_v12 = vsub.f32 %v4776_v47, %v2607_v8 }
 0x1f9   :  { %v2612_v10 = vsub.f32 %v4780_v61, %v2607_v8  ;;  %v2613_v15 = vsub.f32 %v4784_v52, %v2607_v8  ;;  %v2614_v55 = vsub.f32 %v4788_v63, %v2607_v8  ;;  %v2615_v60 = vsub.f32 %v4792_v31, %v2607_v8 }
 0x1fa   :  { %v2616_v19 = vsub.f32 %v4796_v21, %v2607_v8  ;;  %v2617_v9 = vsub.f32 %v4800_v53, %v2607_v8  ;;  %v2618_v2 = vsub.f32 %v4804_v1, %v2607_v8  ;;  %v2619_v4 = vsub.f32 %v2567_v16, %v2607_v8 }
 0x1fb   :  { %v2620_v25 = vsub.f32 %v2572_v17, %v2607_v8  ;;  %v2621_v22 = vsub.f32 %v2575_v42, %v2607_v8  ;;  %v2622_v14 = vsub.f32 %v2580_v33, %v2607_v8  ;;  %v2623_v20 = vsub.f32 %v2583_v56, %v2607_v8 }
 0x1fc   :  { %v2624_v47 = vmul.f32 %v2608_v43, %v2608_v43  ;;  %v2625_v5 = vmul.f32 %v2609_v58, %v2609_v58  ;;  %v2626_v61 = vmul.f32 %v2610_v59, %v2610_v59  ;;  %v2627_v52 = vmul.f32 %v2611_v12, %v2611_v12 }
 0x1fd   :  { %v2628_v63 = vmul.f32 %v2612_v10, %v2612_v10  ;;  %v2629_v31 = vmul.f32 %v2613_v15, %v2613_v15  ;;  %v2630_v21 = vmul.f32 %v2614_v55, %v2614_v55  ;;  %v2631_v53 = vmul.f32 %v2615_v60, %v2615_v60 }
 0x1fe   :  { %v2640_v27 = vadd.f32 %v2625_v5, %v2624_v47  ;;  %v2632_v1 = vmul.f32 %v2616_v19, %v2616_v19  ;;  %v2633_v17 = vmul.f32 %v2617_v9, %v2617_v9  ;;  %v2634_v44 = vmul.f32 %v2618_v2, %v2618_v2  ;;  %v3114_v47 = vld [vmem:[%s4875_s2] ss:$0 sm:$0xff] }
 0x1ff   :  { %v2635_v18 = vmul.f32 %v2619_v4, %v2619_v4  ;;  %v2636_v42 = vmul.f32 %v2620_v25, %v2620_v25  ;;  %v2637_v45 = vmul.f32 %v2621_v22, %v2621_v22  ;;  %v2638_v39 = vmul.f32 %v2622_v14, %v2622_v14 }
 0x200   :  { %v2641_v7 = vadd.f32 %v2640_v27, %v2626_v61  ;;  %v2639_v62 = vmul.f32 %v2623_v20, %v2623_v20 }
 0x202   :  { %v2642_v34 = vadd.f32 %v2641_v7, %v2627_v52 }
 0x204   :  { %v2643_v11 = vadd.f32 %v2642_v34, %v2628_v63 }
 0x206   :  { %v2644_v13 = vadd.f32 %v2643_v11, %v2629_v31  ;;  %v3115_v11 = vld [vmem:[%s4876_s3] ss:$0 sm:$0xff] }
 0x208   :  { %v2645_v36 = vadd.f32 %v2644_v13, %v2630_v21 }
 0x20a   :  { %v2646_v16 = vadd.f32 %v2645_v36, %v2631_v53 }
 0x20c   :  { %v2647_v28 = vadd.f32 %v2646_v16, %v2632_v1 }
 0x20e   :  { %v2648_v38 = vadd.f32 %v2647_v28, %v2633_v17 }
 0x210   :  { %v2649_v32 = vadd.f32 %v2648_v38, %v2634_v44 }
 0x212   :  { %v2650_v23 = vadd.f32 %v2649_v32, %v2635_v18 }
 0x214   :  { %v2651_v29 = vadd.f32 %v2650_v23, %v2636_v42 }
 0x216   :  { %v2652_v35 = vadd.f32 %v2651_v29, %v2637_v45 }
 0x218   :  { %v2653_v26 = vadd.f32 %v2652_v35, %v2638_v39 }
 0x21a   :  { %v2654_v41 = vadd.f32 %v2653_v26, %v2639_v62 }
 0x21c   :  { %v2655_v54 = vrot.slane %v2654_v41, 4 }
 0x21e   :  { %v2656_v50 = vadd.f32 %v2655_v54, %v2654_v41 }
 0x220   :  { %v2657_v33 = vrot.slane %v2656_v50, 2 }
 0x222   :  { %v2658_v30 = vadd.f32 %v2657_v33, %v2656_v50 }
 0x224   :  { %v2659_v37 = vrot.slane %v2658_v30, 1 }
 0x226   :  { %v2660_v57 = vadd.f32 %v2659_v37, %v2658_v30 }
 0x228   :  { %v2661_v48 = vmul.f32 0.0078125, %v2660_v57 }
 0x22a   :  { %v2662_v24 = vadd.f32 1e-05, %v2661_v48 }
 0x22c   :  { %3835 = vrsqrt.f32 %v2662_v24 }
 0x239   :  { %v3836_v56 = vpop.eup %3835 }
 0x23a   :  { %v2664_v6 = vmul.f32 %v3836_v56, %v2608_v43  ;;  %v2665_v0 = vmul.f32 %v3836_v56, %v2609_v58  ;;  %v2666_v3 = vmul.f32 %v3836_v56, %v2610_v59  ;;  %v2667_v46 = vmul.f32 %v3836_v56, %v2611_v12 }
 0x23b   :  { %v2668_v49 = vmul.f32 %v3836_v56, %v2612_v10  ;;  %v2669_v40 = vmul.f32 %v3836_v56, %v2613_v15  ;;  %v2670_v51 = vmul.f32 %v3836_v56, %v2614_v55  ;;  %v2671_v8 = vmul.f32 %v3836_v56, %v2615_v60 }
 0x23c   :  { %v2672_v5 = vmul.f32 %v3836_v56, %v2616_v19  ;;  %v2673_v61 = vmul.f32 %v3836_v56, %v2617_v9  ;;  %v2674_v27 = vmul.f32 %v3836_v56, %v2618_v2  ;;  %v2675_v52 = vmul.f32 %v3836_v56, %v2619_v4 }
 0x23d   :  { %v2676_v7 = vmul.f32 %v3836_v56, %v2620_v25  ;;  %v2677_v63 = vmul.f32 %v3836_v56, %v2621_v22  ;;  %v2678_v34 = vmul.f32 %v3836_v56, %v2622_v14  ;;  %v2679_v31 = vmul.f32 %v3836_v56, %v2623_v20 }
 0x23e   :  { %v2687_v43 = vmul.f32 %v3114_v47, %v2664_v6  ;;  %v2688_v58 = vmul.f32 %v3114_v47, %v2665_v0  ;;  %v2689_v59 = vmul.f32 %v3114_v47, %v2666_v3  ;;  %v2690_v12 = vmul.f32 %v3114_v47, %v2667_v46 }
 0x23f   :  { %v2691_v10 = vmul.f32 %v3114_v47, %v2668_v49  ;;  %v2692_v15 = vmul.f32 %v3114_v47, %v2669_v40  ;;  %v2693_v55 = vmul.f32 %v3114_v47, %v2670_v51  ;;  %v2694_v60 = vmul.f32 %v3114_v47, %v2671_v8 }
 0x240   :  { %v2695_v19 = vmul.f32 %v3114_v47, %v2672_v5  ;;  %v2696_v9 = vmul.f32 %v3114_v47, %v2673_v61  ;;  %v2697_v2 = vmul.f32 %v3114_v47, %v2674_v27  ;;  %v2698_v4 = vmul.f32 %v3114_v47, %v2675_v52 }
 0x241   :  { %v2699_v25 = vmul.f32 %v3114_v47, %v2676_v7  ;;  %v2700_v22 = vmul.f32 %v3114_v47, %v2677_v63  ;;  %v2701_v14 = vmul.f32 %v3114_v47, %v2678_v34  ;;  %v2702_v20 = vmul.f32 %v3114_v47, %v2679_v31 }
 0x242   :  { %v2710_v21 = vadd.f32 %v3115_v11, %v2687_v43  ;;  %v2711_v13 = vadd.f32 %v3115_v11, %v2688_v58  ;;  %v2712_v53 = vadd.f32 %v3115_v11, %v2689_v59  ;;  %v2713_v36 = vadd.f32 %v3115_v11, %v2690_v12 }
 0x243   :  { %v2714_v1 = vadd.f32 %v3115_v11, %v2691_v10  ;;  %v2715_v16 = vadd.f32 %v3115_v11, %v2692_v15  ;;  %v2716_v17 = vadd.f32 %v3115_v11, %v2693_v55  ;;  %v2717_v28 = vadd.f32 %v3115_v11, %v2694_v60 }
 0x244   :  { %v2718_v44 = vadd.f32 %v3115_v11, %v2695_v19  ;;  %v2719_v38 = vadd.f32 %v3115_v11, %v2696_v9  ;;  %v2720_v18 = vadd.f32 %v3115_v11, %v2697_v2  ;;  %v2721_v32 = vadd.f32 %v3115_v11, %v2698_v4 }
 0x245   :  { %v2722_v42 = vadd.f32 %v3115_v11, %v2699_v25  ;;  %v2723_v23 = vadd.f32 %v3115_v11, %v2700_v22  ;;  %v2724_v45 = vadd.f32 %v3115_v11, %v2701_v14  ;;  %v2725_v29 = vadd.f32 %v3115_v11, %v2702_v20 }
 0x246   :  { %vm2726_vm0 = vcmp.ge.f32.partialorder %v2710_v21, 0.0  ;;  %vm2727_vm1 = vcmp.ge.f32.partialorder %v2711_v13, 0.0  ;;  %vm2728_vm2 = vcmp.ge.f32.partialorder %v2712_v53, 0.0  ;;  %vm2729_vm3 = vcmp.ge.f32.partialorder %v2713_v36, 0.0 }
 0x247   :  { %vm2730_vm4 = vcmp.ge.f32.partialorder %v2714_v1, 0.0  ;;  %vm2731_vm5 = vcmp.ge.f32.partialorder %v2715_v16, 0.0  ;;  %vm2732_vm6 = vcmp.ge.f32.partialorder %v2716_v17, 0.0  ;;  %vm2733_vm7 = vcmp.ge.f32.partialorder %v2717_v28, 0.0 }
 0x248   :  { %vm2734_vm8 = vcmp.ge.f32.partialorder %v2718_v44, 0.0  ;;  %vm2735_vm9 = vcmp.ge.f32.partialorder %v2719_v38, 0.0  ;;  %vm2736_vm10 = vcmp.ge.f32.partialorder %v2720_v18, 0.0  ;;  %vm2737_vm11 = vcmp.ge.f32.partialorder %v2721_v32, 0.0 }
 0x249   :  { %vm2738_vm12 = vcmp.ge.f32.partialorder %v2722_v42, 0.0  ;;  %vm2739_vm13 = vcmp.ge.f32.partialorder %v2723_v23, 0.0  ;;  %vm2740_vm14 = vcmp.ge.f32.partialorder %v2724_v45, 0.0  ;;  %vm2741_vm15 = vcmp.ge.f32.partialorder %v2725_v29, 0.0 }
 0x24a   :  { %v2742_v39 = vmul.f32 0.2, %v2710_v21  ;;  %v2743_v35 = vmul.f32 0.2, %v2711_v13  ;;  %v2744_v62 = vmul.f32 0.2, %v2712_v53 }
 0x24b   :  { %v2745_v26 = vmul.f32 0.2, %v2713_v36  ;;  %v2746_v41 = vmul.f32 0.2, %v2714_v1  ;;  %v2747_v54 = vmul.f32 0.2, %v2715_v16 }
 0x24c   :  { %v2748_v50 = vmul.f32 0.2, %v2716_v17  ;;  %v2749_v33 = vmul.f32 0.2, %v2717_v28  ;;  %v2750_v30 = vmul.f32 0.2, %v2718_v44  ;;  %v2758_v37 = vsel %vm2726_vm0, %v2710_v21, %v2742_v39 }
 0x24d   :  { %v2751_v57 = vmul.f32 0.2, %v2719_v38  ;;  %v2752_v48 = vmul.f32 0.2, %v2720_v18  ;;  %v2753_v24 = vmul.f32 0.2, %v2721_v32  ;;  %v2759_v56 = vsel %vm2727_vm1, %v2711_v13, %v2743_v35 }
 0x24e   :  { %v2754_v6 = vmul.f32 0.2, %v2722_v42  ;;  %v2755_v0 = vmul.f32 0.2, %v2723_v23  ;;  %v2756_v3 = vmul.f32 0.2, %v2724_v45  ;;  %v2760_v46 = vsel %vm2728_vm2, %v2712_v53, %v2744_v62 }
 0x24f   :  { %v2757_v49 = vmul.f32 0.2, %v2725_v29  ;;  %v2761_v40 = vsel %vm2729_vm3, %v2713_v36, %v2745_v26  ;;  %v2762_v51 = vsel %vm2730_vm4, %v2714_v1, %v2746_v41  ;;  %v2763_v8 = vsel %vm2731_vm5, %v2715_v16, %v2747_v54 }
 0x250   :  { %v2764_v47 = vsel %vm2732_vm6, %v2716_v17, %v2748_v50  ;;  %v2765_v5 = vsel %vm2733_vm7, %v2717_v28, %v2749_v33  ;;  %v2766_v61 = vsel %vm2734_vm8, %v2718_v44, %v2750_v30  ;;  %v2767_v27 = vsel %vm2735_vm9, %v2719_v38, %v2751_v57 }
 0x251   :  { %v2768_v52 = vsel %vm2736_vm10, %v2720_v18, %v2752_v48  ;;  %v2769_v7 = vsel %vm2737_vm11, %v2721_v32, %v2753_v24  ;;  %v2770_v63 = vsel %vm2738_vm12, %v2722_v42, %v2754_v6  ;;  %v2771_v34 = vsel %vm2739_vm13, %v2723_v23, %v2755_v0 }
 0x252   :  { %v2772_v31 = vsel %vm2740_vm14, %v2724_v45, %v2756_v3  ;;  %v2773_v43 = vsel %vm2741_vm15, %v2725_v29, %v2757_v49  ;;  %v3151_v58 = vpack.c.bf16 %v2759_v56, %v2758_v37  ;;  %v3156_v59 = vpack.c.bf16 %v2761_v40, %v2760_v46 }
 0x253   :  { %v3161_v12 = vpack.c.bf16 %v2763_v8, %v2762_v51  ;;  %v3166_v10 = vpack.c.bf16 %v2765_v5, %v2764_v47  ;;  %v3171_v15 = vpack.c.bf16 %v2767_v27, %v2766_v61  ;;  %v3176_v55 = vpack.c.bf16 %v2769_v7, %v2768_v52 }
 0x254   :  { %3152 = vst [vmem:[%s4877_s4] sm:$0xff] %v3151_v58   ;;  %3188 = vst [vmem:[%s4877_s4 + $0x8] sm:$0xff] %v3156_v59   ;;  %v3181_v60 = vpack.c.bf16 %v2771_v34, %v2770_v63  ;;  %v3186_v11 = vpack.c.bf16 %v2773_v43, %v2772_v31 }
 0x255   :  { %3189 = vst [vmem:[%s4877_s4 + $0x10] sm:$0xff] %v3161_v12   ;;  %3190 = vst [vmem:[%s4877_s4 + $0x18] sm:$0xff] %v3166_v10  }
 0x256   :  { %3191 = vst [vmem:[%s4877_s4 + $0x20] sm:$0xff] %v3171_v15   ;;  %3192 = vst [vmem:[%s4877_s4 + $0x28] sm:$0xff] %v3176_v55  }
 0x257   :  { %3193 = vst [vmem:[%s4877_s4 + $0x30] sm:$0xff] %v3181_v60   ;;  %3194 = vst [vmem:[%s4877_s4 + $0x38] sm:$0xff] %v3186_v11  }

// kernel: discriminator_forward.7
= control target key start
LH: loop header
LB: loop body
LE: loop exit
PB: predicated region body
PF: predicated region fallthrough
CT: control target
= control target key end

     0   :  { %s3973_s1 = inlined_call_operand.vmem [shape: bf16[2048,256], index: 1, kind: input, shape index: {}]   ;;  %s3974_s0 = inlined_call_operand.vmem [shape: bf16[32,2048], index: 0, kind: input, shape index: {}]   ;;  %s3975_s2 = inlined_call_operand.vmem [shape: f32[1,256], index: 2, kind: input, shape index: {}]   ;;  %s3976_s3 = inlined_call_operand.vmem [shape: f32[1,256], index: 3, kind: input, shape index: {}]   ;;  %s3977_s4 = inlined_call_operand.vmem [shape: bf16[32,256], index: 4, kind: output, shape index: {}]  }
   0x1   :  { %v2629_v0 = vld [vmem:[%s3973_s1 + $0x74] ss:$8 sps:$4 sm:$0xff]   ;;  %v2633_v2 = vld [vmem:[%s3973_s1 + $0x70] ss:$8 sps:$4 sm:$0xff]   ;;  %v2635_v4 = vld [vmem:[%s3973_s1 + $0x64] ss:$8 sps:$4 sm:$0xff]  }
   0x2   :  { %v2631_v1 = vld [vmem:[%s3973_s1 + $0x174] ss:$8 sps:$4 sm:$0xff]   ;;  %1745 = vmatprep.subr.bf16.mxu0 %v2629_v0  ;;  %v2634_v3 = vld [vmem:[%s3973_s1 + $0x170] ss:$8 sps:$4 sm:$0xff]   ;;  %v2637_v5 = vld [vmem:[%s3973_s1 + $0x164] ss:$8 sps:$4 sm:$0xff]  }
   0x3   :  { %1798 = vmatprep.subr.bf16.mxu1 %v2631_v1  ;;  %1746 = vmatpush1.bf16.msra.mxu0 %v2633_v2  ;;  %v2639_v6 = vld [vmem:[%s3973_s1 + $0x60] ss:$8 sps:$4 sm:$0xff]   ;;  %v2641_v8 = vld [vmem:[%s3973_s1 + $0x54] ss:$8 sps:$4 sm:$0xff]   ;;  %v2645_v10 = vld [vmem:[%s3973_s1 + $0x50] ss:$8 sps:$4 sm:$0xff]  }
   0x4   :  { %1799 = vmatpush1.bf16.msra.mxu1 %v2634_v3  ;;  %1747 = vmatprep.subr.bf16.mxu0 %v2635_v4  ;;  %v2640_v7 = vld [vmem:[%s3973_s1 + $0x160] ss:$8 sps:$4 sm:$0xff]   ;;  %v2643_v9 = vld [vmem:[%s3973_s1 + $0x154] ss:$8 sps:$4 sm:$0xff]   ;;  %v2646_v11 = vld [vmem:[%s3973_s1 + $0x150] ss:$8 sps:$4 sm:$0xff]  }
   0x5   :  { %1800 = vmatprep.subr.bf16.mxu1 %v2637_v5  ;;  %v2647_v12 = vld [vmem:[%s3973_s1 + $0x44] ss:$8 sps:$4 sm:$0xff]   ;;  %v2651_v14 = vld [vmem:[%s3973_s1 + $0x40] ss:$8 sps:$4 sm:$0xff]   ;;  %v2653_v16 = vld [vmem:[%s3973_s1 + $0x34] ss:$8 sps:$4 sm:$0xff]  }
   0x6   :  { %v2649_v13 = vld [vmem:[%s3973_s1 + $0x144] ss:$8 sps:$4 sm:$0xff]   ;;  %v2652_v15 = vld [vmem:[%s3973_s1 + $0x140] ss:$8 sps:$4 sm:$0xff]   ;;  %v2655_v17 = vld [vmem:[%s3973_s1 + $0x134] ss:$8 sps:$4 sm:$0xff]  }
   0x7   :  { %1748 = vmatpush1.bf16.msra.mxu0 %v2639_v6  ;;  %v2657_v18 = vld [vmem:[%s3973_s1 + $0x30] ss:$8 sps:$4 sm:$0xff]   ;;  %v2659_v20 = vld [vmem:[%s3973_s1 + $0x24] ss:$8 sps:$4 sm:$0xff]   ;;  %v2663_v22 = vld [vmem:[%s3973_s1 + $0x20] ss:$8 sps:$4 sm:$0xff]  }
   0x8   :  { %1801 = vmatpush1.bf16.msra.mxu1 %v2640_v7  ;;  %1749 = vmatprep.subr.bf16.mxu0 %v2641_v8  ;;  %v2658_v19 = vld [vmem:[%s3973_s1 + $0x130] ss:$8 sps:$4 sm:$0xff]   ;;  %v2661_v21 = vld [vmem:[%s3973_s1 + $0x124] ss:$8 sps:$4 sm:$0xff]   ;;  %v2664_v23 = vld [vmem:[%s3973_s1 + $0x120] ss:$8 sps:$4 sm:$0xff]  }
   0x9   :  { %1802 = vmatprep.subr.bf16.mxu1 %v2643_v9  ;;  %v2665_v24 = vld [vmem:[%s3973_s1 + $0x14] ss:$8 sps:$4 sm:$0xff]   ;;  %v2669_v26 = vld [vmem:[%s3973_s1 + $0x10] ss:$8 sps:$4 sm:$0xff]   ;;  %v2671_v28 = vld [vmem:[%s3973_s1 + $0x4] ss:$8 sps:$4 sm:$0xff]  }
   0xa   :  { %v2667_v25 = vld [vmem:[%s3973_s1 + $0x114] ss:$8 sps:$4 sm:$0xff]   ;;  %v2670_v27 = vld [vmem:[%s3973_s1 + $0x110] ss:$8 sps:$4 sm:$0xff]   ;;  %v2673_v29 = vld [vmem:[%s3973_s1 + $0x104] ss:$8 sps:$4 sm:$0xff]  }
   0xb   :  { %1750 = vmatpush1.bf16.msra.mxu0 %v2645_v10  ;;  %v2675_v30 = vld [vmem:[%s3973_s1] ss:$8 sps:$4 sm:$0xff]   ;;  %v2677_v32 = vld [vmem:[%s3973_s1 + $0xf4] ss:$8 sps:$4 sm:$0xff]   ;;  %v2681_v34 = vld [vmem:[%s3973_s1 + $0xf0] ss:$8 sps:$4 sm:$0xff]  }
   0xc   :  { %1803 = vmatpush1.bf16.msra.mxu1 %v2646_v11  ;;  %1751 = vmatprep.subr.bf16.mxu0 %v2647_v12  ;;  %v2676_v31 = vld [vmem:[%s3973_s1 + $0x100] ss:$8 sps:$4 sm:$0xff]   ;;  %v2679_v33 = vld [vmem:[%s3973_s1 + $0x1f4] ss:$8 sps:$4 sm:$0xff]   ;;  %v2682_v35 = vld [vmem:[%s3973_s1 + $0x1f0] ss:$8 sps:$4 sm:$0xff]  }
   0xd   :  { %1804 = vmatprep.subr.bf16.mxu1 %v2649_v13  ;;  %v2683_v36 = vld [vmem:[%s3973_s1 + $0xe4] ss:$8 sps:$4 sm:$0xff]   ;;  %v2687_v38 = vld [vmem:[%s3973_s1 + $0xe0] ss:$8 sps:$4 sm:$0xff]   ;;  %v2689_v40 = vld [vmem:[%s3973_s1 + $0xd4] ss:$8 sps:$4 sm:$0xff]  }
   0xe   :  { %v2685_v37 = vld [vmem:[%s3973_s1 + $0x1e4] ss:$8 sps:$4 sm:$0xff]   ;;  %v2688_v39 = vld [vmem:[%s3973_s1 + $0x1e0] ss:$8 sps:$4 sm:$0xff]   ;;  %v2691_v41 = vld [vmem:[%s3973_s1 + $0x1d4] ss:$8 sps:$4 sm:$0xff]  }
   0xf   :  { %1752 = vmatpush1.bf16.msra.mxu0 %v2651_v14  ;;  %v2693_v42 = vld [vmem:[%s3973_s1 + $0xd0] ss:$8 sps:$4 sm:$0xff]   ;;  %v2695_v44 = vld [vmem:[%s3973_s1 + $0xc4] ss:$8 sps:$4 sm:$0xff]   ;;  %v2699_v46 = vld [vmem:[%s3973_s1 + $0xc0] ss:$8 sps:$4 sm:$0xff]  }
  0x10   :  { %1805 = vmatpush1.bf16.msra.mxu1 %v2652_v15  ;;  %1753 = vmatprep.subr.bf16.mxu0 %v2653_v16  ;;  %v2694_v43 = vld [vmem:[%s3973_s1 + $0x1d0] ss:$8 sps:$4 sm:$0xff]   ;;  %v2697_v45 = vld [vmem:[%s3973_s1 + $0x1c4] ss:$8 sps:$4 sm:$0xff]   ;;  %v2700_v47 = vld [vmem:[%s3973_s1 + $0x1c0] ss:$8 sps:$4 sm:$0xff]  }
  0x11   :  { %1806 = vmatprep.subr.bf16.mxu1 %v2655_v17  ;;  %v17_v48 = vld [vmem:[%s3974_s0] sm:$0xff]  ;;  %v18_v50 = vld [vmem:[%s3974_s0 + $0x8] sm:$0xff]  ;;  %v2701_v52 = vld [vmem:[%s3973_s1 + $0xb4] ss:$8 sps:$4 sm:$0xff]  }
  0x12   :  { %v25_v49 = vld [vmem:[%s3974_s0 + $0x40] sm:$0xff]  ;;  %v26_v51 = vld [vmem:[%s3974_s0 + $0x48] sm:$0xff]  ;;  %v2703_v54 = vld [vmem:[%s3973_s1 + $0x1b4] ss:$8 sps:$4 sm:$0xff]  }
  0x13   :  { %1754 = vmatpush1.bf16.msra.mxu0 %v2657_v18  ;;  %v2334_v53 = vcombine.high %v17_v48, %v25_v49  ;;  %v2336_v55 = vcombine.high %v18_v50, %v26_v51  ;;  %v2705_v56 = vld [vmem:[%s3973_s1 + $0xb0] ss:$8 sps:$4 sm:$0xff]   ;;  %v2707_v58 = vld [vmem:[%s3973_s1 + $0xa4] ss:$8 sps:$4 sm:$0xff]   ;;  %v2711_v60 = vld [vmem:[%s3973_s1 + $0xa0] ss:$8 sps:$4 sm:$0xff]   ;;  %v2333_v8 = vcombine.low %v17_v48, %v25_v49  ;;  %v2335_v9 = vcombine.low %v18_v50, %v26_v51 }
  0x14   :  { %1807 = vmatpush1.bf16.msra.mxu1 %v2658_v19  ;;  %1755 = vmatprep.subr.bf16.mxu0 %v2659_v20  ;;  %v2706_v57 = vld [vmem:[%s3973_s1 + $0x1b0] ss:$8 sps:$4 sm:$0xff]   ;;  %v2709_v59 = vld [vmem:[%s3973_s1 + $0x1a4] ss:$8 sps:$4 sm:$0xff]   ;;  %v2712_v61 = vld [vmem:[%s3973_s1 + $0x1a0] ss:$8 sps:$4 sm:$0xff]  }
  0x15   :  { %1808 = vmatprep.subr.bf16.mxu1 %v2661_v21  ;;  %1777 = vmatprep.mubr.bf16.mxu0 %v2334_v53  ;;  %v2713_v62 = vld [vmem:[%s3973_s1 + $0x94] ss:$8 sps:$4 sm:$0xff]   ;;  %v2717_v0 = vld [vmem:[%s3973_s1 + $0x90] ss:$8 sps:$4 sm:$0xff]   ;;  %v2719_v2 = vld [vmem:[%s3973_s1 + $0x84] ss:$8 sps:$4 sm:$0xff]  }
  0x16   :  { %1830 = vmatprep.mubr.bf16.mxu1 %v2336_v55  ;;  %v2715_v63 = vld [vmem:[%s3973_s1 + $0x194] ss:$8 sps:$4 sm:$0xff]   ;;  %v2718_v1 = vld [vmem:[%s3973_s1 + $0x190] ss:$8 sps:$4 sm:$0xff]   ;;  %v2721_v3 = vld [vmem:[%s3973_s1 + $0x184] ss:$8 sps:$4 sm:$0xff]  }
  0x17   :  { %1756 = vmatpush1.bf16.msra.mxu0 %v2663_v22  ;;  %v2723_v4 = vld [vmem:[%s3973_s1 + $0x80] ss:$8 sps:$4 sm:$0xff]   ;;  %v2727_v6 = vld [vmem:[%s3973_s1 + $0x274] ss:$8 sps:$4 sm:$0xff]   ;;  %v2725_v10 = vld [vmem:[%s3973_s1 + $0x270] ss:$8 sps:$4 sm:$0xff]  }
  0x18   :  { %1809 = vmatpush1.bf16.msra.mxu1 %v2664_v23  ;;  %1757 = vmatprep.subr.bf16.mxu0 %v2665_v24  ;;  %v2724_v5 = vld [vmem:[%s3973_s1 + $0x180] ss:$8 sps:$4 sm:$0xff]   ;;  %v2730_v7 = vld [vmem:[%s3973_s1 + $0x374] ss:$8 sps:$4 sm:$0xff]   ;;  %v2728_v11 = vld [vmem:[%s3973_s1 + $0x370] ss:$8 sps:$4 sm:$0xff]  }
  0x19   :  { %1810 = vmatprep.subr.bf16.mxu1 %v2667_v25  ;;  %v2733_v12 = vld [vmem:[%s3973_s1 + $0x264] ss:$8 sps:$4 sm:$0xff]   ;;  %v2731_v14 = vld [vmem:[%s3973_s1 + $0x260] ss:$8 sps:$4 sm:$0xff]   ;;  %v2739_v16 = vld [vmem:[%s3973_s1 + $0x254] ss:$8 sps:$4 sm:$0xff]  }
  0x1a   :  { %v2736_v13 = vld [vmem:[%s3973_s1 + $0x364] ss:$8 sps:$4 sm:$0xff]   ;;  %v2734_v15 = vld [vmem:[%s3973_s1 + $0x360] ss:$8 sps:$4 sm:$0xff]   ;;  %v2742_v17 = vld [vmem:[%s3973_s1 + $0x354] ss:$8 sps:$4 sm:$0xff]  }
  0x1b   :  { %1758 = vmatpush1.bf16.msra.mxu0 %v2669_v26  ;;  %v2737_v18 = vld [vmem:[%s3973_s1 + $0x250] ss:$8 sps:$4 sm:$0xff]   ;;  %v2745_v20 = vld [vmem:[%s3973_s1 + $0x244] ss:$8 sps:$4 sm:$0xff]   ;;  %v2743_v22 = vld [vmem:[%s3973_s1 + $0x240] ss:$8 sps:$4 sm:$0xff]  }
  0x1c   :  { %1811 = vmatpush1.bf16.msra.mxu1 %v2670_v27  ;;  %1759 = vmatprep.subr.bf16.mxu0 %v2671_v28  ;;  %v2740_v19 = vld [vmem:[%s3973_s1 + $0x350] ss:$8 sps:$4 sm:$0xff]   ;;  %v2748_v21 = vld [vmem:[%s3973_s1 + $0x344] ss:$8 sps:$4 sm:$0xff]   ;;  %v2746_v23 = vld [vmem:[%s3973_s1 + $0x340] ss:$8 sps:$4 sm:$0xff]  }
  0x1d   :  { %1812 = vmatprep.subr.bf16.mxu1 %v2673_v29  ;;  %v2751_v24 = vld [vmem:[%s3973_s1 + $0x234] ss:$8 sps:$4 sm:$0xff]   ;;  %v2749_v26 = vld [vmem:[%s3973_s1 + $0x230] ss:$8 sps:$4 sm:$0xff]   ;;  %v33_v28 = vld [vmem:[%s3974_s0 + $0x80] sm:$0xff] }
  0x1e   :  { %v2754_v25 = vld [vmem:[%s3973_s1 + $0x334] ss:$8 sps:$4 sm:$0xff]   ;;  %v2752_v27 = vld [vmem:[%s3973_s1 + $0x330] ss:$8 sps:$4 sm:$0xff]   ;;  %v41_v29 = vld [vmem:[%s3974_s0 + $0xc0] sm:$0xff] }
  0x1f   :  { %1760 = vmatpush1.bf16.msra.mxu0 %v2675_v30  ;;  %v34_v30 = vld [vmem:[%s3974_s0 + $0x88] sm:$0xff]  ;;  %v3361_v48 = vld [vmem:[%s3974_s0 + $0x18] sm:$0xff] }
  0x20   :  { %1813 = vmatpush1.bf16.msra.mxu1 %v2676_v31  ;;  %1761 = vmatprep.subr.bf16.mxu0 %v2677_v32  ;;  %v42_v31 = vld [vmem:[%s3974_s0 + $0xc8] sm:$0xff]  ;;  %v3368_v50 = vld [vmem:[%s3974_s0 + $0x58] sm:$0xff] }
  0x21   :  { %1814 = vmatprep.subr.bf16.mxu1 %v2679_v33  ;;  %v2757_v32 = vld [vmem:[%s3973_s1 + $0x224] ss:$8 sps:$4 sm:$0xff]   ;;  %v2350_v33 = vcombine.high %v33_v28, %v41_v29  ;;  %v2340_v51 = vcombine.high %v3361_v48, %v3368_v50  ;;  %v2770_v53 = vld [vmem:[%s3973_s1 + $0x300] ss:$8 sps:$4 sm:$0xff]   ;;  %v2778_v55 = vld [vmem:[%s3973_s1 + $0x3f4] ss:$8 sps:$4 sm:$0xff]  }
  0x23   :  { %1762 = vmatpush2.bf16.msra.mxu0 %v2681_v34  ;;  %v2352_v34 = vcombine.high %v34_v30, %v42_v31 }
  0x24   :  { %1815 = vmatpush2.bf16.msra.mxu1 %v2682_v35  ;;  %1763 = vmatprep.subr.bf16.mxu0 %v2683_v36  ;;  %v2349_v35 = vcombine.low %v33_v28, %v41_v29  ;;  %v2760_v36 = vld [vmem:[%s3973_s1 + $0x324] ss:$8 sps:$4 sm:$0xff]   ;;  %v2339_v29 = vcombine.low %v3361_v48, %v3368_v50 }
  0x25   :  { %1816 = vmatprep.subr.bf16.mxu1 %v2685_v37  ;;  %v2351_v37 = vcombine.low %v34_v30, %v42_v31  ;;  %v36_v30 = vld [vmem:[%s3974_s0 + $0x98] sm:$0xff]  ;;  %v2841_v48 = vld [vmem:[%s3973_s1 + $0x444] ss:$8 sps:$4 sm:$0xff]  }
  0x26   :  { %v44_v31 = vld [vmem:[%s3974_s0 + $0xd8] sm:$0xff] }
  0x27   :  { %1764 = vmatpush2.bf16.msra.mxu0 %v2687_v38  ;;  %v2755_v38 = vld [vmem:[%s3973_s1 + $0x220] ss:$8 sps:$4 sm:$0xff]  }
  0x28   :  { %1817 = vmatpush2.bf16.msra.mxu1 %v2688_v39  ;;  %1765 = vmatprep.subr.bf16.mxu0 %v2689_v40  ;;  %v2758_v39 = vld [vmem:[%s3973_s1 + $0x320] ss:$8 sps:$4 sm:$0xff]   ;;  %v2763_v40 = vld [vmem:[%s3973_s1 + $0x214] ss:$8 sps:$4 sm:$0xff]  }
  0x29   :  { %1818 = vmatprep.subr.bf16.mxu1 %v2691_v41  ;;  %v2766_v41 = vld [vmem:[%s3973_s1 + $0x314] ss:$8 sps:$4 sm:$0xff]  }
  0x2b   :  { %1766 = vmatpush2.bf16.msra.mxu0 %v2693_v42  ;;  %v2761_v42 = vld [vmem:[%s3973_s1 + $0x210] ss:$8 sps:$4 sm:$0xff]  }
  0x2c   :  { %1819 = vmatpush2.bf16.msra.mxu1 %v2694_v43  ;;  %1767 = vmatprep.subr.bf16.mxu0 %v2695_v44  ;;  %v2764_v43 = vld [vmem:[%s3973_s1 + $0x310] ss:$8 sps:$4 sm:$0xff]   ;;  %v2769_v44 = vld [vmem:[%s3973_s1 + $0x204] ss:$8 sps:$4 sm:$0xff]  }
  0x2d   :  { %1820 = vmatprep.subr.bf16.mxu1 %v2697_v45  ;;  %v2772_v45 = vld [vmem:[%s3973_s1 + $0x304] ss:$8 sps:$4 sm:$0xff]  }
  0x2f   :  { %1768 = vmatpush2.bf16.msra.mxu0 %v2699_v46  ;;  %v3351_v46 = vld [vmem:[%s3974_s0 + $0x10] sm:$0xff] }
  0x30   :  { %1821 = vmatpush2.bf16.msra.mxu1 %v2700_v47  ;;  %1769 = vmatprep.subr.bf16.mxu0 %v2701_v52  ;;  %v3356_v47 = vld [vmem:[%s3974_s0 + $0x50] sm:$0xff]  ;;  %v2767_v52 = vld [vmem:[%s3973_s1 + $0x200] ss:$8 sps:$4 sm:$0xff]  }
  0x31   :  { %1822 = vmatprep.subr.bf16.mxu1 %v2703_v54  ;;  %v2338_v49 = vcombine.high %v3351_v46, %v3356_v47  ;;  %v2775_v54 = vld [vmem:[%s3973_s1 + $0x2f4] ss:$8 sps:$4 sm:$0xff]   ;;  %v2337_v28 = vcombine.low %v3351_v46, %v3356_v47  ;;  %v3539_v46 = vld [vmem:[%s3974_s0 + $0x28] sm:$0xff] }
  0x32   :  { %v3544_v47 = vld [vmem:[%s3974_s0 + $0x68] sm:$0xff] }
  0x33   :  { %1770 = vmatpush2.bf16.msra.mxu0 %v2705_v56  ;;  %v2773_v56 = vld [vmem:[%s3973_s1 + $0x2f0] ss:$8 sps:$4 sm:$0xff]  }
  0x34   :  { %1823 = vmatpush2.bf16.msra.mxu1 %v2706_v57  ;;  %1771 = vmatprep.subr.bf16.mxu0 %v2707_v58  ;;  %v2776_v57 = vld [vmem:[%s3973_s1 + $0x3f0] ss:$8 sps:$4 sm:$0xff]   ;;  %v2781_v58 = vld [vmem:[%s3973_s1 + $0x2e4] ss:$8 sps:$4 sm:$0xff]  }
  0x35   :  { %1824 = vmatprep.subr.bf16.mxu1 %v2709_v59  ;;  %v2784_v59 = vld [vmem:[%s3973_s1 + $0x3e4] ss:$8 sps:$4 sm:$0xff]  }
  0x37   :  { %1772 = vmatpush2.bf16.msra.mxu0 %v2711_v60  ;;  %v2779_v60 = vld [vmem:[%s3973_s1 + $0x2e0] ss:$8 sps:$4 sm:$0xff]  }
  0x38   :  { %1825 = vmatpush2.bf16.msra.mxu1 %v2712_v61  ;;  %1773 = vmatprep.subr.bf16.mxu0 %v2713_v62  ;;  %v2782_v61 = vld [vmem:[%s3973_s1 + $0x3e0] ss:$8 sps:$4 sm:$0xff]   ;;  %v2787_v62 = vld [vmem:[%s3973_s1 + $0x2d4] ss:$8 sps:$4 sm:$0xff]  }
  0x39   :  { %1826 = vmatprep.subr.bf16.mxu1 %v2715_v63  ;;  %v2790_v63 = vld [vmem:[%s3973_s1 + $0x3d4] ss:$8 sps:$4 sm:$0xff]  }
  0x3b   :  { %1774 = vmatpush2.bf16.msra.mxu0 %v2717_v0  ;;  %v2785_v0 = vld [vmem:[%s3973_s1 + $0x2d0] ss:$8 sps:$4 sm:$0xff]  }
  0x3c   :  { %1827 = vmatpush2.bf16.msra.mxu1 %v2718_v1  ;;  %1775 = vmatprep.subr.bf16.mxu0 %v2719_v2  ;;  %v2788_v1 = vld [vmem:[%s3973_s1 + $0x3d0] ss:$8 sps:$4 sm:$0xff]   ;;  %v2793_v2 = vld [vmem:[%s3973_s1 + $0x2c4] ss:$8 sps:$4 sm:$0xff]  }
  0x3d   :  { %1828 = vmatprep.subr.bf16.mxu1 %v2721_v3  ;;  %v2796_v3 = vld [vmem:[%s3973_s1 + $0x3c4] ss:$8 sps:$4 sm:$0xff]  }
  0x3f   :  { %1776 = vmatpush2.bf16.msra.mxu0 %v2723_v4  ;;  %v2791_v4 = vld [vmem:[%s3973_s1 + $0x2c0] ss:$8 sps:$4 sm:$0xff]  }
  0x40   :  { %1829 = vmatpush2.bf16.msra.mxu1 %v2724_v5  ;;  %1851 = vmatprep.subr.bf16.mxu0 %v2727_v6  ;;  %v2794_v5 = vld [vmem:[%s3973_s1 + $0x3c0] ss:$8 sps:$4 sm:$0xff]   ;;  %v2799_v6 = vld [vmem:[%s3973_s1 + $0x2b4] ss:$8 sps:$4 sm:$0xff]  }
  0x41   :  { %1904 = vmatprep.subr.bf16.mxu1 %v2730_v7  ;;  %v2802_v7 = vld [vmem:[%s3973_s1 + $0x3b4] ss:$8 sps:$4 sm:$0xff]  }
  0x42   :  { %1778 = vmatmul.mubr.bf16.vlgmr.msra.gmra.mxu0 %v2333_v8  ;;  %v2797_v8 = vld [vmem:[%s3973_s1 + $0x2b0] ss:$8 sps:$4 sm:$0xff]  }
  0x43   :  { %1831 = vmatmul.mubr.bf16.vlgmr.msra.gmra.mxu1 %v2335_v9  ;;  %1852 = vmatpush1.bf16.msra.mxu0 %v2725_v10  ;;  %v2800_v9 = vld [vmem:[%s3973_s1 + $0x3b0] ss:$8 sps:$4 sm:$0xff]   ;;  %v2805_v10 = vld [vmem:[%s3973_s1 + $0x2a4] ss:$8 sps:$4 sm:$0xff]  }
  0x44   :  { %1905 = vmatpush1.bf16.msra.mxu1 %v2728_v11  ;;  %1853 = vmatprep.subr.bf16.mxu0 %v2733_v12  ;;  %v2808_v11 = vld [vmem:[%s3973_s1 + $0x3a4] ss:$8 sps:$4 sm:$0xff]   ;;  %v2803_v12 = vld [vmem:[%s3973_s1 + $0x2a0] ss:$8 sps:$4 sm:$0xff]  }
  0x45   :  { %1906 = vmatprep.subr.bf16.mxu1 %v2736_v13  ;;  %1787 = vmatprep.mubr.bf16.mxu0 %v2350_v33  ;;  %v2806_v13 = vld [vmem:[%s3973_s1 + $0x3a0] ss:$8 sps:$4 sm:$0xff]   ;;  %v2832_v33 = vld [vmem:[%s3973_s1 + $0x564] ss:$8 sps:$4 sm:$0xff]  }
  0x46   :  { %1840 = vmatprep.mubr.bf16.mxu1 %v2352_v34 }
  0x47   :  { %1854 = vmatpush1.bf16.msra.mxu0 %v2731_v14  ;;  %v2811_v14 = vld [vmem:[%s3973_s1 + $0x294] ss:$8 sps:$4 sm:$0xff]  }
  0x48   :  { %1907 = vmatpush1.bf16.msra.mxu1 %v2734_v15  ;;  %1855 = vmatprep.subr.bf16.mxu0 %v2739_v16  ;;  %v2814_v15 = vld [vmem:[%s3973_s1 + $0x394] ss:$8 sps:$4 sm:$0xff]   ;;  %v2809_v16 = vld [vmem:[%s3973_s1 + $0x290] ss:$8 sps:$4 sm:$0xff]  }
  0x49   :  { %1908 = vmatprep.subr.bf16.mxu1 %v2742_v17  ;;  %v2812_v17 = vld [vmem:[%s3973_s1 + $0x390] ss:$8 sps:$4 sm:$0xff]  }
  0x4a   :  { %1788 = vmatmul.mubr.bf16.gmra.mxu0 %v2349_v35  ;;  %v2356_v35 = vcombine.high %v36_v30, %v44_v31 }
  0x4b   :  { %1856 = vmatpush1.bf16.msra.mxu0 %v2737_v18  ;;  %1841 = vmatmul.mubr.bf16.gmra.mxu1 %v2351_v37  ;;  %v2817_v18 = vld [vmem:[%s3973_s1 + $0x284] ss:$8 sps:$4 sm:$0xff]   ;;  %v2830_v37 = vld [vmem:[%s3973_s1 + $0x560] ss:$8 sps:$4 sm:$0xff]  }
  0x4c   :  { %1909 = vmatpush1.bf16.msra.mxu1 %v2740_v19  ;;  %1857 = vmatprep.subr.bf16.mxu0 %v2745_v20  ;;  %v2820_v19 = vld [vmem:[%s3973_s1 + $0x384] ss:$8 sps:$4 sm:$0xff]   ;;  %v2815_v20 = vld [vmem:[%s3973_s1 + $0x280] ss:$8 sps:$4 sm:$0xff]  }
  0x4d   :  { %1910 = vmatprep.subr.bf16.mxu1 %v2748_v21  ;;  %1883 = vmatprep.mubr.bf16.mxu0 %v2338_v49  ;;  %v2818_v21 = vld [vmem:[%s3973_s1 + $0x380] ss:$8 sps:$4 sm:$0xff]   ;;  %v2844_v49 = vld [vmem:[%s3973_s1 + $0x544] ss:$8 sps:$4 sm:$0xff]  }
  0x4e   :  { %1936 = vmatprep.mubr.bf16.mxu1 %v2340_v51  ;;  %v2344_v51 = vcombine.high %v3539_v46, %v3544_v47 }
  0x4f   :  { %1858 = vmatpush1.bf16.msra.mxu0 %v2743_v22  ;;  %v2823_v22 = vld [vmem:[%s3973_s1 + $0x474] ss:$8 sps:$4 sm:$0xff]  }
  0x50   :  { %1911 = vmatpush1.bf16.msra.mxu1 %v2746_v23  ;;  %1859 = vmatprep.subr.bf16.mxu0 %v2751_v24  ;;  %v2826_v23 = vld [vmem:[%s3973_s1 + $0x574] ss:$8 sps:$4 sm:$0xff]   ;;  %v2821_v24 = vld [vmem:[%s3973_s1 + $0x470] ss:$8 sps:$4 sm:$0xff]  }
  0x51   :  { %1912 = vmatprep.subr.bf16.mxu1 %v2754_v25  ;;  %v2824_v25 = vld [vmem:[%s3973_s1 + $0x570] ss:$8 sps:$4 sm:$0xff]  }
  0x53   :  { %1860 = vmatpush1.bf16.msra.mxu0 %v2749_v26  ;;  %v35_v26 = vld [vmem:[%s3974_s0 + $0x90] sm:$0xff] }
  0x54   :  { %1913 = vmatpush1.bf16.msra.mxu1 %v2752_v27  ;;  %1861 = vmatprep.subr.bf16.mxu0 %v2757_v32  ;;  %v43_v27 = vld [vmem:[%s3974_s0 + $0xd0] sm:$0xff]  ;;  %v2829_v32 = vld [vmem:[%s3973_s1 + $0x464] ss:$8 sps:$4 sm:$0xff]  }
  0x55   :  { %1914 = vmatprep.subr.bf16.mxu1 %v2760_v36  ;;  %v2354_v34 = vcombine.high %v35_v26, %v43_v27  ;;  %v2827_v36 = vld [vmem:[%s3973_s1 + $0x460] ss:$8 sps:$4 sm:$0xff]  }
  0x57   :  { %1862 = vmatpush1.bf16.msra.mxu0 %v2755_v38  ;;  %v2835_v38 = vld [vmem:[%s3973_s1 + $0x454] ss:$8 sps:$4 sm:$0xff]  }
  0x58   :  { %1915 = vmatpush1.bf16.msra.mxu1 %v2758_v39  ;;  %1863 = vmatprep.subr.bf16.mxu0 %v2763_v40  ;;  %v2838_v39 = vld [vmem:[%s3973_s1 + $0x554] ss:$8 sps:$4 sm:$0xff]   ;;  %v2833_v40 = vld [vmem:[%s3973_s1 + $0x450] ss:$8 sps:$4 sm:$0xff]  }
  0x59   :  { %1916 = vmatprep.subr.bf16.mxu1 %v2766_v41  ;;  %v2836_v41 = vld [vmem:[%s3973_s1 + $0x550] ss:$8 sps:$4 sm:$0xff]  }
  0x5b   :  { %1864 = vmatpush1.bf16.msra.mxu0 %v2761_v42  ;;  %v3529_v42 = vld [vmem:[%s3974_s0 + $0x20] sm:$0xff] }
  0x5c   :  { %1917 = vmatpush1.bf16.msra.mxu1 %v2764_v43  ;;  %1865 = vmatprep.subr.bf16.mxu0 %v2769_v44  ;;  %v3534_v43 = vld [vmem:[%s3974_s0 + $0x60] sm:$0xff]  ;;  %v2353_v44 = vcombine.low %v35_v26, %v43_v27 }
  0x5d   :  { %1918 = vmatprep.subr.bf16.mxu1 %v2772_v45  ;;  %v2355_v45 = vcombine.low %v36_v30, %v44_v31  ;;  %v2342_v50 = vcombine.high %v3529_v42, %v3534_v43  ;;  %v2901_v26 = vld [vmem:[%s3973_s1 + $0x4a4] ss:$8 sps:$4 sm:$0xff]   ;;  %v2907_v30 = vld [vmem:[%s3973_s1 + $0x494] ss:$8 sps:$4 sm:$0xff]  }
  0x5e   :  { %v2904_v27 = vld [vmem:[%s3973_s1 + $0x5a4] ss:$8 sps:$4 sm:$0xff]   ;;  %v2910_v31 = vld [vmem:[%s3973_s1 + $0x594] ss:$8 sps:$4 sm:$0xff]  }
  0x5f   :  { %1866 = vmatpush1.bf16.msra.mxu0 %v2767_v52  ;;  %v2839_v52 = vld [vmem:[%s3973_s1 + $0x440] ss:$8 sps:$4 sm:$0xff]  }
  0x60   :  { %1919 = vmatpush1.bf16.msra.mxu1 %v2770_v53  ;;  %1867 = vmatprep.subr.bf16.mxu0 %v2775_v54  ;;  %v2842_v53 = vld [vmem:[%s3973_s1 + $0x540] ss:$8 sps:$4 sm:$0xff]   ;;  %v2847_v54 = vld [vmem:[%s3973_s1 + $0x434] ss:$8 sps:$4 sm:$0xff]  }
  0x61   :  { %1920 = vmatprep.subr.bf16.mxu1 %v2778_v55  ;;  %v2850_v55 = vld [vmem:[%s3973_s1 + $0x534] ss:$8 sps:$4 sm:$0xff]  }
  0x63   :  { %1868 = vmatpush2.bf16.msra.mxu0 %v2773_v56  ;;  %v2845_v56 = vld [vmem:[%s3973_s1 + $0x430] ss:$8 sps:$4 sm:$0xff]  }
  0x64   :  { %1921 = vmatpush2.bf16.msra.mxu1 %v2776_v57  ;;  %1869 = vmatprep.subr.bf16.mxu0 %v2781_v58  ;;  %v2848_v57 = vld [vmem:[%s3973_s1 + $0x530] ss:$8 sps:$4 sm:$0xff]   ;;  %v2853_v58 = vld [vmem:[%s3973_s1 + $0x424] ss:$8 sps:$4 sm:$0xff]  }
  0x65   :  { %1922 = vmatprep.subr.bf16.mxu1 %v2784_v59  ;;  %v2856_v59 = vld [vmem:[%s3973_s1 + $0x524] ss:$8 sps:$4 sm:$0xff]  }
  0x67   :  { %1870 = vmatpush2.bf16.msra.mxu0 %v2779_v60  ;;  %v2851_v60 = vld [vmem:[%s3973_s1 + $0x420] ss:$8 sps:$4 sm:$0xff]  }
  0x68   :  { %1923 = vmatpush2.bf16.msra.mxu1 %v2782_v61  ;;  %1871 = vmatprep.subr.bf16.mxu0 %v2787_v62  ;;  %v2854_v61 = vld [vmem:[%s3973_s1 + $0x520] ss:$8 sps:$4 sm:$0xff]   ;;  %v2859_v62 = vld [vmem:[%s3973_s1 + $0x414] ss:$8 sps:$4 sm:$0xff]  }
  0x69   :  { %1924 = vmatprep.subr.bf16.mxu1 %v2790_v63  ;;  %v2862_v63 = vld [vmem:[%s3973_s1 + $0x514] ss:$8 sps:$4 sm:$0xff]  }
  0x6b   :  { %1872 = vmatpush2.bf16.msra.mxu0 %v2785_v0  ;;  %v2857_v0 = vld [vmem:[%s3973_s1 + $0x410] ss:$8 sps:$4 sm:$0xff]  }
  0x6c   :  { %1925 = vmatpush2.bf16.msra.mxu1 %v2788_v1  ;;  %1873 = vmatprep.subr.bf16.mxu0 %v2793_v2  ;;  %v2860_v1 = vld [vmem:[%s3973_s1 + $0x510] ss:$8 sps:$4 sm:$0xff]   ;;  %v2865_v2 = vld [vmem:[%s3973_s1 + $0x404] ss:$8 sps:$4 sm:$0xff]  }
  0x6d   :  { %1926 = vmatprep.subr.bf16.mxu1 %v2796_v3  ;;  %v2868_v3 = vld [vmem:[%s3973_s1 + $0x504] ss:$8 sps:$4 sm:$0xff]  }
  0x6f   :  { %1874 = vmatpush2.bf16.msra.mxu0 %v2791_v4  ;;  %v2863_v4 = vld [vmem:[%s3973_s1 + $0x400] ss:$8 sps:$4 sm:$0xff]  }
  0x70   :  { %1927 = vmatpush2.bf16.msra.mxu1 %v2794_v5  ;;  %1875 = vmatprep.subr.bf16.mxu0 %v2799_v6  ;;  %v2866_v5 = vld [vmem:[%s3973_s1 + $0x500] ss:$8 sps:$4 sm:$0xff]   ;;  %v2871_v6 = vld [vmem:[%s3973_s1 + $0x4f4] ss:$8 sps:$4 sm:$0xff]  }
  0x71   :  { %1928 = vmatprep.subr.bf16.mxu1 %v2802_v7  ;;  %v2874_v7 = vld [vmem:[%s3973_s1 + $0x5f4] ss:$8 sps:$4 sm:$0xff]  }
  0x73   :  { %1876 = vmatpush2.bf16.msra.mxu0 %v2797_v8  ;;  %v2869_v8 = vld [vmem:[%s3973_s1 + $0x4f0] ss:$8 sps:$4 sm:$0xff]  }
  0x74   :  { %1929 = vmatpush2.bf16.msra.mxu1 %v2800_v9  ;;  %1877 = vmatprep.subr.bf16.mxu0 %v2805_v10  ;;  %v2872_v9 = vld [vmem:[%s3973_s1 + $0x5f0] ss:$8 sps:$4 sm:$0xff]   ;;  %v2877_v10 = vld [vmem:[%s3973_s1 + $0x4e4] ss:$8 sps:$4 sm:$0xff]  }
  0x75   :  { %1930 = vmatprep.subr.bf16.mxu1 %v2808_v11  ;;  %v2880_v11 = vld [vmem:[%s3973_s1 + $0x5e4] ss:$8 sps:$4 sm:$0xff]  }
  0x77   :  { %1878 = vmatpush2.bf16.msra.mxu0 %v2803_v12  ;;  %v2875_v12 = vld [vmem:[%s3973_s1 + $0x4e0] ss:$8 sps:$4 sm:$0xff]  }
  0x78   :  { %1931 = vmatpush2.bf16.msra.mxu1 %v2806_v13  ;;  %1879 = vmatprep.subr.bf16.mxu0 %v2811_v14  ;;  %v2878_v13 = vld [vmem:[%s3973_s1 + $0x5e0] ss:$8 sps:$4 sm:$0xff]   ;;  %v2883_v14 = vld [vmem:[%s3973_s1 + $0x4d4] ss:$8 sps:$4 sm:$0xff]  }
  0x79   :  { %1932 = vmatprep.subr.bf16.mxu1 %v2814_v15  ;;  %v2886_v15 = vld [vmem:[%s3973_s1 + $0x5d4] ss:$8 sps:$4 sm:$0xff]  }
  0x7b   :  { %1880 = vmatpush2.bf16.msra.mxu0 %v2809_v16  ;;  %v2881_v16 = vld [vmem:[%s3973_s1 + $0x4d0] ss:$8 sps:$4 sm:$0xff]  }
  0x7c   :  { %1933 = vmatpush2.bf16.msra.mxu1 %v2812_v17  ;;  %1881 = vmatprep.subr.bf16.mxu0 %v2817_v18  ;;  %v2884_v17 = vld [vmem:[%s3973_s1 + $0x5d0] ss:$8 sps:$4 sm:$0xff]   ;;  %v2889_v18 = vld [vmem:[%s3973_s1 + $0x4c4] ss:$8 sps:$4 sm:$0xff]  }
  0x7d   :  { %1934 = vmatprep.subr.bf16.mxu1 %v2820_v19  ;;  %v2892_v19 = vld [vmem:[%s3973_s1 + $0x5c4] ss:$8 sps:$4 sm:$0xff]  }
  0x7f   :  { %1882 = vmatpush2.bf16.msra.mxu0 %v2815_v20  ;;  %v2887_v20 = vld [vmem:[%s3973_s1 + $0x4c0] ss:$8 sps:$4 sm:$0xff]  }
  0x80   :  { %1935 = vmatpush2.bf16.msra.mxu1 %v2818_v21  ;;  %1957 = vmatprep.subr.bf16.mxu0 %v2823_v22  ;;  %v2890_v21 = vld [vmem:[%s3973_s1 + $0x5c0] ss:$8 sps:$4 sm:$0xff]   ;;  %v2895_v22 = vld [vmem:[%s3973_s1 + $0x4b4] ss:$8 sps:$4 sm:$0xff]  }
  0x81   :  { %2010 = vmatprep.subr.bf16.mxu1 %v2826_v23  ;;  %v2898_v23 = vld [vmem:[%s3973_s1 + $0x5b4] ss:$8 sps:$4 sm:$0xff]  }
  0x82   :  { %1884 = vmatmul.mubr.bf16.vlgmr.msra.gmra.mxu0 %v2337_v28  ;;  %v2899_v28 = vld [vmem:[%s3973_s1 + $0x4a0] ss:$8 sps:$4 sm:$0xff]  }
  0x83   :  { %1937 = vmatmul.mubr.bf16.vlgmr.msra.gmra.mxu1 %v2339_v29  ;;  %1958 = vmatpush1.bf16.msra.mxu0 %v2821_v24  ;;  %v2893_v24 = vld [vmem:[%s3973_s1 + $0x4b0] ss:$8 sps:$4 sm:$0xff]   ;;  %v2902_v29 = vld [vmem:[%s3973_s1 + $0x5a0] ss:$8 sps:$4 sm:$0xff]  }
  0x84   :  { %2011 = vmatpush1.bf16.msra.mxu1 %v2824_v25  ;;  %1959 = vmatprep.subr.bf16.mxu0 %v2829_v32  ;;  %v2896_v25 = vld [vmem:[%s3973_s1 + $0x5b0] ss:$8 sps:$4 sm:$0xff]  }
  0x85   :  { %2012 = vmatprep.subr.bf16.mxu1 %v2832_v33  ;;  %1893 = vmatprep.mubr.bf16.mxu0 %v2354_v34  ;;  %v2905_v32 = vld [vmem:[%s3973_s1 + $0x490] ss:$8 sps:$4 sm:$0xff]   ;;  %v2913_v34 = vld [vmem:[%s3973_s1 + $0x484] ss:$8 sps:$4 sm:$0xff]  }
  0x86   :  { %1946 = vmatprep.mubr.bf16.mxu1 %v2356_v35  ;;  %v2908_v33 = vld [vmem:[%s3973_s1 + $0x590] ss:$8 sps:$4 sm:$0xff]   ;;  %v2916_v35 = vld [vmem:[%s3973_s1 + $0x584] ss:$8 sps:$4 sm:$0xff]  }
  0x87   :  { %1960 = vmatpush1.bf16.msra.mxu0 %v2827_v36  ;;  %v2911_v36 = vld [vmem:[%s3973_s1 + $0x480] ss:$8 sps:$4 sm:$0xff]  }
  0x88   :  { %2013 = vmatpush1.bf16.msra.mxu1 %v2830_v37  ;;  %1961 = vmatprep.subr.bf16.mxu0 %v2835_v38  ;;  %v2914_v37 = vld [vmem:[%s3973_s1 + $0x580] ss:$8 sps:$4 sm:$0xff]   ;;  %v2919_v38 = vld [vmem:[%s3973_s1 + $0x674] ss:$8 sps:$4 sm:$0xff]  }
  0x89   :  { %2014 = vmatprep.subr.bf16.mxu1 %v2838_v39  ;;  %v2922_v39 = vld [vmem:[%s3973_s1 + $0x774] ss:$8 sps:$4 sm:$0xff]  }
  0x8a   :  { %1894 = vmatmul.mubr.bf16.gmra.mxu0 %v2353_v44  ;;  %v2343_v44 = vcombine.low %v3539_v46, %v3544_v47  ;;  %v2925_v46 = vld [vmem:[%s3973_s1 + $0x664] ss:$8 sps:$4 sm:$0xff]  }
  0x8b   :  { %1947 = vmatmul.mubr.bf16.gmra.mxu1 %v2355_v45  ;;  %1962 = vmatpush1.bf16.msra.mxu0 %v2833_v40  ;;  %v37_v40 = vld [vmem:[%s3974_s0 + $0xa0] sm:$0xff] }
  0x8c   :  { %2015 = vmatpush1.bf16.msra.mxu1 %v2836_v41  ;;  %1963 = vmatprep.subr.bf16.mxu0 %v2841_v48  ;;  %v2341_v41 = vcombine.low %v3529_v42, %v3534_v43  ;;  %v45_v45 = vld [vmem:[%s3974_s0 + $0xe0] sm:$0xff]  ;;  %v38_v48 = vld [vmem:[%s3974_s0 + $0xa8] sm:$0xff]  ;;  %v2917_v42 = vld [vmem:[%s3973_s1 + $0x670] ss:$8 sps:$4 sm:$0xff]  }
  0x8d   :  { %2016 = vmatprep.subr.bf16.mxu1 %v2844_v49  ;;  %1989 = vmatprep.mubr.bf16.mxu0 %v2342_v50  ;;  %v46_v49 = vld [vmem:[%s3974_s0 + $0xe8] sm:$0xff]  ;;  %v2920_v43 = vld [vmem:[%s3973_s1 + $0x770] ss:$8 sps:$4 sm:$0xff]   ;;  %v2358_v50 = vcombine.high %v37_v40, %v45_v45 }
  0x8e   :  { %2042 = vmatprep.mubr.bf16.mxu1 %v2344_v51  ;;  %v2928_v47 = vld [vmem:[%s3973_s1 + $0x764] ss:$8 sps:$4 sm:$0xff]   ;;  %v2360_v51 = vcombine.high %v38_v48, %v46_v49 }
  0x8f   :  { %1964 = vmatpush1.bf16.msra.mxu0 %v2839_v52  ;;  %v2923_v52 = vld [vmem:[%s3973_s1 + $0x660] ss:$8 sps:$4 sm:$0xff]  }
  0x90   :  { %2017 = vmatpush1.bf16.msra.mxu1 %v2842_v53  ;;  %1965 = vmatprep.subr.bf16.mxu0 %v2847_v54  ;;  %v2926_v53 = vld [vmem:[%s3973_s1 + $0x760] ss:$8 sps:$4 sm:$0xff]   ;;  %v2931_v54 = vld [vmem:[%s3973_s1 + $0x654] ss:$8 sps:$4 sm:$0xff]  }
  0x91   :  { %2018 = vmatprep.subr.bf16.mxu1 %v2850_v55  ;;  %v2934_v55 = vld [vmem:[%s3973_s1 + $0x754] ss:$8 sps:$4 sm:$0xff]  }
  0x93   :  { %1966 = vmatpush1.bf16.msra.mxu0 %v2845_v56  ;;  %v3755_v56 = vld [vmem:[%s3974_s0 + $0x30] sm:$0xff] }
  0x94   :  { %2019 = vmatpush1.bf16.msra.mxu1 %v2848_v57  ;;  %1967 = vmatprep.subr.bf16.mxu0 %v2853_v58  ;;  %v2357_v57 = vcombine.low %v37_v40, %v45_v45  ;;  %v2359_v58 = vcombine.low %v38_v48, %v46_v49  ;;  %v2989_v40 = vld [vmem:[%s3973_s1 + $0x6b0] ss:$8 sps:$4 sm:$0xff]   ;;  %v3000_v45 = vld [vmem:[%s3973_s1 + $0x7a4] ss:$8 sps:$4 sm:$0xff]   ;;  %v2995_v48 = vld [vmem:[%s3973_s1 + $0x6a0] ss:$8 sps:$4 sm:$0xff]  }
  0x95   :  { %2020 = vmatprep.subr.bf16.mxu1 %v2856_v59  ;;  %v3760_v59 = vld [vmem:[%s3974_s0 + $0x70] sm:$0xff]  ;;  %v2998_v49 = vld [vmem:[%s3973_s1 + $0x7a0] ss:$8 sps:$4 sm:$0xff]  }
  0x97   :  { %1968 = vmatpush1.bf16.msra.mxu0 %v2851_v60  ;;  %v3765_v60 = vld [vmem:[%s3974_s0 + $0x38] sm:$0xff] }
  0x98   :  { %2021 = vmatpush1.bf16.msra.mxu1 %v2854_v61  ;;  %1969 = vmatprep.subr.bf16.mxu0 %v2859_v62  ;;  %v3770_v61 = vld [vmem:[%s3974_s0 + $0x78] sm:$0xff] }
  0x99   :  { %2022 = vmatprep.subr.bf16.mxu1 %v2862_v63  ;;  %v2929_v62 = vld [vmem:[%s3973_s1 + $0x650] ss:$8 sps:$4 sm:$0xff]  }
  0x9a   :  { %v2932_v63 = vld [vmem:[%s3973_s1 + $0x750] ss:$8 sps:$4 sm:$0xff]  }
  0x9b   :  { %1970 = vmatpush1.bf16.msra.mxu0 %v2857_v0  ;;  %v2937_v0 = vld [vmem:[%s3973_s1 + $0x644] ss:$8 sps:$4 sm:$0xff]  }
  0x9c   :  { %2023 = vmatpush1.bf16.msra.mxu1 %v2860_v1  ;;  %1971 = vmatprep.subr.bf16.mxu0 %v2865_v2  ;;  %v2940_v1 = vld [vmem:[%s3973_s1 + $0x744] ss:$8 sps:$4 sm:$0xff]   ;;  %v2346_v2 = vcombine.high %v3755_v56, %v3760_v59 }
  0x9d   :  { %2024 = vmatprep.subr.bf16.mxu1 %v2868_v3  ;;  %v2348_v3 = vcombine.high %v3765_v60, %v3770_v61 }
  0x9f   :  { %1972 = vmatpush1.bf16.msra.mxu0 %v2863_v4  ;;  %v2935_v4 = vld [vmem:[%s3973_s1 + $0x640] ss:$8 sps:$4 sm:$0xff]  }
  0xa0   :  { %2025 = vmatpush1.bf16.msra.mxu1 %v2866_v5  ;;  %1973 = vmatprep.subr.bf16.mxu0 %v2871_v6  ;;  %v2938_v5 = vld [vmem:[%s3973_s1 + $0x740] ss:$8 sps:$4 sm:$0xff]   ;;  %v2943_v6 = vld [vmem:[%s3973_s1 + $0x634] ss:$8 sps:$4 sm:$0xff]  }
  0xa1   :  { %2026 = vmatprep.subr.bf16.mxu1 %v2874_v7  ;;  %v2946_v7 = vld [vmem:[%s3973_s1 + $0x734] ss:$8 sps:$4 sm:$0xff]  }
  0xa3   :  { %1974 = vmatpush2.bf16.msra.mxu0 %v2869_v8  ;;  %v2941_v8 = vld [vmem:[%s3973_s1 + $0x630] ss:$8 sps:$4 sm:$0xff]  }
  0xa4   :  { %2027 = vmatpush2.bf16.msra.mxu1 %v2872_v9  ;;  %1975 = vmatprep.subr.bf16.mxu0 %v2877_v10  ;;  %v2944_v9 = vld [vmem:[%s3973_s1 + $0x730] ss:$8 sps:$4 sm:$0xff]   ;;  %v2949_v10 = vld [vmem:[%s3973_s1 + $0x624] ss:$8 sps:$4 sm:$0xff]  }
  0xa5   :  { %2028 = vmatprep.subr.bf16.mxu1 %v2880_v11  ;;  %v2952_v11 = vld [vmem:[%s3973_s1 + $0x724] ss:$8 sps:$4 sm:$0xff]  }
  0xa7   :  { %1976 = vmatpush2.bf16.msra.mxu0 %v2875_v12  ;;  %v2947_v12 = vld [vmem:[%s3973_s1 + $0x620] ss:$8 sps:$4 sm:$0xff]  }
  0xa8   :  { %2029 = vmatpush2.bf16.msra.mxu1 %v2878_v13  ;;  %1977 = vmatprep.subr.bf16.mxu0 %v2883_v14  ;;  %v2950_v13 = vld [vmem:[%s3973_s1 + $0x720] ss:$8 sps:$4 sm:$0xff]   ;;  %v2955_v14 = vld [vmem:[%s3973_s1 + $0x614] ss:$8 sps:$4 sm:$0xff]  }
  0xa9   :  { %2030 = vmatprep.subr.bf16.mxu1 %v2886_v15  ;;  %v2958_v15 = vld [vmem:[%s3973_s1 + $0x714] ss:$8 sps:$4 sm:$0xff]  }
  0xab   :  { %1978 = vmatpush2.bf16.msra.mxu0 %v2881_v16  ;;  %v2953_v16 = vld [vmem:[%s3973_s1 + $0x610] ss:$8 sps:$4 sm:$0xff]  }
  0xac   :  { %2031 = vmatpush2.bf16.msra.mxu1 %v2884_v17  ;;  %1979 = vmatprep.subr.bf16.mxu0 %v2889_v18  ;;  %v2956_v17 = vld [vmem:[%s3973_s1 + $0x710] ss:$8 sps:$4 sm:$0xff]   ;;  %v2961_v18 = vld [vmem:[%s3973_s1 + $0x604] ss:$8 sps:$4 sm:$0xff]  }
  0xad   :  { %2032 = vmatprep.subr.bf16.mxu1 %v2892_v19  ;;  %v2964_v19 = vld [vmem:[%s3973_s1 + $0x704] ss:$8 sps:$4 sm:$0xff]  }
  0xaf   :  { %1980 = vmatpush2.bf16.msra.mxu0 %v2887_v20  ;;  %v2959_v20 = vld [vmem:[%s3973_s1 + $0x600] ss:$8 sps:$4 sm:$0xff]  }
  0xb0   :  { %2033 = vmatpush2.bf16.msra.mxu1 %v2890_v21  ;;  %1981 = vmatprep.subr.bf16.mxu0 %v2895_v22  ;;  %v2962_v21 = vld [vmem:[%s3973_s1 + $0x700] ss:$8 sps:$4 sm:$0xff]   ;;  %v2967_v22 = vld [vmem:[%s3973_s1 + $0x6f4] ss:$8 sps:$4 sm:$0xff]  }
  0xb1   :  { %2034 = vmatprep.subr.bf16.mxu1 %v2898_v23  ;;  %v2970_v23 = vld [vmem:[%s3973_s1 + $0x7f4] ss:$8 sps:$4 sm:$0xff]  }
  0xb3   :  { %1982 = vmatpush2.bf16.msra.mxu0 %v2893_v24  ;;  %v2965_v24 = vld [vmem:[%s3973_s1 + $0x6f0] ss:$8 sps:$4 sm:$0xff]  }
  0xb4   :  { %2035 = vmatpush2.bf16.msra.mxu1 %v2896_v25  ;;  %1983 = vmatprep.subr.bf16.mxu0 %v2901_v26  ;;  %v2968_v25 = vld [vmem:[%s3973_s1 + $0x7f0] ss:$8 sps:$4 sm:$0xff]   ;;  %v2973_v26 = vld [vmem:[%s3973_s1 + $0x6e4] ss:$8 sps:$4 sm:$0xff]  }
  0xb5   :  { %2036 = vmatprep.subr.bf16.mxu1 %v2904_v27  ;;  %v2976_v27 = vld [vmem:[%s3973_s1 + $0x7e4] ss:$8 sps:$4 sm:$0xff]  }
  0xb7   :  { %1984 = vmatpush2.bf16.msra.mxu0 %v2899_v28  ;;  %v2971_v28 = vld [vmem:[%s3973_s1 + $0x6e0] ss:$8 sps:$4 sm:$0xff]  }
  0xb8   :  { %2037 = vmatpush2.bf16.msra.mxu1 %v2902_v29  ;;  %1985 = vmatprep.subr.bf16.mxu0 %v2907_v30  ;;  %v2974_v29 = vld [vmem:[%s3973_s1 + $0x7e0] ss:$8 sps:$4 sm:$0xff]   ;;  %v2979_v30 = vld [vmem:[%s3973_s1 + $0x6d4] ss:$8 sps:$4 sm:$0xff]  }
  0xb9   :  { %2038 = vmatprep.subr.bf16.mxu1 %v2910_v31  ;;  %v2982_v31 = vld [vmem:[%s3973_s1 + $0x7d4] ss:$8 sps:$4 sm:$0xff]  }
  0xbb   :  { %1986 = vmatpush2.bf16.msra.mxu0 %v2905_v32  ;;  %v2977_v32 = vld [vmem:[%s3973_s1 + $0x6d0] ss:$8 sps:$4 sm:$0xff]  }
  0xbc   :  { %2039 = vmatpush2.bf16.msra.mxu1 %v2908_v33  ;;  %1987 = vmatprep.subr.bf16.mxu0 %v2913_v34  ;;  %v2980_v33 = vld [vmem:[%s3973_s1 + $0x7d0] ss:$8 sps:$4 sm:$0xff]   ;;  %v2985_v34 = vld [vmem:[%s3973_s1 + $0x6c4] ss:$8 sps:$4 sm:$0xff]  }
  0xbd   :  { %2040 = vmatprep.subr.bf16.mxu1 %v2916_v35  ;;  %v2988_v35 = vld [vmem:[%s3973_s1 + $0x7c4] ss:$8 sps:$4 sm:$0xff]  }
  0xbf   :  { %1988 = vmatpush2.bf16.msra.mxu0 %v2911_v36  ;;  %v2983_v36 = vld [vmem:[%s3973_s1 + $0x6c0] ss:$8 sps:$4 sm:$0xff]  }
  0xc0   :  { %2041 = vmatpush2.bf16.msra.mxu1 %v2914_v37  ;;  %2063 = vmatprep.subr.bf16.mxu0 %v2919_v38  ;;  %v2986_v37 = vld [vmem:[%s3973_s1 + $0x7c0] ss:$8 sps:$4 sm:$0xff]   ;;  %v2991_v38 = vld [vmem:[%s3973_s1 + $0x6b4] ss:$8 sps:$4 sm:$0xff]  }
  0xc1   :  { %2116 = vmatprep.subr.bf16.mxu1 %v2922_v39  ;;  %v2994_v39 = vld [vmem:[%s3973_s1 + $0x7b4] ss:$8 sps:$4 sm:$0xff]  }
  0xc2   :  { %1990 = vmatmul.mubr.bf16.vlgmr.msra.gmra.mxu0 %v2341_v41  ;;  %v2992_v41 = vld [vmem:[%s3973_s1 + $0x7b0] ss:$8 sps:$4 sm:$0xff]  }
  0xc3   :  { %2043 = vmatmul.mubr.bf16.vlgmr.msra.gmra.mxu1 %v2343_v44  ;;  %2064 = vmatpush1.bf16.msra.mxu0 %v2917_v42  ;;  %v2997_v44 = vld [vmem:[%s3973_s1 + $0x6a4] ss:$8 sps:$4 sm:$0xff]   ;;  %v3003_v42 = vld [vmem:[%s3973_s1 + $0x694] ss:$8 sps:$4 sm:$0xff]  }
  0xc4   :  { %2117 = vmatpush1.bf16.msra.mxu1 %v2920_v43  ;;  %2065 = vmatprep.subr.bf16.mxu0 %v2925_v46  ;;  %v3006_v43 = vld [vmem:[%s3973_s1 + $0x794] ss:$8 sps:$4 sm:$0xff]   ;;  %v3001_v46 = vld [vmem:[%s3973_s1 + $0x690] ss:$8 sps:$4 sm:$0xff]  }
  0xc5   :  { %2118 = vmatprep.subr.bf16.mxu1 %v2928_v47  ;;  %1999 = vmatprep.mubr.bf16.mxu0 %v2358_v50  ;;  %v3004_v47 = vld [vmem:[%s3973_s1 + $0x790] ss:$8 sps:$4 sm:$0xff]   ;;  %v3009_v50 = vld [vmem:[%s3973_s1 + $0x684] ss:$8 sps:$4 sm:$0xff]  }
  0xc6   :  { %2052 = vmatprep.mubr.bf16.mxu1 %v2360_v51  ;;  %v3012_v51 = vld [vmem:[%s3973_s1 + $0x784] ss:$8 sps:$4 sm:$0xff]  }
  0xc7   :  { %2066 = vmatpush1.bf16.msra.mxu0 %v2923_v52  ;;  %v3007_v52 = vld [vmem:[%s3973_s1 + $0x680] ss:$8 sps:$4 sm:$0xff]  }
  0xc8   :  { %2119 = vmatpush1.bf16.msra.mxu1 %v2926_v53  ;;  %2067 = vmatprep.subr.bf16.mxu0 %v2931_v54  ;;  %v3010_v53 = vld [vmem:[%s3973_s1 + $0x780] ss:$8 sps:$4 sm:$0xff]   ;;  %v39_v54 = vld [vmem:[%s3974_s0 + $0xb0] sm:$0xff] }
  0xc9   :  { %2120 = vmatprep.subr.bf16.mxu1 %v2934_v55  ;;  %v47_v55 = vld [vmem:[%s3974_s0 + $0xf0] sm:$0xff] }
  0xca   :  { %2000 = vmatmul.mubr.bf16.gmra.mxu0 %v2357_v57  ;;  %v40_v57 = vld [vmem:[%s3974_s0 + $0xb8] sm:$0xff] }
  0xcb   :  { %2053 = vmatmul.mubr.bf16.gmra.mxu1 %v2359_v58  ;;  %2068 = vmatpush1.bf16.msra.mxu0 %v2929_v62  ;;  %v48_v58 = vld [vmem:[%s3974_s0 + $0xf8] sm:$0xff]  ;;  %v2345_v62 = vcombine.low %v3755_v56, %v3760_v59 }
  0xcc   :  { %2121 = vmatpush1.bf16.msra.mxu1 %v2932_v63  ;;  %2069 = vmatprep.subr.bf16.mxu0 %v2937_v0  ;;  %v2347_v63 = vcombine.low %v3765_v60, %v3770_v61  ;;  %v2362_v0 = vcombine.high %v39_v54, %v47_v55 }
  0xcd   :  { %2122 = vmatprep.subr.bf16.mxu1 %v2940_v1  ;;  %2095 = vmatprep.mubr.bf16.mxu0 %v2346_v2  ;;  %v2364_v1 = vcombine.high %v40_v57, %v48_v58  ;;  %v2361_v2 = vcombine.low %v39_v54, %v47_v55 }
  0xce   :  { %2148 = vmatprep.mubr.bf16.mxu1 %v2348_v3  ;;  %v2363_v3 = vcombine.low %v40_v57, %v48_v58 }
  0xcf   :  { %2070 = vmatpush1.bf16.msra.mxu0 %v2935_v4 }
  0xd0   :  { %2123 = vmatpush1.bf16.msra.mxu1 %v2938_v5  ;;  %2071 = vmatprep.subr.bf16.mxu0 %v2943_v6 }
  0xd1   :  { %2124 = vmatprep.subr.bf16.mxu1 %v2946_v7 }
  0xd3   :  { %2072 = vmatpush1.bf16.msra.mxu0 %v2941_v8 }
  0xd4   :  { %2125 = vmatpush1.bf16.msra.mxu1 %v2944_v9  ;;  %2073 = vmatprep.subr.bf16.mxu0 %v2949_v10 }
  0xd5   :  { %2126 = vmatprep.subr.bf16.mxu1 %v2952_v11 }
  0xd7   :  { %2074 = vmatpush1.bf16.msra.mxu0 %v2947_v12 }
  0xd8   :  { %2127 = vmatpush1.bf16.msra.mxu1 %v2950_v13  ;;  %2075 = vmatprep.subr.bf16.mxu0 %v2955_v14 }
  0xd9   :  { %2128 = vmatprep.subr.bf16.mxu1 %v2958_v15 }
  0xdb   :  { %2076 = vmatpush1.bf16.msra.mxu0 %v2953_v16 }
  0xdc   :  { %2129 = vmatpush1.bf16.msra.mxu1 %v2956_v17  ;;  %2077 = vmatprep.subr.bf16.mxu0 %v2961_v18 }
  0xdd   :  { %2130 = vmatprep.subr.bf16.mxu1 %v2964_v19 }
  0xdf   :  { %2078 = vmatpush1.bf16.msra.mxu0 %v2959_v20 }
  0xe0   :  { %2131 = vmatpush1.bf16.msra.mxu1 %v2962_v21  ;;  %2079 = vmatprep.subr.bf16.mxu0 %v2967_v22 }
  0xe1   :  { %2132 = vmatprep.subr.bf16.mxu1 %v2970_v23 }
  0xe3   :  { %2080 = vmatpush2.bf16.msra.mxu0 %v2965_v24 }
  0xe4   :  { %2133 = vmatpush2.bf16.msra.mxu1 %v2968_v25  ;;  %2081 = vmatprep.subr.bf16.mxu0 %v2973_v26 }
  0xe5   :  { %2134 = vmatprep.subr.bf16.mxu1 %v2976_v27 }
  0xe7   :  { %2082 = vmatpush2.bf16.msra.mxu0 %v2971_v28 }
  0xe8   :  { %2135 = vmatpush2.bf16.msra.mxu1 %v2974_v29  ;;  %2083 = vmatprep.subr.bf16.mxu0 %v2979_v30 }
  0xe9   :  { %2136 = vmatprep.subr.bf16.mxu1 %v2982_v31 }
  0xeb   :  { %2084 = vmatpush2.bf16.msra.mxu0 %v2977_v32 }
  0xec   :  { %2137 = vmatpush2.bf16.msra.mxu1 %v2980_v33  ;;  %2085 = vmatprep.subr.bf16.mxu0 %v2985_v34 }
  0xed   :  { %2138 = vmatprep.subr.bf16.mxu1 %v2988_v35 }
  0xef   :  { %2086 = vmatpush2.bf16.msra.mxu0 %v2983_v36 }
  0xf0   :  { %2139 = vmatpush2.bf16.msra.mxu1 %v2986_v37  ;;  %2087 = vmatprep.subr.bf16.mxu0 %v2991_v38 }
  0xf1   :  { %2140 = vmatprep.subr.bf16.mxu1 %v2994_v39 }
  0xf3   :  { %2088 = vmatpush2.bf16.msra.mxu0 %v2989_v40 }
  0xf4   :  { %2141 = vmatpush2.bf16.msra.mxu1 %v2992_v41  ;;  %2089 = vmatprep.subr.bf16.mxu0 %v2997_v44 }
  0xf5   :  { %2142 = vmatprep.subr.bf16.mxu1 %v3000_v45 }
  0xf7   :  { %2090 = vmatpush2.bf16.msra.mxu0 %v2995_v48 }
  0xf8   :  { %2143 = vmatpush2.bf16.msra.mxu1 %v2998_v49  ;;  %2091 = vmatprep.subr.bf16.mxu0 %v3003_v42 }
  0xf9   :  { %2144 = vmatprep.subr.bf16.mxu1 %v3006_v43 }
  0xfb   :  { %2092 = vmatpush2.bf16.msra.mxu0 %v3001_v46 }
  0xfc   :  { %2145 = vmatpush2.bf16.msra.mxu1 %v3004_v47  ;;  %2093 = vmatprep.subr.bf16.mxu0 %v3009_v50 }
  0xfd   :  { %2146 = vmatprep.subr.bf16.mxu1 %v3012_v51 }
  0xff   :  { %2094 = vmatpush2.bf16.msra.mxu0 %v3007_v52 }
 0x100   :  { %2147 = vmatpush2.bf16.msra.mxu1 %v3010_v53 }
 0x102   :  { %2096 = vmatmul.mubr.bf16.vlgmr.msra.gmra.mxu0 %v2345_v62  ;;  %v1779_v4 = vpop.f32.mrf.mxu0 }
 0x103   :  { %2149 = vmatmul.mubr.bf16.vlgmr.msra.gmra.mxu1 %v2347_v63  ;;  %2105 = vmatprep.mubr.bf16.mxu0 %v2362_v0  ;;  %v1832_v5 = vpop.f32.mrf.mxu1 }
 0x104   :  { %2158 = vmatprep.mubr.bf16.mxu1 %v2364_v1  ;;  %v1781_v6 = vpop.f32.mrf.mxu0  ;;  %v1833_v49 = vadd.f32 %v1832_v5, %v1779_v4 }
 0x105   :  { %v1834_v7 = vpop.f32.mrf.mxu1 }
 0x106   :  { %v1783_v56 = vpop.f32.mrf.mxu0  ;;  %v1835_v50 = vadd.f32 %v1834_v7, %v1781_v6 }
 0x107   :  { %v1836_v59 = vpop.f32.mrf.mxu1 }
 0x108   :  { %v1785_v8 = vpop.f32.mrf.mxu0  ;;  %v1837_v48 = vadd.f32 %v1836_v59, %v1783_v56 }
 0x109   :  { %v1838_v61 = vpop.f32.mrf.mxu1 }
 0x10a   :  { %2106 = vmatmul.mubr.bf16.gmra.mxu0 %v2361_v2  ;;  %v1789_v60 = vpop.f32.mrf.mxu0  ;;  %v1839_v42 = vadd.f32 %v1838_v61, %v1785_v8 }
 0x10b   :  { %2159 = vmatmul.mubr.bf16.gmra.mxu1 %v2363_v3  ;;  %v1842_v9 = vpop.f32.mrf.mxu1 }
 0x10c   :  { %v1791_v10 = vpop.f32.mrf.mxu0  ;;  %v1843_v51 = vadd.f32 %v1842_v9, %v1789_v60 }
 0x10d   :  { %v1844_v11 = vpop.f32.mrf.mxu1 }
 0x10e   :  { %v1793_v12 = vpop.f32.mrf.mxu0  ;;  %v1845_v54 = vadd.f32 %v1844_v11, %v1791_v10 }
 0x10f   :  { %v1846_v13 = vpop.f32.mrf.mxu1 }
 0x110   :  { %v1795_v14 = vpop.f32.mrf.mxu0  ;;  %v1847_v62 = vadd.f32 %v1846_v13, %v1793_v12 }
 0x111   :  { %v1848_v16 = vpop.f32.mrf.mxu1 }
 0x112   :  { %v1849_v4 = vadd.f32 %v1848_v16, %v1795_v14 }
 0x142   :  { %v1885_v15 = vpop.f32.mrf.mxu0 }
 0x143   :  { %v1938_v17 = vpop.f32.mrf.mxu1  ;;  %v1886_v52 = vadd.f32 %v1885_v15, %v1833_v49 }
 0x144   :  { %v1887_v18 = vpop.f32.mrf.mxu0 }
 0x145   :  { %v1940_v19 = vpop.f32.mrf.mxu1  ;;  %v1888_v55 = vadd.f32 %v1887_v18, %v1835_v50  ;;  %v1939_v1 = vadd.f32 %v1938_v17, %v1886_v52 }
 0x146   :  { %v1889_v20 = vpop.f32.mrf.mxu0 }
 0x147   :  { %v1942_v21 = vpop.f32.mrf.mxu1  ;;  %v1890_v43 = vadd.f32 %v1889_v20, %v1837_v48  ;;  %v1941_v61 = vadd.f32 %v1940_v19, %v1888_v55 }
 0x148   :  { %v1891_v22 = vpop.f32.mrf.mxu0 }
 0x149   :  { %v1944_v23 = vpop.f32.mrf.mxu1  ;;  %v1892_v53 = vadd.f32 %v1891_v22, %v1839_v42  ;;  %v1943_v57 = vadd.f32 %v1942_v21, %v1890_v43 }
 0x14a   :  { %v1895_v24 = vpop.f32.mrf.mxu0 }
 0x14b   :  { %v1948_v25 = vpop.f32.mrf.mxu1  ;;  %v1896_v58 = vadd.f32 %v1895_v24, %v1843_v51  ;;  %v1945_v2 = vadd.f32 %v1944_v23, %v1892_v53 }
 0x14c   :  { %v1897_v26 = vpop.f32.mrf.mxu0 }
 0x14d   :  { %v1950_v27 = vpop.f32.mrf.mxu1  ;;  %v1898_v3 = vadd.f32 %v1897_v26, %v1845_v54  ;;  %v1949_v6 = vadd.f32 %v1948_v25, %v1896_v58 }
 0x14e   :  { %v1899_v28 = vpop.f32.mrf.mxu0 }
 0x14f   :  { %v1952_v29 = vpop.f32.mrf.mxu1  ;;  %v1900_v5 = vadd.f32 %v1899_v28, %v1847_v62  ;;  %v1951_v15 = vadd.f32 %v1950_v27, %v1898_v3 }
 0x150   :  { %v1901_v30 = vpop.f32.mrf.mxu0 }
 0x151   :  { %v1954_v31 = vpop.f32.mrf.mxu1  ;;  %v1902_v9 = vadd.f32 %v1901_v30, %v1849_v4  ;;  %v1953_v20 = vadd.f32 %v1952_v29, %v1900_v5 }
 0x153   :  { %v1955_v24 = vadd.f32 %v1954_v31, %v1902_v9 }
 0x182   :  { %v1991_v32 = vpop.f32.mrf.mxu0 }
 0x183   :  { %v2044_v33 = vpop.f32.mrf.mxu1  ;;  %v1992_v7 = vadd.f32 %v1991_v32, %v1939_v1 }
 0x184   :  { %v1993_v34 = vpop.f32.mrf.mxu0 }
 0x185   :  { %v2046_v35 = vpop.f32.mrf.mxu1  ;;  %v1994_v18 = vadd.f32 %v1993_v34, %v1941_v61  ;;  %v2045_v22 = vadd.f32 %v2044_v33, %v1992_v7 }
 0x186   :  { %v1995_v36 = vpop.f32.mrf.mxu0 }
 0x187   :  { %v2048_v37 = vpop.f32.mrf.mxu1  ;;  %v1996_v56 = vadd.f32 %v1995_v36, %v1943_v57  ;;  %v2047_v28 = vadd.f32 %v2046_v35, %v1994_v18 }
 0x188   :  { %v1997_v38 = vpop.f32.mrf.mxu0 }
 0x189   :  { %v2050_v39 = vpop.f32.mrf.mxu1  ;;  %v1998_v60 = vadd.f32 %v1997_v38, %v1945_v2  ;;  %v2049_v12 = vadd.f32 %v2048_v37, %v1996_v56 }
 0x18a   :  { %v2001_v40 = vpop.f32.mrf.mxu0 }
 0x18b   :  { %v2054_v41 = vpop.f32.mrf.mxu1  ;;  %v2002_v13 = vadd.f32 %v2001_v40, %v1949_v6  ;;  %v2051_v23 = vadd.f32 %v2050_v39, %v1998_v60 }
 0x18c   :  { %v2003_v44 = vpop.f32.mrf.mxu0 }
 0x18d   :  { %v2056_v45 = vpop.f32.mrf.mxu1  ;;  %v2004_v14 = vadd.f32 %v2003_v44, %v1951_v15  ;;  %v2055_v32 = vadd.f32 %v2054_v41, %v2002_v13 }
 0x18e   :  { %v2005_v46 = vpop.f32.mrf.mxu0 }
 0x18f   :  { %v2058_v47 = vpop.f32.mrf.mxu1  ;;  %v2006_v26 = vadd.f32 %v2005_v46, %v1953_v20  ;;  %v2057_v37 = vadd.f32 %v2056_v45, %v2004_v14 }
 0x190   :  { %v2007_v63 = vpop.f32.mrf.mxu0 }
 0x191   :  { %v2060_v0 = vpop.f32.mrf.mxu1  ;;  %v2008_v38 = vadd.f32 %v2007_v63, %v1955_v24  ;;  %v2059_v49 = vadd.f32 %v2058_v47, %v2006_v26 }
 0x193   :  { %v2061_v46 = vadd.f32 %v2060_v0, %v2008_v38 }
 0x1c2   :  { %v2097_v59 = vpop.f32.mrf.mxu0 }
 0x1c3   :  { %v2150_v8 = vpop.f32.mrf.mxu1  ;;  %v2098_v30 = vadd.f32 %v2097_v59, %v2045_v22 }
 0x1c4   :  { %v2099_v10 = vpop.f32.mrf.mxu0 }
 0x1c5   :  { %v2152_v11 = vpop.f32.mrf.mxu1  ;;  %v2100_v40 = vadd.f32 %v2099_v10, %v2047_v28  ;;  %v2151_v44 = vadd.f32 %v2150_v8, %v2098_v30 }
 0x1c6   :  { %v2101_v17 = vpop.f32.mrf.mxu0 }
 0x1c7   :  { %v2154_v21 = vpop.f32.mrf.mxu1  ;;  %v2102_v16 = vadd.f32 %v2101_v17, %v2049_v12  ;;  %v2153_v41 = vadd.f32 %v2152_v11, %v2100_v40 }
 0x1c8   :  { %v2103_v19 = vpop.f32.mrf.mxu0 }
 0x1c9   :  { %v2156_v25 = vpop.f32.mrf.mxu1  ;;  %v2104_v36 = vadd.f32 %v2103_v19, %v2051_v23  ;;  %v2155_v29 = vadd.f32 %v2154_v21, %v2102_v16 }
 0x1ca   :  { %v2107_v27 = vpop.f32.mrf.mxu0 }
 0x1cb   :  { %v2160_v34 = vpop.f32.mrf.mxu1  ;;  %v2108_v48 = vadd.f32 %v2107_v27, %v2055_v32  ;;  %v2157_v42 = vadd.f32 %v2156_v25, %v2104_v36  ;;  %v2169_v51 = vadd.f32 %v2155_v29, %v2151_v44 }
 0x1cc   :  { %v2109_v33 = vpop.f32.mrf.mxu0 }
 0x1cd   :  { %v2162_v39 = vpop.f32.mrf.mxu1  ;;  %v2161_v31 = vadd.f32 %v2160_v34, %v2108_v48  ;;  %v2110_v43 = vadd.f32 %v2109_v33, %v2057_v37  ;;  %v2178_v55 = vadd.f32 %v2157_v42, %v2153_v41 }
 0x1ce   :  { %v2111_v50 = vpop.f32.mrf.mxu0 }
 0x1cf   :  { %v2164_v35 = vpop.f32.mrf.mxu1  ;;  %v2163_v52 = vadd.f32 %v2162_v39, %v2110_v43  ;;  %v2112_v53 = vadd.f32 %v2111_v50, %v2059_v49  ;;  %v2170_v45 = vadd.f32 %v2169_v51, %v2161_v31  ;;  %v2239_v51 = vlaneseq }
 0x1d0   :  { %v2113_v54 = vpop.f32.mrf.mxu0 }
 0x1d1   :  { %v2165_v57 = vadd.f32 %v2164_v35, %v2112_v53  ;;  %v2114_v58 = vadd.f32 %v2113_v54, %v2061_v46  ;;  %v2166_v62 = vpop.f32.mrf.mxu1  ;;  %v2179_v47 = vadd.f32 %v2178_v55, %v2163_v52  ;;  %v2240_v53 = vshrl.u32 %v2239_v51, 7  ;;  %v2237_v55 = vld [vmem:[%s3975_s2] sm:$0x3] }
 0x1d3   :  { %v2171_v63 = vadd.f32 %v2170_v45, %v2165_v57  ;;  %v2167_v1 = vadd.f32 %v2166_v62, %v2114_v58  ;;  %v2241_v54 = vsub.s32 0, %v2240_v53  ;;  %v2257_v45 = vld [vmem:[%s3976_s3] sm:$0x3] }
 0x1d5   :  { %v2172_v2 = vrot.slane %v2171_v63, 4  ;;  %v2180_v3 = vadd.f32 %v2179_v47, %v2167_v1  ;;  %v2242_v58 = vrot.slane %v2237_v55, %v2241_v54  ;;  %v2262_v47 = vrot.slane %v2257_v45, %v2241_v54 }
 0x1d7   :  { %v2173_v56 = vadd.f32 %v2172_v2, %v2171_v63  ;;  %v2181_v4 = vrot.slane %v2180_v3, 4 }
 0x1d9   :  { %v2174_v0 = vrot.slane %v2173_v56, 2  ;;  %v2182_v5 = vadd.f32 %v2181_v4, %v2180_v3 }
 0x1db   :  { %v2175_v59 = vadd.f32 %v2174_v0, %v2173_v56  ;;  %v2183_v8 = vrot.slane %v2182_v5, 2 }
 0x1dd   :  { %v2176_v61 = vrot.slane %v2175_v59, 1  ;;  %v2184_v6 = vadd.f32 %v2183_v8, %v2182_v5 }
 0x1df   :  { %v2177_v7 = vadd.f32 %v2176_v61, %v2175_v59  ;;  %v2185_v60 = vrot.slane %v2184_v6, 1 }
 0x1e1   :  { %v2187_v9 = vmul.f32 0.03125, %v2177_v7  ;;  %v2186_v10 = vadd.f32 %v2185_v60, %v2184_v6 }
 0x1e3   :  { %v2189_v11 = vsub.f32 %v2151_v44, %v2187_v9  ;;  %v2191_v15 = vsub.f32 %v2155_v29, %v2187_v9  ;;  %v2193_v18 = vsub.f32 %v2161_v31, %v2187_v9  ;;  %v2188_v12 = vmul.f32 0.03125, %v2186_v10 }
 0x1e4   :  { %v2195_v13 = vsub.f32 %v2165_v57, %v2187_v9  ;;  %v2245_v57 = vsub.s32 1, %v2240_v53 }
 0x1e5   :  { %v2197_v20 = vmul.f32 %v2189_v11, %v2189_v11  ;;  %v2199_v17 = vmul.f32 %v2191_v15, %v2191_v15  ;;  %v2190_v21 = vsub.f32 %v2153_v41, %v2188_v12  ;;  %v2192_v22 = vsub.f32 %v2157_v42, %v2188_v12 }
 0x1e6   :  { %v2194_v23 = vsub.f32 %v2163_v52, %v2188_v12  ;;  %v2201_v14 = vmul.f32 %v2193_v18, %v2193_v18  ;;  %v2196_v24 = vsub.f32 %v2167_v1, %v2188_v12  ;;  %v2203_v25 = vmul.f32 %v2195_v13, %v2195_v13 }
 0x1e7   :  { %v2205_v16 = vadd.f32 %v2199_v17, %v2197_v20  ;;  %v2198_v26 = vmul.f32 %v2190_v21, %v2190_v21  ;;  %v2200_v19 = vmul.f32 %v2192_v22, %v2192_v22  ;;  %v2246_v56 = vrot.slane %v2237_v55, %v2245_v57 }
 0x1e8   :  { %v2202_v32 = vmul.f32 %v2194_v23, %v2194_v23  ;;  %v2204_v38 = vmul.f32 %v2196_v24, %v2196_v24  ;;  %v2266_v4 = vrot.slane %v2257_v45, %v2245_v57 }
 0x1e9   :  { %v2206_v28 = vadd.f32 %v2205_v16, %v2201_v14  ;;  %v2214_v30 = vadd.f32 %v2200_v19, %v2198_v26 }
 0x1eb   :  { %v2207_v36 = vadd.f32 %v2206_v28, %v2203_v25  ;;  %v2215_v27 = vadd.f32 %v2214_v30, %v2202_v32 }
 0x1ed   :  { %v2208_v34 = vrot.slane %v2207_v36, 4  ;;  %v2216_v37 = vadd.f32 %v2215_v27, %v2204_v38 }
 0x1ef   :  { %v2209_v40 = vadd.f32 %v2208_v34, %v2207_v36  ;;  %v2217_v29 = vrot.slane %v2216_v37, 4 }
 0x1f1   :  { %v2210_v48 = vrot.slane %v2209_v40, 2  ;;  %v2218_v49 = vadd.f32 %v2217_v29, %v2216_v37 }
 0x1f3   :  { %v2211_v33 = vadd.f32 %v2210_v48, %v2209_v40  ;;  %v2219_v39 = vrot.slane %v2218_v49, 2 }
 0x1f5   :  { %v2212_v44 = vrot.slane %v2211_v33, 1  ;;  %v2220_v42 = vadd.f32 %v2219_v39, %v2218_v49 }
 0x1f7   :  { %v2213_v31 = vadd.f32 %v2212_v44, %v2211_v33  ;;  %v2221_v43 = vrot.slane %v2220_v42, 1 }
 0x1f9   :  { %v2223_v46 = vmul.f32 0.03125, %v2213_v31  ;;  %v2222_v50 = vadd.f32 %v2221_v43, %v2220_v42 }
 0x1fb   :  { %v2225_v35 = vadd.f32 1e-05, %v2223_v46  ;;  %v2224_v41 = vmul.f32 0.03125, %v2222_v50 }
 0x1fd   :  { %3013 = vrsqrt.f32 %v2225_v35  ;;  %v2226_v52 = vadd.f32 1e-05, %v2224_v41 }
 0x1ff   :  { %3015 = vrsqrt.f32 %v2226_v52 }
 0x20a   :  { %v3014_v62 = vpop.eup %3013 }
 0x20b   :  { %v2229_v63 = vmul.f32 %v3014_v62, %v2189_v11  ;;  %v2231_v1 = vmul.f32 %v3014_v62, %v2191_v15  ;;  %v2233_v2 = vmul.f32 %v3014_v62, %v2193_v18  ;;  %v2235_v3 = vmul.f32 %v3014_v62, %v2195_v13 }
 0x20c   :  { %v3016_v0 = vpop.eup %3015 }
 0x20d   :  { %v2249_v5 = vmul.f32 %v2242_v58, %v2229_v63  ;;  %v2251_v59 = vmul.f32 %v2242_v58, %v2231_v1  ;;  %v2253_v8 = vmul.f32 %v2242_v58, %v2233_v2  ;;  %v2255_v61 = vmul.f32 %v2242_v58, %v2235_v3 }
 0x20e   :  { %v2230_v6 = vmul.f32 %v3016_v0, %v2190_v21  ;;  %v2232_v7 = vmul.f32 %v3016_v0, %v2192_v22  ;;  %v2234_v60 = vmul.f32 %v3016_v0, %v2194_v23  ;;  %v2236_v9 = vmul.f32 %v3016_v0, %v2196_v24 }
 0x20f   :  { %v2269_v10 = vadd.f32 %v2262_v47, %v2249_v5  ;;  %v2271_v12 = vadd.f32 %v2262_v47, %v2251_v59  ;;  %v2273_v20 = vadd.f32 %v2262_v47, %v2253_v8  ;;  %v2275_v17 = vadd.f32 %v2262_v47, %v2255_v61 }
 0x210   :  { %v2250_v14 = vmul.f32 %v2246_v56, %v2230_v6  ;;  %v2252_v11 = vmul.f32 %v2246_v56, %v2232_v7  ;;  %v2254_v15 = vmul.f32 %v2246_v56, %v2234_v60  ;;  %v2256_v18 = vmul.f32 %v2246_v56, %v2236_v9 }
 0x211   :  { %vm2277_vm0 = vcmp.ge.f32.partialorder %v2269_v10, 0.0  ;;  %v2285_v13 = vmul.f32 0.2, %v2269_v10  ;;  %v2287_v16 = vmul.f32 0.2, %v2271_v12  ;;  %vm2279_vm1 = vcmp.ge.f32.partialorder %v2271_v12, 0.0 }
 0x212   :  { %v2270_v26 = vadd.f32 %v2266_v4, %v2250_v14  ;;  %v2289_v19 = vmul.f32 0.2, %v2273_v20  ;;  %v2272_v25 = vadd.f32 %v2266_v4, %v2252_v11  ;;  %v2274_v28 = vadd.f32 %v2266_v4, %v2254_v15 }
 0x213   :  { %v2276_v32 = vadd.f32 %v2266_v4, %v2256_v18  ;;  %vm2281_vm2 = vcmp.ge.f32.partialorder %v2273_v20, 0.0  ;;  %vm2283_vm3 = vcmp.ge.f32.partialorder %v2275_v17, 0.0  ;;  %v2291_v21 = vmul.f32 0.2, %v2275_v17 }
 0x214   :  { %vm2278_vm4 = vcmp.ge.f32.partialorder %v2270_v26, 0.0  ;;  %vm2280_vm5 = vcmp.ge.f32.partialorder %v2272_v25, 0.0  ;;  %vm2282_vm6 = vcmp.ge.f32.partialorder %v2274_v28, 0.0  ;;  %v2286_v22 = vmul.f32 0.2, %v2270_v26 }
 0x215   :  { %vm2284_vm7 = vcmp.ge.f32.partialorder %v2276_v32, 0.0  ;;  %v2288_v23 = vmul.f32 0.2, %v2272_v25  ;;  %v2290_v24 = vmul.f32 0.2, %v2274_v28  ;;  %v2293_v30 = vsel %vm2277_vm0, %v2269_v10, %v2285_v13 }
 0x216   :  { %v2295_v36 = vsel %vm2279_vm1, %v2271_v12, %v2287_v16  ;;  %v2297_v38 = vsel %vm2281_vm2, %v2273_v20, %v2289_v19  ;;  %v2292_v27 = vmul.f32 0.2, %v2276_v32  ;;  %v2299_v34 = vsel %vm2283_vm3, %v2275_v17, %v2291_v21 }
 0x217   :  { %v2294_v37 = vsel %vm2278_vm4, %v2270_v26, %v2286_v22  ;;  %v2296_v40 = vsel %vm2280_vm5, %v2272_v25, %v2288_v23  ;;  %v2298_v29 = vsel %vm2282_vm6, %v2274_v28, %v2290_v24 }
 0x218   :  { %v2300_v48 = vsel %vm2284_vm7, %v2276_v32, %v2292_v27  ;;  %v2625_v49 = vpack.c.bf16 %v2294_v37, %v2293_v30  ;;  %v2626_v33 = vpack.c.bf16 %v2296_v40, %v2295_v36  ;;  %v2627_v39 = vpack.c.bf16 %v2298_v29, %v2297_v38 }
 0x219   :  { %v2628_v44 = vpack.c.bf16 %v2300_v48, %v2299_v34 }
 0x21a   :  { %2325 = vst [vmem:[%s3977_s4] sm:$0xff] %v2625_v49  ;;  %2326 = vst [vmem:[%s3977_s4 + $0x8] sm:$0xff] %v2626_v33 }
 0x21b   :  { %2327 = vst [vmem:[%s3977_s4 + $0x10] sm:$0xff] %v2627_v39  ;;  %2328 = vst [vmem:[%s3977_s4 + $0x18] sm:$0xff] %v2628_v44 }

// kernel: discriminator_forward.9
= control target key start
LH: loop header
LB: loop body
LE: loop exit
PB: predicated region body
PF: predicated region fallthrough
CT: control target
= control target key end

     0   :  { %s9640_s1 = inlined_call_operand.vmem [shape: bf16[8192,128], index: 1, kind: input, shape index: {}]   ;;  %s9641_s0 = inlined_call_operand.vmem [shape: bf16[16,8192], index: 0, kind: input, shape index: {}]   ;;  %s9642_s2 = inlined_call_operand.vmem [shape: f32[1,128], index: 2, kind: input, shape index: {}]   ;;  %s9643_s3 = inlined_call_operand.vmem [shape: f32[16,128], index: 3, kind: output, shape index: {}]  }
   0x1   :  { %v7101_v0 = vld [vmem:[%s9640_s1 + $0x78] sm:$0xff]   ;;  %v7105_v4 = vld [vmem:[%s9640_s1 + $0x70] sm:$0xff]   ;;  %v7109_v8 = vld [vmem:[%s9640_s1 + $0x68] sm:$0xff]  }
   0x2   :  { %v7102_v1 = vld [vmem:[%s9640_s1 + $0xf8] sm:$0xff]   ;;  %6397 = vmatprep.subr.bf16.mxu0 %v7101_v0  ;;  %v7106_v5 = vld [vmem:[%s9640_s1 + $0xf0] sm:$0xff]   ;;  %v7110_v9 = vld [vmem:[%s9640_s1 + $0xe8] sm:$0xff]  }
   0x3   :  { %v7103_v2 = vld [vmem:[%s9640_s1 + $0x38] sm:$0xff]   ;;  %6419 = vmatprep.subr.bf16.mxu1 %v7102_v1  ;;  %v7107_v6 = vld [vmem:[%s9640_s1 + $0x30] sm:$0xff]   ;;  %v7111_v10 = vld [vmem:[%s9640_s1 + $0x28] sm:$0xff]  }
   0x4   :  { %v7104_v3 = vld [vmem:[%s9640_s1 + $0xb8] sm:$0xff]   ;;  %6398 = vmatpush3.bf16.msra.mxu0 %v7103_v2  ;;  %v7108_v7 = vld [vmem:[%s9640_s1 + $0xb0] sm:$0xff]   ;;  %v7112_v11 = vld [vmem:[%s9640_s1 + $0xa8] sm:$0xff]  }
   0x5   :  { %6420 = vmatpush3.bf16.msra.mxu1 %v7104_v3  ;;  %6399 = vmatprep.subr.bf16.mxu0 %v7105_v4  ;;  %v7113_v12 = vld [vmem:[%s9640_s1 + $0x60] sm:$0xff]   ;;  %v7117_v16 = vld [vmem:[%s9640_s1 + $0x58] sm:$0xff]   ;;  %v7121_v20 = vld [vmem:[%s9640_s1 + $0x50] sm:$0xff]  }
   0x6   :  { %6421 = vmatprep.subr.bf16.mxu1 %v7106_v5  ;;  %v7114_v13 = vld [vmem:[%s9640_s1 + $0xe0] sm:$0xff]   ;;  %v7118_v17 = vld [vmem:[%s9640_s1 + $0xd8] sm:$0xff]   ;;  %v7122_v21 = vld [vmem:[%s9640_s1 + $0xd0] sm:$0xff]  }
   0x7   :  { %v7115_v14 = vld [vmem:[%s9640_s1 + $0x20] sm:$0xff]   ;;  %v7119_v18 = vld [vmem:[%s9640_s1 + $0x18] sm:$0xff]   ;;  %v7123_v22 = vld [vmem:[%s9640_s1 + $0x10] sm:$0xff]  }
   0x8   :  { %6400 = vmatpush3.bf16.msra.mxu0 %v7107_v6  ;;  %v7116_v15 = vld [vmem:[%s9640_s1 + $0xa0] sm:$0xff]   ;;  %v7120_v19 = vld [vmem:[%s9640_s1 + $0x98] sm:$0xff]   ;;  %v7124_v23 = vld [vmem:[%s9640_s1 + $0x90] sm:$0xff]  }
   0x9   :  { %6422 = vmatpush3.bf16.msra.mxu1 %v7108_v7  ;;  %6401 = vmatprep.subr.bf16.mxu0 %v7109_v8  ;;  %v7125_v24 = vld [vmem:[%s9640_s1 + $0x48] sm:$0xff]   ;;  %v7129_v28 = vld [vmem:[%s9640_s1 + $0x40] sm:$0xff]   ;;  %v7133_v40 = vld [vmem:[%s9640_s1 + $0x178] sm:$0xff]  }
   0xa   :  { %6423 = vmatprep.subr.bf16.mxu1 %v7110_v9  ;;  %v7126_v25 = vld [vmem:[%s9640_s1 + $0xc8] sm:$0xff]   ;;  %v7130_v29 = vld [vmem:[%s9640_s1 + $0xc0] sm:$0xff]   ;;  %v7134_v41 = vld [vmem:[%s9640_s1 + $0x1f8] sm:$0xff]  }
   0xb   :  { %v7127_v26 = vld [vmem:[%s9640_s1 + $0x8] sm:$0xff]   ;;  %v7131_v30 = vld [vmem:[%s9640_s1] sm:$0xff]   ;;  %v7135_v42 = vld [vmem:[%s9640_s1 + $0x138] sm:$0xff]  }
   0xc   :  { %6402 = vmatpush3.bf16.msra.mxu0 %v7111_v10  ;;  %v7128_v27 = vld [vmem:[%s9640_s1 + $0x88] sm:$0xff]   ;;  %v7132_v31 = vld [vmem:[%s9640_s1 + $0x80] sm:$0xff]   ;;  %v7136_v43 = vld [vmem:[%s9640_s1 + $0x1b8] sm:$0xff]  }
   0xd   :  { %6424 = vmatpush3.bf16.msra.mxu1 %v7112_v11  ;;  %6403 = vmatprep.subr.bf16.mxu0 %v7113_v12  ;;  %v15_v32 = vld [vmem:[%s9641_s0] sm:$0xff]  ;;  %v16_v34 = vld [vmem:[%s9641_s0 + $0x8] sm:$0xff]  ;;  %v7137_v44 = vld [vmem:[%s9640_s1 + $0x170] sm:$0xff]  }
   0xe   :  { %6425 = vmatprep.subr.bf16.mxu1 %v7114_v13  ;;  %v47_v33 = vld [vmem:[%s9641_s0 + $0x100] sm:$0xff]  ;;  %v48_v37 = vld [vmem:[%s9641_s0 + $0x108] sm:$0xff]  ;;  %v7138_v45 = vld [vmem:[%s9640_s1 + $0x1f0] sm:$0xff]  }
   0xf   :  { %v5821_v35 = vcombine.low %v15_v32, %v47_v33  ;;  %v5822_v36 = vcombine.high %v15_v32, %v47_v33  ;;  %v5823_v38 = vcombine.low %v16_v34, %v48_v37  ;;  %v5824_v39 = vcombine.high %v16_v34, %v48_v37  ;;  %v7139_v46 = vld [vmem:[%s9640_s1 + $0x130] sm:$0xff]   ;;  %v7141_v48 = vld [vmem:[%s9640_s1 + $0x168] sm:$0xff]   ;;  %v7145_v52 = vld [vmem:[%s9640_s1 + $0x160] sm:$0xff]  }
  0x10   :  { %6404 = vmatpush3.bf16.msra.mxu0 %v7115_v14  ;;  %v7140_v47 = vld [vmem:[%s9640_s1 + $0x1b0] sm:$0xff]   ;;  %v7142_v49 = vld [vmem:[%s9640_s1 + $0x1e8] sm:$0xff]   ;;  %v7146_v53 = vld [vmem:[%s9640_s1 + $0x1e0] sm:$0xff]  }
  0x11   :  { %6426 = vmatpush3.bf16.msra.mxu1 %v7116_v15  ;;  %6405 = vmatprep.subr.bf16.mxu0 %v7117_v16  ;;  %v7143_v50 = vld [vmem:[%s9640_s1 + $0x128] sm:$0xff]   ;;  %v7147_v54 = vld [vmem:[%s9640_s1 + $0x120] sm:$0xff]   ;;  %v7149_v56 = vld [vmem:[%s9640_s1 + $0x158] sm:$0xff]  }
  0x12   :  { %6427 = vmatprep.subr.bf16.mxu1 %v7118_v17  ;;  %4534 = vmatprep.mubr.bf16.mxu0 %v5822_v36  ;;  %v7144_v51 = vld [vmem:[%s9640_s1 + $0x1a8] sm:$0xff]   ;;  %v7148_v55 = vld [vmem:[%s9640_s1 + $0x1a0] sm:$0xff]   ;;  %v7150_v57 = vld [vmem:[%s9640_s1 + $0x1d8] sm:$0xff]  }
  0x13   :  { %4575 = vmatprep.mubr.bf16.mxu1 %v5824_v39  ;;  %v7151_v58 = vld [vmem:[%s9640_s1 + $0x118] sm:$0xff]   ;;  %v7153_v60 = vld [vmem:[%s9640_s1 + $0x150] sm:$0xff]   ;;  %v7157_v0 = vld [vmem:[%s9640_s1 + $0x148] sm:$0xff]  }
  0x14   :  { %6406 = vmatpush3.bf16.msra.mxu0 %v7119_v18  ;;  %v7152_v59 = vld [vmem:[%s9640_s1 + $0x198] sm:$0xff]   ;;  %v7154_v61 = vld [vmem:[%s9640_s1 + $0x1d0] sm:$0xff]   ;;  %v7158_v1 = vld [vmem:[%s9640_s1 + $0x1c8] sm:$0xff]  }
  0x15   :  { %6428 = vmatpush3.bf16.msra.mxu1 %v7120_v19  ;;  %6407 = vmatprep.subr.bf16.mxu0 %v7121_v20  ;;  %v7155_v62 = vld [vmem:[%s9640_s1 + $0x110] sm:$0xff]   ;;  %v7159_v2 = vld [vmem:[%s9640_s1 + $0x108] sm:$0xff]   ;;  %v7161_v4 = vld [vmem:[%s9640_s1 + $0x140] sm:$0xff]  }
  0x16   :  { %6429 = vmatprep.subr.bf16.mxu1 %v7122_v21  ;;  %v7156_v63 = vld [vmem:[%s9640_s1 + $0x190] sm:$0xff]   ;;  %v7160_v3 = vld [vmem:[%s9640_s1 + $0x188] sm:$0xff]   ;;  %v7162_v5 = vld [vmem:[%s9640_s1 + $0x1c0] sm:$0xff]  }
  0x17   :  { %v7163_v6 = vld [vmem:[%s9640_s1 + $0x100] sm:$0xff]   ;;  %v17_v8 = vld [vmem:[%s9641_s0 + $0x10] sm:$0xff]  ;;  %v18_v12 = vld [vmem:[%s9641_s0 + $0x18] sm:$0xff] }
  0x18   :  { %6408 = vmatpush3.bf16.msra.mxu0 %v7123_v22  ;;  %v7164_v7 = vld [vmem:[%s9640_s1 + $0x180] sm:$0xff]   ;;  %v49_v9 = vld [vmem:[%s9641_s0 + $0x110] sm:$0xff]  ;;  %v50_v13 = vld [vmem:[%s9641_s0 + $0x118] sm:$0xff] }
  0x19   :  { %6430 = vmatpush3.bf16.msra.mxu1 %v7124_v23  ;;  %6409 = vmatprep.subr.bf16.mxu0 %v7125_v24  ;;  %v5825_v10 = vcombine.low %v17_v8, %v49_v9  ;;  %v5826_v11 = vcombine.high %v17_v8, %v49_v9  ;;  %v5827_v14 = vcombine.low %v18_v12, %v50_v13  ;;  %v7165_v16 = vld [vmem:[%s9640_s1 + $0x278] sm:$0xff]   ;;  %v7169_v20 = vld [vmem:[%s9640_s1 + $0x270] sm:$0xff]   ;;  %v7173_v24 = vld [vmem:[%s9640_s1 + $0x268] sm:$0xff]  }
  0x1a   :  { %6431 = vmatprep.subr.bf16.mxu1 %v7126_v25  ;;  %v5828_v15 = vcombine.high %v18_v12, %v50_v13  ;;  %v7166_v17 = vld [vmem:[%s9640_s1 + $0x2f8] sm:$0xff]   ;;  %v7170_v21 = vld [vmem:[%s9640_s1 + $0x2f0] sm:$0xff]   ;;  %v7174_v25 = vld [vmem:[%s9640_s1 + $0x2e8] sm:$0xff]  }
  0x1b   :  { %v7167_v18 = vld [vmem:[%s9640_s1 + $0x238] sm:$0xff]   ;;  %v7171_v22 = vld [vmem:[%s9640_s1 + $0x230] sm:$0xff]  }
  0x1c   :  { %6410 = vmatpush3.bf16.msra.mxu0 %v7127_v26  ;;  %v7168_v19 = vld [vmem:[%s9640_s1 + $0x2b8] sm:$0xff]   ;;  %v7172_v23 = vld [vmem:[%s9640_s1 + $0x2b0] sm:$0xff]   ;;  %v7175_v26 = vld [vmem:[%s9640_s1 + $0x228] sm:$0xff]  }
  0x1d   :  { %6432 = vmatpush3.bf16.msra.mxu1 %v7128_v27  ;;  %6411 = vmatprep.subr.bf16.mxu0 %v7129_v28  ;;  %v7176_v27 = vld [vmem:[%s9640_s1 + $0x2a8] sm:$0xff]   ;;  %v7177_v28 = vld [vmem:[%s9640_s1 + $0x260] sm:$0xff]   ;;  %v7181_v32 = vld [vmem:[%s9640_s1 + $0x258] sm:$0xff]  }
  0x1e   :  { %6433 = vmatprep.subr.bf16.mxu1 %v7130_v29  ;;  %v7178_v29 = vld [vmem:[%s9640_s1 + $0x2e0] sm:$0xff]   ;;  %v7182_v33 = vld [vmem:[%s9640_s1 + $0x2d8] sm:$0xff]   ;;  %v7185_v36 = vld [vmem:[%s9640_s1 + $0x250] sm:$0xff]  }
  0x1f   :  { %v7183_v34 = vld [vmem:[%s9640_s1 + $0x218] sm:$0xff]   ;;  %v7186_v37 = vld [vmem:[%s9640_s1 + $0x2d0] sm:$0xff]  }
  0x20   :  { %6412 = vmatpush3.bf16.msra.mxu0 %v7131_v30  ;;  %v7179_v30 = vld [vmem:[%s9640_s1 + $0x220] sm:$0xff]   ;;  %v7188_v39 = vld [vmem:[%s9640_s1 + $0x290] sm:$0xff]   ;;  %v7213_v8 = vld [vmem:[%s9640_s1 + $0x358] sm:$0xff]  }
  0x21   :  { %6434 = vmatpush3.bf16.msra.mxu1 %v7132_v31  ;;  %6441 = vmatprep.subr.bf16.mxu0 %v7133_v40  ;;  %v7180_v31 = vld [vmem:[%s9640_s1 + $0x2a0] sm:$0xff]   ;;  %v7189_v40 = vld [vmem:[%s9640_s1 + $0x248] sm:$0xff]   ;;  %v7214_v9 = vld [vmem:[%s9640_s1 + $0x3d8] sm:$0xff]  }
  0x22   :  { %6463 = vmatprep.subr.bf16.mxu1 %v7134_v41  ;;  %v7190_v41 = vld [vmem:[%s9640_s1 + $0x2c8] sm:$0xff]   ;;  %v7217_v12 = vld [vmem:[%s9640_s1 + $0x350] sm:$0xff]  }
  0x23   :  { %4535 = vmatmul.mubr.bf16.vlgmr.msra.gmra.mxu0 %v5821_v35  ;;  %v7184_v35 = vld [vmem:[%s9640_s1 + $0x298] sm:$0xff]   ;;  %v7218_v13 = vld [vmem:[%s9640_s1 + $0x3d0] sm:$0xff]  }
  0x24   :  { %4576 = vmatmul.mubr.bf16.vlgmr.msra.gmra.mxu1 %v5823_v38  ;;  %6442 = vmatpush3.bf16.msra.mxu0 %v7135_v42  ;;  %v7187_v38 = vld [vmem:[%s9640_s1 + $0x210] sm:$0xff]   ;;  %v7191_v42 = vld [vmem:[%s9640_s1 + $0x208] sm:$0xff]  }
  0x25   :  { %6464 = vmatpush3.bf16.msra.mxu1 %v7136_v43  ;;  %6443 = vmatprep.subr.bf16.mxu0 %v7137_v44  ;;  %v7192_v43 = vld [vmem:[%s9640_s1 + $0x288] sm:$0xff]   ;;  %v7193_v44 = vld [vmem:[%s9640_s1 + $0x240] sm:$0xff]  }
  0x26   :  { %6465 = vmatprep.subr.bf16.mxu1 %v7138_v45  ;;  %4616 = vmatprep.mubr.bf16.mxu0 %v5826_v11  ;;  %v7194_v45 = vld [vmem:[%s9640_s1 + $0x2c0] sm:$0xff]   ;;  %v7216_v11 = vld [vmem:[%s9640_s1 + $0x398] sm:$0xff]  }
  0x27   :  { %4657 = vmatprep.mubr.bf16.mxu1 %v5828_v15  ;;  %v7220_v15 = vld [vmem:[%s9640_s1 + $0x390] sm:$0xff]  }
  0x28   :  { %6444 = vmatpush3.bf16.msra.mxu0 %v7139_v46  ;;  %v7195_v46 = vld [vmem:[%s9640_s1 + $0x200] sm:$0xff]  }
  0x29   :  { %6466 = vmatpush3.bf16.msra.mxu1 %v7140_v47  ;;  %6445 = vmatprep.subr.bf16.mxu0 %v7141_v48  ;;  %v7196_v47 = vld [vmem:[%s9640_s1 + $0x280] sm:$0xff]  }
  0x2a   :  { %6467 = vmatprep.subr.bf16.mxu1 %v7142_v49  ;;  %v19_v48 = vld [vmem:[%s9641_s0 + $0x20] sm:$0xff] }
  0x2b   :  { %v51_v49 = vld [vmem:[%s9641_s0 + $0x120] sm:$0xff] }
  0x2c   :  { %6446 = vmatpush3.bf16.msra.mxu0 %v7143_v50  ;;  %v20_v50 = vld [vmem:[%s9641_s0 + $0x28] sm:$0xff] }
  0x2d   :  { %6468 = vmatpush3.bf16.msra.mxu1 %v7144_v51  ;;  %6447 = vmatprep.subr.bf16.mxu0 %v7145_v52  ;;  %v52_v51 = vld [vmem:[%s9641_s0 + $0x128] sm:$0xff]  ;;  %v5829_v52 = vcombine.low %v19_v48, %v51_v49 }
  0x2e   :  { %6469 = vmatprep.subr.bf16.mxu1 %v7146_v53  ;;  %v5830_v53 = vcombine.high %v19_v48, %v51_v49  ;;  %v7245_v48 = vld [vmem:[%s9640_s1 + $0x458] sm:$0xff]  }
  0x2f   :  { %v7246_v49 = vld [vmem:[%s9640_s1 + $0x4d8] sm:$0xff]  }
  0x30   :  { %6448 = vmatpush3.bf16.msra.mxu0 %v7147_v54  ;;  %v5831_v54 = vcombine.low %v20_v50, %v52_v51 }
  0x31   :  { %6470 = vmatpush3.bf16.msra.mxu1 %v7148_v55  ;;  %6449 = vmatprep.subr.bf16.mxu0 %v7149_v56  ;;  %v5832_v55 = vcombine.high %v20_v50, %v52_v51  ;;  %v7197_v56 = vld [vmem:[%s9640_s1 + $0x378] sm:$0xff]  }
  0x32   :  { %6471 = vmatprep.subr.bf16.mxu1 %v7150_v57  ;;  %v7198_v57 = vld [vmem:[%s9640_s1 + $0x3f8] sm:$0xff]  }
  0x33   :  { %v7247_v50 = vld [vmem:[%s9640_s1 + $0x418] sm:$0xff]  }
  0x34   :  { %6450 = vmatpush3.bf16.msra.mxu0 %v7151_v58  ;;  %v7199_v58 = vld [vmem:[%s9640_s1 + $0x338] sm:$0xff]  }
  0x35   :  { %6472 = vmatpush3.bf16.msra.mxu1 %v7152_v59  ;;  %6451 = vmatprep.subr.bf16.mxu0 %v7153_v60  ;;  %v7200_v59 = vld [vmem:[%s9640_s1 + $0x3b8] sm:$0xff]   ;;  %v7201_v60 = vld [vmem:[%s9640_s1 + $0x370] sm:$0xff]  }
  0x36   :  { %6473 = vmatprep.subr.bf16.mxu1 %v7154_v61  ;;  %v7202_v61 = vld [vmem:[%s9640_s1 + $0x3f0] sm:$0xff]   ;;  %v7248_v51 = vld [vmem:[%s9640_s1 + $0x498] sm:$0xff]  }
  0x38   :  { %6452 = vmatpush3.bf16.msra.mxu0 %v7155_v62  ;;  %v7203_v62 = vld [vmem:[%s9640_s1 + $0x330] sm:$0xff]  }
  0x39   :  { %6474 = vmatpush3.bf16.msra.mxu1 %v7156_v63  ;;  %6453 = vmatprep.subr.bf16.mxu0 %v7157_v0  ;;  %v7204_v63 = vld [vmem:[%s9640_s1 + $0x3b0] sm:$0xff]   ;;  %v7205_v0 = vld [vmem:[%s9640_s1 + $0x368] sm:$0xff]  }
  0x3a   :  { %6475 = vmatprep.subr.bf16.mxu1 %v7158_v1  ;;  %v7206_v1 = vld [vmem:[%s9640_s1 + $0x3e8] sm:$0xff]  }
  0x3c   :  { %6454 = vmatpush3.bf16.msra.mxu0 %v7159_v2  ;;  %v7207_v2 = vld [vmem:[%s9640_s1 + $0x328] sm:$0xff]  }
  0x3d   :  { %6476 = vmatpush3.bf16.msra.mxu1 %v7160_v3  ;;  %6455 = vmatprep.subr.bf16.mxu0 %v7161_v4  ;;  %v7208_v3 = vld [vmem:[%s9640_s1 + $0x3a8] sm:$0xff]   ;;  %v7209_v4 = vld [vmem:[%s9640_s1 + $0x360] sm:$0xff]  }
  0x3e   :  { %6477 = vmatprep.subr.bf16.mxu1 %v7162_v5  ;;  %v7210_v5 = vld [vmem:[%s9640_s1 + $0x3e0] sm:$0xff]  }
  0x40   :  { %6456 = vmatpush3.bf16.msra.mxu0 %v7163_v6  ;;  %v7211_v6 = vld [vmem:[%s9640_s1 + $0x320] sm:$0xff]  }
  0x41   :  { %6478 = vmatpush3.bf16.msra.mxu1 %v7164_v7  ;;  %6485 = vmatprep.subr.bf16.mxu0 %v7165_v16  ;;  %v7212_v7 = vld [vmem:[%s9640_s1 + $0x3a0] sm:$0xff]   ;;  %v7221_v16 = vld [vmem:[%s9640_s1 + $0x348] sm:$0xff]  }
  0x42   :  { %6507 = vmatprep.subr.bf16.mxu1 %v7166_v17  ;;  %v7222_v17 = vld [vmem:[%s9640_s1 + $0x3c8] sm:$0xff]  }
  0x43   :  { %4617 = vmatmul.mubr.bf16.vlgmr.msra.gmra.mxu0 %v5825_v10  ;;  %v7215_v10 = vld [vmem:[%s9640_s1 + $0x318] sm:$0xff]  }
  0x44   :  { %4658 = vmatmul.mubr.bf16.vlgmr.msra.gmra.mxu1 %v5827_v14  ;;  %6486 = vmatpush3.bf16.msra.mxu0 %v7167_v18  ;;  %v7219_v14 = vld [vmem:[%s9640_s1 + $0x310] sm:$0xff]   ;;  %v7223_v18 = vld [vmem:[%s9640_s1 + $0x308] sm:$0xff]  }
  0x45   :  { %6508 = vmatpush3.bf16.msra.mxu1 %v7168_v19  ;;  %6487 = vmatprep.subr.bf16.mxu0 %v7169_v20  ;;  %v7224_v19 = vld [vmem:[%s9640_s1 + $0x388] sm:$0xff]   ;;  %v7225_v20 = vld [vmem:[%s9640_s1 + $0x340] sm:$0xff]  }
  0x46   :  { %6509 = vmatprep.subr.bf16.mxu1 %v7170_v21  ;;  %4698 = vmatprep.mubr.bf16.mxu0 %v5830_v53  ;;  %v7226_v21 = vld [vmem:[%s9640_s1 + $0x3c0] sm:$0xff]   ;;  %v7250_v53 = vld [vmem:[%s9640_s1 + $0x4d0] sm:$0xff]  }
  0x47   :  { %4739 = vmatprep.mubr.bf16.mxu1 %v5832_v55  ;;  %v7252_v55 = vld [vmem:[%s9640_s1 + $0x490] sm:$0xff]  }
  0x48   :  { %6488 = vmatpush3.bf16.msra.mxu0 %v7171_v22  ;;  %v7227_v22 = vld [vmem:[%s9640_s1 + $0x300] sm:$0xff]  }
  0x49   :  { %6510 = vmatpush3.bf16.msra.mxu1 %v7172_v23  ;;  %6489 = vmatprep.subr.bf16.mxu0 %v7173_v24  ;;  %v7228_v23 = vld [vmem:[%s9640_s1 + $0x380] sm:$0xff]   ;;  %v21_v24 = vld [vmem:[%s9641_s0 + $0x30] sm:$0xff] }
  0x4a   :  { %6511 = vmatprep.subr.bf16.mxu1 %v7174_v25  ;;  %v53_v25 = vld [vmem:[%s9641_s0 + $0x130] sm:$0xff] }
  0x4c   :  { %6490 = vmatpush3.bf16.msra.mxu0 %v7175_v26  ;;  %v22_v26 = vld [vmem:[%s9641_s0 + $0x38] sm:$0xff] }
  0x4d   :  { %6512 = vmatpush3.bf16.msra.mxu1 %v7176_v27  ;;  %6491 = vmatprep.subr.bf16.mxu0 %v7177_v28  ;;  %v5833_v27 = vcombine.low %v21_v24, %v53_v25  ;;  %v5834_v28 = vcombine.high %v21_v24, %v53_v25  ;;  %v7277_v24 = vld [vmem:[%s9640_s1 + $0x558] sm:$0xff]  }
  0x4e   :  { %6513 = vmatprep.subr.bf16.mxu1 %v7178_v29  ;;  %v54_v29 = vld [vmem:[%s9641_s0 + $0x138] sm:$0xff] }
  0x4f   :  { %v7278_v25 = vld [vmem:[%s9640_s1 + $0x5d8] sm:$0xff]  }
  0x50   :  { %6492 = vmatpush3.bf16.msra.mxu0 %v7179_v30  ;;  %v5835_v30 = vcombine.low %v22_v26, %v54_v29 }
  0x51   :  { %6514 = vmatpush3.bf16.msra.mxu1 %v7180_v31  ;;  %6493 = vmatprep.subr.bf16.mxu0 %v7181_v32  ;;  %v5836_v31 = vcombine.high %v22_v26, %v54_v29  ;;  %v7229_v32 = vld [vmem:[%s9640_s1 + $0x478] sm:$0xff]   ;;  %v7282_v29 = vld [vmem:[%s9640_s1 + $0x5d0] sm:$0xff]  }
  0x52   :  { %6515 = vmatprep.subr.bf16.mxu1 %v7182_v33  ;;  %v7230_v33 = vld [vmem:[%s9640_s1 + $0x4f8] sm:$0xff]  }
  0x53   :  { %v7279_v26 = vld [vmem:[%s9640_s1 + $0x518] sm:$0xff]  }
  0x54   :  { %6494 = vmatpush3.bf16.msra.mxu0 %v7183_v34  ;;  %v7231_v34 = vld [vmem:[%s9640_s1 + $0x438] sm:$0xff]  }
  0x55   :  { %6516 = vmatpush3.bf16.msra.mxu1 %v7184_v35  ;;  %6495 = vmatprep.subr.bf16.mxu0 %v7185_v36  ;;  %v7232_v35 = vld [vmem:[%s9640_s1 + $0x4b8] sm:$0xff]   ;;  %v7233_v36 = vld [vmem:[%s9640_s1 + $0x470] sm:$0xff]  }
  0x56   :  { %6517 = vmatprep.subr.bf16.mxu1 %v7186_v37  ;;  %v7234_v37 = vld [vmem:[%s9640_s1 + $0x4f0] sm:$0xff]  }
  0x58   :  { %6496 = vmatpush3.bf16.msra.mxu0 %v7187_v38  ;;  %v7235_v38 = vld [vmem:[%s9640_s1 + $0x430] sm:$0xff]  }
  0x59   :  { %6518 = vmatpush3.bf16.msra.mxu1 %v7188_v39  ;;  %6497 = vmatprep.subr.bf16.mxu0 %v7189_v40  ;;  %v7236_v39 = vld [vmem:[%s9640_s1 + $0x4b0] sm:$0xff]   ;;  %v7237_v40 = vld [vmem:[%s9640_s1 + $0x468] sm:$0xff]  }
  0x5a   :  { %6519 = vmatprep.subr.bf16.mxu1 %v7190_v41  ;;  %v7238_v41 = vld [vmem:[%s9640_s1 + $0x4e8] sm:$0xff]  }
  0x5c   :  { %6498 = vmatpush3.bf16.msra.mxu0 %v7191_v42  ;;  %v7239_v42 = vld [vmem:[%s9640_s1 + $0x428] sm:$0xff]  }
  0x5d   :  { %6520 = vmatpush3.bf16.msra.mxu1 %v7192_v43  ;;  %6499 = vmatprep.subr.bf16.mxu0 %v7193_v44  ;;  %v7240_v43 = vld [vmem:[%s9640_s1 + $0x4a8] sm:$0xff]   ;;  %v7241_v44 = vld [vmem:[%s9640_s1 + $0x460] sm:$0xff]  }
  0x5e   :  { %6521 = vmatprep.subr.bf16.mxu1 %v7194_v45  ;;  %v7242_v45 = vld [vmem:[%s9640_s1 + $0x4e0] sm:$0xff]  }
  0x60   :  { %6500 = vmatpush3.bf16.msra.mxu0 %v7195_v46  ;;  %v7243_v46 = vld [vmem:[%s9640_s1 + $0x420] sm:$0xff]  }
  0x61   :  { %6522 = vmatpush3.bf16.msra.mxu1 %v7196_v47  ;;  %6529 = vmatprep.subr.bf16.mxu0 %v7197_v56  ;;  %v7244_v47 = vld [vmem:[%s9640_s1 + $0x4a0] sm:$0xff]   ;;  %v7253_v56 = vld [vmem:[%s9640_s1 + $0x448] sm:$0xff]  }
  0x62   :  { %6551 = vmatprep.subr.bf16.mxu1 %v7198_v57  ;;  %v7254_v57 = vld [vmem:[%s9640_s1 + $0x4c8] sm:$0xff]  }
  0x63   :  { %4699 = vmatmul.mubr.bf16.vlgmr.msra.gmra.mxu0 %v5829_v52  ;;  %v7249_v52 = vld [vmem:[%s9640_s1 + $0x450] sm:$0xff]  }
  0x64   :  { %4740 = vmatmul.mubr.bf16.vlgmr.msra.gmra.mxu1 %v5831_v54  ;;  %6530 = vmatpush3.bf16.msra.mxu0 %v7199_v58  ;;  %v7251_v54 = vld [vmem:[%s9640_s1 + $0x410] sm:$0xff]   ;;  %v7255_v58 = vld [vmem:[%s9640_s1 + $0x408] sm:$0xff]  }
  0x65   :  { %6552 = vmatpush3.bf16.msra.mxu1 %v7200_v59  ;;  %6531 = vmatprep.subr.bf16.mxu0 %v7201_v60  ;;  %v7256_v59 = vld [vmem:[%s9640_s1 + $0x488] sm:$0xff]   ;;  %v7257_v60 = vld [vmem:[%s9640_s1 + $0x440] sm:$0xff]  }
  0x66   :  { %6553 = vmatprep.subr.bf16.mxu1 %v7202_v61  ;;  %4780 = vmatprep.mubr.bf16.mxu0 %v5834_v28  ;;  %v7258_v61 = vld [vmem:[%s9640_s1 + $0x4c0] sm:$0xff]   ;;  %v7281_v28 = vld [vmem:[%s9640_s1 + $0x550] sm:$0xff]  }
  0x67   :  { %4821 = vmatprep.mubr.bf16.mxu1 %v5836_v31  ;;  %v7284_v31 = vld [vmem:[%s9640_s1 + $0x590] sm:$0xff]  }
  0x68   :  { %6532 = vmatpush3.bf16.msra.mxu0 %v7203_v62  ;;  %v7259_v62 = vld [vmem:[%s9640_s1 + $0x400] sm:$0xff]  }
  0x69   :  { %6554 = vmatpush3.bf16.msra.mxu1 %v7204_v63  ;;  %6533 = vmatprep.subr.bf16.mxu0 %v7205_v0  ;;  %v7260_v63 = vld [vmem:[%s9640_s1 + $0x480] sm:$0xff]  }
  0x6a   :  { %6555 = vmatprep.subr.bf16.mxu1 %v7206_v1  ;;  %v23_v0 = vld [vmem:[%s9641_s0 + $0x40] sm:$0xff] }
  0x6b   :  { %v55_v1 = vld [vmem:[%s9641_s0 + $0x140] sm:$0xff] }
  0x6c   :  { %6534 = vmatpush3.bf16.msra.mxu0 %v7207_v2  ;;  %v5837_v2 = vcombine.low %v23_v0, %v55_v1 }
  0x6d   :  { %6556 = vmatpush3.bf16.msra.mxu1 %v7208_v3  ;;  %6535 = vmatprep.subr.bf16.mxu0 %v7209_v4  ;;  %v5838_v3 = vcombine.high %v23_v0, %v55_v1  ;;  %v24_v4 = vld [vmem:[%s9641_s0 + $0x48] sm:$0xff]  ;;  %v7309_v0 = vld [vmem:[%s9640_s1 + $0x658] sm:$0xff]  }
  0x6e   :  { %6557 = vmatprep.subr.bf16.mxu1 %v7210_v5  ;;  %v56_v5 = vld [vmem:[%s9641_s0 + $0x148] sm:$0xff]  ;;  %v7310_v1 = vld [vmem:[%s9640_s1 + $0x6d8] sm:$0xff]  }
  0x70   :  { %6536 = vmatpush3.bf16.msra.mxu0 %v7211_v6  ;;  %v5839_v6 = vcombine.low %v24_v4, %v56_v5 }
  0x71   :  { %6558 = vmatpush3.bf16.msra.mxu1 %v7212_v7  ;;  %6537 = vmatprep.subr.bf16.mxu0 %v7213_v8  ;;  %v5840_v7 = vcombine.high %v24_v4, %v56_v5  ;;  %v7261_v8 = vld [vmem:[%s9640_s1 + $0x578] sm:$0xff]   ;;  %v7313_v4 = vld [vmem:[%s9640_s1 + $0x650] sm:$0xff]  }
  0x72   :  { %6559 = vmatprep.subr.bf16.mxu1 %v7214_v9  ;;  %v7262_v9 = vld [vmem:[%s9640_s1 + $0x5f8] sm:$0xff]   ;;  %v7314_v5 = vld [vmem:[%s9640_s1 + $0x6d0] sm:$0xff]  }
  0x74   :  { %6538 = vmatpush3.bf16.msra.mxu0 %v7215_v10  ;;  %v7263_v10 = vld [vmem:[%s9640_s1 + $0x538] sm:$0xff]  }
  0x75   :  { %6560 = vmatpush3.bf16.msra.mxu1 %v7216_v11  ;;  %6539 = vmatprep.subr.bf16.mxu0 %v7217_v12  ;;  %v7264_v11 = vld [vmem:[%s9640_s1 + $0x5b8] sm:$0xff]   ;;  %v7265_v12 = vld [vmem:[%s9640_s1 + $0x570] sm:$0xff]  }
  0x76   :  { %6561 = vmatprep.subr.bf16.mxu1 %v7218_v13  ;;  %v7266_v13 = vld [vmem:[%s9640_s1 + $0x5f0] sm:$0xff]  }
  0x78   :  { %6540 = vmatpush3.bf16.msra.mxu0 %v7219_v14  ;;  %v7267_v14 = vld [vmem:[%s9640_s1 + $0x530] sm:$0xff]  }
  0x79   :  { %6562 = vmatpush3.bf16.msra.mxu1 %v7220_v15  ;;  %6541 = vmatprep.subr.bf16.mxu0 %v7221_v16  ;;  %v7268_v15 = vld [vmem:[%s9640_s1 + $0x5b0] sm:$0xff]   ;;  %v7269_v16 = vld [vmem:[%s9640_s1 + $0x568] sm:$0xff]  }
  0x7a   :  { %6563 = vmatprep.subr.bf16.mxu1 %v7222_v17  ;;  %v7270_v17 = vld [vmem:[%s9640_s1 + $0x5e8] sm:$0xff]  }
  0x7c   :  { %6542 = vmatpush3.bf16.msra.mxu0 %v7223_v18  ;;  %v7271_v18 = vld [vmem:[%s9640_s1 + $0x528] sm:$0xff]  }
  0x7d   :  { %6564 = vmatpush3.bf16.msra.mxu1 %v7224_v19  ;;  %6543 = vmatprep.subr.bf16.mxu0 %v7225_v20  ;;  %v7272_v19 = vld [vmem:[%s9640_s1 + $0x5a8] sm:$0xff]   ;;  %v7273_v20 = vld [vmem:[%s9640_s1 + $0x560] sm:$0xff]  }
  0x7e   :  { %6565 = vmatprep.subr.bf16.mxu1 %v7226_v21  ;;  %v7274_v21 = vld [vmem:[%s9640_s1 + $0x5e0] sm:$0xff]  }
  0x80   :  { %6544 = vmatpush3.bf16.msra.mxu0 %v7227_v22  ;;  %v7275_v22 = vld [vmem:[%s9640_s1 + $0x520] sm:$0xff]  }
  0x81   :  { %6566 = vmatpush3.bf16.msra.mxu1 %v7228_v23  ;;  %6573 = vmatprep.subr.bf16.mxu0 %v7229_v32  ;;  %v7276_v23 = vld [vmem:[%s9640_s1 + $0x5a0] sm:$0xff]   ;;  %v7285_v32 = vld [vmem:[%s9640_s1 + $0x548] sm:$0xff]  }
  0x82   :  { %6595 = vmatprep.subr.bf16.mxu1 %v7230_v33  ;;  %v7286_v33 = vld [vmem:[%s9640_s1 + $0x5c8] sm:$0xff]  }
  0x83   :  { %4781 = vmatmul.mubr.bf16.vlgmr.msra.gmra.mxu0 %v5833_v27  ;;  %v7280_v27 = vld [vmem:[%s9640_s1 + $0x598] sm:$0xff]  }
  0x84   :  { %4822 = vmatmul.mubr.bf16.vlgmr.msra.gmra.mxu1 %v5835_v30  ;;  %6574 = vmatpush3.bf16.msra.mxu0 %v7231_v34  ;;  %v7283_v30 = vld [vmem:[%s9640_s1 + $0x510] sm:$0xff]   ;;  %v7287_v34 = vld [vmem:[%s9640_s1 + $0x508] sm:$0xff]  }
  0x85   :  { %6596 = vmatpush3.bf16.msra.mxu1 %v7232_v35  ;;  %6575 = vmatprep.subr.bf16.mxu0 %v7233_v36  ;;  %v7288_v35 = vld [vmem:[%s9640_s1 + $0x588] sm:$0xff]   ;;  %v7289_v36 = vld [vmem:[%s9640_s1 + $0x540] sm:$0xff]  }
  0x86   :  { %6597 = vmatprep.subr.bf16.mxu1 %v7234_v37  ;;  %4862 = vmatprep.mubr.bf16.mxu0 %v5838_v3  ;;  %v7290_v37 = vld [vmem:[%s9640_s1 + $0x5c0] sm:$0xff]   ;;  %v7312_v3 = vld [vmem:[%s9640_s1 + $0x698] sm:$0xff]  }
  0x87   :  { %4903 = vmatprep.mubr.bf16.mxu1 %v5840_v7  ;;  %v7316_v7 = vld [vmem:[%s9640_s1 + $0x690] sm:$0xff]  }
  0x88   :  { %6576 = vmatpush3.bf16.msra.mxu0 %v7235_v38  ;;  %v7291_v38 = vld [vmem:[%s9640_s1 + $0x500] sm:$0xff]  }
  0x89   :  { %6598 = vmatpush3.bf16.msra.mxu1 %v7236_v39  ;;  %6577 = vmatprep.subr.bf16.mxu0 %v7237_v40  ;;  %v7292_v39 = vld [vmem:[%s9640_s1 + $0x580] sm:$0xff]   ;;  %v25_v40 = vld [vmem:[%s9641_s0 + $0x50] sm:$0xff] }
  0x8a   :  { %6599 = vmatprep.subr.bf16.mxu1 %v7238_v41  ;;  %v57_v41 = vld [vmem:[%s9641_s0 + $0x150] sm:$0xff] }
  0x8c   :  { %6578 = vmatpush3.bf16.msra.mxu0 %v7239_v42  ;;  %v26_v42 = vld [vmem:[%s9641_s0 + $0x58] sm:$0xff] }
  0x8d   :  { %6600 = vmatpush3.bf16.msra.mxu1 %v7240_v43  ;;  %6579 = vmatprep.subr.bf16.mxu0 %v7241_v44  ;;  %v58_v43 = vld [vmem:[%s9641_s0 + $0x158] sm:$0xff]  ;;  %v5841_v44 = vcombine.low %v25_v40, %v57_v41 }
  0x8e   :  { %6601 = vmatprep.subr.bf16.mxu1 %v7242_v45  ;;  %v5842_v45 = vcombine.high %v25_v40, %v57_v41  ;;  %v7341_v40 = vld [vmem:[%s9640_s1 + $0x758] sm:$0xff]  }
  0x8f   :  { %v7342_v41 = vld [vmem:[%s9640_s1 + $0x7d8] sm:$0xff]  }
  0x90   :  { %6580 = vmatpush3.bf16.msra.mxu0 %v7243_v46  ;;  %v5843_v46 = vcombine.low %v26_v42, %v58_v43 }
  0x91   :  { %6602 = vmatpush3.bf16.msra.mxu1 %v7244_v47  ;;  %6581 = vmatprep.subr.bf16.mxu0 %v7245_v48  ;;  %v5844_v47 = vcombine.high %v26_v42, %v58_v43  ;;  %v7293_v48 = vld [vmem:[%s9640_s1 + $0x678] sm:$0xff]  }
  0x92   :  { %6603 = vmatprep.subr.bf16.mxu1 %v7246_v49  ;;  %v7294_v49 = vld [vmem:[%s9640_s1 + $0x6f8] sm:$0xff]  }
  0x93   :  { %v7343_v42 = vld [vmem:[%s9640_s1 + $0x718] sm:$0xff]  }
  0x94   :  { %6582 = vmatpush3.bf16.msra.mxu0 %v7247_v50  ;;  %v7295_v50 = vld [vmem:[%s9640_s1 + $0x638] sm:$0xff]  }
  0x95   :  { %6604 = vmatpush3.bf16.msra.mxu1 %v7248_v51  ;;  %6583 = vmatprep.subr.bf16.mxu0 %v7249_v52  ;;  %v7296_v51 = vld [vmem:[%s9640_s1 + $0x6b8] sm:$0xff]   ;;  %v7297_v52 = vld [vmem:[%s9640_s1 + $0x670] sm:$0xff]  }
  0x96   :  { %6605 = vmatprep.subr.bf16.mxu1 %v7250_v53  ;;  %v7298_v53 = vld [vmem:[%s9640_s1 + $0x6f0] sm:$0xff]   ;;  %v7344_v43 = vld [vmem:[%s9640_s1 + $0x798] sm:$0xff]  }
  0x98   :  { %6584 = vmatpush3.bf16.msra.mxu0 %v7251_v54  ;;  %v7299_v54 = vld [vmem:[%s9640_s1 + $0x630] sm:$0xff]  }
  0x99   :  { %6606 = vmatpush3.bf16.msra.mxu1 %v7252_v55  ;;  %6585 = vmatprep.subr.bf16.mxu0 %v7253_v56  ;;  %v7300_v55 = vld [vmem:[%s9640_s1 + $0x6b0] sm:$0xff]   ;;  %v7301_v56 = vld [vmem:[%s9640_s1 + $0x668] sm:$0xff]  }
  0x9a   :  { %6607 = vmatprep.subr.bf16.mxu1 %v7254_v57  ;;  %v7302_v57 = vld [vmem:[%s9640_s1 + $0x6e8] sm:$0xff]  }
  0x9c   :  { %6586 = vmatpush3.bf16.msra.mxu0 %v7255_v58  ;;  %v7303_v58 = vld [vmem:[%s9640_s1 + $0x628] sm:$0xff]  }
  0x9d   :  { %6608 = vmatpush3.bf16.msra.mxu1 %v7256_v59  ;;  %6587 = vmatprep.subr.bf16.mxu0 %v7257_v60  ;;  %v7304_v59 = vld [vmem:[%s9640_s1 + $0x6a8] sm:$0xff]   ;;  %v7305_v60 = vld [vmem:[%s9640_s1 + $0x660] sm:$0xff]  }
  0x9e   :  { %6609 = vmatprep.subr.bf16.mxu1 %v7258_v61  ;;  %v7306_v61 = vld [vmem:[%s9640_s1 + $0x6e0] sm:$0xff]  }
  0xa0   :  { %6588 = vmatpush3.bf16.msra.mxu0 %v7259_v62  ;;  %v7307_v62 = vld [vmem:[%s9640_s1 + $0x620] sm:$0xff]  }
  0xa1   :  { %6610 = vmatpush3.bf16.msra.mxu1 %v7260_v63  ;;  %6617 = vmatprep.subr.bf16.mxu0 %v7261_v8  ;;  %v7308_v63 = vld [vmem:[%s9640_s1 + $0x6a0] sm:$0xff]   ;;  %v7317_v8 = vld [vmem:[%s9640_s1 + $0x648] sm:$0xff]  }
  0xa2   :  { %6639 = vmatprep.subr.bf16.mxu1 %v7262_v9  ;;  %v7318_v9 = vld [vmem:[%s9640_s1 + $0x6c8] sm:$0xff]  }
  0xa3   :  { %4863 = vmatmul.mubr.bf16.vlgmr.msra.gmra.mxu0 %v5837_v2  ;;  %v7311_v2 = vld [vmem:[%s9640_s1 + $0x618] sm:$0xff]  }
  0xa4   :  { %4904 = vmatmul.mubr.bf16.vlgmr.msra.gmra.mxu1 %v5839_v6  ;;  %6618 = vmatpush3.bf16.msra.mxu0 %v7263_v10  ;;  %v7315_v6 = vld [vmem:[%s9640_s1 + $0x610] sm:$0xff]   ;;  %v7319_v10 = vld [vmem:[%s9640_s1 + $0x608] sm:$0xff]  }
  0xa5   :  { %6640 = vmatpush3.bf16.msra.mxu1 %v7264_v11  ;;  %6619 = vmatprep.subr.bf16.mxu0 %v7265_v12  ;;  %v7320_v11 = vld [vmem:[%s9640_s1 + $0x688] sm:$0xff]   ;;  %v7321_v12 = vld [vmem:[%s9640_s1 + $0x640] sm:$0xff]  }
  0xa6   :  { %6641 = vmatprep.subr.bf16.mxu1 %v7266_v13  ;;  %4944 = vmatprep.mubr.bf16.mxu0 %v5842_v45  ;;  %v7322_v13 = vld [vmem:[%s9640_s1 + $0x6c0] sm:$0xff]   ;;  %v7346_v45 = vld [vmem:[%s9640_s1 + $0x7d0] sm:$0xff]  }
  0xa7   :  { %4985 = vmatprep.mubr.bf16.mxu1 %v5844_v47  ;;  %v7348_v47 = vld [vmem:[%s9640_s1 + $0x790] sm:$0xff]  }
  0xa8   :  { %6620 = vmatpush3.bf16.msra.mxu0 %v7267_v14  ;;  %v7323_v14 = vld [vmem:[%s9640_s1 + $0x600] sm:$0xff]  }
  0xa9   :  { %6642 = vmatpush3.bf16.msra.mxu1 %v7268_v15  ;;  %6621 = vmatprep.subr.bf16.mxu0 %v7269_v16  ;;  %v7324_v15 = vld [vmem:[%s9640_s1 + $0x680] sm:$0xff]  }
  0xaa   :  { %6643 = vmatprep.subr.bf16.mxu1 %v7270_v17  ;;  %v27_v16 = vld [vmem:[%s9641_s0 + $0x60] sm:$0xff] }
  0xab   :  { %v59_v17 = vld [vmem:[%s9641_s0 + $0x160] sm:$0xff] }
  0xac   :  { %6622 = vmatpush3.bf16.msra.mxu0 %v7271_v18  ;;  %v28_v18 = vld [vmem:[%s9641_s0 + $0x68] sm:$0xff] }
  0xad   :  { %6644 = vmatpush3.bf16.msra.mxu1 %v7272_v19  ;;  %6623 = vmatprep.subr.bf16.mxu0 %v7273_v20  ;;  %v5845_v19 = vcombine.low %v27_v16, %v59_v17  ;;  %v5846_v20 = vcombine.high %v27_v16, %v59_v17  ;;  %v7373_v16 = vld [vmem:[%s9640_s1 + $0x858] sm:$0xff]  }
  0xae   :  { %6645 = vmatprep.subr.bf16.mxu1 %v7274_v21  ;;  %v60_v21 = vld [vmem:[%s9641_s0 + $0x168] sm:$0xff]  ;;  %v7374_v17 = vld [vmem:[%s9640_s1 + $0x8d8] sm:$0xff]  }
  0xb0   :  { %6624 = vmatpush3.bf16.msra.mxu0 %v7275_v22  ;;  %v5847_v22 = vcombine.low %v28_v18, %v60_v21 }
  0xb1   :  { %6646 = vmatpush3.bf16.msra.mxu1 %v7276_v23  ;;  %6625 = vmatprep.subr.bf16.mxu0 %v7277_v24  ;;  %v5848_v23 = vcombine.high %v28_v18, %v60_v21  ;;  %v7325_v24 = vld [vmem:[%s9640_s1 + $0x778] sm:$0xff]   ;;  %v7378_v21 = vld [vmem:[%s9640_s1 + $0x8d0] sm:$0xff]  }
  0xb2   :  { %6647 = vmatprep.subr.bf16.mxu1 %v7278_v25  ;;  %v7326_v25 = vld [vmem:[%s9640_s1 + $0x7f8] sm:$0xff]  }
  0xb3   :  { %v7375_v18 = vld [vmem:[%s9640_s1 + $0x818] sm:$0xff]  }
  0xb4   :  { %6626 = vmatpush3.bf16.msra.mxu0 %v7279_v26  ;;  %v7327_v26 = vld [vmem:[%s9640_s1 + $0x738] sm:$0xff]  }
  0xb5   :  { %6648 = vmatpush3.bf16.msra.mxu1 %v7280_v27  ;;  %6627 = vmatprep.subr.bf16.mxu0 %v7281_v28  ;;  %v7328_v27 = vld [vmem:[%s9640_s1 + $0x7b8] sm:$0xff]   ;;  %v7329_v28 = vld [vmem:[%s9640_s1 + $0x770] sm:$0xff]  }
  0xb6   :  { %6649 = vmatprep.subr.bf16.mxu1 %v7282_v29  ;;  %v7330_v29 = vld [vmem:[%s9640_s1 + $0x7f0] sm:$0xff]  }
  0xb8   :  { %6628 = vmatpush3.bf16.msra.mxu0 %v7283_v30  ;;  %v7331_v30 = vld [vmem:[%s9640_s1 + $0x730] sm:$0xff]  }
  0xb9   :  { %6650 = vmatpush3.bf16.msra.mxu1 %v7284_v31  ;;  %6629 = vmatprep.subr.bf16.mxu0 %v7285_v32  ;;  %v7332_v31 = vld [vmem:[%s9640_s1 + $0x7b0] sm:$0xff]   ;;  %v7333_v32 = vld [vmem:[%s9640_s1 + $0x768] sm:$0xff]  }
  0xba   :  { %6651 = vmatprep.subr.bf16.mxu1 %v7286_v33  ;;  %v7334_v33 = vld [vmem:[%s9640_s1 + $0x7e8] sm:$0xff]  }
  0xbc   :  { %6630 = vmatpush3.bf16.msra.mxu0 %v7287_v34  ;;  %v7335_v34 = vld [vmem:[%s9640_s1 + $0x728] sm:$0xff]  }
  0xbd   :  { %6652 = vmatpush3.bf16.msra.mxu1 %v7288_v35  ;;  %6631 = vmatprep.subr.bf16.mxu0 %v7289_v36  ;;  %v7336_v35 = vld [vmem:[%s9640_s1 + $0x7a8] sm:$0xff]   ;;  %v7337_v36 = vld [vmem:[%s9640_s1 + $0x760] sm:$0xff]  }
  0xbe   :  { %6653 = vmatprep.subr.bf16.mxu1 %v7290_v37  ;;  %v7338_v37 = vld [vmem:[%s9640_s1 + $0x7e0] sm:$0xff]  }
  0xc0   :  { %6632 = vmatpush3.bf16.msra.mxu0 %v7291_v38  ;;  %v7339_v38 = vld [vmem:[%s9640_s1 + $0x720] sm:$0xff]  }
  0xc1   :  { %6654 = vmatpush3.bf16.msra.mxu1 %v7292_v39  ;;  %6661 = vmatprep.subr.bf16.mxu0 %v7293_v48  ;;  %v7340_v39 = vld [vmem:[%s9640_s1 + $0x7a0] sm:$0xff]   ;;  %v7349_v48 = vld [vmem:[%s9640_s1 + $0x748] sm:$0xff]  }
  0xc2   :  { %6683 = vmatprep.subr.bf16.mxu1 %v7294_v49  ;;  %v7350_v49 = vld [vmem:[%s9640_s1 + $0x7c8] sm:$0xff]  }
  0xc3   :  { %4945 = vmatmul.mubr.bf16.vlgmr.msra.gmra.mxu0 %v5841_v44  ;;  %v7345_v44 = vld [vmem:[%s9640_s1 + $0x750] sm:$0xff]  }
  0xc4   :  { %4986 = vmatmul.mubr.bf16.vlgmr.msra.gmra.mxu1 %v5843_v46  ;;  %6662 = vmatpush3.bf16.msra.mxu0 %v7295_v50  ;;  %v7347_v46 = vld [vmem:[%s9640_s1 + $0x710] sm:$0xff]   ;;  %v7351_v50 = vld [vmem:[%s9640_s1 + $0x708] sm:$0xff]  }
  0xc5   :  { %6684 = vmatpush3.bf16.msra.mxu1 %v7296_v51  ;;  %6663 = vmatprep.subr.bf16.mxu0 %v7297_v52  ;;  %v7352_v51 = vld [vmem:[%s9640_s1 + $0x788] sm:$0xff]   ;;  %v7353_v52 = vld [vmem:[%s9640_s1 + $0x740] sm:$0xff]  }
  0xc6   :  { %6685 = vmatprep.subr.bf16.mxu1 %v7298_v53  ;;  %5026 = vmatprep.mubr.bf16.mxu0 %v5846_v20  ;;  %v7354_v53 = vld [vmem:[%s9640_s1 + $0x7c0] sm:$0xff]   ;;  %v7377_v20 = vld [vmem:[%s9640_s1 + $0x850] sm:$0xff]  }
  0xc7   :  { %5067 = vmatprep.mubr.bf16.mxu1 %v5848_v23  ;;  %v7380_v23 = vld [vmem:[%s9640_s1 + $0x890] sm:$0xff]  }
  0xc8   :  { %6664 = vmatpush3.bf16.msra.mxu0 %v7299_v54  ;;  %v7355_v54 = vld [vmem:[%s9640_s1 + $0x700] sm:$0xff]  }
  0xc9   :  { %6686 = vmatpush3.bf16.msra.mxu1 %v7300_v55  ;;  %6665 = vmatprep.subr.bf16.mxu0 %v7301_v56  ;;  %v7356_v55 = vld [vmem:[%s9640_s1 + $0x780] sm:$0xff]   ;;  %v29_v56 = vld [vmem:[%s9641_s0 + $0x70] sm:$0xff] }
  0xca   :  { %6687 = vmatprep.subr.bf16.mxu1 %v7302_v57  ;;  %v61_v57 = vld [vmem:[%s9641_s0 + $0x170] sm:$0xff] }
  0xcc   :  { %6666 = vmatpush3.bf16.msra.mxu0 %v7303_v58  ;;  %v30_v58 = vld [vmem:[%s9641_s0 + $0x78] sm:$0xff] }
  0xcd   :  { %6688 = vmatpush3.bf16.msra.mxu1 %v7304_v59  ;;  %6667 = vmatprep.subr.bf16.mxu0 %v7305_v60  ;;  %v62_v59 = vld [vmem:[%s9641_s0 + $0x178] sm:$0xff]  ;;  %v5849_v60 = vcombine.low %v29_v56, %v61_v57 }
  0xce   :  { %6689 = vmatprep.subr.bf16.mxu1 %v7306_v61  ;;  %v5850_v61 = vcombine.high %v29_v56, %v61_v57  ;;  %v7405_v56 = vld [vmem:[%s9640_s1 + $0x958] sm:$0xff]  }
  0xcf   :  { %v7406_v57 = vld [vmem:[%s9640_s1 + $0x9d8] sm:$0xff]  }
  0xd0   :  { %6668 = vmatpush3.bf16.msra.mxu0 %v7307_v62  ;;  %v5851_v62 = vcombine.low %v30_v58, %v62_v59 }
  0xd1   :  { %6690 = vmatpush3.bf16.msra.mxu1 %v7308_v63  ;;  %6669 = vmatprep.subr.bf16.mxu0 %v7309_v0  ;;  %v5852_v63 = vcombine.high %v30_v58, %v62_v59  ;;  %v7357_v0 = vld [vmem:[%s9640_s1 + $0x878] sm:$0xff]  }
  0xd2   :  { %6691 = vmatprep.subr.bf16.mxu1 %v7310_v1  ;;  %v7358_v1 = vld [vmem:[%s9640_s1 + $0x8f8] sm:$0xff]  }
  0xd3   :  { %v7407_v58 = vld [vmem:[%s9640_s1 + $0x918] sm:$0xff]  }
  0xd4   :  { %6670 = vmatpush3.bf16.msra.mxu0 %v7311_v2  ;;  %v7359_v2 = vld [vmem:[%s9640_s1 + $0x838] sm:$0xff]  }
  0xd5   :  { %6692 = vmatpush3.bf16.msra.mxu1 %v7312_v3  ;;  %6671 = vmatprep.subr.bf16.mxu0 %v7313_v4  ;;  %v7360_v3 = vld [vmem:[%s9640_s1 + $0x8b8] sm:$0xff]   ;;  %v7361_v4 = vld [vmem:[%s9640_s1 + $0x870] sm:$0xff]  }
  0xd6   :  { %6693 = vmatprep.subr.bf16.mxu1 %v7314_v5  ;;  %v7362_v5 = vld [vmem:[%s9640_s1 + $0x8f0] sm:$0xff]   ;;  %v7408_v59 = vld [vmem:[%s9640_s1 + $0x998] sm:$0xff]  }
  0xd8   :  { %6672 = vmatpush3.bf16.msra.mxu0 %v7315_v6  ;;  %v7363_v6 = vld [vmem:[%s9640_s1 + $0x830] sm:$0xff]  }
  0xd9   :  { %6694 = vmatpush3.bf16.msra.mxu1 %v7316_v7  ;;  %6673 = vmatprep.subr.bf16.mxu0 %v7317_v8  ;;  %v7364_v7 = vld [vmem:[%s9640_s1 + $0x8b0] sm:$0xff]   ;;  %v7365_v8 = vld [vmem:[%s9640_s1 + $0x868] sm:$0xff]  }
  0xda   :  { %6695 = vmatprep.subr.bf16.mxu1 %v7318_v9  ;;  %v7366_v9 = vld [vmem:[%s9640_s1 + $0x8e8] sm:$0xff]  }
  0xdc   :  { %6674 = vmatpush3.bf16.msra.mxu0 %v7319_v10  ;;  %v7367_v10 = vld [vmem:[%s9640_s1 + $0x828] sm:$0xff]  }
  0xdd   :  { %6696 = vmatpush3.bf16.msra.mxu1 %v7320_v11  ;;  %6675 = vmatprep.subr.bf16.mxu0 %v7321_v12  ;;  %v7368_v11 = vld [vmem:[%s9640_s1 + $0x8a8] sm:$0xff]   ;;  %v7369_v12 = vld [vmem:[%s9640_s1 + $0x860] sm:$0xff]  }
  0xde   :  { %6697 = vmatprep.subr.bf16.mxu1 %v7322_v13  ;;  %v7370_v13 = vld [vmem:[%s9640_s1 + $0x8e0] sm:$0xff]  }
  0xe0   :  { %6676 = vmatpush3.bf16.msra.mxu0 %v7323_v14  ;;  %v7371_v14 = vld [vmem:[%s9640_s1 + $0x820] sm:$0xff]  }
  0xe1   :  { %6698 = vmatpush3.bf16.msra.mxu1 %v7324_v15  ;;  %6705 = vmatprep.subr.bf16.mxu0 %v7325_v24  ;;  %v7372_v15 = vld [vmem:[%s9640_s1 + $0x8a0] sm:$0xff]   ;;  %v7381_v24 = vld [vmem:[%s9640_s1 + $0x848] sm:$0xff]  }
  0xe2   :  { %6727 = vmatprep.subr.bf16.mxu1 %v7326_v25  ;;  %v7382_v25 = vld [vmem:[%s9640_s1 + $0x8c8] sm:$0xff]  }
  0xe3   :  { %5027 = vmatmul.mubr.bf16.vlgmr.msra.gmra.mxu0 %v5845_v19  ;;  %v7376_v19 = vld [vmem:[%s9640_s1 + $0x898] sm:$0xff]  }
  0xe4   :  { %5068 = vmatmul.mubr.bf16.vlgmr.msra.gmra.mxu1 %v5847_v22  ;;  %6706 = vmatpush3.bf16.msra.mxu0 %v7327_v26  ;;  %v7379_v22 = vld [vmem:[%s9640_s1 + $0x810] sm:$0xff]   ;;  %v7383_v26 = vld [vmem:[%s9640_s1 + $0x808] sm:$0xff]  }
  0xe5   :  { %6728 = vmatpush3.bf16.msra.mxu1 %v7328_v27  ;;  %6707 = vmatprep.subr.bf16.mxu0 %v7329_v28  ;;  %v7384_v27 = vld [vmem:[%s9640_s1 + $0x888] sm:$0xff]   ;;  %v7385_v28 = vld [vmem:[%s9640_s1 + $0x840] sm:$0xff]  }
  0xe6   :  { %6729 = vmatprep.subr.bf16.mxu1 %v7330_v29  ;;  %5108 = vmatprep.mubr.bf16.mxu0 %v5850_v61  ;;  %v7386_v29 = vld [vmem:[%s9640_s1 + $0x8c0] sm:$0xff]   ;;  %v7410_v61 = vld [vmem:[%s9640_s1 + $0x9d0] sm:$0xff]  }
  0xe7   :  { %5149 = vmatprep.mubr.bf16.mxu1 %v5852_v63  ;;  %v7412_v63 = vld [vmem:[%s9640_s1 + $0x990] sm:$0xff]  }
  0xe8   :  { %6708 = vmatpush3.bf16.msra.mxu0 %v7331_v30  ;;  %v7387_v30 = vld [vmem:[%s9640_s1 + $0x800] sm:$0xff]  }
  0xe9   :  { %6730 = vmatpush3.bf16.msra.mxu1 %v7332_v31  ;;  %6709 = vmatprep.subr.bf16.mxu0 %v7333_v32  ;;  %v7388_v31 = vld [vmem:[%s9640_s1 + $0x880] sm:$0xff]  }
  0xea   :  { %6731 = vmatprep.subr.bf16.mxu1 %v7334_v33  ;;  %v31_v32 = vld [vmem:[%s9641_s0 + $0x80] sm:$0xff] }
  0xeb   :  { %v63_v33 = vld [vmem:[%s9641_s0 + $0x180] sm:$0xff] }
  0xec   :  { %6710 = vmatpush3.bf16.msra.mxu0 %v7335_v34  ;;  %v32_v34 = vld [vmem:[%s9641_s0 + $0x88] sm:$0xff] }
  0xed   :  { %6732 = vmatpush3.bf16.msra.mxu1 %v7336_v35  ;;  %6711 = vmatprep.subr.bf16.mxu0 %v7337_v36  ;;  %v5853_v35 = vcombine.low %v31_v32, %v63_v33  ;;  %v5854_v36 = vcombine.high %v31_v32, %v63_v33  ;;  %v7437_v32 = vld [vmem:[%s9640_s1 + $0xa58] sm:$0xff]  }
  0xee   :  { %6733 = vmatprep.subr.bf16.mxu1 %v7338_v37  ;;  %v64_v37 = vld [vmem:[%s9641_s0 + $0x188] sm:$0xff]  ;;  %v7438_v33 = vld [vmem:[%s9640_s1 + $0xad8] sm:$0xff]  }
  0xf0   :  { %6712 = vmatpush3.bf16.msra.mxu0 %v7339_v38  ;;  %v5855_v38 = vcombine.low %v32_v34, %v64_v37 }
  0xf1   :  { %6734 = vmatpush3.bf16.msra.mxu1 %v7340_v39  ;;  %6713 = vmatprep.subr.bf16.mxu0 %v7341_v40  ;;  %v5856_v39 = vcombine.high %v32_v34, %v64_v37  ;;  %v7389_v40 = vld [vmem:[%s9640_s1 + $0x978] sm:$0xff]   ;;  %v7442_v37 = vld [vmem:[%s9640_s1 + $0xad0] sm:$0xff]  }
  0xf2   :  { %6735 = vmatprep.subr.bf16.mxu1 %v7342_v41  ;;  %v7390_v41 = vld [vmem:[%s9640_s1 + $0x9f8] sm:$0xff]  }
  0xf3   :  { %v7439_v34 = vld [vmem:[%s9640_s1 + $0xa18] sm:$0xff]  }
  0xf4   :  { %6714 = vmatpush3.bf16.msra.mxu0 %v7343_v42  ;;  %v7391_v42 = vld [vmem:[%s9640_s1 + $0x938] sm:$0xff]  }
  0xf5   :  { %6736 = vmatpush3.bf16.msra.mxu1 %v7344_v43  ;;  %6715 = vmatprep.subr.bf16.mxu0 %v7345_v44  ;;  %v7392_v43 = vld [vmem:[%s9640_s1 + $0x9b8] sm:$0xff]   ;;  %v7393_v44 = vld [vmem:[%s9640_s1 + $0x970] sm:$0xff]  }
  0xf6   :  { %6737 = vmatprep.subr.bf16.mxu1 %v7346_v45  ;;  %v7394_v45 = vld [vmem:[%s9640_s1 + $0x9f0] sm:$0xff]  }
  0xf8   :  { %6716 = vmatpush3.bf16.msra.mxu0 %v7347_v46  ;;  %v7395_v46 = vld [vmem:[%s9640_s1 + $0x930] sm:$0xff]  }
  0xf9   :  { %6738 = vmatpush3.bf16.msra.mxu1 %v7348_v47  ;;  %6717 = vmatprep.subr.bf16.mxu0 %v7349_v48  ;;  %v7396_v47 = vld [vmem:[%s9640_s1 + $0x9b0] sm:$0xff]   ;;  %v7397_v48 = vld [vmem:[%s9640_s1 + $0x968] sm:$0xff]  }
  0xfa   :  { %6739 = vmatprep.subr.bf16.mxu1 %v7350_v49  ;;  %v7398_v49 = vld [vmem:[%s9640_s1 + $0x9e8] sm:$0xff]  }
  0xfc   :  { %6718 = vmatpush3.bf16.msra.mxu0 %v7351_v50  ;;  %v7399_v50 = vld [vmem:[%s9640_s1 + $0x928] sm:$0xff]  }
  0xfd   :  { %6740 = vmatpush3.bf16.msra.mxu1 %v7352_v51  ;;  %6719 = vmatprep.subr.bf16.mxu0 %v7353_v52  ;;  %v7400_v51 = vld [vmem:[%s9640_s1 + $0x9a8] sm:$0xff]   ;;  %v7401_v52 = vld [vmem:[%s9640_s1 + $0x960] sm:$0xff]  }
  0xfe   :  { %6741 = vmatprep.subr.bf16.mxu1 %v7354_v53  ;;  %v7402_v53 = vld [vmem:[%s9640_s1 + $0x9e0] sm:$0xff]  }
 0x100   :  { %6720 = vmatpush3.bf16.msra.mxu0 %v7355_v54  ;;  %v7403_v54 = vld [vmem:[%s9640_s1 + $0x920] sm:$0xff]  }
 0x101   :  { %6742 = vmatpush3.bf16.msra.mxu1 %v7356_v55  ;;  %6749 = vmatprep.subr.bf16.mxu0 %v7357_v0  ;;  %v7404_v55 = vld [vmem:[%s9640_s1 + $0x9a0] sm:$0xff]   ;;  %v7413_v0 = vld [vmem:[%s9640_s1 + $0x948] sm:$0xff]  }
 0x102   :  { %6771 = vmatprep.subr.bf16.mxu1 %v7358_v1  ;;  %v7414_v1 = vld [vmem:[%s9640_s1 + $0x9c8] sm:$0xff]  }
 0x103   :  { %5109 = vmatmul.mubr.bf16.vlgmr.msra.gmra.mxu0 %v5849_v60  ;;  %v7409_v60 = vld [vmem:[%s9640_s1 + $0x950] sm:$0xff]  }
 0x104   :  { %5150 = vmatmul.mubr.bf16.vlgmr.msra.gmra.mxu1 %v5851_v62  ;;  %6750 = vmatpush3.bf16.msra.mxu0 %v7359_v2  ;;  %v7411_v62 = vld [vmem:[%s9640_s1 + $0x910] sm:$0xff]   ;;  %v7415_v2 = vld [vmem:[%s9640_s1 + $0x908] sm:$0xff]  }
 0x105   :  { %6772 = vmatpush3.bf16.msra.mxu1 %v7360_v3  ;;  %6751 = vmatprep.subr.bf16.mxu0 %v7361_v4  ;;  %v7416_v3 = vld [vmem:[%s9640_s1 + $0x988] sm:$0xff]   ;;  %v7417_v4 = vld [vmem:[%s9640_s1 + $0x940] sm:$0xff]  }
 0x106   :  { %6773 = vmatprep.subr.bf16.mxu1 %v7362_v5  ;;  %5190 = vmatprep.mubr.bf16.mxu0 %v5854_v36  ;;  %v7418_v5 = vld [vmem:[%s9640_s1 + $0x9c0] sm:$0xff]   ;;  %v7441_v36 = vld [vmem:[%s9640_s1 + $0xa50] sm:$0xff]  }
 0x107   :  { %5231 = vmatprep.mubr.bf16.mxu1 %v5856_v39  ;;  %v7444_v39 = vld [vmem:[%s9640_s1 + $0xa90] sm:$0xff]  }
 0x108   :  { %6752 = vmatpush3.bf16.msra.mxu0 %v7363_v6  ;;  %v7419_v6 = vld [vmem:[%s9640_s1 + $0x900] sm:$0xff]  }
 0x109   :  { %6774 = vmatpush3.bf16.msra.mxu1 %v7364_v7  ;;  %6753 = vmatprep.subr.bf16.mxu0 %v7365_v8  ;;  %v7420_v7 = vld [vmem:[%s9640_s1 + $0x980] sm:$0xff]   ;;  %v33_v8 = vld [vmem:[%s9641_s0 + $0x90] sm:$0xff] }
 0x10a   :  { %6775 = vmatprep.subr.bf16.mxu1 %v7366_v9  ;;  %v65_v9 = vld [vmem:[%s9641_s0 + $0x190] sm:$0xff] }
 0x10c   :  { %6754 = vmatpush3.bf16.msra.mxu0 %v7367_v10  ;;  %v5857_v10 = vcombine.low %v33_v8, %v65_v9 }
 0x10d   :  { %6776 = vmatpush3.bf16.msra.mxu1 %v7368_v11  ;;  %6755 = vmatprep.subr.bf16.mxu0 %v7369_v12  ;;  %v5858_v11 = vcombine.high %v33_v8, %v65_v9  ;;  %v34_v12 = vld [vmem:[%s9641_s0 + $0x98] sm:$0xff] }
 0x10e   :  { %6777 = vmatprep.subr.bf16.mxu1 %v7370_v13  ;;  %v66_v13 = vld [vmem:[%s9641_s0 + $0x198] sm:$0xff] }
 0x10f   :  { %v7469_v8 = vld [vmem:[%s9640_s1 + $0xb58] sm:$0xff]  }
 0x110   :  { %6756 = vmatpush3.bf16.msra.mxu0 %v7371_v14  ;;  %v5859_v14 = vcombine.low %v34_v12, %v66_v13  ;;  %v7470_v9 = vld [vmem:[%s9640_s1 + $0xbd8] sm:$0xff]  }
 0x111   :  { %6778 = vmatpush3.bf16.msra.mxu1 %v7372_v15  ;;  %6757 = vmatprep.subr.bf16.mxu0 %v7373_v16  ;;  %v5860_v15 = vcombine.high %v34_v12, %v66_v13  ;;  %v7421_v16 = vld [vmem:[%s9640_s1 + $0xa78] sm:$0xff]   ;;  %v7473_v12 = vld [vmem:[%s9640_s1 + $0xb50] sm:$0xff]  }
 0x112   :  { %6779 = vmatprep.subr.bf16.mxu1 %v7374_v17  ;;  %v7422_v17 = vld [vmem:[%s9640_s1 + $0xaf8] sm:$0xff]   ;;  %v7474_v13 = vld [vmem:[%s9640_s1 + $0xbd0] sm:$0xff]  }
 0x114   :  { %6758 = vmatpush3.bf16.msra.mxu0 %v7375_v18  ;;  %v7423_v18 = vld [vmem:[%s9640_s1 + $0xa38] sm:$0xff]  }
 0x115   :  { %6780 = vmatpush3.bf16.msra.mxu1 %v7376_v19  ;;  %6759 = vmatprep.subr.bf16.mxu0 %v7377_v20  ;;  %v7424_v19 = vld [vmem:[%s9640_s1 + $0xab8] sm:$0xff]   ;;  %v7425_v20 = vld [vmem:[%s9640_s1 + $0xa70] sm:$0xff]  }
 0x116   :  { %6781 = vmatprep.subr.bf16.mxu1 %v7378_v21  ;;  %v7426_v21 = vld [vmem:[%s9640_s1 + $0xaf0] sm:$0xff]  }
 0x118   :  { %6760 = vmatpush3.bf16.msra.mxu0 %v7379_v22  ;;  %v7427_v22 = vld [vmem:[%s9640_s1 + $0xa30] sm:$0xff]  }
 0x119   :  { %6782 = vmatpush3.bf16.msra.mxu1 %v7380_v23  ;;  %6761 = vmatprep.subr.bf16.mxu0 %v7381_v24  ;;  %v7428_v23 = vld [vmem:[%s9640_s1 + $0xab0] sm:$0xff]   ;;  %v7429_v24 = vld [vmem:[%s9640_s1 + $0xa68] sm:$0xff]  }
 0x11a   :  { %6783 = vmatprep.subr.bf16.mxu1 %v7382_v25  ;;  %v7430_v25 = vld [vmem:[%s9640_s1 + $0xae8] sm:$0xff]  }
 0x11c   :  { %6762 = vmatpush3.bf16.msra.mxu0 %v7383_v26  ;;  %v7431_v26 = vld [vmem:[%s9640_s1 + $0xa28] sm:$0xff]  }
 0x11d   :  { %6784 = vmatpush3.bf16.msra.mxu1 %v7384_v27  ;;  %6763 = vmatprep.subr.bf16.mxu0 %v7385_v28  ;;  %v7432_v27 = vld [vmem:[%s9640_s1 + $0xaa8] sm:$0xff]   ;;  %v7433_v28 = vld [vmem:[%s9640_s1 + $0xa60] sm:$0xff]  }
 0x11e   :  { %6785 = vmatprep.subr.bf16.mxu1 %v7386_v29  ;;  %v7434_v29 = vld [vmem:[%s9640_s1 + $0xae0] sm:$0xff]  }
 0x120   :  { %6764 = vmatpush3.bf16.msra.mxu0 %v7387_v30  ;;  %v7435_v30 = vld [vmem:[%s9640_s1 + $0xa20] sm:$0xff]  }
 0x121   :  { %6786 = vmatpush3.bf16.msra.mxu1 %v7388_v31  ;;  %6793 = vmatprep.subr.bf16.mxu0 %v7389_v40  ;;  %v7436_v31 = vld [vmem:[%s9640_s1 + $0xaa0] sm:$0xff]   ;;  %v7445_v40 = vld [vmem:[%s9640_s1 + $0xa48] sm:$0xff]  }
 0x122   :  { %6815 = vmatprep.subr.bf16.mxu1 %v7390_v41  ;;  %v7446_v41 = vld [vmem:[%s9640_s1 + $0xac8] sm:$0xff]  }
 0x123   :  { %5191 = vmatmul.mubr.bf16.vlgmr.msra.gmra.mxu0 %v5853_v35  ;;  %v7440_v35 = vld [vmem:[%s9640_s1 + $0xa98] sm:$0xff]  }
 0x124   :  { %5232 = vmatmul.mubr.bf16.vlgmr.msra.gmra.mxu1 %v5855_v38  ;;  %6794 = vmatpush3.bf16.msra.mxu0 %v7391_v42  ;;  %v7443_v38 = vld [vmem:[%s9640_s1 + $0xa10] sm:$0xff]   ;;  %v7447_v42 = vld [vmem:[%s9640_s1 + $0xa08] sm:$0xff]  }
 0x125   :  { %6816 = vmatpush3.bf16.msra.mxu1 %v7392_v43  ;;  %6795 = vmatprep.subr.bf16.mxu0 %v7393_v44  ;;  %v7448_v43 = vld [vmem:[%s9640_s1 + $0xa88] sm:$0xff]   ;;  %v7449_v44 = vld [vmem:[%s9640_s1 + $0xa40] sm:$0xff]  }
 0x126   :  { %6817 = vmatprep.subr.bf16.mxu1 %v7394_v45  ;;  %5272 = vmatprep.mubr.bf16.mxu0 %v5858_v11  ;;  %v7450_v45 = vld [vmem:[%s9640_s1 + $0xac0] sm:$0xff]   ;;  %v7472_v11 = vld [vmem:[%s9640_s1 + $0xb98] sm:$0xff]  }
 0x127   :  { %5313 = vmatprep.mubr.bf16.mxu1 %v5860_v15  ;;  %v7476_v15 = vld [vmem:[%s9640_s1 + $0xb90] sm:$0xff]  }
 0x128   :  { %6796 = vmatpush3.bf16.msra.mxu0 %v7395_v46  ;;  %v7451_v46 = vld [vmem:[%s9640_s1 + $0xa00] sm:$0xff]  }
 0x129   :  { %6818 = vmatpush3.bf16.msra.mxu1 %v7396_v47  ;;  %6797 = vmatprep.subr.bf16.mxu0 %v7397_v48  ;;  %v7452_v47 = vld [vmem:[%s9640_s1 + $0xa80] sm:$0xff]  }
 0x12a   :  { %6819 = vmatprep.subr.bf16.mxu1 %v7398_v49  ;;  %v35_v48 = vld [vmem:[%s9641_s0 + $0xa0] sm:$0xff] }
 0x12b   :  { %v67_v49 = vld [vmem:[%s9641_s0 + $0x1a0] sm:$0xff] }
 0x12c   :  { %6798 = vmatpush3.bf16.msra.mxu0 %v7399_v50  ;;  %v36_v50 = vld [vmem:[%s9641_s0 + $0xa8] sm:$0xff] }
 0x12d   :  { %6820 = vmatpush3.bf16.msra.mxu1 %v7400_v51  ;;  %6799 = vmatprep.subr.bf16.mxu0 %v7401_v52  ;;  %v68_v51 = vld [vmem:[%s9641_s0 + $0x1a8] sm:$0xff]  ;;  %v5861_v52 = vcombine.low %v35_v48, %v67_v49 }
 0x12e   :  { %6821 = vmatprep.subr.bf16.mxu1 %v7402_v53  ;;  %v5862_v53 = vcombine.high %v35_v48, %v67_v49  ;;  %v7501_v48 = vld [vmem:[%s9640_s1 + $0xc58] sm:$0xff]  }
 0x12f   :  { %v7502_v49 = vld [vmem:[%s9640_s1 + $0xcd8] sm:$0xff]  }
 0x130   :  { %6800 = vmatpush3.bf16.msra.mxu0 %v7403_v54  ;;  %v5863_v54 = vcombine.low %v36_v50, %v68_v51 }
 0x131   :  { %6822 = vmatpush3.bf16.msra.mxu1 %v7404_v55  ;;  %6801 = vmatprep.subr.bf16.mxu0 %v7405_v56  ;;  %v5864_v55 = vcombine.high %v36_v50, %v68_v51  ;;  %v7453_v56 = vld [vmem:[%s9640_s1 + $0xb78] sm:$0xff]  }
 0x132   :  { %6823 = vmatprep.subr.bf16.mxu1 %v7406_v57  ;;  %v7454_v57 = vld [vmem:[%s9640_s1 + $0xbf8] sm:$0xff]  }
 0x133   :  { %v7503_v50 = vld [vmem:[%s9640_s1 + $0xc18] sm:$0xff]  }
 0x134   :  { %6802 = vmatpush3.bf16.msra.mxu0 %v7407_v58  ;;  %v7455_v58 = vld [vmem:[%s9640_s1 + $0xb38] sm:$0xff]  }
 0x135   :  { %6824 = vmatpush3.bf16.msra.mxu1 %v7408_v59  ;;  %6803 = vmatprep.subr.bf16.mxu0 %v7409_v60  ;;  %v7456_v59 = vld [vmem:[%s9640_s1 + $0xbb8] sm:$0xff]   ;;  %v7457_v60 = vld [vmem:[%s9640_s1 + $0xb70] sm:$0xff]  }
 0x136   :  { %6825 = vmatprep.subr.bf16.mxu1 %v7410_v61  ;;  %v7458_v61 = vld [vmem:[%s9640_s1 + $0xbf0] sm:$0xff]   ;;  %v7504_v51 = vld [vmem:[%s9640_s1 + $0xc98] sm:$0xff]  }
 0x138   :  { %6804 = vmatpush3.bf16.msra.mxu0 %v7411_v62  ;;  %v7459_v62 = vld [vmem:[%s9640_s1 + $0xb30] sm:$0xff]  }
 0x139   :  { %6826 = vmatpush3.bf16.msra.mxu1 %v7412_v63  ;;  %6805 = vmatprep.subr.bf16.mxu0 %v7413_v0  ;;  %v7460_v63 = vld [vmem:[%s9640_s1 + $0xbb0] sm:$0xff]   ;;  %v7461_v0 = vld [vmem:[%s9640_s1 + $0xb68] sm:$0xff]  }
 0x13a   :  { %6827 = vmatprep.subr.bf16.mxu1 %v7414_v1  ;;  %v7462_v1 = vld [vmem:[%s9640_s1 + $0xbe8] sm:$0xff]  }
 0x13c   :  { %6806 = vmatpush3.bf16.msra.mxu0 %v7415_v2  ;;  %v7463_v2 = vld [vmem:[%s9640_s1 + $0xb28] sm:$0xff]  }
 0x13d   :  { %6828 = vmatpush3.bf16.msra.mxu1 %v7416_v3  ;;  %6807 = vmatprep.subr.bf16.mxu0 %v7417_v4  ;;  %v7464_v3 = vld [vmem:[%s9640_s1 + $0xba8] sm:$0xff]   ;;  %v7465_v4 = vld [vmem:[%s9640_s1 + $0xb60] sm:$0xff]  }
 0x13e   :  { %6829 = vmatprep.subr.bf16.mxu1 %v7418_v5  ;;  %v7466_v5 = vld [vmem:[%s9640_s1 + $0xbe0] sm:$0xff]  }
 0x140   :  { %6808 = vmatpush3.bf16.msra.mxu0 %v7419_v6  ;;  %v7467_v6 = vld [vmem:[%s9640_s1 + $0xb20] sm:$0xff]  }
 0x141   :  { %6830 = vmatpush3.bf16.msra.mxu1 %v7420_v7  ;;  %6837 = vmatprep.subr.bf16.mxu0 %v7421_v16  ;;  %v7468_v7 = vld [vmem:[%s9640_s1 + $0xba0] sm:$0xff]   ;;  %v7477_v16 = vld [vmem:[%s9640_s1 + $0xb48] sm:$0xff]  }
 0x142   :  { %6859 = vmatprep.subr.bf16.mxu1 %v7422_v17  ;;  %v7478_v17 = vld [vmem:[%s9640_s1 + $0xbc8] sm:$0xff]  }
 0x143   :  { %5273 = vmatmul.mubr.bf16.vlgmr.msra.gmra.mxu0 %v5857_v10  ;;  %v7471_v10 = vld [vmem:[%s9640_s1 + $0xb18] sm:$0xff]  }
 0x144   :  { %5314 = vmatmul.mubr.bf16.vlgmr.msra.gmra.mxu1 %v5859_v14  ;;  %6838 = vmatpush3.bf16.msra.mxu0 %v7423_v18  ;;  %v7475_v14 = vld [vmem:[%s9640_s1 + $0xb10] sm:$0xff]   ;;  %v7479_v18 = vld [vmem:[%s9640_s1 + $0xb08] sm:$0xff]  }
 0x145   :  { %6860 = vmatpush3.bf16.msra.mxu1 %v7424_v19  ;;  %6839 = vmatprep.subr.bf16.mxu0 %v7425_v20  ;;  %v7480_v19 = vld [vmem:[%s9640_s1 + $0xb88] sm:$0xff]   ;;  %v7481_v20 = vld [vmem:[%s9640_s1 + $0xb40] sm:$0xff]  }
 0x146   :  { %6861 = vmatprep.subr.bf16.mxu1 %v7426_v21  ;;  %5354 = vmatprep.mubr.bf16.mxu0 %v5862_v53  ;;  %v7482_v21 = vld [vmem:[%s9640_s1 + $0xbc0] sm:$0xff]   ;;  %v7506_v53 = vld [vmem:[%s9640_s1 + $0xcd0] sm:$0xff]  }
 0x147   :  { %5395 = vmatprep.mubr.bf16.mxu1 %v5864_v55  ;;  %v7508_v55 = vld [vmem:[%s9640_s1 + $0xc90] sm:$0xff]  }
 0x148   :  { %6840 = vmatpush3.bf16.msra.mxu0 %v7427_v22  ;;  %v7483_v22 = vld [vmem:[%s9640_s1 + $0xb00] sm:$0xff]  }
 0x149   :  { %6862 = vmatpush3.bf16.msra.mxu1 %v7428_v23  ;;  %6841 = vmatprep.subr.bf16.mxu0 %v7429_v24  ;;  %v7484_v23 = vld [vmem:[%s9640_s1 + $0xb80] sm:$0xff]   ;;  %v37_v24 = vld [vmem:[%s9641_s0 + $0xb0] sm:$0xff] }
 0x14a   :  { %6863 = vmatprep.subr.bf16.mxu1 %v7430_v25  ;;  %v69_v25 = vld [vmem:[%s9641_s0 + $0x1b0] sm:$0xff] }
 0x14c   :  { %6842 = vmatpush3.bf16.msra.mxu0 %v7431_v26  ;;  %v38_v26 = vld [vmem:[%s9641_s0 + $0xb8] sm:$0xff] }
 0x14d   :  { %6864 = vmatpush3.bf16.msra.mxu1 %v7432_v27  ;;  %6843 = vmatprep.subr.bf16.mxu0 %v7433_v28  ;;  %v5865_v27 = vcombine.low %v37_v24, %v69_v25  ;;  %v5866_v28 = vcombine.high %v37_v24, %v69_v25  ;;  %v7533_v24 = vld [vmem:[%s9640_s1 + $0xd58] sm:$0xff]  }
 0x14e   :  { %6865 = vmatprep.subr.bf16.mxu1 %v7434_v29  ;;  %v70_v29 = vld [vmem:[%s9641_s0 + $0x1b8] sm:$0xff] }
 0x14f   :  { %v7534_v25 = vld [vmem:[%s9640_s1 + $0xdd8] sm:$0xff]  }
 0x150   :  { %6844 = vmatpush3.bf16.msra.mxu0 %v7435_v30  ;;  %v5867_v30 = vcombine.low %v38_v26, %v70_v29 }
 0x151   :  { %6866 = vmatpush3.bf16.msra.mxu1 %v7436_v31  ;;  %6845 = vmatprep.subr.bf16.mxu0 %v7437_v32  ;;  %v5868_v31 = vcombine.high %v38_v26, %v70_v29  ;;  %v7485_v32 = vld [vmem:[%s9640_s1 + $0xc78] sm:$0xff]   ;;  %v7538_v29 = vld [vmem:[%s9640_s1 + $0xdd0] sm:$0xff]  }
 0x152   :  { %6867 = vmatprep.subr.bf16.mxu1 %v7438_v33  ;;  %v7486_v33 = vld [vmem:[%s9640_s1 + $0xcf8] sm:$0xff]  }
 0x153   :  { %v7535_v26 = vld [vmem:[%s9640_s1 + $0xd18] sm:$0xff]  }
 0x154   :  { %6846 = vmatpush3.bf16.msra.mxu0 %v7439_v34  ;;  %v7487_v34 = vld [vmem:[%s9640_s1 + $0xc38] sm:$0xff]  }
 0x155   :  { %6868 = vmatpush3.bf16.msra.mxu1 %v7440_v35  ;;  %6847 = vmatprep.subr.bf16.mxu0 %v7441_v36  ;;  %v7488_v35 = vld [vmem:[%s9640_s1 + $0xcb8] sm:$0xff]   ;;  %v7489_v36 = vld [vmem:[%s9640_s1 + $0xc70] sm:$0xff]  }
 0x156   :  { %6869 = vmatprep.subr.bf16.mxu1 %v7442_v37  ;;  %v7490_v37 = vld [vmem:[%s9640_s1 + $0xcf0] sm:$0xff]  }
 0x158   :  { %6848 = vmatpush3.bf16.msra.mxu0 %v7443_v38  ;;  %v7491_v38 = vld [vmem:[%s9640_s1 + $0xc30] sm:$0xff]  }
 0x159   :  { %6870 = vmatpush3.bf16.msra.mxu1 %v7444_v39  ;;  %6849 = vmatprep.subr.bf16.mxu0 %v7445_v40  ;;  %v7492_v39 = vld [vmem:[%s9640_s1 + $0xcb0] sm:$0xff]   ;;  %v7493_v40 = vld [vmem:[%s9640_s1 + $0xc68] sm:$0xff]  }
 0x15a   :  { %6871 = vmatprep.subr.bf16.mxu1 %v7446_v41  ;;  %v7494_v41 = vld [vmem:[%s9640_s1 + $0xce8] sm:$0xff]  }
 0x15c   :  { %6850 = vmatpush3.bf16.msra.mxu0 %v7447_v42  ;;  %v7495_v42 = vld [vmem:[%s9640_s1 + $0xc28] sm:$0xff]  }
 0x15d   :  { %6872 = vmatpush3.bf16.msra.mxu1 %v7448_v43  ;;  %6851 = vmatprep.subr.bf16.mxu0 %v7449_v44  ;;  %v7496_v43 = vld [vmem:[%s9640_s1 + $0xca8] sm:$0xff]   ;;  %v7497_v44 = vld [vmem:[%s9640_s1 + $0xc60] sm:$0xff]  }
 0x15e   :  { %6873 = vmatprep.subr.bf16.mxu1 %v7450_v45  ;;  %v7498_v45 = vld [vmem:[%s9640_s1 + $0xce0] sm:$0xff]  }
 0x160   :  { %6852 = vmatpush3.bf16.msra.mxu0 %v7451_v46  ;;  %v7499_v46 = vld [vmem:[%s9640_s1 + $0xc20] sm:$0xff]  }
 0x161   :  { %6874 = vmatpush3.bf16.msra.mxu1 %v7452_v47  ;;  %6881 = vmatprep.subr.bf16.mxu0 %v7453_v56  ;;  %v7500_v47 = vld [vmem:[%s9640_s1 + $0xca0] sm:$0xff]   ;;  %v7509_v56 = vld [vmem:[%s9640_s1 + $0xc48] sm:$0xff]  }
 0x162   :  { %6903 = vmatprep.subr.bf16.mxu1 %v7454_v57  ;;  %v7510_v57 = vld [vmem:[%s9640_s1 + $0xcc8] sm:$0xff]  }
 0x163   :  { %5355 = vmatmul.mubr.bf16.vlgmr.msra.gmra.mxu0 %v5861_v52  ;;  %v7505_v52 = vld [vmem:[%s9640_s1 + $0xc50] sm:$0xff]  }
 0x164   :  { %5396 = vmatmul.mubr.bf16.vlgmr.msra.gmra.mxu1 %v5863_v54  ;;  %6882 = vmatpush3.bf16.msra.mxu0 %v7455_v58  ;;  %v7507_v54 = vld [vmem:[%s9640_s1 + $0xc10] sm:$0xff]   ;;  %v7511_v58 = vld [vmem:[%s9640_s1 + $0xc08] sm:$0xff]  }
 0x165   :  { %6904 = vmatpush3.bf16.msra.mxu1 %v7456_v59  ;;  %6883 = vmatprep.subr.bf16.mxu0 %v7457_v60  ;;  %v7512_v59 = vld [vmem:[%s9640_s1 + $0xc88] sm:$0xff]   ;;  %v7513_v60 = vld [vmem:[%s9640_s1 + $0xc40] sm:$0xff]  }
 0x166   :  { %6905 = vmatprep.subr.bf16.mxu1 %v7458_v61  ;;  %5436 = vmatprep.mubr.bf16.mxu0 %v5866_v28  ;;  %v7514_v61 = vld [vmem:[%s9640_s1 + $0xcc0] sm:$0xff]   ;;  %v7537_v28 = vld [vmem:[%s9640_s1 + $0xd50] sm:$0xff]  }
 0x167   :  { %5477 = vmatprep.mubr.bf16.mxu1 %v5868_v31  ;;  %v7540_v31 = vld [vmem:[%s9640_s1 + $0xd90] sm:$0xff]  }
 0x168   :  { %6884 = vmatpush3.bf16.msra.mxu0 %v7459_v62  ;;  %v7515_v62 = vld [vmem:[%s9640_s1 + $0xc00] sm:$0xff]  }
 0x169   :  { %6906 = vmatpush3.bf16.msra.mxu1 %v7460_v63  ;;  %6885 = vmatprep.subr.bf16.mxu0 %v7461_v0  ;;  %v7516_v63 = vld [vmem:[%s9640_s1 + $0xc80] sm:$0xff]  }
 0x16a   :  { %6907 = vmatprep.subr.bf16.mxu1 %v7462_v1  ;;  %v39_v0 = vld [vmem:[%s9641_s0 + $0xc0] sm:$0xff] }
 0x16b   :  { %v71_v1 = vld [vmem:[%s9641_s0 + $0x1c0] sm:$0xff] }
 0x16c   :  { %6886 = vmatpush3.bf16.msra.mxu0 %v7463_v2  ;;  %v5869_v2 = vcombine.low %v39_v0, %v71_v1 }
 0x16d   :  { %6908 = vmatpush3.bf16.msra.mxu1 %v7464_v3  ;;  %6887 = vmatprep.subr.bf16.mxu0 %v7465_v4  ;;  %v5870_v3 = vcombine.high %v39_v0, %v71_v1  ;;  %v40_v4 = vld [vmem:[%s9641_s0 + $0xc8] sm:$0xff]  ;;  %v7565_v0 = vld [vmem:[%s9640_s1 + $0xe58] sm:$0xff]  }
 0x16e   :  { %6909 = vmatprep.subr.bf16.mxu1 %v7466_v5  ;;  %v72_v5 = vld [vmem:[%s9641_s0 + $0x1c8] sm:$0xff]  ;;  %v7566_v1 = vld [vmem:[%s9640_s1 + $0xed8] sm:$0xff]  }
 0x170   :  { %6888 = vmatpush3.bf16.msra.mxu0 %v7467_v6  ;;  %v5871_v6 = vcombine.low %v40_v4, %v72_v5 }
 0x171   :  { %6910 = vmatpush3.bf16.msra.mxu1 %v7468_v7  ;;  %6889 = vmatprep.subr.bf16.mxu0 %v7469_v8  ;;  %v5872_v7 = vcombine.high %v40_v4, %v72_v5  ;;  %v7517_v8 = vld [vmem:[%s9640_s1 + $0xd78] sm:$0xff]   ;;  %v7569_v4 = vld [vmem:[%s9640_s1 + $0xe50] sm:$0xff]  }
 0x172   :  { %6911 = vmatprep.subr.bf16.mxu1 %v7470_v9  ;;  %v7518_v9 = vld [vmem:[%s9640_s1 + $0xdf8] sm:$0xff]   ;;  %v7570_v5 = vld [vmem:[%s9640_s1 + $0xed0] sm:$0xff]  }
 0x174   :  { %6890 = vmatpush3.bf16.msra.mxu0 %v7471_v10  ;;  %v7519_v10 = vld [vmem:[%s9640_s1 + $0xd38] sm:$0xff]  }
 0x175   :  { %6912 = vmatpush3.bf16.msra.mxu1 %v7472_v11  ;;  %6891 = vmatprep.subr.bf16.mxu0 %v7473_v12  ;;  %v7520_v11 = vld [vmem:[%s9640_s1 + $0xdb8] sm:$0xff]   ;;  %v7521_v12 = vld [vmem:[%s9640_s1 + $0xd70] sm:$0xff]  }
 0x176   :  { %6913 = vmatprep.subr.bf16.mxu1 %v7474_v13  ;;  %v7522_v13 = vld [vmem:[%s9640_s1 + $0xdf0] sm:$0xff]  }
 0x178   :  { %6892 = vmatpush3.bf16.msra.mxu0 %v7475_v14  ;;  %v7523_v14 = vld [vmem:[%s9640_s1 + $0xd30] sm:$0xff]  }
 0x179   :  { %6914 = vmatpush3.bf16.msra.mxu1 %v7476_v15  ;;  %6893 = vmatprep.subr.bf16.mxu0 %v7477_v16  ;;  %v7524_v15 = vld [vmem:[%s9640_s1 + $0xdb0] sm:$0xff]   ;;  %v7525_v16 = vld [vmem:[%s9640_s1 + $0xd68] sm:$0xff]  }
 0x17a   :  { %6915 = vmatprep.subr.bf16.mxu1 %v7478_v17  ;;  %v7526_v17 = vld [vmem:[%s9640_s1 + $0xde8] sm:$0xff]  }
 0x17c   :  { %6894 = vmatpush3.bf16.msra.mxu0 %v7479_v18  ;;  %v7527_v18 = vld [vmem:[%s9640_s1 + $0xd28] sm:$0xff]  }
 0x17d   :  { %6916 = vmatpush3.bf16.msra.mxu1 %v7480_v19  ;;  %6895 = vmatprep.subr.bf16.mxu0 %v7481_v20  ;;  %v7528_v19 = vld [vmem:[%s9640_s1 + $0xda8] sm:$0xff]   ;;  %v7529_v20 = vld [vmem:[%s9640_s1 + $0xd60] sm:$0xff]  }
 0x17e   :  { %6917 = vmatprep.subr.bf16.mxu1 %v7482_v21  ;;  %v7530_v21 = vld [vmem:[%s9640_s1 + $0xde0] sm:$0xff]  }
 0x180   :  { %6896 = vmatpush3.bf16.msra.mxu0 %v7483_v22  ;;  %v7531_v22 = vld [vmem:[%s9640_s1 + $0xd20] sm:$0xff]  }
 0x181   :  { %6918 = vmatpush3.bf16.msra.mxu1 %v7484_v23  ;;  %6925 = vmatprep.subr.bf16.mxu0 %v7485_v32  ;;  %v7532_v23 = vld [vmem:[%s9640_s1 + $0xda0] sm:$0xff]   ;;  %v7541_v32 = vld [vmem:[%s9640_s1 + $0xd48] sm:$0xff]  }
 0x182   :  { %6947 = vmatprep.subr.bf16.mxu1 %v7486_v33  ;;  %v7542_v33 = vld [vmem:[%s9640_s1 + $0xdc8] sm:$0xff]  }
 0x183   :  { %5437 = vmatmul.mubr.bf16.vlgmr.msra.gmra.mxu0 %v5865_v27  ;;  %v7536_v27 = vld [vmem:[%s9640_s1 + $0xd98] sm:$0xff]  }
 0x184   :  { %5478 = vmatmul.mubr.bf16.vlgmr.msra.gmra.mxu1 %v5867_v30  ;;  %6926 = vmatpush3.bf16.msra.mxu0 %v7487_v34  ;;  %v7539_v30 = vld [vmem:[%s9640_s1 + $0xd10] sm:$0xff]   ;;  %v7543_v34 = vld [vmem:[%s9640_s1 + $0xd08] sm:$0xff]  }
 0x185   :  { %6948 = vmatpush3.bf16.msra.mxu1 %v7488_v35  ;;  %6927 = vmatprep.subr.bf16.mxu0 %v7489_v36  ;;  %v7544_v35 = vld [vmem:[%s9640_s1 + $0xd88] sm:$0xff]   ;;  %v7545_v36 = vld [vmem:[%s9640_s1 + $0xd40] sm:$0xff]  }
 0x186   :  { %6949 = vmatprep.subr.bf16.mxu1 %v7490_v37  ;;  %5518 = vmatprep.mubr.bf16.mxu0 %v5870_v3  ;;  %v7546_v37 = vld [vmem:[%s9640_s1 + $0xdc0] sm:$0xff]   ;;  %v7568_v3 = vld [vmem:[%s9640_s1 + $0xe98] sm:$0xff]  }
 0x187   :  { %5559 = vmatprep.mubr.bf16.mxu1 %v5872_v7  ;;  %v7572_v7 = vld [vmem:[%s9640_s1 + $0xe90] sm:$0xff]  }
 0x188   :  { %6928 = vmatpush3.bf16.msra.mxu0 %v7491_v38  ;;  %v7547_v38 = vld [vmem:[%s9640_s1 + $0xd00] sm:$0xff]  }
 0x189   :  { %6950 = vmatpush3.bf16.msra.mxu1 %v7492_v39  ;;  %6929 = vmatprep.subr.bf16.mxu0 %v7493_v40  ;;  %v7548_v39 = vld [vmem:[%s9640_s1 + $0xd80] sm:$0xff]   ;;  %v41_v40 = vld [vmem:[%s9641_s0 + $0xd0] sm:$0xff] }
 0x18a   :  { %6951 = vmatprep.subr.bf16.mxu1 %v7494_v41  ;;  %v73_v41 = vld [vmem:[%s9641_s0 + $0x1d0] sm:$0xff] }
 0x18c   :  { %6930 = vmatpush3.bf16.msra.mxu0 %v7495_v42  ;;  %v42_v42 = vld [vmem:[%s9641_s0 + $0xd8] sm:$0xff] }
 0x18d   :  { %6952 = vmatpush3.bf16.msra.mxu1 %v7496_v43  ;;  %6931 = vmatprep.subr.bf16.mxu0 %v7497_v44  ;;  %v74_v43 = vld [vmem:[%s9641_s0 + $0x1d8] sm:$0xff]  ;;  %v5873_v44 = vcombine.low %v41_v40, %v73_v41 }
 0x18e   :  { %6953 = vmatprep.subr.bf16.mxu1 %v7498_v45  ;;  %v5874_v45 = vcombine.high %v41_v40, %v73_v41  ;;  %v7596_v40 = vld [vmem:[%s9640_s1 + $0xfa0] sm:$0xff]   ;;  %v7597_v41 = vld [vmem:[%s9640_s1 + $0xf58] sm:$0xff]  }
 0x190   :  { %6932 = vmatpush3.bf16.msra.mxu0 %v7499_v46  ;;  %v5875_v46 = vcombine.low %v42_v42, %v74_v43 }
 0x191   :  { %6954 = vmatpush3.bf16.msra.mxu1 %v7500_v47  ;;  %6933 = vmatprep.subr.bf16.mxu0 %v7501_v48  ;;  %v5876_v47 = vcombine.high %v42_v42, %v74_v43  ;;  %v7549_v48 = vld [vmem:[%s9640_s1 + $0xe78] sm:$0xff]   ;;  %v9309_v43 = vpop.f32.mrf.mxu1 }
 0x192   :  { %6955 = vmatprep.subr.bf16.mxu1 %v7502_v49  ;;  %v7550_v49 = vld [vmem:[%s9640_s1 + $0xef8] sm:$0xff]  }
 0x193   :  { %v7598_v42 = vld [vmem:[%s9640_s1 + $0xfd8] sm:$0xff]  }
 0x194   :  { %6934 = vmatpush3.bf16.msra.mxu0 %v7503_v50  ;;  %v7551_v50 = vld [vmem:[%s9640_s1 + $0xe38] sm:$0xff]  }
 0x195   :  { %6956 = vmatpush3.bf16.msra.mxu1 %v7504_v51  ;;  %6935 = vmatprep.subr.bf16.mxu0 %v7505_v52  ;;  %v7552_v51 = vld [vmem:[%s9640_s1 + $0xeb8] sm:$0xff]   ;;  %v7553_v52 = vld [vmem:[%s9640_s1 + $0xe70] sm:$0xff]  }
 0x196   :  { %6957 = vmatprep.subr.bf16.mxu1 %v7506_v53  ;;  %v7554_v53 = vld [vmem:[%s9640_s1 + $0xef0] sm:$0xff]  }
 0x198   :  { %6936 = vmatpush3.bf16.msra.mxu0 %v7507_v54  ;;  %v7555_v54 = vld [vmem:[%s9640_s1 + $0xe30] sm:$0xff]  }
 0x199   :  { %6958 = vmatpush3.bf16.msra.mxu1 %v7508_v55  ;;  %6937 = vmatprep.subr.bf16.mxu0 %v7509_v56  ;;  %v7556_v55 = vld [vmem:[%s9640_s1 + $0xeb0] sm:$0xff]   ;;  %v7557_v56 = vld [vmem:[%s9640_s1 + $0xe68] sm:$0xff]  }
 0x19a   :  { %6959 = vmatprep.subr.bf16.mxu1 %v7510_v57  ;;  %v7558_v57 = vld [vmem:[%s9640_s1 + $0xee8] sm:$0xff]  }
 0x19c   :  { %6938 = vmatpush3.bf16.msra.mxu0 %v7511_v58  ;;  %v7559_v58 = vld [vmem:[%s9640_s1 + $0xe28] sm:$0xff]  }
 0x19d   :  { %6960 = vmatpush3.bf16.msra.mxu1 %v7512_v59  ;;  %6939 = vmatprep.subr.bf16.mxu0 %v7513_v60  ;;  %v7560_v59 = vld [vmem:[%s9640_s1 + $0xea8] sm:$0xff]   ;;  %v7561_v60 = vld [vmem:[%s9640_s1 + $0xe60] sm:$0xff]  }
 0x19e   :  { %6961 = vmatprep.subr.bf16.mxu1 %v7514_v61  ;;  %v7562_v61 = vld [vmem:[%s9640_s1 + $0xee0] sm:$0xff]  }
 0x1a0   :  { %6940 = vmatpush3.bf16.msra.mxu0 %v7515_v62  ;;  %v7563_v62 = vld [vmem:[%s9640_s1 + $0xe20] sm:$0xff]  }
 0x1a1   :  { %6962 = vmatpush3.bf16.msra.mxu1 %v7516_v63  ;;  %6969 = vmatprep.subr.bf16.mxu0 %v7517_v8  ;;  %v7564_v63 = vld [vmem:[%s9640_s1 + $0xea0] sm:$0xff]   ;;  %v7573_v8 = vld [vmem:[%s9640_s1 + $0xe48] sm:$0xff]  }
 0x1a2   :  { %6991 = vmatprep.subr.bf16.mxu1 %v7518_v9  ;;  %v7574_v9 = vld [vmem:[%s9640_s1 + $0xec8] sm:$0xff]  }
 0x1a3   :  { %5519 = vmatmul.mubr.bf16.vlgmr.msra.gmra.mxu0 %v5869_v2  ;;  %v7567_v2 = vld [vmem:[%s9640_s1 + $0xe18] sm:$0xff]  }
 0x1a4   :  { %5560 = vmatmul.mubr.bf16.vlgmr.msra.gmra.mxu1 %v5871_v6  ;;  %6970 = vmatpush3.bf16.msra.mxu0 %v7519_v10  ;;  %v7571_v6 = vld [vmem:[%s9640_s1 + $0xe10] sm:$0xff]   ;;  %v7575_v10 = vld [vmem:[%s9640_s1 + $0xe08] sm:$0xff]  }
 0x1a5   :  { %6992 = vmatpush3.bf16.msra.mxu1 %v7520_v11  ;;  %6971 = vmatprep.subr.bf16.mxu0 %v7521_v12  ;;  %v7576_v11 = vld [vmem:[%s9640_s1 + $0xe88] sm:$0xff]   ;;  %v7577_v12 = vld [vmem:[%s9640_s1 + $0xe40] sm:$0xff]  }
 0x1a6   :  { %6993 = vmatprep.subr.bf16.mxu1 %v7522_v13  ;;  %5600 = vmatprep.mubr.bf16.mxu0 %v5874_v45  ;;  %v7578_v13 = vld [vmem:[%s9640_s1 + $0xec0] sm:$0xff]  }
 0x1a7   :  { %5641 = vmatprep.mubr.bf16.mxu1 %v5876_v47  ;;  %v7601_v47 = vld [vmem:[%s9640_s1 + $0xf50] sm:$0xff]  }
 0x1a8   :  { %6972 = vmatpush3.bf16.msra.mxu0 %v7523_v14  ;;  %v7579_v14 = vld [vmem:[%s9640_s1 + $0xe00] sm:$0xff]  }
 0x1a9   :  { %6994 = vmatpush3.bf16.msra.mxu1 %v7524_v15  ;;  %6973 = vmatprep.subr.bf16.mxu0 %v7525_v16  ;;  %v7580_v15 = vld [vmem:[%s9640_s1 + $0xe80] sm:$0xff]  }
 0x1aa   :  { %6995 = vmatprep.subr.bf16.mxu1 %v7526_v17  ;;  %v43_v16 = vld [vmem:[%s9641_s0 + $0xe0] sm:$0xff] }
 0x1ab   :  { %v75_v17 = vld [vmem:[%s9641_s0 + $0x1e0] sm:$0xff] }
 0x1ac   :  { %6974 = vmatpush3.bf16.msra.mxu0 %v7527_v18  ;;  %v44_v18 = vld [vmem:[%s9641_s0 + $0xe8] sm:$0xff] }
 0x1ad   :  { %6996 = vmatpush3.bf16.msra.mxu1 %v7528_v19  ;;  %6975 = vmatprep.subr.bf16.mxu0 %v7529_v20  ;;  %v5877_v19 = vcombine.low %v43_v16, %v75_v17  ;;  %v5878_v20 = vcombine.high %v43_v16, %v75_v17 }
 0x1ae   :  { %6997 = vmatprep.subr.bf16.mxu1 %v7530_v21  ;;  %v76_v21 = vld [vmem:[%s9641_s0 + $0x1e8] sm:$0xff] }
 0x1b0   :  { %6976 = vmatpush3.bf16.msra.mxu0 %v7531_v22  ;;  %v5879_v22 = vcombine.low %v44_v18, %v76_v21 }
 0x1b1   :  { %6998 = vmatpush3.bf16.msra.mxu1 %v7532_v23  ;;  %6977 = vmatprep.subr.bf16.mxu0 %v7533_v24  ;;  %v5880_v23 = vcombine.high %v44_v18, %v76_v21  ;;  %v7581_v24 = vld [vmem:[%s9640_s1 + $0xf78] sm:$0xff]  }
 0x1b2   :  { %6999 = vmatprep.subr.bf16.mxu1 %v7534_v25  ;;  %v7582_v25 = vld [vmem:[%s9640_s1 + $0xff8] sm:$0xff]  }
 0x1b4   :  { %6978 = vmatpush3.bf16.msra.mxu0 %v7535_v26  ;;  %v7583_v26 = vld [vmem:[%s9640_s1 + $0xf38] sm:$0xff]  }
 0x1b5   :  { %7000 = vmatpush3.bf16.msra.mxu1 %v7536_v27  ;;  %6979 = vmatprep.subr.bf16.mxu0 %v7537_v28  ;;  %v7584_v27 = vld [vmem:[%s9640_s1 + $0xfb8] sm:$0xff]   ;;  %v7585_v28 = vld [vmem:[%s9640_s1 + $0xf70] sm:$0xff]  }
 0x1b6   :  { %7001 = vmatprep.subr.bf16.mxu1 %v7538_v29  ;;  %v7586_v29 = vld [vmem:[%s9640_s1 + $0xff0] sm:$0xff]  }
 0x1b8   :  { %6980 = vmatpush3.bf16.msra.mxu0 %v7539_v30  ;;  %v7587_v30 = vld [vmem:[%s9640_s1 + $0xf30] sm:$0xff]  }
 0x1b9   :  { %7002 = vmatpush3.bf16.msra.mxu1 %v7540_v31  ;;  %6981 = vmatprep.subr.bf16.mxu0 %v7541_v32  ;;  %v7588_v31 = vld [vmem:[%s9640_s1 + $0xfb0] sm:$0xff]   ;;  %v7589_v32 = vld [vmem:[%s9640_s1 + $0xf68] sm:$0xff]  }
 0x1ba   :  { %7003 = vmatprep.subr.bf16.mxu1 %v7542_v33  ;;  %v7590_v33 = vld [vmem:[%s9640_s1 + $0xfe8] sm:$0xff]  }
 0x1bc   :  { %6982 = vmatpush3.bf16.msra.mxu0 %v7543_v34  ;;  %v7591_v34 = vld [vmem:[%s9640_s1 + $0xf28] sm:$0xff]  }
 0x1bd   :  { %7004 = vmatpush3.bf16.msra.mxu1 %v7544_v35  ;;  %6983 = vmatprep.subr.bf16.mxu0 %v7545_v36  ;;  %v7592_v35 = vld [vmem:[%s9640_s1 + $0xfa8] sm:$0xff]   ;;  %v7593_v36 = vld [vmem:[%s9640_s1 + $0xf60] sm:$0xff]  }
 0x1be   :  { %7005 = vmatprep.subr.bf16.mxu1 %v7546_v37  ;;  %v7594_v37 = vld [vmem:[%s9640_s1 + $0xfe0] sm:$0xff]  }
 0x1c0   :  { %6984 = vmatpush3.bf16.msra.mxu0 %v7547_v38  ;;  %v7595_v38 = vld [vmem:[%s9640_s1 + $0xf20] sm:$0xff]  }
 0x1c1   :  { %7006 = vmatpush3.bf16.msra.mxu1 %v7548_v39  ;;  %7013 = vmatprep.subr.bf16.mxu0 %v7549_v48  ;;  %v9298_v39 = vpop.f32.mrf.mxu0  ;;  %v7602_v48 = vld [vmem:[%s9640_s1 + $0xfd0] sm:$0xff]  }
 0x1c2   :  { %7035 = vmatprep.subr.bf16.mxu1 %v7550_v49  ;;  %v9325_v49 = vpop.f32.mrf.mxu1 }
 0x1c3   :  { %5601 = vmatmul.mubr.bf16.vlgmr.msra.gmra.mxu0 %v5873_v44  ;;  %v7599_v44 = vld [vmem:[%s9640_s1 + $0xf18] sm:$0xff]   ;;  %v9314_v45 = vpop.f32.mrf.mxu0 }
 0x1c4   :  { %5642 = vmatmul.mubr.bf16.vlgmr.msra.gmra.mxu1 %v5875_v46  ;;  %7014 = vmatpush3.bf16.msra.mxu0 %v7551_v50  ;;  %v7600_v46 = vld [vmem:[%s9640_s1 + $0xf98] sm:$0xff]   ;;  %v7603_v50 = vld [vmem:[%s9640_s1 + $0xf10] sm:$0xff]  }
 0x1c5   :  { %7036 = vmatpush3.bf16.msra.mxu1 %v7552_v51  ;;  %7015 = vmatprep.subr.bf16.mxu0 %v7553_v52  ;;  %v9330_v51 = vpop.f32.mrf.mxu0  ;;  %v7604_v52 = vld [vmem:[%s9640_s1 + $0xf90] sm:$0xff]  }
 0x1c6   :  { %7037 = vmatprep.subr.bf16.mxu1 %v7554_v53  ;;  %5682 = vmatprep.mubr.bf16.mxu0 %v5878_v20  ;;  %v7605_v53 = vld [vmem:[%s9640_s1 + $0xf48] sm:$0xff]  }
 0x1c7   :  { %5723 = vmatprep.mubr.bf16.mxu1 %v5880_v23 }
 0x1c8   :  { %7016 = vmatpush3.bf16.msra.mxu0 %v7555_v54  ;;  %v7606_v54 = vld [vmem:[%s9640_s1 + $0xfc8] sm:$0xff]  }
 0x1c9   :  { %7038 = vmatpush3.bf16.msra.mxu1 %v7556_v55  ;;  %7017 = vmatprep.subr.bf16.mxu0 %v7557_v56  ;;  %v9341_v55 = vpop.f32.mrf.mxu1  ;;  %v7607_v56 = vld [vmem:[%s9640_s1 + $0xf08] sm:$0xff]  }
 0x1ca   :  { %7039 = vmatprep.subr.bf16.mxu1 %v7558_v57  ;;  %v9346_v57 = vpop.f32.mrf.mxu0 }
 0x1cc   :  { %7018 = vmatpush3.bf16.msra.mxu0 %v7559_v58  ;;  %v7608_v58 = vld [vmem:[%s9640_s1 + $0xf88] sm:$0xff]  }
 0x1cd   :  { %7040 = vmatpush3.bf16.msra.mxu1 %v7560_v59  ;;  %7019 = vmatprep.subr.bf16.mxu0 %v7561_v60  ;;  %v7609_v59 = vld [vmem:[%s9640_s1 + $0xf40] sm:$0xff]   ;;  %v9354_v60 = vpop.f32.mrf.mxu0 }
 0x1ce   :  { %7041 = vmatprep.subr.bf16.mxu1 %v7562_v61  ;;  %v7610_v61 = vld [vmem:[%s9640_s1 + $0xfc0] sm:$0xff]  }
 0x1d0   :  { %7020 = vmatpush3.bf16.msra.mxu0 %v7563_v62  ;;  %v9359_v62 = vpop.f32.mrf.mxu1 }
 0x1d1   :  { %7042 = vmatpush3.bf16.msra.mxu1 %v7564_v63  ;;  %7021 = vmatprep.subr.bf16.mxu0 %v7565_v0  ;;  %v7611_v63 = vld [vmem:[%s9640_s1 + $0xf00] sm:$0xff]  }
 0x1d2   :  { %7043 = vmatprep.subr.bf16.mxu1 %v7566_v1  ;;  %v7612_v0 = vld [vmem:[%s9640_s1 + $0xf80] sm:$0xff]   ;;  %v45_v1 = vld [vmem:[%s9641_s0 + $0xf0] sm:$0xff] }
 0x1d4   :  { %7022 = vmatpush3.bf16.msra.mxu0 %v7567_v2  ;;  %v77_v2 = vld [vmem:[%s9641_s0 + $0x1f0] sm:$0xff] }
 0x1d5   :  { %7044 = vmatpush3.bf16.msra.mxu1 %v7568_v3  ;;  %7023 = vmatprep.subr.bf16.mxu0 %v7569_v4  ;;  %v9373_v3 = vpop.f32.mrf.mxu1  ;;  %v5881_v4 = vcombine.low %v45_v1, %v77_v2 }
 0x1d6   :  { %7045 = vmatprep.subr.bf16.mxu1 %v7570_v5  ;;  %v5882_v5 = vcombine.high %v45_v1, %v77_v2 }
 0x1d8   :  { %7024 = vmatpush3.bf16.msra.mxu0 %v7571_v6  ;;  %v46_v6 = vld [vmem:[%s9641_s0 + $0xf8] sm:$0xff] }
 0x1d9   :  { %7046 = vmatpush3.bf16.msra.mxu1 %v7572_v7  ;;  %7025 = vmatprep.subr.bf16.mxu0 %v7573_v8  ;;  %v78_v7 = vld [vmem:[%s9641_s0 + $0x1f8] sm:$0xff]  ;;  %v9381_v8 = vpop.f32.mrf.mxu0 }
 0x1da   :  { %7047 = vmatprep.subr.bf16.mxu1 %v7574_v9  ;;  %v5883_v9 = vcombine.low %v46_v6, %v78_v7 }
 0x1dc   :  { %7026 = vmatpush3.bf16.msra.mxu0 %v7575_v10  ;;  %v5884_v10 = vcombine.high %v46_v6, %v78_v7 }
 0x1dd   :  { %7048 = vmatpush3.bf16.msra.mxu1 %v7576_v11  ;;  %7027 = vmatprep.subr.bf16.mxu0 %v7577_v12  ;;  %v9383_v11 = vpop.f32.mrf.mxu1  ;;  %v9385_v12 = vpop.f32.mrf.mxu0 }
 0x1de   :  { %7049 = vmatprep.subr.bf16.mxu1 %v7578_v13 }
 0x1df   :  { %v9387_v13 = vpop.f32.mrf.mxu1 }
 0x1e0   :  { %7028 = vmatpush3.bf16.msra.mxu0 %v7579_v14  ;;  %v9389_v14 = vpop.f32.mrf.mxu0 }
 0x1e1   :  { %7050 = vmatpush3.bf16.msra.mxu1 %v7580_v15  ;;  %7057 = vmatprep.subr.bf16.mxu0 %v7581_v24  ;;  %v9393_v16 = vpop.f32.mrf.mxu1 }
 0x1e2   :  { %7079 = vmatprep.subr.bf16.mxu1 %v7582_v25  ;;  %v9391_v15 = vpop.f32.mrf.mxu0 }
 0x1e3   :  { %5683 = vmatmul.mubr.bf16.vlgmr.msra.gmra.mxu0 %v5877_v19  ;;  %v9395_v17 = vpop.f32.mrf.mxu1 }
 0x1e4   :  { %5724 = vmatmul.mubr.bf16.vlgmr.msra.gmra.mxu1 %v5879_v22  ;;  %7058 = vmatpush3.bf16.msra.mxu0 %v7583_v26  ;;  %v9397_v18 = vpop.f32.mrf.mxu0 }
 0x1e5   :  { %7080 = vmatpush3.bf16.msra.mxu1 %v7584_v27  ;;  %7059 = vmatprep.subr.bf16.mxu0 %v7585_v28  ;;  %v9399_v19 = vpop.f32.mrf.mxu1 }
 0x1e6   :  { %7081 = vmatprep.subr.bf16.mxu1 %v7586_v29  ;;  %5764 = vmatprep.mubr.bf16.mxu0 %v5882_v5  ;;  %v9401_v20 = vpop.f32.mrf.mxu0 }
 0x1e7   :  { %5805 = vmatprep.mubr.bf16.mxu1 %v5884_v10  ;;  %v9403_v21 = vpop.f32.mrf.mxu1 }
 0x1e8   :  { %7060 = vmatpush3.bf16.msra.mxu0 %v7587_v30  ;;  %v9405_v22 = vpop.f32.mrf.mxu0 }
 0x1e9   :  { %7082 = vmatpush3.bf16.msra.mxu1 %v7588_v31  ;;  %7061 = vmatprep.subr.bf16.mxu0 %v7589_v32  ;;  %v9409_v24 = vpop.f32.mrf.mxu1 }
 0x1ea   :  { %7083 = vmatprep.subr.bf16.mxu1 %v7590_v33  ;;  %v9407_v23 = vpop.f32.mrf.mxu0 }
 0x1eb   :  { %v9411_v25 = vpop.f32.mrf.mxu1 }
 0x1ec   :  { %7062 = vmatpush3.bf16.msra.mxu0 %v7591_v34  ;;  %v9413_v26 = vpop.f32.mrf.mxu0 }
 0x1ed   :  { %7084 = vmatpush3.bf16.msra.mxu1 %v7592_v35  ;;  %7063 = vmatprep.subr.bf16.mxu0 %v7593_v36  ;;  %v9415_v27 = vpop.f32.mrf.mxu1 }
 0x1ee   :  { %7085 = vmatprep.subr.bf16.mxu1 %v7594_v37  ;;  %v9417_v28 = vpop.f32.mrf.mxu0 }
 0x1ef   :  { %v9419_v29 = vpop.f32.mrf.mxu1 }
 0x1f0   :  { %7064 = vmatpush3.bf16.msra.mxu0 %v7595_v38  ;;  %v9421_v30 = vpop.f32.mrf.mxu0 }
 0x1f1   :  { %7086 = vmatpush3.bf16.msra.mxu1 %v7596_v40  ;;  %7065 = vmatprep.subr.bf16.mxu0 %v7597_v41  ;;  %v9425_v32 = vpop.f32.mrf.mxu1 }
 0x1f2   :  { %7087 = vmatprep.subr.bf16.mxu1 %v7598_v42  ;;  %v9423_v31 = vpop.f32.mrf.mxu0 }
 0x1f3   :  { %v9427_v33 = vpop.f32.mrf.mxu1 }
 0x1f4   :  { %7066 = vmatpush3.bf16.msra.mxu0 %v7599_v44  ;;  %v9429_v34 = vpop.f32.mrf.mxu0 }
 0x1f5   :  { %7088 = vmatpush3.bf16.msra.mxu1 %v7600_v46  ;;  %7067 = vmatprep.subr.bf16.mxu0 %v7601_v47  ;;  %v9431_v35 = vpop.f32.mrf.mxu1 }
 0x1f6   :  { %7089 = vmatprep.subr.bf16.mxu1 %v7602_v48  ;;  %v9433_v36 = vpop.f32.mrf.mxu0 }
 0x1f7   :  { %v9435_v37 = vpop.f32.mrf.mxu1 }
 0x1f8   :  { %7068 = vmatpush3.bf16.msra.mxu0 %v7603_v50  ;;  %v9437_v38 = vpop.f32.mrf.mxu0 }
 0x1f9   :  { %7090 = vmatpush3.bf16.msra.mxu1 %v7604_v52  ;;  %7069 = vmatprep.subr.bf16.mxu0 %v7605_v53  ;;  %v9441_v41 = vpop.f32.mrf.mxu1 }
 0x1fa   :  { %7091 = vmatprep.subr.bf16.mxu1 %v7606_v54  ;;  %v9439_v40 = vpop.f32.mrf.mxu0 }
 0x1fb   :  { %v9443_v42 = vpop.f32.mrf.mxu1 }
 0x1fc   :  { %7070 = vmatpush3.bf16.msra.mxu0 %v7607_v56  ;;  %v9445_v44 = vpop.f32.mrf.mxu0 }
 0x1fd   :  { %7092 = vmatpush3.bf16.msra.mxu1 %v7608_v58  ;;  %7071 = vmatprep.subr.bf16.mxu0 %v7609_v59  ;;  %v9447_v46 = vpop.f32.mrf.mxu1 }
 0x1fe   :  { %7093 = vmatprep.subr.bf16.mxu1 %v7610_v61  ;;  %v9449_v47 = vpop.f32.mrf.mxu0 }
 0x1ff   :  { %v9451_v48 = vpop.f32.mrf.mxu1 }
 0x200   :  { %7072 = vmatpush3.bf16.msra.mxu0 %v7611_v63  ;;  %v9453_v50 = vpop.f32.mrf.mxu0 }
 0x201   :  { %7094 = vmatpush3.bf16.msra.mxu1 %v7612_v0  ;;  %v9457_v53 = vpop.f32.mrf.mxu1 }
 0x202   :  { %v9455_v52 = vpop.f32.mrf.mxu0 }
 0x203   :  { %5765 = vmatmul.mubr.bf16.vlgmr.msra.gmra.mxu0 %v5881_v4  ;;  %v9459_v54 = vpop.f32.mrf.mxu1 }
 0x204   :  { %5806 = vmatmul.mubr.bf16.vlgmr.msra.gmra.mxu1 %v5883_v9  ;;  %v9461_v56 = vpop.f32.mrf.mxu0 }
 0x205   :  { %v9463_v58 = vpop.f32.mrf.mxu1 }
 0x206   :  { %v9465_v59 = vpop.f32.mrf.mxu0 }
 0x207   :  { %v9467_v61 = vpop.f32.mrf.mxu1 }
 0x208   :  { %9644 = vst [vmem:[#allocation2_spill] sm:$0xff] %v9467_v61  ;;  %v9469_v63 = vpop.f32.mrf.mxu0 }
 0x209   :  { %9645 = vst [vmem:[#allocation3_spill] sm:$0xff] %v9469_v63  ;;  %v9473_v1 = vpop.f32.mrf.mxu1 }
 0x20a   :  { %v9471_v0 = vpop.f32.mrf.mxu0  ;;  %9647 = vst [vmem:[#allocation5_spill] sm:$0xff] %v9473_v1 }
 0x20b   :  { %9646 = vst [vmem:[#allocation4_spill] sm:$0xff] %v9471_v0  ;;  %v9475_v2 = vpop.f32.mrf.mxu1 }
 0x20c   :  { %9648 = vst [vmem:[#allocation6_spill] sm:$0xff] %v9475_v2  ;;  %v9477_v4 = vpop.f32.mrf.mxu0 }
 0x20d   :  { %v9479_v5 = vpop.f32.mrf.mxu1 }
 0x20e   :  { %9649 = vst [vmem:[#allocation7_spill] sm:$0xff] %v9479_v5  ;;  %v9481_v6 = vpop.f32.mrf.mxu0  ;;  %v6415_v5 = vadd.f32 %v9314_v45, %v9298_v39  ;;  %v6459_v39 = vadd.f32 %v9381_v8, %v9354_v60  ;;  %v6503_v8 = vadd.f32 %v9397_v18, %v9391_v15  ;;  %v6547_v15 = vadd.f32 %v9413_v26, %v9407_v23 }
 0x20f   :  { %9650 = vst [vmem:[#allocation8_spill] sm:$0xff] %v9481_v6  ;;  %v9483_v7 = vpop.f32.mrf.mxu1  ;;  %v6591_v23 = vadd.f32 %v9429_v34, %v9423_v31  ;;  %v6635_v34 = vadd.f32 %v9445_v44, %v9439_v40  ;;  %v6679_v44 = vadd.f32 %v9461_v56, %v9455_v52 }
 0x210   :  { %9651 = vst [vmem:[#allocation9_spill] sm:$0xff] %v9483_v7  ;;  %v9485_v9 = vpop.f32.mrf.mxu0  ;;  %v5820_v7 = vld [vmem:[%s9642_s2] ss:$0 sm:$0xff] }
 0x211   :  { %9652 = vst [vmem:[#allocation10_spill] sm:$0xff] %v9485_v9  ;;  %v9489_v61 = vpop.f32.mrf.mxu1 }
 0x212   :  { %v9487_v10 = vpop.f32.mrf.mxu0  ;;  %9654 = vst [vmem:[#allocation12_spill] sm:$0xff] %v9489_v61 }
 0x213   :  { %9653 = vst [vmem:[#allocation11_spill] sm:$0xff] %v9487_v10  ;;  %v9491_v63 = vpop.f32.mrf.mxu1 }
 0x214   :  { %9655 = vst [vmem:[#allocation13_spill] sm:$0xff] %v9491_v63  ;;  %v9493_v0 = vpop.f32.mrf.mxu0  ;;  %v4537_v63 = vadd.f32 %v6415_v5, %v5820_v7  ;;  %v6440_v5 = vadd.f32 %v9359_v62, %v9341_v55  ;;  %v6484_v62 = vadd.f32 %v9393_v16, %v9387_v13  ;;  %v6528_v16 = vadd.f32 %v9409_v24, %v9403_v21 }
 0x215   :  { %9656 = vst [vmem:[#allocation14_spill] sm:$0xff] %v9493_v0  ;;  %v9495_v1 = vpop.f32.mrf.mxu1  ;;  %v6437_v0 = vadd.f32 %v9325_v49, %v9309_v43  ;;  %v6481_v43 = vadd.f32 %v9383_v11, %v9373_v3  ;;  %v6462_v49 = vadd.f32 %v9389_v14, %v9385_v12  ;;  %v6525_v11 = vadd.f32 %v9399_v19, %v9395_v17 }
 0x216   :  { %9657 = vst [vmem:[#allocation15_spill] sm:$0xff] %v9495_v1  ;;  %v9497_v2 = vpop.f32.mrf.mxu0  ;;  %v6506_v12 = vadd.f32 %v9405_v22, %v9401_v20  ;;  %v6569_v19 = vadd.f32 %v9415_v27, %v9411_v25  ;;  %v6550_v20 = vadd.f32 %v9421_v30, %v9417_v28  ;;  %v6572_v21 = vadd.f32 %v9425_v32, %v9419_v29 }
 0x217   :  { %9658 = vst [vmem:[#allocation16_spill] sm:$0xff] %v9497_v2  ;;  %v9501_v6 = vpop.f32.mrf.mxu1  ;;  %v6418_v2 = vadd.f32 %v9346_v57, %v9330_v51  ;;  %v4578_v9 = vadd.f32 %v6437_v0, %v4537_v63  ;;  %v6613_v25 = vadd.f32 %v9431_v35, %v9427_v33  ;;  %v6594_v27 = vadd.f32 %v9437_v38, %v9433_v36 }
 0x218   :  { %9659 = vst [vmem:[#allocation17_spill] sm:$0xff] %v9501_v6  ;;  %v9506_v10 = vpop.f32.mrf.mxu0  ;;  %v6616_v32 = vadd.f32 %v9441_v41, %v9435_v37  ;;  %v6657_v35 = vadd.f32 %v9447_v46, %v9443_v42  ;;  %v6638_v36 = vadd.f32 %v9453_v50, %v9449_v47  ;;  %v6660_v37 = vadd.f32 %v9457_v53, %v9451_v48  ;;  %v9662_v46 = vld [vmem:[#allocation3_spill] sm:$0xff]  ;;  %v9666_v53 = vld [vmem:[#allocation6_spill] sm:$0xff] }
 0x219   :  { %9660 = vst [vmem:[#allocation18_spill] sm:$0xff] %v9506_v10  ;;  %v9514_v1 = vpop.f32.mrf.mxu1  ;;  %v4540_v10 = vadd.f32 %v6418_v2, %v5820_v7  ;;  %v6701_v42 = vadd.f32 %v9463_v58, %v9459_v54  ;;  %v6682_v47 = vadd.f32 %v9662_v46, %v9465_v59  ;;  %v9668_v54 = vld [vmem:[#allocation8_spill] sm:$0xff]  ;;  %v9669_v58 = vld [vmem:[#allocation10_spill] sm:$0xff] }
 0x21a   :  { %v9508_v61 = vpop.f32.mrf.mxu0 }
 0x21b   :  { %9661 = vst [vmem:[#allocation19_spill] sm:$0xff] %v9508_v61  ;;  %v9518_v45 = vpop.f32.mrf.mxu1  ;;  %v4619_v61 = vadd.f32 %v6459_v39, %v4578_v9  ;;  %v4581_v60 = vadd.f32 %v6440_v5, %v4540_v10 }
 0x21c   :  { %v9520_v6 = vpop.f32.mrf.mxu0 }
 0x21d   :  { %v9528_v51 = vpop.f32.mrf.mxu1  ;;  %v4660_v63 = vadd.f32 %v6481_v43, %v4619_v61  ;;  %v4622_v0 = vadd.f32 %v6462_v49, %v4581_v60 }
 0x21e   :  { %v9530_v57 = vpop.f32.mrf.mxu0 }
 0x21f   :  { %v9534_v2 = vpop.f32.mrf.mxu1  ;;  %v4701_v3 = vadd.f32 %v6503_v8, %v4660_v63  ;;  %v4663_v7 = vadd.f32 %v6484_v62, %v4622_v0 }
 0x220   :  { %v9536_v55 = vpop.f32.mrf.mxu0 }
 0x221   :  { %v9548_v18 = vpop.f32.mrf.mxu1  ;;  %v4742_v61 = vadd.f32 %v6525_v11, %v4701_v3  ;;  %v4704_v9 = vadd.f32 %v6506_v12, %v4663_v7  ;;  %v9663_v12 = vld [vmem:[#allocation4_spill] sm:$0xff] }
 0x222   :  { %v6723_v7 = vadd.f32 %v9477_v4, %v9663_v12 }
 0x223   :  { %v9544_v14 = vpop.f32.mrf.mxu0  ;;  %v4783_v17 = vadd.f32 %v6547_v15, %v4742_v61  ;;  %v4745_v22 = vadd.f32 %v6528_v16, %v4704_v9  ;;  %v9664_v16 = vld [vmem:[#allocation2_spill] sm:$0xff] }
 0x224   :  { %v9550_v10 = vpop.f32.mrf.mxu1 }
 0x225   :  { %v9552_v13 = vpop.f32.mrf.mxu0  ;;  %v4824_v5 = vadd.f32 %v6569_v19, %v4783_v17  ;;  %v4786_v43 = vadd.f32 %v6550_v20, %v4745_v22  ;;  %v9665_v17 = vld [vmem:[#allocation5_spill] sm:$0xff]  ;;  %v9667_v20 = vld [vmem:[#allocation7_spill] sm:$0xff] }
 0x226   :  { %v9562_v26 = vpop.f32.mrf.mxu1  ;;  %v6704_v19 = vadd.f32 %v9665_v17, %v9664_v16  ;;  %v6745_v22 = vadd.f32 %v9667_v20, %v9666_v53  ;;  %v6833_v17 = vadd.f32 %v9528_v51, %v9518_v45  ;;  %v6855_v20 = vadd.f32 %v9552_v13, %v9544_v14 }
 0x227   :  { %v9564_v39 = vpop.f32.mrf.mxu0  ;;  %v4865_v24 = vadd.f32 %v6591_v23, %v4824_v5  ;;  %v4827_v31 = vadd.f32 %v6572_v21, %v4786_v43  ;;  %v6726_v23 = vadd.f32 %v9669_v58, %v9668_v54  ;;  %v9670_v43 = vld [vmem:[#allocation11_spill] sm:$0xff]  ;;  %v9671_v21 = vld [vmem:[#allocation14_spill] sm:$0xff]  ;;  %v6877_v45 = vadd.f32 %v9562_v26, %v9550_v10 }
 0x228   :  { %v9572_v28 = vpop.f32.mrf.mxu1  ;;  %v6767_v4 = vadd.f32 %v9671_v21, %v9670_v43 }
 0x229   :  { %v9574_v30 = vpop.f32.mrf.mxu0  ;;  %v4906_v60 = vadd.f32 %v6613_v25, %v4865_v24  ;;  %v4868_v8 = vadd.f32 %v6594_v27, %v4827_v31 }
 0x22a   :  { %v9580_v29 = vpop.f32.mrf.mxu1  ;;  %v6858_v51 = vadd.f32 %v9574_v30, %v9564_v39 }
 0x22b   :  { %v4947_v33 = vadd.f32 %v6635_v34, %v4906_v60  ;;  %v4909_v40 = vadd.f32 %v6616_v32, %v4868_v8  ;;  %v9672_v34 = vld [vmem:[#allocation9_spill] sm:$0xff]  ;;  %v9673_v60 = vld [vmem:[#allocation12_spill] sm:$0xff] }
 0x22c   :  { %v6748_v8 = vadd.f32 %v9673_v60, %v9672_v34 }
 0x22d   :  { %v4988_v0 = vadd.f32 %v6657_v35, %v4947_v33  ;;  %v4950_v62 = vadd.f32 %v6638_v36, %v4909_v40  ;;  %v9674_v33 = vld [vmem:[#allocation13_spill] sm:$0xff]  ;;  %v9675_v35 = vld [vmem:[#allocation15_spill] sm:$0xff]  ;;  %v9676_v40 = vld [vmem:[#allocation16_spill] sm:$0xff] }
 0x22e   :  { %v6789_v36 = vadd.f32 %v9675_v35, %v9674_v33 }
 0x22f   :  { %v5029_v41 = vadd.f32 %v6679_v44, %v4988_v0  ;;  %v4991_v50 = vadd.f32 %v6660_v37, %v4950_v62  ;;  %v9677_v44 = vld [vmem:[#allocation18_spill] sm:$0xff] }
 0x230   :  { %v6770_v0 = vadd.f32 %v9677_v44, %v9676_v40 }
 0x231   :  { %v5070_v56 = vadd.f32 %v6701_v42, %v5029_v41  ;;  %v5032_v61 = vadd.f32 %v6682_v47, %v4991_v50  ;;  %v9678_v42 = vld [vmem:[#allocation19_spill] sm:$0xff] }
 0x232   :  { %v6811_v46 = vadd.f32 %v9520_v6, %v9678_v42 }
 0x233   :  { %v5111_v48 = vadd.f32 %v6723_v7, %v5070_v56  ;;  %v5073_v5 = vadd.f32 %v6704_v19, %v5032_v61  ;;  %v9679_v56 = vld [vmem:[#allocation17_spill] sm:$0xff]  ;;  %v6814_v19 = vadd.f32 %v9536_v55, %v9530_v57 }
 0x234   :  { %v6792_v61 = vadd.f32 %v9514_v1, %v9679_v56  ;;  %v6836_v1 = vadd.f32 %v9548_v18, %v9534_v2 }
 0x235   :  { %v5152_v27 = vadd.f32 %v6745_v22, %v5111_v48  ;;  %v5114_v31 = vadd.f32 %v6726_v23, %v5073_v5 }
 0x237   :  { %v5193_v32 = vadd.f32 %v6767_v4, %v5152_v27  ;;  %v5155_v41 = vadd.f32 %v6748_v8, %v5114_v31  ;;  %v6880_v4 = vadd.f32 %v9580_v29, %v9572_v28 }
 0x239   :  { %v5234_v47 = vadd.f32 %v6789_v36, %v5193_v32  ;;  %v5196_v50 = vadd.f32 %v6770_v0, %v5155_v41 }
 0x23b   :  { %v5275_v16 = vadd.f32 %v6811_v46, %v5234_v47  ;;  %v5237_v53 = vadd.f32 %v6792_v61, %v5196_v50 }
 0x23d   :  { %v5316_v22 = vadd.f32 %v6833_v17, %v5275_v16  ;;  %v5278_v54 = vadd.f32 %v6814_v19, %v5237_v53 }
 0x23f   :  { %v5357_v5 = vadd.f32 %v6855_v20, %v5316_v22  ;;  %v5319_v57 = vadd.f32 %v6836_v1, %v5278_v54 }
 0x241   :  { %v5398_v13 = vadd.f32 %v6877_v45, %v5357_v5  ;;  %v5360_v21 = vadd.f32 %v6858_v51, %v5319_v57 }
 0x243   :  { %v9578_v49 = vpop.f32.mrf.mxu0  ;;  %v5401_v10 = vadd.f32 %v6880_v4, %v5360_v21 }
 0x244   :  { %v9588_v38 = vpop.f32.mrf.mxu1 }
 0x245   :  { %v6898_v63 = vpop.f32.mrf.mxu0 }
 0x246   :  { %v6920_v3 = vpop.f32.mrf.mxu1  ;;  %v6899_v55 = vadd.f32 %v6898_v63, %v9578_v49 }
 0x247   :  { %v6900_v11 = vpop.f32.mrf.mxu0  ;;  %v6921_v2 = vadd.f32 %v6920_v3, %v9588_v38 }
 0x248   :  { %v6922_v15 = vpop.f32.mrf.mxu1  ;;  %v5439_v27 = vadd.f32 %v6899_v55, %v5398_v13 }
 0x249   :  { %v6901_v52 = vpop.f32.mrf.mxu0 }
 0x24a   :  { %v6923_v59 = vpop.f32.mrf.mxu1  ;;  %v6902_v18 = vadd.f32 %v6901_v52, %v6900_v11  ;;  %v5480_v39 = vadd.f32 %v6921_v2, %v5439_v27 }
 0x24b   :  { %v6924_v49 = vadd.f32 %v6923_v59, %v6922_v15 }
 0x24c   :  { %v5442_v30 = vadd.f32 %v6902_v18, %v5401_v10 }
 0x24e   :  { %v5483_v40 = vadd.f32 %v6924_v49, %v5442_v30 }
 0x263   :  { %v6941_v9 = vpop.f32.mrf.mxu0 }
 0x264   :  { %v6963_v24 = vpop.f32.mrf.mxu1 }
 0x265   :  { %v6942_v25 = vpop.f32.mrf.mxu0 }
 0x266   :  { %v6964_v62 = vpop.f32.mrf.mxu1  ;;  %v6943_v26 = vadd.f32 %v6942_v25, %v6941_v9 }
 0x267   :  { %v6944_v37 = vpop.f32.mrf.mxu0  ;;  %v6965_v32 = vadd.f32 %v6964_v62, %v6963_v24 }
 0x268   :  { %v6966_v12 = vpop.f32.mrf.mxu1  ;;  %v5521_v63 = vadd.f32 %v6943_v26, %v5480_v39 }
 0x269   :  { %v6945_v7 = vpop.f32.mrf.mxu0 }
 0x26a   :  { %v6967_v6 = vpop.f32.mrf.mxu1  ;;  %v6946_v33 = vadd.f32 %v6945_v7, %v6944_v37  ;;  %v5562_v29 = vadd.f32 %v6965_v32, %v5521_v63 }
 0x26b   :  { %v6968_v11 = vadd.f32 %v6967_v6, %v6966_v12 }
 0x26c   :  { %v5524_v44 = vadd.f32 %v6946_v33, %v5483_v40 }
 0x26e   :  { %v5565_v25 = vadd.f32 %v6968_v11, %v5524_v44 }
 0x283   :  { %v6985_v48 = vpop.f32.mrf.mxu0 }
 0x284   :  { %v7007_v58 = vpop.f32.mrf.mxu1 }
 0x285   :  { %v6986_v23 = vpop.f32.mrf.mxu0 }
 0x286   :  { %v7008_v43 = vpop.f32.mrf.mxu1  ;;  %v6987_v28 = vadd.f32 %v6986_v23, %v6985_v48 }
 0x287   :  { %v6988_v14 = vpop.f32.mrf.mxu0  ;;  %v7009_v0 = vadd.f32 %v7008_v43, %v7007_v58 }
 0x288   :  { %v7010_v31 = vpop.f32.mrf.mxu1  ;;  %v5603_v52 = vadd.f32 %v6987_v28, %v5562_v29 }
 0x289   :  { %v6989_v34 = vpop.f32.mrf.mxu0 }
 0x28a   :  { %v7011_v8 = vpop.f32.mrf.mxu1  ;;  %v6990_v9 = vadd.f32 %v6989_v34, %v6988_v14  ;;  %v5644_v15 = vadd.f32 %v7009_v0, %v5603_v52 }
 0x28b   :  { %v7012_v24 = vadd.f32 %v7011_v8, %v7010_v31 }
 0x28c   :  { %v5606_v59 = vadd.f32 %v6990_v9, %v5565_v25 }
 0x28e   :  { %v5647_v56 = vadd.f32 %v7012_v24, %v5606_v59 }
 0x2a3   :  { %v7029_v60 = vpop.f32.mrf.mxu0 }
 0x2a4   :  { %v7051_v35 = vpop.f32.mrf.mxu1 }
 0x2a5   :  { %v7030_v36 = vpop.f32.mrf.mxu0 }
 0x2a6   :  { %v7052_v38 = vpop.f32.mrf.mxu1  ;;  %v7031_v41 = vadd.f32 %v7030_v36, %v7029_v60 }
 0x2a7   :  { %v7032_v3 = vpop.f32.mrf.mxu0  ;;  %v7053_v37 = vadd.f32 %v7052_v38, %v7051_v35 }
 0x2a8   :  { %v7054_v42 = vpop.f32.mrf.mxu1  ;;  %v5685_v62 = vadd.f32 %v7031_v41, %v5644_v15 }
 0x2a9   :  { %v7033_v46 = vpop.f32.mrf.mxu0 }
 0x2aa   :  { %v7034_v47 = vadd.f32 %v7033_v46, %v7032_v3  ;;  %v7055_v50 = vpop.f32.mrf.mxu1  ;;  %v5726_v17 = vadd.f32 %v7053_v37, %v5685_v62 }
 0x2ab   :  { %v7056_v20 = vadd.f32 %v7055_v50, %v7054_v42 }
 0x2ac   :  { %v5688_v12 = vadd.f32 %v7034_v47, %v5647_v56 }
 0x2ae   :  { %v5729_v23 = vadd.f32 %v7056_v20, %v5688_v12 }
 0x2c3   :  { %v7073_v7 = vpop.f32.mrf.mxu0 }
 0x2c4   :  { %v7095_v61 = vpop.f32.mrf.mxu1 }
 0x2c5   :  { %v7074_v16 = vpop.f32.mrf.mxu0 }
 0x2c6   :  { %v7075_v19 = vadd.f32 %v7074_v16, %v7073_v7  ;;  %v7096_v48 = vpop.f32.mrf.mxu1 }
 0x2c7   :  { %v7076_v53 = vpop.f32.mrf.mxu0  ;;  %v7097_v22 = vadd.f32 %v7096_v48, %v7095_v61 }
 0x2c8   :  { %v5767_v6 = vadd.f32 %v7075_v19, %v5726_v17  ;;  %v7098_v54 = vpop.f32.mrf.mxu1 }
 0x2c9   :  { %v7077_v58 = vpop.f32.mrf.mxu0 }
 0x2ca   :  { %v5808_v1 = vadd.f32 %v7097_v22, %v5767_v6  ;;  %v7078_v5 = vadd.f32 %v7077_v58, %v7076_v53  ;;  %v7099_v45 = vpop.f32.mrf.mxu1 }
 0x2cb   :  { %v7100_v57 = vadd.f32 %v7099_v45, %v7098_v54 }
 0x2cc   :  { %5814 = vst [vmem:[%s9643_s3] sm:$0xff] %v5808_v1  ;;  %v5770_v51 = vadd.f32 %v7078_v5, %v5729_v23 }
 0x2ce   :  { %v5811_v55 = vadd.f32 %v7100_v57, %v5770_v51 }
 0x2d0   :  { %5815 = vst [vmem:[%s9643_s3 + $0x8] sm:$0xff] %v5811_v55 }

// kernel: discriminator_forward.8
= control target key start
LH: loop header
LB: loop body
LE: loop exit
PB: predicated region body
PF: predicated region fallthrough
CT: control target
= control target key end

     0   :  { %s14203_s1 = inlined_call_operand.vmem [shape: bf16[4096,512], index: 1, kind: input, shape index: {}]   ;;  %s14204_s0 = inlined_call_operand.vmem [shape: bf16[16,4096], index: 0, kind: input, shape index: {}]   ;;  %s14205_s2 = inlined_call_operand.vmem [shape: f32[1,512], index: 2, kind: input, shape index: {}]   ;;  %s14206_s3 = inlined_call_operand.vmem [shape: f32[1,512], index: 3, kind: input, shape index: {}]   ;;  %s14207_s4 = inlined_call_operand.vmem [shape: bf16[16,512], index: 4, kind: output, shape index: {}]  }
   0x1   :  { %v9030_v0 = vld [vmem:[%s14203_s1 + $0xe4] ss:$16 sps:$4 sm:$0xff]   ;;  %v9034_v2 = vld [vmem:[%s14203_s1 + $0xe0] ss:$16 sps:$4 sm:$0xff]   ;;  %v18_v50 = vld [vmem:[%s14204_s0 + $0x8] sm:$0xff] }
   0x2   :  { %v9032_v1 = vld [vmem:[%s14203_s1 + $0x2e4] ss:$16 sps:$4 sm:$0xff]   ;;  %6353 = vmatprep.subr.bf16.mxu0 %v9030_v0  ;;  %v9035_v3 = vld [vmem:[%s14203_s1 + $0x2e0] ss:$16 sps:$4 sm:$0xff]   ;;  %v34_v51 = vld [vmem:[%s14204_s0 + $0x88] sm:$0xff] }
   0x3   :  { %6396 = vmatprep.subr.bf16.mxu1 %v9032_v1  ;;  %v9036_v4 = vld [vmem:[%s14203_s1 + $0xc4] ss:$16 sps:$4 sm:$0xff]   ;;  %6354 = vmatpush1.bf16.msra.mxu0 %v9034_v2  ;;  %v9040_v6 = vld [vmem:[%s14203_s1 + $0xc0] ss:$16 sps:$4 sm:$0xff]   ;;  %v10765_v55 = vcombine.high %v18_v50, %v34_v51 }
   0x4   :  { %6397 = vmatpush1.bf16.msra.mxu1 %v9035_v3  ;;  %v9038_v5 = vld [vmem:[%s14203_s1 + $0x2c4] ss:$16 sps:$4 sm:$0xff]   ;;  %6355 = vmatprep.subr.bf16.mxu0 %v9036_v4  ;;  %v9041_v7 = vld [vmem:[%s14203_s1 + $0x2c0] ss:$16 sps:$4 sm:$0xff]  }
   0x5   :  { %6398 = vmatprep.subr.bf16.mxu1 %v9038_v5  ;;  %v9042_v8 = vld [vmem:[%s14203_s1 + $0xa4] ss:$16 sps:$4 sm:$0xff]   ;;  %v9046_v10 = vld [vmem:[%s14203_s1 + $0xa0] ss:$16 sps:$4 sm:$0xff]   ;;  %6428 = vmatprep.mubr.bf16.mxu1 %v10765_v55 }
   0x6   :  { %v9044_v9 = vld [vmem:[%s14203_s1 + $0x2a4] ss:$16 sps:$4 sm:$0xff]   ;;  %v9047_v11 = vld [vmem:[%s14203_s1 + $0x2a0] ss:$16 sps:$4 sm:$0xff]  }
   0x7   :  { %6356 = vmatpush1.bf16.msra.mxu0 %v9040_v6  ;;  %v9048_v12 = vld [vmem:[%s14203_s1 + $0x84] ss:$16 sps:$4 sm:$0xff]   ;;  %v9052_v14 = vld [vmem:[%s14203_s1 + $0x80] ss:$16 sps:$4 sm:$0xff]  }
   0x8   :  { %6399 = vmatpush1.bf16.msra.mxu1 %v9041_v7  ;;  %6357 = vmatprep.subr.bf16.mxu0 %v9042_v8  ;;  %v9050_v13 = vld [vmem:[%s14203_s1 + $0x284] ss:$16 sps:$4 sm:$0xff]   ;;  %v9053_v15 = vld [vmem:[%s14203_s1 + $0x280] ss:$16 sps:$4 sm:$0xff]  }
   0x9   :  { %6400 = vmatprep.subr.bf16.mxu1 %v9044_v9  ;;  %v9054_v16 = vld [vmem:[%s14203_s1 + $0x64] ss:$16 sps:$4 sm:$0xff]   ;;  %v9058_v18 = vld [vmem:[%s14203_s1 + $0x60] ss:$16 sps:$4 sm:$0xff]   ;;  %v10819_v9 = vcombine.low %v18_v50, %v34_v51 }
   0xa   :  { %v9056_v17 = vld [vmem:[%s14203_s1 + $0x264] ss:$16 sps:$4 sm:$0xff]   ;;  %v9059_v19 = vld [vmem:[%s14203_s1 + $0x260] ss:$16 sps:$4 sm:$0xff]  }
   0xb   :  { %6358 = vmatpush1.bf16.msra.mxu0 %v9046_v10  ;;  %v9060_v20 = vld [vmem:[%s14203_s1 + $0x44] ss:$16 sps:$4 sm:$0xff]   ;;  %v9064_v22 = vld [vmem:[%s14203_s1 + $0x40] ss:$16 sps:$4 sm:$0xff]  }
   0xc   :  { %6401 = vmatpush1.bf16.msra.mxu1 %v9047_v11  ;;  %6359 = vmatprep.subr.bf16.mxu0 %v9048_v12  ;;  %v9062_v21 = vld [vmem:[%s14203_s1 + $0x244] ss:$16 sps:$4 sm:$0xff]   ;;  %v9065_v23 = vld [vmem:[%s14203_s1 + $0x240] ss:$16 sps:$4 sm:$0xff]  }
   0xd   :  { %6402 = vmatprep.subr.bf16.mxu1 %v9050_v13  ;;  %v9066_v24 = vld [vmem:[%s14203_s1 + $0x24] ss:$16 sps:$4 sm:$0xff]   ;;  %v9070_v26 = vld [vmem:[%s14203_s1 + $0x20] ss:$16 sps:$4 sm:$0xff]  }
   0xe   :  { %v9068_v25 = vld [vmem:[%s14203_s1 + $0x224] ss:$16 sps:$4 sm:$0xff]   ;;  %v9071_v27 = vld [vmem:[%s14203_s1 + $0x220] ss:$16 sps:$4 sm:$0xff]  }
   0xf   :  { %6360 = vmatpush1.bf16.msra.mxu0 %v9052_v14  ;;  %v9072_v28 = vld [vmem:[%s14203_s1 + $0x4] ss:$16 sps:$4 sm:$0xff]   ;;  %v9076_v30 = vld [vmem:[%s14203_s1] ss:$16 sps:$4 sm:$0xff]  }
  0x10   :  { %6403 = vmatpush1.bf16.msra.mxu1 %v9053_v15  ;;  %6361 = vmatprep.subr.bf16.mxu0 %v9054_v16  ;;  %v9074_v29 = vld [vmem:[%s14203_s1 + $0x204] ss:$16 sps:$4 sm:$0xff]   ;;  %v9077_v31 = vld [vmem:[%s14203_s1 + $0x200] ss:$16 sps:$4 sm:$0xff]  }
  0x11   :  { %6404 = vmatprep.subr.bf16.mxu1 %v9056_v17  ;;  %v9078_v32 = vld [vmem:[%s14203_s1 + $0x1e4] ss:$16 sps:$4 sm:$0xff]   ;;  %v9082_v34 = vld [vmem:[%s14203_s1 + $0x1e0] ss:$16 sps:$4 sm:$0xff]  }
  0x12   :  { %v9080_v33 = vld [vmem:[%s14203_s1 + $0x3e4] ss:$16 sps:$4 sm:$0xff]   ;;  %v9083_v35 = vld [vmem:[%s14203_s1 + $0x3e0] ss:$16 sps:$4 sm:$0xff]  }
  0x13   :  { %6362 = vmatpush1.bf16.msra.mxu0 %v9058_v18  ;;  %v9084_v36 = vld [vmem:[%s14203_s1 + $0x1c4] ss:$16 sps:$4 sm:$0xff]   ;;  %v9088_v38 = vld [vmem:[%s14203_s1 + $0x1c0] ss:$16 sps:$4 sm:$0xff]  }
  0x14   :  { %6405 = vmatpush1.bf16.msra.mxu1 %v9059_v19  ;;  %6363 = vmatprep.subr.bf16.mxu0 %v9060_v20  ;;  %v9086_v37 = vld [vmem:[%s14203_s1 + $0x3c4] ss:$16 sps:$4 sm:$0xff]   ;;  %v9089_v39 = vld [vmem:[%s14203_s1 + $0x3c0] ss:$16 sps:$4 sm:$0xff]  }
  0x15   :  { %6406 = vmatprep.subr.bf16.mxu1 %v9062_v21  ;;  %v9090_v40 = vld [vmem:[%s14203_s1 + $0x1a4] ss:$16 sps:$4 sm:$0xff]   ;;  %v9094_v42 = vld [vmem:[%s14203_s1 + $0x1a0] ss:$16 sps:$4 sm:$0xff]  }
  0x16   :  { %v9092_v41 = vld [vmem:[%s14203_s1 + $0x3a4] ss:$16 sps:$4 sm:$0xff]   ;;  %v9095_v43 = vld [vmem:[%s14203_s1 + $0x3a0] ss:$16 sps:$4 sm:$0xff]  }
  0x17   :  { %6364 = vmatpush1.bf16.msra.mxu0 %v9064_v22  ;;  %v9096_v44 = vld [vmem:[%s14203_s1 + $0x184] ss:$16 sps:$4 sm:$0xff]   ;;  %v9100_v46 = vld [vmem:[%s14203_s1 + $0x180] ss:$16 sps:$4 sm:$0xff]  }
  0x18   :  { %6407 = vmatpush1.bf16.msra.mxu1 %v9065_v23  ;;  %6365 = vmatprep.subr.bf16.mxu0 %v9066_v24  ;;  %v9098_v45 = vld [vmem:[%s14203_s1 + $0x384] ss:$16 sps:$4 sm:$0xff]   ;;  %v9101_v47 = vld [vmem:[%s14203_s1 + $0x380] ss:$16 sps:$4 sm:$0xff]  }
  0x19   :  { %6408 = vmatprep.subr.bf16.mxu1 %v9068_v25  ;;  %v17_v48 = vld [vmem:[%s14204_s0] sm:$0xff] }
  0x1a   :  { %v33_v49 = vld [vmem:[%s14204_s0 + $0x80] sm:$0xff] }
  0x1b   :  { %6366 = vmatpush1.bf16.msra.mxu0 %v9070_v26  ;;  %v9102_v52 = vld [vmem:[%s14203_s1 + $0x164] ss:$16 sps:$4 sm:$0xff]   ;;  %v10760_v53 = vcombine.high %v17_v48, %v33_v49  ;;  %v9106_v56 = vld [vmem:[%s14203_s1 + $0x160] ss:$16 sps:$4 sm:$0xff]   ;;  %v10817_v8 = vcombine.low %v17_v48, %v33_v49 }
  0x1c   :  { %6409 = vmatpush1.bf16.msra.mxu1 %v9071_v27  ;;  %6367 = vmatprep.subr.bf16.mxu0 %v9072_v28  ;;  %v9104_v54 = vld [vmem:[%s14203_s1 + $0x364] ss:$16 sps:$4 sm:$0xff]   ;;  %v9107_v57 = vld [vmem:[%s14203_s1 + $0x360] ss:$16 sps:$4 sm:$0xff]  }
  0x1d   :  { %6410 = vmatprep.subr.bf16.mxu1 %v9074_v29  ;;  %6385 = vmatprep.mubr.bf16.mxu0 %v10760_v53  ;;  %v9108_v58 = vld [vmem:[%s14203_s1 + $0x144] ss:$16 sps:$4 sm:$0xff]   ;;  %v9112_v60 = vld [vmem:[%s14203_s1 + $0x140] ss:$16 sps:$4 sm:$0xff]  }
  0x1e   :  { %v9110_v59 = vld [vmem:[%s14203_s1 + $0x344] ss:$16 sps:$4 sm:$0xff]   ;;  %v9113_v61 = vld [vmem:[%s14203_s1 + $0x340] ss:$16 sps:$4 sm:$0xff]  }
  0x1f   :  { %6368 = vmatpush1.bf16.msra.mxu0 %v9076_v30  ;;  %v9114_v62 = vld [vmem:[%s14203_s1 + $0x124] ss:$16 sps:$4 sm:$0xff]   ;;  %v9118_v0 = vld [vmem:[%s14203_s1 + $0x120] ss:$16 sps:$4 sm:$0xff]  }
  0x20   :  { %6411 = vmatpush1.bf16.msra.mxu1 %v9077_v31  ;;  %6369 = vmatprep.subr.bf16.mxu0 %v9078_v32  ;;  %v9116_v63 = vld [vmem:[%s14203_s1 + $0x324] ss:$16 sps:$4 sm:$0xff]   ;;  %v9119_v1 = vld [vmem:[%s14203_s1 + $0x320] ss:$16 sps:$4 sm:$0xff]  }
  0x21   :  { %6412 = vmatprep.subr.bf16.mxu1 %v9080_v33  ;;  %v9120_v2 = vld [vmem:[%s14203_s1 + $0x104] ss:$16 sps:$4 sm:$0xff]   ;;  %v9124_v4 = vld [vmem:[%s14203_s1 + $0x100] ss:$16 sps:$4 sm:$0xff]  }
  0x22   :  { %v9122_v3 = vld [vmem:[%s14203_s1 + $0x304] ss:$16 sps:$4 sm:$0xff]   ;;  %v9125_v5 = vld [vmem:[%s14203_s1 + $0x300] ss:$16 sps:$4 sm:$0xff]  }
  0x23   :  { %6370 = vmatpush2.bf16.msra.mxu0 %v9082_v34  ;;  %v9128_v6 = vld [vmem:[%s14203_s1 + $0x4e4] ss:$16 sps:$4 sm:$0xff]   ;;  %v9126_v10 = vld [vmem:[%s14203_s1 + $0x4e0] ss:$16 sps:$4 sm:$0xff]  }
  0x24   :  { %6413 = vmatpush2.bf16.msra.mxu1 %v9083_v35  ;;  %6371 = vmatprep.subr.bf16.mxu0 %v9084_v36  ;;  %v9131_v7 = vld [vmem:[%s14203_s1 + $0x6e4] ss:$16 sps:$4 sm:$0xff]   ;;  %v9129_v11 = vld [vmem:[%s14203_s1 + $0x6e0] ss:$16 sps:$4 sm:$0xff]  }
  0x25   :  { %6414 = vmatprep.subr.bf16.mxu1 %v9086_v37  ;;  %v9134_v12 = vld [vmem:[%s14203_s1 + $0x4c4] ss:$16 sps:$4 sm:$0xff]   ;;  %v9132_v14 = vld [vmem:[%s14203_s1 + $0x4c0] ss:$16 sps:$4 sm:$0xff]  }
  0x26   :  { %v9137_v13 = vld [vmem:[%s14203_s1 + $0x6c4] ss:$16 sps:$4 sm:$0xff]   ;;  %v9135_v15 = vld [vmem:[%s14203_s1 + $0x6c0] ss:$16 sps:$4 sm:$0xff]  }
  0x27   :  { %6372 = vmatpush2.bf16.msra.mxu0 %v9088_v38  ;;  %v9140_v16 = vld [vmem:[%s14203_s1 + $0x4a4] ss:$16 sps:$4 sm:$0xff]   ;;  %v9138_v18 = vld [vmem:[%s14203_s1 + $0x4a0] ss:$16 sps:$4 sm:$0xff]   ;;  %v10914_v38 = vld [vmem:[%s14204_s0 + $0x18] sm:$0xff] }
  0x28   :  { %6415 = vmatpush2.bf16.msra.mxu1 %v9089_v39  ;;  %6373 = vmatprep.subr.bf16.mxu0 %v9090_v40  ;;  %v9143_v17 = vld [vmem:[%s14203_s1 + $0x6a4] ss:$16 sps:$4 sm:$0xff]   ;;  %v9141_v19 = vld [vmem:[%s14203_s1 + $0x6a0] ss:$16 sps:$4 sm:$0xff]   ;;  %v10919_v39 = vld [vmem:[%s14204_s0 + $0x98] sm:$0xff] }
  0x29   :  { %6416 = vmatprep.subr.bf16.mxu1 %v9092_v41  ;;  %v9146_v20 = vld [vmem:[%s14203_s1 + $0x484] ss:$16 sps:$4 sm:$0xff]   ;;  %v9144_v22 = vld [vmem:[%s14203_s1 + $0x480] ss:$16 sps:$4 sm:$0xff]  }
  0x2a   :  { %v9149_v21 = vld [vmem:[%s14203_s1 + $0x684] ss:$16 sps:$4 sm:$0xff]   ;;  %v9147_v23 = vld [vmem:[%s14203_s1 + $0x680] ss:$16 sps:$4 sm:$0xff]  }
  0x2b   :  { %6374 = vmatpush2.bf16.msra.mxu0 %v9094_v42  ;;  %v9152_v24 = vld [vmem:[%s14203_s1 + $0x464] ss:$16 sps:$4 sm:$0xff]   ;;  %v9150_v26 = vld [vmem:[%s14203_s1 + $0x460] ss:$16 sps:$4 sm:$0xff]  }
  0x2c   :  { %6417 = vmatpush2.bf16.msra.mxu1 %v9095_v43  ;;  %6375 = vmatprep.subr.bf16.mxu0 %v9096_v44  ;;  %v9155_v25 = vld [vmem:[%s14203_s1 + $0x664] ss:$16 sps:$4 sm:$0xff]   ;;  %v9153_v27 = vld [vmem:[%s14203_s1 + $0x660] ss:$16 sps:$4 sm:$0xff]   ;;  %v10933_v43 = vcombine.high %v10914_v38, %v10919_v39 }
  0x2d   :  { %6418 = vmatprep.subr.bf16.mxu1 %v9098_v45  ;;  %v9158_v28 = vld [vmem:[%s14203_s1 + $0x444] ss:$16 sps:$4 sm:$0xff]   ;;  %v9156_v30 = vld [vmem:[%s14203_s1 + $0x440] ss:$16 sps:$4 sm:$0xff]  }
  0x2e   :  { %v9161_v29 = vld [vmem:[%s14203_s1 + $0x644] ss:$16 sps:$4 sm:$0xff]   ;;  %v9159_v31 = vld [vmem:[%s14203_s1 + $0x640] ss:$16 sps:$4 sm:$0xff]  }
  0x2f   :  { %6376 = vmatpush2.bf16.msra.mxu0 %v9100_v46  ;;  %v9164_v32 = vld [vmem:[%s14203_s1 + $0x424] ss:$16 sps:$4 sm:$0xff]   ;;  %v9162_v34 = vld [vmem:[%s14203_s1 + $0x420] ss:$16 sps:$4 sm:$0xff]  }
  0x30   :  { %6419 = vmatpush2.bf16.msra.mxu1 %v9101_v47  ;;  %6377 = vmatprep.subr.bf16.mxu0 %v9102_v52  ;;  %v9167_v33 = vld [vmem:[%s14203_s1 + $0x624] ss:$16 sps:$4 sm:$0xff]   ;;  %v9165_v35 = vld [vmem:[%s14203_s1 + $0x620] ss:$16 sps:$4 sm:$0xff]  }
  0x31   :  { %6420 = vmatprep.subr.bf16.mxu1 %v9104_v54  ;;  %v10904_v36 = vld [vmem:[%s14204_s0 + $0x10] sm:$0xff] }
  0x32   :  { %v10909_v37 = vld [vmem:[%s14204_s0 + $0x90] sm:$0xff] }
  0x33   :  { %6378 = vmatpush2.bf16.msra.mxu0 %v9106_v56  ;;  %v9170_v40 = vld [vmem:[%s14203_s1 + $0x404] ss:$16 sps:$4 sm:$0xff]   ;;  %v10926_v41 = vcombine.high %v10904_v36, %v10909_v37  ;;  %v9168_v44 = vld [vmem:[%s14203_s1 + $0x400] ss:$16 sps:$4 sm:$0xff]  }
  0x34   :  { %6421 = vmatpush2.bf16.msra.mxu1 %v9107_v57  ;;  %6379 = vmatprep.subr.bf16.mxu0 %v9108_v58  ;;  %v9173_v42 = vld [vmem:[%s14203_s1 + $0x604] ss:$16 sps:$4 sm:$0xff]   ;;  %v9171_v45 = vld [vmem:[%s14203_s1 + $0x600] ss:$16 sps:$4 sm:$0xff]  }
  0x35   :  { %6422 = vmatprep.subr.bf16.mxu1 %v9110_v59  ;;  %v9176_v46 = vld [vmem:[%s14203_s1 + $0x5e4] ss:$16 sps:$4 sm:$0xff]   ;;  %v9174_v48 = vld [vmem:[%s14203_s1 + $0x5e0] ss:$16 sps:$4 sm:$0xff]  }
  0x36   :  { %v9179_v47 = vld [vmem:[%s14203_s1 + $0x7e4] ss:$16 sps:$4 sm:$0xff]   ;;  %v9177_v49 = vld [vmem:[%s14203_s1 + $0x7e0] ss:$16 sps:$4 sm:$0xff]  }
  0x37   :  { %6380 = vmatpush2.bf16.msra.mxu0 %v9112_v60  ;;  %v9182_v50 = vld [vmem:[%s14203_s1 + $0x5c4] ss:$16 sps:$4 sm:$0xff]   ;;  %v9180_v52 = vld [vmem:[%s14203_s1 + $0x5c0] ss:$16 sps:$4 sm:$0xff]  }
  0x38   :  { %6423 = vmatpush2.bf16.msra.mxu1 %v9113_v61  ;;  %6381 = vmatprep.subr.bf16.mxu0 %v9114_v62  ;;  %v9185_v51 = vld [vmem:[%s14203_s1 + $0x7c4] ss:$16 sps:$4 sm:$0xff]   ;;  %v9183_v54 = vld [vmem:[%s14203_s1 + $0x7c0] ss:$16 sps:$4 sm:$0xff]  }
  0x39   :  { %6424 = vmatprep.subr.bf16.mxu1 %v9116_v63  ;;  %v9188_v56 = vld [vmem:[%s14203_s1 + $0x5a4] ss:$16 sps:$4 sm:$0xff]   ;;  %v9186_v58 = vld [vmem:[%s14203_s1 + $0x5a0] ss:$16 sps:$4 sm:$0xff]  }
  0x3a   :  { %v9191_v57 = vld [vmem:[%s14203_s1 + $0x7a4] ss:$16 sps:$4 sm:$0xff]   ;;  %v9189_v59 = vld [vmem:[%s14203_s1 + $0x7a0] ss:$16 sps:$4 sm:$0xff]  }
  0x3b   :  { %6382 = vmatpush2.bf16.msra.mxu0 %v9118_v0  ;;  %v9194_v60 = vld [vmem:[%s14203_s1 + $0x584] ss:$16 sps:$4 sm:$0xff]   ;;  %v9192_v62 = vld [vmem:[%s14203_s1 + $0x580] ss:$16 sps:$4 sm:$0xff]  }
  0x3c   :  { %6425 = vmatpush2.bf16.msra.mxu1 %v9119_v1  ;;  %6383 = vmatprep.subr.bf16.mxu0 %v9120_v2  ;;  %v9197_v61 = vld [vmem:[%s14203_s1 + $0x784] ss:$16 sps:$4 sm:$0xff]   ;;  %v9195_v63 = vld [vmem:[%s14203_s1 + $0x780] ss:$16 sps:$4 sm:$0xff]  }
  0x3d   :  { %6426 = vmatprep.subr.bf16.mxu1 %v9122_v3  ;;  %v9200_v0 = vld [vmem:[%s14203_s1 + $0x564] ss:$16 sps:$4 sm:$0xff]   ;;  %v9198_v2 = vld [vmem:[%s14203_s1 + $0x560] ss:$16 sps:$4 sm:$0xff]  }
  0x3e   :  { %v9203_v1 = vld [vmem:[%s14203_s1 + $0x764] ss:$16 sps:$4 sm:$0xff]   ;;  %v9201_v3 = vld [vmem:[%s14203_s1 + $0x760] ss:$16 sps:$4 sm:$0xff]  }
  0x3f   :  { %6384 = vmatpush2.bf16.msra.mxu0 %v9124_v4  ;;  %v9206_v4 = vld [vmem:[%s14203_s1 + $0x544] ss:$16 sps:$4 sm:$0xff]  }
  0x40   :  { %6427 = vmatpush2.bf16.msra.mxu1 %v9125_v5  ;;  %6439 = vmatprep.subr.bf16.mxu0 %v9128_v6  ;;  %v9209_v5 = vld [vmem:[%s14203_s1 + $0x744] ss:$16 sps:$4 sm:$0xff]   ;;  %v9204_v6 = vld [vmem:[%s14203_s1 + $0x540] ss:$16 sps:$4 sm:$0xff]  }
  0x41   :  { %6482 = vmatprep.subr.bf16.mxu1 %v9131_v7  ;;  %v9207_v7 = vld [vmem:[%s14203_s1 + $0x740] ss:$16 sps:$4 sm:$0xff]  }
  0x42   :  { %6386 = vmatmul.mubr.bf16.vlgmr.msra.gmra.mxu0 %v10817_v8 }
  0x43   :  { %6429 = vmatmul.mubr.bf16.vlgmr.msra.gmra.mxu1 %v10819_v9  ;;  %6440 = vmatpush1.bf16.msra.mxu0 %v9126_v10  ;;  %v9212_v10 = vld [vmem:[%s14203_s1 + $0x524] ss:$16 sps:$4 sm:$0xff]  }
  0x44   :  { %6483 = vmatpush1.bf16.msra.mxu1 %v9129_v11  ;;  %6441 = vmatprep.subr.bf16.mxu0 %v9134_v12  ;;  %v9215_v11 = vld [vmem:[%s14203_s1 + $0x724] ss:$16 sps:$4 sm:$0xff]   ;;  %v9210_v12 = vld [vmem:[%s14203_s1 + $0x520] ss:$16 sps:$4 sm:$0xff]  }
  0x45   :  { %6484 = vmatprep.subr.bf16.mxu1 %v9137_v13  ;;  %6471 = vmatprep.mubr.bf16.mxu0 %v10926_v41  ;;  %v9213_v13 = vld [vmem:[%s14203_s1 + $0x720] ss:$16 sps:$4 sm:$0xff]  }
  0x46   :  { %6514 = vmatprep.mubr.bf16.mxu1 %v10933_v43 }
  0x47   :  { %6442 = vmatpush1.bf16.msra.mxu0 %v9132_v14  ;;  %v9218_v14 = vld [vmem:[%s14203_s1 + $0x504] ss:$16 sps:$4 sm:$0xff]  }
  0x48   :  { %6485 = vmatpush1.bf16.msra.mxu1 %v9135_v15  ;;  %6443 = vmatprep.subr.bf16.mxu0 %v9140_v16  ;;  %v9221_v15 = vld [vmem:[%s14203_s1 + $0x704] ss:$16 sps:$4 sm:$0xff]   ;;  %v9216_v16 = vld [vmem:[%s14203_s1 + $0x500] ss:$16 sps:$4 sm:$0xff]  }
  0x49   :  { %6486 = vmatprep.subr.bf16.mxu1 %v9143_v17  ;;  %v9219_v17 = vld [vmem:[%s14203_s1 + $0x700] ss:$16 sps:$4 sm:$0xff]  }
  0x4b   :  { %6444 = vmatpush1.bf16.msra.mxu0 %v9138_v18  ;;  %v9224_v18 = vld [vmem:[%s14203_s1 + $0x8e4] ss:$16 sps:$4 sm:$0xff]  }
  0x4c   :  { %6487 = vmatpush1.bf16.msra.mxu1 %v9141_v19  ;;  %6445 = vmatprep.subr.bf16.mxu0 %v9146_v20  ;;  %v9227_v19 = vld [vmem:[%s14203_s1 + $0xae4] ss:$16 sps:$4 sm:$0xff]   ;;  %v11047_v20 = vcombine.low %v10904_v36, %v10909_v37  ;;  %v9234_v36 = vld [vmem:[%s14203_s1 + $0x8a0] ss:$16 sps:$4 sm:$0xff]  }
  0x4d   :  { %6488 = vmatprep.subr.bf16.mxu1 %v9149_v21  ;;  %v11051_v21 = vcombine.low %v10914_v38, %v10919_v39  ;;  %v9237_v37 = vld [vmem:[%s14203_s1 + $0xaa0] ss:$16 sps:$4 sm:$0xff]   ;;  %v9242_v38 = vld [vmem:[%s14203_s1 + $0x884] ss:$16 sps:$4 sm:$0xff]  }
  0x4e   :  { %v9245_v39 = vld [vmem:[%s14203_s1 + $0xa84] ss:$16 sps:$4 sm:$0xff]  }
  0x4f   :  { %6446 = vmatpush1.bf16.msra.mxu0 %v9144_v22  ;;  %v9222_v22 = vld [vmem:[%s14203_s1 + $0x8e0] ss:$16 sps:$4 sm:$0xff]  }
  0x50   :  { %6489 = vmatpush1.bf16.msra.mxu1 %v9147_v23  ;;  %6447 = vmatprep.subr.bf16.mxu0 %v9152_v24  ;;  %v9225_v23 = vld [vmem:[%s14203_s1 + $0xae0] ss:$16 sps:$4 sm:$0xff]   ;;  %v9230_v24 = vld [vmem:[%s14203_s1 + $0x8c4] ss:$16 sps:$4 sm:$0xff]  }
  0x51   :  { %6490 = vmatprep.subr.bf16.mxu1 %v9155_v25  ;;  %v9233_v25 = vld [vmem:[%s14203_s1 + $0xac4] ss:$16 sps:$4 sm:$0xff]  }
  0x53   :  { %6448 = vmatpush1.bf16.msra.mxu0 %v9150_v26  ;;  %v9228_v26 = vld [vmem:[%s14203_s1 + $0x8c0] ss:$16 sps:$4 sm:$0xff]  }
  0x54   :  { %6491 = vmatpush1.bf16.msra.mxu1 %v9153_v27  ;;  %6449 = vmatprep.subr.bf16.mxu0 %v9158_v28  ;;  %v9231_v27 = vld [vmem:[%s14203_s1 + $0xac0] ss:$16 sps:$4 sm:$0xff]  }
  0x55   :  { %6492 = vmatprep.subr.bf16.mxu1 %v9161_v29  ;;  %v11074_v28 = vld [vmem:[%s14204_s0 + $0x20] sm:$0xff] }
  0x56   :  { %v11081_v29 = vld [vmem:[%s14204_s0 + $0xa0] sm:$0xff] }
  0x57   :  { %6450 = vmatpush1.bf16.msra.mxu0 %v9156_v30  ;;  %v11086_v30 = vld [vmem:[%s14204_s0 + $0x28] sm:$0xff] }
  0x58   :  { %6493 = vmatpush1.bf16.msra.mxu1 %v9159_v31  ;;  %6451 = vmatprep.subr.bf16.mxu0 %v9164_v32  ;;  %v11091_v31 = vld [vmem:[%s14204_s0 + $0xa8] sm:$0xff]  ;;  %v9236_v32 = vld [vmem:[%s14203_s1 + $0x8a4] ss:$16 sps:$4 sm:$0xff]  }
  0x59   :  { %6494 = vmatprep.subr.bf16.mxu1 %v9167_v33  ;;  %v11098_v33 = vcombine.high %v11074_v28, %v11081_v29 }
  0x5b   :  { %6452 = vmatpush1.bf16.msra.mxu0 %v9162_v34  ;;  %v9239_v34 = vld [vmem:[%s14203_s1 + $0xaa4] ss:$16 sps:$4 sm:$0xff]  }
  0x5c   :  { %6495 = vmatpush1.bf16.msra.mxu1 %v9165_v35  ;;  %6453 = vmatprep.subr.bf16.mxu0 %v9170_v40  ;;  %v11105_v35 = vcombine.high %v11086_v30, %v11091_v31  ;;  %v9240_v40 = vld [vmem:[%s14203_s1 + $0x880] ss:$16 sps:$4 sm:$0xff]  }
  0x5d   :  { %6496 = vmatprep.subr.bf16.mxu1 %v9173_v42  ;;  %v9243_v42 = vld [vmem:[%s14203_s1 + $0xa80] ss:$16 sps:$4 sm:$0xff]  }
  0x5f   :  { %6454 = vmatpush1.bf16.msra.mxu0 %v9168_v44  ;;  %v9248_v44 = vld [vmem:[%s14203_s1 + $0x864] ss:$16 sps:$4 sm:$0xff]  }
  0x60   :  { %6497 = vmatpush1.bf16.msra.mxu1 %v9171_v45  ;;  %6455 = vmatprep.subr.bf16.mxu0 %v9176_v46  ;;  %v9251_v45 = vld [vmem:[%s14203_s1 + $0xa64] ss:$16 sps:$4 sm:$0xff]   ;;  %v9246_v46 = vld [vmem:[%s14203_s1 + $0x860] ss:$16 sps:$4 sm:$0xff]  }
  0x61   :  { %6498 = vmatprep.subr.bf16.mxu1 %v9179_v47  ;;  %v9249_v47 = vld [vmem:[%s14203_s1 + $0xa60] ss:$16 sps:$4 sm:$0xff]  }
  0x63   :  { %6456 = vmatpush2.bf16.msra.mxu0 %v9174_v48  ;;  %v9254_v48 = vld [vmem:[%s14203_s1 + $0x844] ss:$16 sps:$4 sm:$0xff]  }
  0x64   :  { %6499 = vmatpush2.bf16.msra.mxu1 %v9177_v49  ;;  %6457 = vmatprep.subr.bf16.mxu0 %v9182_v50  ;;  %v9257_v49 = vld [vmem:[%s14203_s1 + $0xa44] ss:$16 sps:$4 sm:$0xff]   ;;  %v9252_v50 = vld [vmem:[%s14203_s1 + $0x840] ss:$16 sps:$4 sm:$0xff]  }
  0x65   :  { %6500 = vmatprep.subr.bf16.mxu1 %v9185_v51  ;;  %v9255_v51 = vld [vmem:[%s14203_s1 + $0xa40] ss:$16 sps:$4 sm:$0xff]  }
  0x67   :  { %6458 = vmatpush2.bf16.msra.mxu0 %v9180_v52  ;;  %v9260_v52 = vld [vmem:[%s14203_s1 + $0x824] ss:$16 sps:$4 sm:$0xff]  }
  0x68   :  { %6501 = vmatpush2.bf16.msra.mxu1 %v9183_v54  ;;  %6459 = vmatprep.subr.bf16.mxu0 %v9188_v56  ;;  %v9263_v54 = vld [vmem:[%s14203_s1 + $0xa24] ss:$16 sps:$4 sm:$0xff]   ;;  %v9258_v56 = vld [vmem:[%s14203_s1 + $0x820] ss:$16 sps:$4 sm:$0xff]  }
  0x69   :  { %6502 = vmatprep.subr.bf16.mxu1 %v9191_v57  ;;  %v9261_v57 = vld [vmem:[%s14203_s1 + $0xa20] ss:$16 sps:$4 sm:$0xff]  }
  0x6b   :  { %6460 = vmatpush2.bf16.msra.mxu0 %v9186_v58  ;;  %v9266_v58 = vld [vmem:[%s14203_s1 + $0x804] ss:$16 sps:$4 sm:$0xff]  }
  0x6c   :  { %6503 = vmatpush2.bf16.msra.mxu1 %v9189_v59  ;;  %6461 = vmatprep.subr.bf16.mxu0 %v9194_v60  ;;  %v9269_v59 = vld [vmem:[%s14203_s1 + $0xa04] ss:$16 sps:$4 sm:$0xff]   ;;  %v9264_v60 = vld [vmem:[%s14203_s1 + $0x800] ss:$16 sps:$4 sm:$0xff]  }
  0x6d   :  { %6504 = vmatprep.subr.bf16.mxu1 %v9197_v61  ;;  %v9267_v61 = vld [vmem:[%s14203_s1 + $0xa00] ss:$16 sps:$4 sm:$0xff]  }
  0x6f   :  { %6462 = vmatpush2.bf16.msra.mxu0 %v9192_v62  ;;  %v9272_v62 = vld [vmem:[%s14203_s1 + $0x9e4] ss:$16 sps:$4 sm:$0xff]  }
  0x70   :  { %6505 = vmatpush2.bf16.msra.mxu1 %v9195_v63  ;;  %6463 = vmatprep.subr.bf16.mxu0 %v9200_v0  ;;  %v9275_v63 = vld [vmem:[%s14203_s1 + $0xbe4] ss:$16 sps:$4 sm:$0xff]   ;;  %v9270_v0 = vld [vmem:[%s14203_s1 + $0x9e0] ss:$16 sps:$4 sm:$0xff]  }
  0x71   :  { %6506 = vmatprep.subr.bf16.mxu1 %v9203_v1  ;;  %v9273_v1 = vld [vmem:[%s14203_s1 + $0xbe0] ss:$16 sps:$4 sm:$0xff]  }
  0x73   :  { %6464 = vmatpush2.bf16.msra.mxu0 %v9198_v2  ;;  %v9278_v2 = vld [vmem:[%s14203_s1 + $0x9c4] ss:$16 sps:$4 sm:$0xff]  }
  0x74   :  { %6507 = vmatpush2.bf16.msra.mxu1 %v9201_v3  ;;  %6465 = vmatprep.subr.bf16.mxu0 %v9206_v4  ;;  %v9281_v3 = vld [vmem:[%s14203_s1 + $0xbc4] ss:$16 sps:$4 sm:$0xff]   ;;  %v9276_v4 = vld [vmem:[%s14203_s1 + $0x9c0] ss:$16 sps:$4 sm:$0xff]  }
  0x75   :  { %6508 = vmatprep.subr.bf16.mxu1 %v9209_v5  ;;  %v9279_v5 = vld [vmem:[%s14203_s1 + $0xbc0] ss:$16 sps:$4 sm:$0xff]  }
  0x77   :  { %6466 = vmatpush2.bf16.msra.mxu0 %v9204_v6  ;;  %v9284_v6 = vld [vmem:[%s14203_s1 + $0x9a4] ss:$16 sps:$4 sm:$0xff]  }
  0x78   :  { %6509 = vmatpush2.bf16.msra.mxu1 %v9207_v7  ;;  %6467 = vmatprep.subr.bf16.mxu0 %v9212_v10  ;;  %v9287_v7 = vld [vmem:[%s14203_s1 + $0xba4] ss:$16 sps:$4 sm:$0xff]   ;;  %v9282_v10 = vld [vmem:[%s14203_s1 + $0x9a0] ss:$16 sps:$4 sm:$0xff]  }
  0x79   :  { %6510 = vmatprep.subr.bf16.mxu1 %v9215_v11  ;;  %v9285_v11 = vld [vmem:[%s14203_s1 + $0xba0] ss:$16 sps:$4 sm:$0xff]  }
  0x7b   :  { %6468 = vmatpush2.bf16.msra.mxu0 %v9210_v12  ;;  %v9290_v12 = vld [vmem:[%s14203_s1 + $0x984] ss:$16 sps:$4 sm:$0xff]  }
  0x7c   :  { %6511 = vmatpush2.bf16.msra.mxu1 %v9213_v13  ;;  %6469 = vmatprep.subr.bf16.mxu0 %v9218_v14  ;;  %v9293_v13 = vld [vmem:[%s14203_s1 + $0xb84] ss:$16 sps:$4 sm:$0xff]   ;;  %v9288_v14 = vld [vmem:[%s14203_s1 + $0x980] ss:$16 sps:$4 sm:$0xff]  }
  0x7d   :  { %6512 = vmatprep.subr.bf16.mxu1 %v9221_v15  ;;  %v9291_v15 = vld [vmem:[%s14203_s1 + $0xb80] ss:$16 sps:$4 sm:$0xff]  }
  0x7f   :  { %6470 = vmatpush2.bf16.msra.mxu0 %v9216_v16  ;;  %v9296_v16 = vld [vmem:[%s14203_s1 + $0x964] ss:$16 sps:$4 sm:$0xff]  }
  0x80   :  { %6513 = vmatpush2.bf16.msra.mxu1 %v9219_v17  ;;  %6525 = vmatprep.subr.bf16.mxu0 %v9224_v18  ;;  %v9299_v17 = vld [vmem:[%s14203_s1 + $0xb64] ss:$16 sps:$4 sm:$0xff]   ;;  %v9294_v18 = vld [vmem:[%s14203_s1 + $0x960] ss:$16 sps:$4 sm:$0xff]  }
  0x81   :  { %6568 = vmatprep.subr.bf16.mxu1 %v9227_v19  ;;  %v9297_v19 = vld [vmem:[%s14203_s1 + $0xb60] ss:$16 sps:$4 sm:$0xff]  }
  0x82   :  { %6472 = vmatmul.mubr.bf16.vlgmr.msra.gmra.mxu0 %v11047_v20 }
  0x83   :  { %6515 = vmatmul.mubr.bf16.vlgmr.msra.gmra.mxu1 %v11051_v21  ;;  %6526 = vmatpush1.bf16.msra.mxu0 %v9222_v22  ;;  %v9302_v22 = vld [vmem:[%s14203_s1 + $0x944] ss:$16 sps:$4 sm:$0xff]  }
  0x84   :  { %6569 = vmatpush1.bf16.msra.mxu1 %v9225_v23  ;;  %6527 = vmatprep.subr.bf16.mxu0 %v9230_v24  ;;  %v9305_v23 = vld [vmem:[%s14203_s1 + $0xb44] ss:$16 sps:$4 sm:$0xff]   ;;  %v9300_v24 = vld [vmem:[%s14203_s1 + $0x940] ss:$16 sps:$4 sm:$0xff]  }
  0x85   :  { %6570 = vmatprep.subr.bf16.mxu1 %v9233_v25  ;;  %6557 = vmatprep.mubr.bf16.mxu0 %v11098_v33  ;;  %v9303_v25 = vld [vmem:[%s14203_s1 + $0xb40] ss:$16 sps:$4 sm:$0xff]  }
  0x86   :  { %6600 = vmatprep.mubr.bf16.mxu1 %v11105_v35 }
  0x87   :  { %6528 = vmatpush1.bf16.msra.mxu0 %v9228_v26  ;;  %v9308_v26 = vld [vmem:[%s14203_s1 + $0x924] ss:$16 sps:$4 sm:$0xff]  }
  0x88   :  { %6571 = vmatpush1.bf16.msra.mxu1 %v9231_v27  ;;  %6529 = vmatprep.subr.bf16.mxu0 %v9236_v32  ;;  %v9311_v27 = vld [vmem:[%s14203_s1 + $0xb24] ss:$16 sps:$4 sm:$0xff]   ;;  %v9306_v32 = vld [vmem:[%s14203_s1 + $0x920] ss:$16 sps:$4 sm:$0xff]  }
  0x89   :  { %6572 = vmatprep.subr.bf16.mxu1 %v9239_v34  ;;  %v9309_v34 = vld [vmem:[%s14203_s1 + $0xb20] ss:$16 sps:$4 sm:$0xff]  }
  0x8b   :  { %6530 = vmatpush1.bf16.msra.mxu0 %v9234_v36  ;;  %v9314_v36 = vld [vmem:[%s14203_s1 + $0x904] ss:$16 sps:$4 sm:$0xff]  }
  0x8c   :  { %6573 = vmatpush1.bf16.msra.mxu1 %v9237_v37  ;;  %6531 = vmatprep.subr.bf16.mxu0 %v9242_v38  ;;  %v9317_v37 = vld [vmem:[%s14203_s1 + $0xb04] ss:$16 sps:$4 sm:$0xff]   ;;  %v9312_v38 = vld [vmem:[%s14203_s1 + $0x900] ss:$16 sps:$4 sm:$0xff]  }
  0x8d   :  { %6574 = vmatprep.subr.bf16.mxu1 %v9245_v39  ;;  %v9315_v39 = vld [vmem:[%s14203_s1 + $0xb00] ss:$16 sps:$4 sm:$0xff]  }
  0x8f   :  { %6532 = vmatpush1.bf16.msra.mxu0 %v9240_v40  ;;  %v9320_v40 = vld [vmem:[%s14203_s1 + $0xce4] ss:$16 sps:$4 sm:$0xff]  }
  0x90   :  { %6575 = vmatpush1.bf16.msra.mxu1 %v9243_v42  ;;  %6533 = vmatprep.subr.bf16.mxu0 %v9248_v44  ;;  %v9323_v42 = vld [vmem:[%s14203_s1 + $0xee4] ss:$16 sps:$4 sm:$0xff]   ;;  %v9318_v44 = vld [vmem:[%s14203_s1 + $0xce0] ss:$16 sps:$4 sm:$0xff]  }
  0x91   :  { %6576 = vmatprep.subr.bf16.mxu1 %v9251_v45  ;;  %v9321_v45 = vld [vmem:[%s14203_s1 + $0xee0] ss:$16 sps:$4 sm:$0xff]  }
  0x93   :  { %6534 = vmatpush1.bf16.msra.mxu0 %v9246_v46  ;;  %v11286_v46 = vld [vmem:[%s14204_s0 + $0x30] sm:$0xff] }
  0x94   :  { %6577 = vmatpush1.bf16.msra.mxu1 %v9249_v47  ;;  %6535 = vmatprep.subr.bf16.mxu0 %v9254_v48  ;;  %v11291_v47 = vld [vmem:[%s14204_s0 + $0xb0] sm:$0xff]  ;;  %v11295_v48 = vcombine.low %v11074_v28, %v11081_v29 }
  0x95   :  { %6578 = vmatprep.subr.bf16.mxu1 %v9257_v49  ;;  %v11299_v49 = vcombine.low %v11086_v30, %v11091_v31  ;;  %v9326_v28 = vld [vmem:[%s14203_s1 + $0xcc4] ss:$16 sps:$4 sm:$0xff]   ;;  %v11319_v30 = vcombine.high %v11286_v46, %v11291_v47 }
  0x96   :  { %v9329_v29 = vld [vmem:[%s14203_s1 + $0xec4] ss:$16 sps:$4 sm:$0xff]  }
  0x97   :  { %6536 = vmatpush1.bf16.msra.mxu0 %v9252_v50  ;;  %v11304_v50 = vld [vmem:[%s14204_s0 + $0x38] sm:$0xff] }
  0x98   :  { %6579 = vmatpush1.bf16.msra.mxu1 %v9255_v51  ;;  %6537 = vmatprep.subr.bf16.mxu0 %v9260_v52  ;;  %v11309_v51 = vld [vmem:[%s14204_s0 + $0xb8] sm:$0xff]  ;;  %v9324_v52 = vld [vmem:[%s14203_s1 + $0xcc0] ss:$16 sps:$4 sm:$0xff]  }
  0x99   :  { %6580 = vmatprep.subr.bf16.mxu1 %v9263_v54  ;;  %v11323_v31 = vcombine.high %v11304_v50, %v11309_v51  ;;  %v9327_v54 = vld [vmem:[%s14203_s1 + $0xec0] ss:$16 sps:$4 sm:$0xff]  }
  0x9b   :  { %6538 = vmatpush1.bf16.msra.mxu0 %v9258_v56  ;;  %v9332_v56 = vld [vmem:[%s14203_s1 + $0xca4] ss:$16 sps:$4 sm:$0xff]  }
  0x9c   :  { %6581 = vmatpush1.bf16.msra.mxu1 %v9261_v57  ;;  %6539 = vmatprep.subr.bf16.mxu0 %v9266_v58  ;;  %v9335_v57 = vld [vmem:[%s14203_s1 + $0xea4] ss:$16 sps:$4 sm:$0xff]   ;;  %v9330_v58 = vld [vmem:[%s14203_s1 + $0xca0] ss:$16 sps:$4 sm:$0xff]  }
  0x9d   :  { %6582 = vmatprep.subr.bf16.mxu1 %v9269_v59  ;;  %v9333_v59 = vld [vmem:[%s14203_s1 + $0xea0] ss:$16 sps:$4 sm:$0xff]  }
  0x9f   :  { %6540 = vmatpush1.bf16.msra.mxu0 %v9264_v60  ;;  %v9338_v60 = vld [vmem:[%s14203_s1 + $0xc84] ss:$16 sps:$4 sm:$0xff]  }
  0xa0   :  { %6583 = vmatpush1.bf16.msra.mxu1 %v9267_v61  ;;  %6541 = vmatprep.subr.bf16.mxu0 %v9272_v62  ;;  %v9341_v61 = vld [vmem:[%s14203_s1 + $0xe84] ss:$16 sps:$4 sm:$0xff]   ;;  %v9336_v62 = vld [vmem:[%s14203_s1 + $0xc80] ss:$16 sps:$4 sm:$0xff]  }
  0xa1   :  { %6584 = vmatprep.subr.bf16.mxu1 %v9275_v63  ;;  %v9339_v63 = vld [vmem:[%s14203_s1 + $0xe80] ss:$16 sps:$4 sm:$0xff]  }
  0xa3   :  { %6542 = vmatpush2.bf16.msra.mxu0 %v9270_v0  ;;  %v9344_v0 = vld [vmem:[%s14203_s1 + $0xc64] ss:$16 sps:$4 sm:$0xff]  }
  0xa4   :  { %6585 = vmatpush2.bf16.msra.mxu1 %v9273_v1  ;;  %6543 = vmatprep.subr.bf16.mxu0 %v9278_v2  ;;  %v9347_v1 = vld [vmem:[%s14203_s1 + $0xe64] ss:$16 sps:$4 sm:$0xff]   ;;  %v9342_v2 = vld [vmem:[%s14203_s1 + $0xc60] ss:$16 sps:$4 sm:$0xff]  }
  0xa5   :  { %6586 = vmatprep.subr.bf16.mxu1 %v9281_v3  ;;  %v9345_v3 = vld [vmem:[%s14203_s1 + $0xe60] ss:$16 sps:$4 sm:$0xff]  }
  0xa7   :  { %6544 = vmatpush2.bf16.msra.mxu0 %v9276_v4  ;;  %v9350_v4 = vld [vmem:[%s14203_s1 + $0xc44] ss:$16 sps:$4 sm:$0xff]  }
  0xa8   :  { %6587 = vmatpush2.bf16.msra.mxu1 %v9279_v5  ;;  %6545 = vmatprep.subr.bf16.mxu0 %v9284_v6  ;;  %v9353_v5 = vld [vmem:[%s14203_s1 + $0xe44] ss:$16 sps:$4 sm:$0xff]   ;;  %v9348_v6 = vld [vmem:[%s14203_s1 + $0xc40] ss:$16 sps:$4 sm:$0xff]  }
  0xa9   :  { %6588 = vmatprep.subr.bf16.mxu1 %v9287_v7  ;;  %v9351_v7 = vld [vmem:[%s14203_s1 + $0xe40] ss:$16 sps:$4 sm:$0xff]  }
  0xab   :  { %6546 = vmatpush2.bf16.msra.mxu0 %v9282_v10  ;;  %v9356_v10 = vld [vmem:[%s14203_s1 + $0xc24] ss:$16 sps:$4 sm:$0xff]  }
  0xac   :  { %6589 = vmatpush2.bf16.msra.mxu1 %v9285_v11  ;;  %6547 = vmatprep.subr.bf16.mxu0 %v9290_v12  ;;  %v9359_v11 = vld [vmem:[%s14203_s1 + $0xe24] ss:$16 sps:$4 sm:$0xff]   ;;  %v9354_v12 = vld [vmem:[%s14203_s1 + $0xc20] ss:$16 sps:$4 sm:$0xff]  }
  0xad   :  { %6590 = vmatprep.subr.bf16.mxu1 %v9293_v13  ;;  %v9357_v13 = vld [vmem:[%s14203_s1 + $0xe20] ss:$16 sps:$4 sm:$0xff]  }
  0xaf   :  { %6548 = vmatpush2.bf16.msra.mxu0 %v9288_v14  ;;  %v9362_v14 = vld [vmem:[%s14203_s1 + $0xc04] ss:$16 sps:$4 sm:$0xff]  }
  0xb0   :  { %6591 = vmatpush2.bf16.msra.mxu1 %v9291_v15  ;;  %6549 = vmatprep.subr.bf16.mxu0 %v9296_v16  ;;  %v9365_v15 = vld [vmem:[%s14203_s1 + $0xe04] ss:$16 sps:$4 sm:$0xff]   ;;  %v9360_v16 = vld [vmem:[%s14203_s1 + $0xc00] ss:$16 sps:$4 sm:$0xff]  }
  0xb1   :  { %6592 = vmatprep.subr.bf16.mxu1 %v9299_v17  ;;  %v9363_v17 = vld [vmem:[%s14203_s1 + $0xe00] ss:$16 sps:$4 sm:$0xff]  }
  0xb3   :  { %6550 = vmatpush2.bf16.msra.mxu0 %v9294_v18  ;;  %v9368_v18 = vld [vmem:[%s14203_s1 + $0xde4] ss:$16 sps:$4 sm:$0xff]  }
  0xb4   :  { %6593 = vmatpush2.bf16.msra.mxu1 %v9297_v19  ;;  %6551 = vmatprep.subr.bf16.mxu0 %v9302_v22  ;;  %v9371_v19 = vld [vmem:[%s14203_s1 + $0xfe4] ss:$16 sps:$4 sm:$0xff]   ;;  %v9366_v22 = vld [vmem:[%s14203_s1 + $0xde0] ss:$16 sps:$4 sm:$0xff]  }
  0xb5   :  { %6594 = vmatprep.subr.bf16.mxu1 %v9305_v23  ;;  %v9369_v23 = vld [vmem:[%s14203_s1 + $0xfe0] ss:$16 sps:$4 sm:$0xff]  }
  0xb7   :  { %6552 = vmatpush2.bf16.msra.mxu0 %v9300_v24  ;;  %v9374_v24 = vld [vmem:[%s14203_s1 + $0xdc4] ss:$16 sps:$4 sm:$0xff]  }
  0xb8   :  { %6595 = vmatpush2.bf16.msra.mxu1 %v9303_v25  ;;  %6553 = vmatprep.subr.bf16.mxu0 %v9308_v26  ;;  %v9377_v25 = vld [vmem:[%s14203_s1 + $0xfc4] ss:$16 sps:$4 sm:$0xff]   ;;  %v9372_v26 = vld [vmem:[%s14203_s1 + $0xdc0] ss:$16 sps:$4 sm:$0xff]  }
  0xb9   :  { %6596 = vmatprep.subr.bf16.mxu1 %v9311_v27  ;;  %v9375_v27 = vld [vmem:[%s14203_s1 + $0xfc0] ss:$16 sps:$4 sm:$0xff]  }
  0xbb   :  { %6554 = vmatpush2.bf16.msra.mxu0 %v9306_v32  ;;  %v9380_v32 = vld [vmem:[%s14203_s1 + $0xda4] ss:$16 sps:$4 sm:$0xff]  }
  0xbc   :  { %6597 = vmatpush2.bf16.msra.mxu1 %v9309_v34  ;;  %6555 = vmatprep.subr.bf16.mxu0 %v9314_v36  ;;  %v9383_v34 = vld [vmem:[%s14203_s1 + $0xfa4] ss:$16 sps:$4 sm:$0xff]   ;;  %v9378_v36 = vld [vmem:[%s14203_s1 + $0xda0] ss:$16 sps:$4 sm:$0xff]  }
  0xbd   :  { %6598 = vmatprep.subr.bf16.mxu1 %v9317_v37  ;;  %v9381_v37 = vld [vmem:[%s14203_s1 + $0xfa0] ss:$16 sps:$4 sm:$0xff]  }
  0xbf   :  { %6556 = vmatpush2.bf16.msra.mxu0 %v9312_v38  ;;  %v9386_v38 = vld [vmem:[%s14203_s1 + $0xd84] ss:$16 sps:$4 sm:$0xff]  }
  0xc0   :  { %6599 = vmatpush2.bf16.msra.mxu1 %v9315_v39  ;;  %6611 = vmatprep.subr.bf16.mxu0 %v9320_v40  ;;  %v9389_v39 = vld [vmem:[%s14203_s1 + $0xf84] ss:$16 sps:$4 sm:$0xff]   ;;  %v9384_v40 = vld [vmem:[%s14203_s1 + $0xd80] ss:$16 sps:$4 sm:$0xff]  }
  0xc1   :  { %6654 = vmatprep.subr.bf16.mxu1 %v9323_v42  ;;  %v9387_v42 = vld [vmem:[%s14203_s1 + $0xf80] ss:$16 sps:$4 sm:$0xff]  }
  0xc2   :  { %6558 = vmatmul.mubr.bf16.vlgmr.msra.gmra.mxu0 %v11295_v48 }
  0xc3   :  { %6601 = vmatmul.mubr.bf16.vlgmr.msra.gmra.mxu1 %v11299_v49  ;;  %6612 = vmatpush1.bf16.msra.mxu0 %v9318_v44  ;;  %v9392_v44 = vld [vmem:[%s14203_s1 + $0xd64] ss:$16 sps:$4 sm:$0xff]  }
  0xc4   :  { %6655 = vmatpush1.bf16.msra.mxu1 %v9321_v45  ;;  %6613 = vmatprep.subr.bf16.mxu0 %v9326_v28  ;;  %v9395_v45 = vld [vmem:[%s14203_s1 + $0xf64] ss:$16 sps:$4 sm:$0xff]   ;;  %v9390_v28 = vld [vmem:[%s14203_s1 + $0xd60] ss:$16 sps:$4 sm:$0xff]  }
  0xc5   :  { %6656 = vmatprep.subr.bf16.mxu1 %v9329_v29  ;;  %6643 = vmatprep.mubr.bf16.mxu0 %v11319_v30  ;;  %v9393_v29 = vld [vmem:[%s14203_s1 + $0xf60] ss:$16 sps:$4 sm:$0xff]  }
  0xc6   :  { %6686 = vmatprep.mubr.bf16.mxu1 %v11323_v31 }
  0xc7   :  { %6614 = vmatpush1.bf16.msra.mxu0 %v9324_v52  ;;  %v9398_v52 = vld [vmem:[%s14203_s1 + $0xd44] ss:$16 sps:$4 sm:$0xff]  }
  0xc8   :  { %6657 = vmatpush1.bf16.msra.mxu1 %v9327_v54  ;;  %6615 = vmatprep.subr.bf16.mxu0 %v9332_v56  ;;  %v9401_v54 = vld [vmem:[%s14203_s1 + $0xf44] ss:$16 sps:$4 sm:$0xff]   ;;  %v9396_v56 = vld [vmem:[%s14203_s1 + $0xd40] ss:$16 sps:$4 sm:$0xff]  }
  0xc9   :  { %6658 = vmatprep.subr.bf16.mxu1 %v9335_v57  ;;  %v9399_v57 = vld [vmem:[%s14203_s1 + $0xf40] ss:$16 sps:$4 sm:$0xff]  }
  0xcb   :  { %6616 = vmatpush1.bf16.msra.mxu0 %v9330_v58  ;;  %v9404_v58 = vld [vmem:[%s14203_s1 + $0xd24] ss:$16 sps:$4 sm:$0xff]  }
  0xcc   :  { %6659 = vmatpush1.bf16.msra.mxu1 %v9333_v59  ;;  %6617 = vmatprep.subr.bf16.mxu0 %v9338_v60  ;;  %v9407_v59 = vld [vmem:[%s14203_s1 + $0xf24] ss:$16 sps:$4 sm:$0xff]   ;;  %v9402_v60 = vld [vmem:[%s14203_s1 + $0xd20] ss:$16 sps:$4 sm:$0xff]  }
  0xcd   :  { %6660 = vmatprep.subr.bf16.mxu1 %v9341_v61  ;;  %v9405_v61 = vld [vmem:[%s14203_s1 + $0xf20] ss:$16 sps:$4 sm:$0xff]  }
  0xcf   :  { %6618 = vmatpush1.bf16.msra.mxu0 %v9336_v62  ;;  %v9410_v62 = vld [vmem:[%s14203_s1 + $0xd04] ss:$16 sps:$4 sm:$0xff]  }
  0xd0   :  { %6661 = vmatpush1.bf16.msra.mxu1 %v9339_v63  ;;  %6619 = vmatprep.subr.bf16.mxu0 %v9344_v0  ;;  %v9413_v63 = vld [vmem:[%s14203_s1 + $0xf04] ss:$16 sps:$4 sm:$0xff]   ;;  %v9408_v0 = vld [vmem:[%s14203_s1 + $0xd00] ss:$16 sps:$4 sm:$0xff]  }
  0xd1   :  { %6662 = vmatprep.subr.bf16.mxu1 %v9347_v1  ;;  %v9411_v1 = vld [vmem:[%s14203_s1 + $0xf00] ss:$16 sps:$4 sm:$0xff]  }
  0xd3   :  { %6620 = vmatpush1.bf16.msra.mxu0 %v9342_v2  ;;  %v9416_v2 = vld [vmem:[%s14203_s1 + $0x10e4] ss:$16 sps:$4 sm:$0xff]  }
  0xd4   :  { %6663 = vmatpush1.bf16.msra.mxu1 %v9345_v3  ;;  %6621 = vmatprep.subr.bf16.mxu0 %v9350_v4  ;;  %v9419_v3 = vld [vmem:[%s14203_s1 + $0x12e4] ss:$16 sps:$4 sm:$0xff]   ;;  %v9414_v4 = vld [vmem:[%s14203_s1 + $0x10e0] ss:$16 sps:$4 sm:$0xff]  }
  0xd5   :  { %6664 = vmatprep.subr.bf16.mxu1 %v9353_v5  ;;  %v9417_v5 = vld [vmem:[%s14203_s1 + $0x12e0] ss:$16 sps:$4 sm:$0xff]  }
  0xd7   :  { %6622 = vmatpush1.bf16.msra.mxu0 %v9348_v6  ;;  %v11518_v6 = vld [vmem:[%s14204_s0 + $0x40] sm:$0xff] }
  0xd8   :  { %6665 = vmatpush1.bf16.msra.mxu1 %v9351_v7  ;;  %6623 = vmatprep.subr.bf16.mxu0 %v9356_v10  ;;  %v11523_v7 = vld [vmem:[%s14204_s0 + $0xc0] sm:$0xff]  ;;  %v11527_v10 = vcombine.low %v11286_v46, %v11291_v47 }
  0xd9   :  { %6666 = vmatprep.subr.bf16.mxu1 %v9359_v11  ;;  %v11531_v11 = vcombine.low %v11304_v50, %v11309_v51  ;;  %v9422_v46 = vld [vmem:[%s14203_s1 + $0x10c4] ss:$16 sps:$4 sm:$0xff]   ;;  %v11551_v50 = vcombine.high %v11518_v6, %v11523_v7 }
  0xda   :  { %v9425_v47 = vld [vmem:[%s14203_s1 + $0x12c4] ss:$16 sps:$4 sm:$0xff]  }
  0xdb   :  { %6624 = vmatpush1.bf16.msra.mxu0 %v9354_v12  ;;  %v11536_v12 = vld [vmem:[%s14204_s0 + $0x48] sm:$0xff] }
  0xdc   :  { %6667 = vmatpush1.bf16.msra.mxu1 %v9357_v13  ;;  %6625 = vmatprep.subr.bf16.mxu0 %v9362_v14  ;;  %v11541_v13 = vld [vmem:[%s14204_s0 + $0xc8] sm:$0xff]  ;;  %v9420_v14 = vld [vmem:[%s14203_s1 + $0x10c0] ss:$16 sps:$4 sm:$0xff]  }
  0xdd   :  { %6668 = vmatprep.subr.bf16.mxu1 %v9365_v15  ;;  %v11555_v51 = vcombine.high %v11536_v12, %v11541_v13  ;;  %v9423_v15 = vld [vmem:[%s14203_s1 + $0x12c0] ss:$16 sps:$4 sm:$0xff]  }
  0xdf   :  { %6626 = vmatpush1.bf16.msra.mxu0 %v9360_v16  ;;  %v9428_v16 = vld [vmem:[%s14203_s1 + $0x10a4] ss:$16 sps:$4 sm:$0xff]  }
  0xe0   :  { %6669 = vmatpush1.bf16.msra.mxu1 %v9363_v17  ;;  %6627 = vmatprep.subr.bf16.mxu0 %v9368_v18  ;;  %v9431_v17 = vld [vmem:[%s14203_s1 + $0x12a4] ss:$16 sps:$4 sm:$0xff]   ;;  %v9426_v18 = vld [vmem:[%s14203_s1 + $0x10a0] ss:$16 sps:$4 sm:$0xff]  }
  0xe1   :  { %6670 = vmatprep.subr.bf16.mxu1 %v9371_v19  ;;  %v9429_v19 = vld [vmem:[%s14203_s1 + $0x12a0] ss:$16 sps:$4 sm:$0xff]  }
  0xe3   :  { %6628 = vmatpush2.bf16.msra.mxu0 %v9366_v22  ;;  %v9434_v22 = vld [vmem:[%s14203_s1 + $0x1084] ss:$16 sps:$4 sm:$0xff]  }
  0xe4   :  { %6671 = vmatpush2.bf16.msra.mxu1 %v9369_v23  ;;  %6629 = vmatprep.subr.bf16.mxu0 %v9374_v24  ;;  %v9437_v23 = vld [vmem:[%s14203_s1 + $0x1284] ss:$16 sps:$4 sm:$0xff]   ;;  %v9432_v24 = vld [vmem:[%s14203_s1 + $0x1080] ss:$16 sps:$4 sm:$0xff]  }
  0xe5   :  { %6672 = vmatprep.subr.bf16.mxu1 %v9377_v25  ;;  %v9435_v25 = vld [vmem:[%s14203_s1 + $0x1280] ss:$16 sps:$4 sm:$0xff]  }
  0xe7   :  { %6630 = vmatpush2.bf16.msra.mxu0 %v9372_v26  ;;  %v9440_v26 = vld [vmem:[%s14203_s1 + $0x1064] ss:$16 sps:$4 sm:$0xff]  }
  0xe8   :  { %6673 = vmatpush2.bf16.msra.mxu1 %v9375_v27  ;;  %6631 = vmatprep.subr.bf16.mxu0 %v9380_v32  ;;  %v9443_v27 = vld [vmem:[%s14203_s1 + $0x1264] ss:$16 sps:$4 sm:$0xff]   ;;  %v9438_v32 = vld [vmem:[%s14203_s1 + $0x1060] ss:$16 sps:$4 sm:$0xff]  }
  0xe9   :  { %6674 = vmatprep.subr.bf16.mxu1 %v9383_v34  ;;  %v9441_v34 = vld [vmem:[%s14203_s1 + $0x1260] ss:$16 sps:$4 sm:$0xff]  }
  0xeb   :  { %6632 = vmatpush2.bf16.msra.mxu0 %v9378_v36  ;;  %v9446_v36 = vld [vmem:[%s14203_s1 + $0x1044] ss:$16 sps:$4 sm:$0xff]  }
  0xec   :  { %6675 = vmatpush2.bf16.msra.mxu1 %v9381_v37  ;;  %6633 = vmatprep.subr.bf16.mxu0 %v9386_v38  ;;  %v9449_v37 = vld [vmem:[%s14203_s1 + $0x1244] ss:$16 sps:$4 sm:$0xff]   ;;  %v9444_v38 = vld [vmem:[%s14203_s1 + $0x1040] ss:$16 sps:$4 sm:$0xff]  }
  0xed   :  { %6676 = vmatprep.subr.bf16.mxu1 %v9389_v39  ;;  %v9447_v39 = vld [vmem:[%s14203_s1 + $0x1240] ss:$16 sps:$4 sm:$0xff]  }
  0xef   :  { %6634 = vmatpush2.bf16.msra.mxu0 %v9384_v40  ;;  %v9452_v40 = vld [vmem:[%s14203_s1 + $0x1024] ss:$16 sps:$4 sm:$0xff]  }
  0xf0   :  { %6677 = vmatpush2.bf16.msra.mxu1 %v9387_v42  ;;  %6635 = vmatprep.subr.bf16.mxu0 %v9392_v44  ;;  %v9455_v42 = vld [vmem:[%s14203_s1 + $0x1224] ss:$16 sps:$4 sm:$0xff]   ;;  %v9450_v44 = vld [vmem:[%s14203_s1 + $0x1020] ss:$16 sps:$4 sm:$0xff]  }
  0xf1   :  { %6678 = vmatprep.subr.bf16.mxu1 %v9395_v45  ;;  %v9453_v45 = vld [vmem:[%s14203_s1 + $0x1220] ss:$16 sps:$4 sm:$0xff]  }
  0xf3   :  { %6636 = vmatpush2.bf16.msra.mxu0 %v9390_v28  ;;  %v9458_v28 = vld [vmem:[%s14203_s1 + $0x1004] ss:$16 sps:$4 sm:$0xff]  }
  0xf4   :  { %6679 = vmatpush2.bf16.msra.mxu1 %v9393_v29  ;;  %6637 = vmatprep.subr.bf16.mxu0 %v9398_v52  ;;  %v9461_v29 = vld [vmem:[%s14203_s1 + $0x1204] ss:$16 sps:$4 sm:$0xff]   ;;  %v9456_v52 = vld [vmem:[%s14203_s1 + $0x1000] ss:$16 sps:$4 sm:$0xff]  }
  0xf5   :  { %6680 = vmatprep.subr.bf16.mxu1 %v9401_v54  ;;  %v9459_v54 = vld [vmem:[%s14203_s1 + $0x1200] ss:$16 sps:$4 sm:$0xff]  }
  0xf7   :  { %6638 = vmatpush2.bf16.msra.mxu0 %v9396_v56  ;;  %v9464_v56 = vld [vmem:[%s14203_s1 + $0x11e4] ss:$16 sps:$4 sm:$0xff]  }
  0xf8   :  { %6681 = vmatpush2.bf16.msra.mxu1 %v9399_v57  ;;  %6639 = vmatprep.subr.bf16.mxu0 %v9404_v58  ;;  %v9467_v57 = vld [vmem:[%s14203_s1 + $0x13e4] ss:$16 sps:$4 sm:$0xff]   ;;  %v9462_v58 = vld [vmem:[%s14203_s1 + $0x11e0] ss:$16 sps:$4 sm:$0xff]  }
  0xf9   :  { %6682 = vmatprep.subr.bf16.mxu1 %v9407_v59  ;;  %v9465_v59 = vld [vmem:[%s14203_s1 + $0x13e0] ss:$16 sps:$4 sm:$0xff]  }
  0xfb   :  { %6640 = vmatpush2.bf16.msra.mxu0 %v9402_v60  ;;  %v9470_v60 = vld [vmem:[%s14203_s1 + $0x11c4] ss:$16 sps:$4 sm:$0xff]  }
  0xfc   :  { %6683 = vmatpush2.bf16.msra.mxu1 %v9405_v61  ;;  %6641 = vmatprep.subr.bf16.mxu0 %v9410_v62  ;;  %v9473_v61 = vld [vmem:[%s14203_s1 + $0x13c4] ss:$16 sps:$4 sm:$0xff]   ;;  %v9468_v62 = vld [vmem:[%s14203_s1 + $0x11c0] ss:$16 sps:$4 sm:$0xff]  }
  0xfd   :  { %6684 = vmatprep.subr.bf16.mxu1 %v9413_v63  ;;  %v9471_v63 = vld [vmem:[%s14203_s1 + $0x13c0] ss:$16 sps:$4 sm:$0xff]  }
  0xff   :  { %6642 = vmatpush2.bf16.msra.mxu0 %v9408_v0  ;;  %v9476_v0 = vld [vmem:[%s14203_s1 + $0x11a4] ss:$16 sps:$4 sm:$0xff]  }
 0x100   :  { %6685 = vmatpush2.bf16.msra.mxu1 %v9411_v1  ;;  %6697 = vmatprep.subr.bf16.mxu0 %v9416_v2  ;;  %v9479_v1 = vld [vmem:[%s14203_s1 + $0x13a4] ss:$16 sps:$4 sm:$0xff]   ;;  %v9474_v2 = vld [vmem:[%s14203_s1 + $0x11a0] ss:$16 sps:$4 sm:$0xff]  }
 0x101   :  { %6740 = vmatprep.subr.bf16.mxu1 %v9419_v3  ;;  %v9477_v3 = vld [vmem:[%s14203_s1 + $0x13a0] ss:$16 sps:$4 sm:$0xff]  }
 0x102   :  { %6644 = vmatmul.mubr.bf16.vlgmr.msra.gmra.mxu0 %v11527_v10 }
 0x103   :  { %6687 = vmatmul.mubr.bf16.vlgmr.msra.gmra.mxu1 %v11531_v11  ;;  %6698 = vmatpush1.bf16.msra.mxu0 %v9414_v4  ;;  %v9482_v4 = vld [vmem:[%s14203_s1 + $0x1184] ss:$16 sps:$4 sm:$0xff]  }
 0x104   :  { %6741 = vmatpush1.bf16.msra.mxu1 %v9417_v5  ;;  %6699 = vmatprep.subr.bf16.mxu0 %v9422_v46  ;;  %v9485_v5 = vld [vmem:[%s14203_s1 + $0x1384] ss:$16 sps:$4 sm:$0xff]   ;;  %v9480_v46 = vld [vmem:[%s14203_s1 + $0x1180] ss:$16 sps:$4 sm:$0xff]  }
 0x105   :  { %6742 = vmatprep.subr.bf16.mxu1 %v9425_v47  ;;  %6729 = vmatprep.mubr.bf16.mxu0 %v11551_v50  ;;  %v9483_v47 = vld [vmem:[%s14203_s1 + $0x1380] ss:$16 sps:$4 sm:$0xff]  }
 0x106   :  { %6772 = vmatprep.mubr.bf16.mxu1 %v11555_v51 }
 0x107   :  { %6700 = vmatpush1.bf16.msra.mxu0 %v9420_v14  ;;  %v9488_v14 = vld [vmem:[%s14203_s1 + $0x1164] ss:$16 sps:$4 sm:$0xff]  }
 0x108   :  { %6743 = vmatpush1.bf16.msra.mxu1 %v9423_v15  ;;  %6701 = vmatprep.subr.bf16.mxu0 %v9428_v16  ;;  %v9491_v15 = vld [vmem:[%s14203_s1 + $0x1364] ss:$16 sps:$4 sm:$0xff]   ;;  %v9486_v16 = vld [vmem:[%s14203_s1 + $0x1160] ss:$16 sps:$4 sm:$0xff]  }
 0x109   :  { %6744 = vmatprep.subr.bf16.mxu1 %v9431_v17  ;;  %v9489_v17 = vld [vmem:[%s14203_s1 + $0x1360] ss:$16 sps:$4 sm:$0xff]  }
 0x10b   :  { %6702 = vmatpush1.bf16.msra.mxu0 %v9426_v18  ;;  %v9494_v18 = vld [vmem:[%s14203_s1 + $0x1144] ss:$16 sps:$4 sm:$0xff]  }
 0x10c   :  { %6745 = vmatpush1.bf16.msra.mxu1 %v9429_v19  ;;  %6703 = vmatprep.subr.bf16.mxu0 %v9434_v22  ;;  %v9497_v19 = vld [vmem:[%s14203_s1 + $0x1344] ss:$16 sps:$4 sm:$0xff]   ;;  %v9492_v22 = vld [vmem:[%s14203_s1 + $0x1140] ss:$16 sps:$4 sm:$0xff]  }
 0x10d   :  { %6746 = vmatprep.subr.bf16.mxu1 %v9437_v23  ;;  %v9495_v23 = vld [vmem:[%s14203_s1 + $0x1340] ss:$16 sps:$4 sm:$0xff]  }
 0x10f   :  { %6704 = vmatpush1.bf16.msra.mxu0 %v9432_v24  ;;  %v9500_v24 = vld [vmem:[%s14203_s1 + $0x1124] ss:$16 sps:$4 sm:$0xff]  }
 0x110   :  { %6747 = vmatpush1.bf16.msra.mxu1 %v9435_v25  ;;  %6705 = vmatprep.subr.bf16.mxu0 %v9440_v26  ;;  %v9503_v25 = vld [vmem:[%s14203_s1 + $0x1324] ss:$16 sps:$4 sm:$0xff]   ;;  %v9498_v26 = vld [vmem:[%s14203_s1 + $0x1120] ss:$16 sps:$4 sm:$0xff]  }
 0x111   :  { %6748 = vmatprep.subr.bf16.mxu1 %v9443_v27  ;;  %v9501_v27 = vld [vmem:[%s14203_s1 + $0x1320] ss:$16 sps:$4 sm:$0xff]  }
 0x113   :  { %6706 = vmatpush1.bf16.msra.mxu0 %v9438_v32  ;;  %v9506_v32 = vld [vmem:[%s14203_s1 + $0x1104] ss:$16 sps:$4 sm:$0xff]  }
 0x114   :  { %6749 = vmatpush1.bf16.msra.mxu1 %v9441_v34  ;;  %6707 = vmatprep.subr.bf16.mxu0 %v9446_v36  ;;  %v9509_v34 = vld [vmem:[%s14203_s1 + $0x1304] ss:$16 sps:$4 sm:$0xff]   ;;  %v9504_v36 = vld [vmem:[%s14203_s1 + $0x1100] ss:$16 sps:$4 sm:$0xff]  }
 0x115   :  { %6750 = vmatprep.subr.bf16.mxu1 %v9449_v37  ;;  %v9507_v37 = vld [vmem:[%s14203_s1 + $0x1300] ss:$16 sps:$4 sm:$0xff]  }
 0x117   :  { %6708 = vmatpush1.bf16.msra.mxu0 %v9444_v38  ;;  %v9512_v38 = vld [vmem:[%s14203_s1 + $0x14e4] ss:$16 sps:$4 sm:$0xff]  }
 0x118   :  { %6751 = vmatpush1.bf16.msra.mxu1 %v9447_v39  ;;  %6709 = vmatprep.subr.bf16.mxu0 %v9452_v40  ;;  %v9515_v39 = vld [vmem:[%s14203_s1 + $0x16e4] ss:$16 sps:$4 sm:$0xff]  }
 0x119   :  { %6752 = vmatprep.subr.bf16.mxu1 %v9455_v42  ;;  %v11744_v40 = vld [vmem:[%s14204_s0 + $0x50] sm:$0xff] }
 0x11a   :  { %v9510_v42 = vld [vmem:[%s14203_s1 + $0x14e0] ss:$16 sps:$4 sm:$0xff]  }
 0x11b   :  { %6710 = vmatpush1.bf16.msra.mxu0 %v9450_v44  ;;  %v11751_v44 = vcombine.low %v11518_v6, %v11523_v7  ;;  %v9513_v6 = vld [vmem:[%s14203_s1 + $0x16e0] ss:$16 sps:$4 sm:$0xff]   ;;  %v9518_v7 = vld [vmem:[%s14203_s1 + $0x14c4] ss:$16 sps:$4 sm:$0xff]  }
 0x11c   :  { %6753 = vmatpush1.bf16.msra.mxu1 %v9453_v45  ;;  %6711 = vmatprep.subr.bf16.mxu0 %v9458_v28  ;;  %v11755_v45 = vcombine.low %v11536_v12, %v11541_v13  ;;  %v11760_v28 = vld [vmem:[%s14204_s0 + $0xd0] sm:$0xff] }
 0x11d   :  { %6754 = vmatprep.subr.bf16.mxu1 %v9461_v29  ;;  %v11765_v29 = vld [vmem:[%s14204_s0 + $0x58] sm:$0xff]  ;;  %v9521_v12 = vld [vmem:[%s14203_s1 + $0x16c4] ss:$16 sps:$4 sm:$0xff]   ;;  %v9516_v13 = vld [vmem:[%s14203_s1 + $0x14c0] ss:$16 sps:$4 sm:$0xff]  }
 0x11f   :  { %6712 = vmatpush1.bf16.msra.mxu0 %v9456_v52  ;;  %v11770_v52 = vld [vmem:[%s14204_s0 + $0xd8] sm:$0xff] }
 0x120   :  { %6755 = vmatpush1.bf16.msra.mxu1 %v9459_v54  ;;  %6713 = vmatprep.subr.bf16.mxu0 %v9464_v56  ;;  %v9519_v54 = vld [vmem:[%s14203_s1 + $0x16c0] ss:$16 sps:$4 sm:$0xff]   ;;  %v11789_v56 = vcombine.high %v11744_v40, %v11760_v28 }
 0x121   :  { %6756 = vmatprep.subr.bf16.mxu1 %v9467_v57  ;;  %v11793_v57 = vcombine.high %v11765_v29, %v11770_v52 }
 0x123   :  { %6714 = vmatpush2.bf16.msra.mxu0 %v9462_v58  ;;  %v9524_v58 = vld [vmem:[%s14203_s1 + $0x14a4] ss:$16 sps:$4 sm:$0xff]  }
 0x124   :  { %6757 = vmatpush2.bf16.msra.mxu1 %v9465_v59  ;;  %6715 = vmatprep.subr.bf16.mxu0 %v9470_v60  ;;  %v9527_v59 = vld [vmem:[%s14203_s1 + $0x16a4] ss:$16 sps:$4 sm:$0xff]   ;;  %v9522_v60 = vld [vmem:[%s14203_s1 + $0x14a0] ss:$16 sps:$4 sm:$0xff]  }
 0x125   :  { %6758 = vmatprep.subr.bf16.mxu1 %v9473_v61  ;;  %v9525_v61 = vld [vmem:[%s14203_s1 + $0x16a0] ss:$16 sps:$4 sm:$0xff]  }
 0x127   :  { %6716 = vmatpush2.bf16.msra.mxu0 %v9468_v62  ;;  %v9530_v62 = vld [vmem:[%s14203_s1 + $0x1484] ss:$16 sps:$4 sm:$0xff]  }
 0x128   :  { %6759 = vmatpush2.bf16.msra.mxu1 %v9471_v63  ;;  %6717 = vmatprep.subr.bf16.mxu0 %v9476_v0  ;;  %v9533_v63 = vld [vmem:[%s14203_s1 + $0x1684] ss:$16 sps:$4 sm:$0xff]   ;;  %v9528_v0 = vld [vmem:[%s14203_s1 + $0x1480] ss:$16 sps:$4 sm:$0xff]  }
 0x129   :  { %6760 = vmatprep.subr.bf16.mxu1 %v9479_v1  ;;  %v9531_v1 = vld [vmem:[%s14203_s1 + $0x1680] ss:$16 sps:$4 sm:$0xff]  }
 0x12b   :  { %6718 = vmatpush2.bf16.msra.mxu0 %v9474_v2  ;;  %v9536_v2 = vld [vmem:[%s14203_s1 + $0x1464] ss:$16 sps:$4 sm:$0xff]  }
 0x12c   :  { %6761 = vmatpush2.bf16.msra.mxu1 %v9477_v3  ;;  %6719 = vmatprep.subr.bf16.mxu0 %v9482_v4  ;;  %v9539_v3 = vld [vmem:[%s14203_s1 + $0x1664] ss:$16 sps:$4 sm:$0xff]   ;;  %v9534_v4 = vld [vmem:[%s14203_s1 + $0x1460] ss:$16 sps:$4 sm:$0xff]  }
 0x12d   :  { %6762 = vmatprep.subr.bf16.mxu1 %v9485_v5  ;;  %v9537_v5 = vld [vmem:[%s14203_s1 + $0x1660] ss:$16 sps:$4 sm:$0xff]  }
 0x12f   :  { %6720 = vmatpush2.bf16.msra.mxu0 %v9480_v46  ;;  %v9542_v46 = vld [vmem:[%s14203_s1 + $0x1444] ss:$16 sps:$4 sm:$0xff]  }
 0x130   :  { %6763 = vmatpush2.bf16.msra.mxu1 %v9483_v47  ;;  %6721 = vmatprep.subr.bf16.mxu0 %v9488_v14  ;;  %v9545_v47 = vld [vmem:[%s14203_s1 + $0x1644] ss:$16 sps:$4 sm:$0xff]   ;;  %v9540_v14 = vld [vmem:[%s14203_s1 + $0x1440] ss:$16 sps:$4 sm:$0xff]  }
 0x131   :  { %6764 = vmatprep.subr.bf16.mxu1 %v9491_v15  ;;  %v9543_v15 = vld [vmem:[%s14203_s1 + $0x1640] ss:$16 sps:$4 sm:$0xff]  }
 0x133   :  { %6722 = vmatpush2.bf16.msra.mxu0 %v9486_v16  ;;  %v9548_v16 = vld [vmem:[%s14203_s1 + $0x1424] ss:$16 sps:$4 sm:$0xff]  }
 0x134   :  { %6765 = vmatpush2.bf16.msra.mxu1 %v9489_v17  ;;  %6723 = vmatprep.subr.bf16.mxu0 %v9494_v18  ;;  %v9551_v17 = vld [vmem:[%s14203_s1 + $0x1624] ss:$16 sps:$4 sm:$0xff]   ;;  %v9546_v18 = vld [vmem:[%s14203_s1 + $0x1420] ss:$16 sps:$4 sm:$0xff]  }
 0x135   :  { %6766 = vmatprep.subr.bf16.mxu1 %v9497_v19  ;;  %v9549_v19 = vld [vmem:[%s14203_s1 + $0x1620] ss:$16 sps:$4 sm:$0xff]  }
 0x137   :  { %6724 = vmatpush2.bf16.msra.mxu0 %v9492_v22  ;;  %v9554_v22 = vld [vmem:[%s14203_s1 + $0x1404] ss:$16 sps:$4 sm:$0xff]  }
 0x138   :  { %6767 = vmatpush2.bf16.msra.mxu1 %v9495_v23  ;;  %6725 = vmatprep.subr.bf16.mxu0 %v9500_v24  ;;  %v9557_v23 = vld [vmem:[%s14203_s1 + $0x1604] ss:$16 sps:$4 sm:$0xff]   ;;  %v9552_v24 = vld [vmem:[%s14203_s1 + $0x1400] ss:$16 sps:$4 sm:$0xff]  }
 0x139   :  { %6768 = vmatprep.subr.bf16.mxu1 %v9503_v25  ;;  %v9555_v25 = vld [vmem:[%s14203_s1 + $0x1600] ss:$16 sps:$4 sm:$0xff]  }
 0x13b   :  { %6726 = vmatpush2.bf16.msra.mxu0 %v9498_v26  ;;  %v9560_v26 = vld [vmem:[%s14203_s1 + $0x15e4] ss:$16 sps:$4 sm:$0xff]  }
 0x13c   :  { %6769 = vmatpush2.bf16.msra.mxu1 %v9501_v27  ;;  %6727 = vmatprep.subr.bf16.mxu0 %v9506_v32  ;;  %v9563_v27 = vld [vmem:[%s14203_s1 + $0x17e4] ss:$16 sps:$4 sm:$0xff]   ;;  %v9558_v32 = vld [vmem:[%s14203_s1 + $0x15e0] ss:$16 sps:$4 sm:$0xff]  }
 0x13d   :  { %6770 = vmatprep.subr.bf16.mxu1 %v9509_v34  ;;  %v9561_v34 = vld [vmem:[%s14203_s1 + $0x17e0] ss:$16 sps:$4 sm:$0xff]  }
 0x13f   :  { %6728 = vmatpush2.bf16.msra.mxu0 %v9504_v36  ;;  %v9566_v36 = vld [vmem:[%s14203_s1 + $0x15c4] ss:$16 sps:$4 sm:$0xff]  }
 0x140   :  { %6771 = vmatpush2.bf16.msra.mxu1 %v9507_v37  ;;  %6783 = vmatprep.subr.bf16.mxu0 %v9512_v38  ;;  %v9569_v37 = vld [vmem:[%s14203_s1 + $0x17c4] ss:$16 sps:$4 sm:$0xff]   ;;  %v9564_v38 = vld [vmem:[%s14203_s1 + $0x15c0] ss:$16 sps:$4 sm:$0xff]  }
 0x141   :  { %6826 = vmatprep.subr.bf16.mxu1 %v9515_v39  ;;  %v9567_v39 = vld [vmem:[%s14203_s1 + $0x17c0] ss:$16 sps:$4 sm:$0xff]  }
 0x142   :  { %6730 = vmatmul.mubr.bf16.vlgmr.msra.gmra.mxu0 %v11751_v44 }
 0x143   :  { %6773 = vmatmul.mubr.bf16.vlgmr.msra.gmra.mxu1 %v11755_v45  ;;  %6784 = vmatpush1.bf16.msra.mxu0 %v9510_v42  ;;  %v9572_v42 = vld [vmem:[%s14203_s1 + $0x15a4] ss:$16 sps:$4 sm:$0xff]  }
 0x144   :  { %6827 = vmatpush1.bf16.msra.mxu1 %v9513_v6  ;;  %6785 = vmatprep.subr.bf16.mxu0 %v9518_v7  ;;  %v9575_v6 = vld [vmem:[%s14203_s1 + $0x17a4] ss:$16 sps:$4 sm:$0xff]   ;;  %v9570_v7 = vld [vmem:[%s14203_s1 + $0x15a0] ss:$16 sps:$4 sm:$0xff]  }
 0x145   :  { %6828 = vmatprep.subr.bf16.mxu1 %v9521_v12  ;;  %6815 = vmatprep.mubr.bf16.mxu0 %v11789_v56  ;;  %v9573_v12 = vld [vmem:[%s14203_s1 + $0x17a0] ss:$16 sps:$4 sm:$0xff]  }
 0x146   :  { %6858 = vmatprep.mubr.bf16.mxu1 %v11793_v57 }
 0x147   :  { %6786 = vmatpush1.bf16.msra.mxu0 %v9516_v13  ;;  %v9578_v13 = vld [vmem:[%s14203_s1 + $0x1584] ss:$16 sps:$4 sm:$0xff]  }
 0x148   :  { %6829 = vmatpush1.bf16.msra.mxu1 %v9519_v54  ;;  %6787 = vmatprep.subr.bf16.mxu0 %v9524_v58  ;;  %v9581_v54 = vld [vmem:[%s14203_s1 + $0x1784] ss:$16 sps:$4 sm:$0xff]   ;;  %v9576_v58 = vld [vmem:[%s14203_s1 + $0x1580] ss:$16 sps:$4 sm:$0xff]  }
 0x149   :  { %6830 = vmatprep.subr.bf16.mxu1 %v9527_v59  ;;  %v9579_v59 = vld [vmem:[%s14203_s1 + $0x1780] ss:$16 sps:$4 sm:$0xff]  }
 0x14b   :  { %6788 = vmatpush1.bf16.msra.mxu0 %v9522_v60  ;;  %v9584_v60 = vld [vmem:[%s14203_s1 + $0x1564] ss:$16 sps:$4 sm:$0xff]  }
 0x14c   :  { %6831 = vmatpush1.bf16.msra.mxu1 %v9525_v61  ;;  %6789 = vmatprep.subr.bf16.mxu0 %v9530_v62  ;;  %v9587_v61 = vld [vmem:[%s14203_s1 + $0x1764] ss:$16 sps:$4 sm:$0xff]   ;;  %v9582_v62 = vld [vmem:[%s14203_s1 + $0x1560] ss:$16 sps:$4 sm:$0xff]  }
 0x14d   :  { %6832 = vmatprep.subr.bf16.mxu1 %v9533_v63  ;;  %v9585_v63 = vld [vmem:[%s14203_s1 + $0x1760] ss:$16 sps:$4 sm:$0xff]  }
 0x14f   :  { %6790 = vmatpush1.bf16.msra.mxu0 %v9528_v0  ;;  %v9590_v0 = vld [vmem:[%s14203_s1 + $0x1544] ss:$16 sps:$4 sm:$0xff]  }
 0x150   :  { %6833 = vmatpush1.bf16.msra.mxu1 %v9531_v1  ;;  %6791 = vmatprep.subr.bf16.mxu0 %v9536_v2  ;;  %v9593_v1 = vld [vmem:[%s14203_s1 + $0x1744] ss:$16 sps:$4 sm:$0xff]   ;;  %v9588_v2 = vld [vmem:[%s14203_s1 + $0x1540] ss:$16 sps:$4 sm:$0xff]  }
 0x151   :  { %6834 = vmatprep.subr.bf16.mxu1 %v9539_v3  ;;  %v9591_v3 = vld [vmem:[%s14203_s1 + $0x1740] ss:$16 sps:$4 sm:$0xff]  }
 0x153   :  { %6792 = vmatpush1.bf16.msra.mxu0 %v9534_v4  ;;  %v9596_v4 = vld [vmem:[%s14203_s1 + $0x1524] ss:$16 sps:$4 sm:$0xff]  }
 0x154   :  { %6835 = vmatpush1.bf16.msra.mxu1 %v9537_v5  ;;  %6793 = vmatprep.subr.bf16.mxu0 %v9542_v46  ;;  %v9599_v5 = vld [vmem:[%s14203_s1 + $0x1724] ss:$16 sps:$4 sm:$0xff]   ;;  %v9594_v46 = vld [vmem:[%s14203_s1 + $0x1520] ss:$16 sps:$4 sm:$0xff]  }
 0x155   :  { %6836 = vmatprep.subr.bf16.mxu1 %v9545_v47  ;;  %v9597_v47 = vld [vmem:[%s14203_s1 + $0x1720] ss:$16 sps:$4 sm:$0xff]  }
 0x157   :  { %6794 = vmatpush1.bf16.msra.mxu0 %v9540_v14  ;;  %v9602_v14 = vld [vmem:[%s14203_s1 + $0x1504] ss:$16 sps:$4 sm:$0xff]  }
 0x158   :  { %6837 = vmatpush1.bf16.msra.mxu1 %v9543_v15  ;;  %6795 = vmatprep.subr.bf16.mxu0 %v9548_v16  ;;  %v9605_v15 = vld [vmem:[%s14203_s1 + $0x1704] ss:$16 sps:$4 sm:$0xff]   ;;  %v9600_v16 = vld [vmem:[%s14203_s1 + $0x1500] ss:$16 sps:$4 sm:$0xff]  }
 0x159   :  { %6838 = vmatprep.subr.bf16.mxu1 %v9551_v17  ;;  %v9603_v17 = vld [vmem:[%s14203_s1 + $0x1700] ss:$16 sps:$4 sm:$0xff]  }
 0x15b   :  { %6796 = vmatpush1.bf16.msra.mxu0 %v9546_v18  ;;  %v9608_v18 = vld [vmem:[%s14203_s1 + $0x18e4] ss:$16 sps:$4 sm:$0xff]  }
 0x15c   :  { %6839 = vmatpush1.bf16.msra.mxu1 %v9549_v19  ;;  %6797 = vmatprep.subr.bf16.mxu0 %v9554_v22  ;;  %v9611_v19 = vld [vmem:[%s14203_s1 + $0x1ae4] ss:$16 sps:$4 sm:$0xff]  }
 0x15d   :  { %6840 = vmatprep.subr.bf16.mxu1 %v9557_v23  ;;  %v11976_v22 = vld [vmem:[%s14204_s0 + $0x60] sm:$0xff] }
 0x15e   :  { %v9606_v23 = vld [vmem:[%s14203_s1 + $0x18e0] ss:$16 sps:$4 sm:$0xff]  }
 0x15f   :  { %6798 = vmatpush1.bf16.msra.mxu0 %v9552_v24  ;;  %v11983_v24 = vcombine.low %v11744_v40, %v11760_v28  ;;  %v9609_v40 = vld [vmem:[%s14203_s1 + $0x1ae0] ss:$16 sps:$4 sm:$0xff]   ;;  %v9614_v28 = vld [vmem:[%s14203_s1 + $0x18c4] ss:$16 sps:$4 sm:$0xff]  }
 0x160   :  { %6841 = vmatpush1.bf16.msra.mxu1 %v9555_v25  ;;  %6799 = vmatprep.subr.bf16.mxu0 %v9560_v26  ;;  %v11987_v25 = vcombine.low %v11765_v29, %v11770_v52  ;;  %v11992_v26 = vld [vmem:[%s14204_s0 + $0xe0] sm:$0xff] }
 0x161   :  { %6842 = vmatprep.subr.bf16.mxu1 %v9563_v27  ;;  %v11997_v27 = vld [vmem:[%s14204_s0 + $0x68] sm:$0xff]  ;;  %v9617_v29 = vld [vmem:[%s14203_s1 + $0x1ac4] ss:$16 sps:$4 sm:$0xff]   ;;  %v9612_v52 = vld [vmem:[%s14203_s1 + $0x18c0] ss:$16 sps:$4 sm:$0xff]  }
 0x163   :  { %6800 = vmatpush2.bf16.msra.mxu0 %v9558_v32  ;;  %v12002_v32 = vld [vmem:[%s14204_s0 + $0xe8] sm:$0xff] }
 0x164   :  { %6843 = vmatpush2.bf16.msra.mxu1 %v9561_v34  ;;  %6801 = vmatprep.subr.bf16.mxu0 %v9566_v36  ;;  %v9615_v34 = vld [vmem:[%s14203_s1 + $0x1ac0] ss:$16 sps:$4 sm:$0xff]   ;;  %v12021_v36 = vcombine.high %v11976_v22, %v11992_v26 }
 0x165   :  { %6844 = vmatprep.subr.bf16.mxu1 %v9569_v37  ;;  %v12025_v37 = vcombine.high %v11997_v27, %v12002_v32 }
 0x167   :  { %6802 = vmatpush2.bf16.msra.mxu0 %v9564_v38  ;;  %14215 = vst [vmem:[#allocation2_spill] sm:$0xff] %v12025_v37  ;;  %v9620_v38 = vld [vmem:[%s14203_s1 + $0x18a4] ss:$16 sps:$4 sm:$0xff]  }
 0x168   :  { %6845 = vmatpush2.bf16.msra.mxu1 %v9567_v39  ;;  %6803 = vmatprep.subr.bf16.mxu0 %v9572_v42  ;;  %v9623_v39 = vld [vmem:[%s14203_s1 + $0x1aa4] ss:$16 sps:$4 sm:$0xff]   ;;  %v9618_v42 = vld [vmem:[%s14203_s1 + $0x18a0] ss:$16 sps:$4 sm:$0xff]  }
 0x169   :  { %6846 = vmatprep.subr.bf16.mxu1 %v9575_v6  ;;  %v9621_v6 = vld [vmem:[%s14203_s1 + $0x1aa0] ss:$16 sps:$4 sm:$0xff]  }
 0x16b   :  { %6804 = vmatpush2.bf16.msra.mxu0 %v9570_v7  ;;  %v9626_v7 = vld [vmem:[%s14203_s1 + $0x1884] ss:$16 sps:$4 sm:$0xff]  }
 0x16c   :  { %6847 = vmatpush2.bf16.msra.mxu1 %v9573_v12  ;;  %6805 = vmatprep.subr.bf16.mxu0 %v9578_v13  ;;  %v9629_v12 = vld [vmem:[%s14203_s1 + $0x1a84] ss:$16 sps:$4 sm:$0xff]   ;;  %v9624_v13 = vld [vmem:[%s14203_s1 + $0x1880] ss:$16 sps:$4 sm:$0xff]  }
 0x16d   :  { %6848 = vmatprep.subr.bf16.mxu1 %v9581_v54  ;;  %v9627_v54 = vld [vmem:[%s14203_s1 + $0x1a80] ss:$16 sps:$4 sm:$0xff]  }
 0x16f   :  { %6806 = vmatpush2.bf16.msra.mxu0 %v9576_v58  ;;  %v9632_v58 = vld [vmem:[%s14203_s1 + $0x1864] ss:$16 sps:$4 sm:$0xff]  }
 0x170   :  { %6849 = vmatpush2.bf16.msra.mxu1 %v9579_v59  ;;  %6807 = vmatprep.subr.bf16.mxu0 %v9584_v60  ;;  %v9635_v59 = vld [vmem:[%s14203_s1 + $0x1a64] ss:$16 sps:$4 sm:$0xff]   ;;  %v9630_v60 = vld [vmem:[%s14203_s1 + $0x1860] ss:$16 sps:$4 sm:$0xff]  }
 0x171   :  { %6850 = vmatprep.subr.bf16.mxu1 %v9587_v61  ;;  %v9633_v61 = vld [vmem:[%s14203_s1 + $0x1a60] ss:$16 sps:$4 sm:$0xff]  }
 0x173   :  { %6808 = vmatpush2.bf16.msra.mxu0 %v9582_v62  ;;  %v9638_v62 = vld [vmem:[%s14203_s1 + $0x1844] ss:$16 sps:$4 sm:$0xff]  }
 0x174   :  { %6851 = vmatpush2.bf16.msra.mxu1 %v9585_v63  ;;  %6809 = vmatprep.subr.bf16.mxu0 %v9590_v0  ;;  %v9641_v63 = vld [vmem:[%s14203_s1 + $0x1a44] ss:$16 sps:$4 sm:$0xff]   ;;  %v9636_v0 = vld [vmem:[%s14203_s1 + $0x1840] ss:$16 sps:$4 sm:$0xff]  }
 0x175   :  { %6852 = vmatprep.subr.bf16.mxu1 %v9593_v1  ;;  %v9639_v1 = vld [vmem:[%s14203_s1 + $0x1a40] ss:$16 sps:$4 sm:$0xff]  }
 0x177   :  { %6810 = vmatpush2.bf16.msra.mxu0 %v9588_v2  ;;  %v9644_v2 = vld [vmem:[%s14203_s1 + $0x1824] ss:$16 sps:$4 sm:$0xff]  }
 0x178   :  { %6853 = vmatpush2.bf16.msra.mxu1 %v9591_v3  ;;  %6811 = vmatprep.subr.bf16.mxu0 %v9596_v4  ;;  %v9647_v3 = vld [vmem:[%s14203_s1 + $0x1a24] ss:$16 sps:$4 sm:$0xff]   ;;  %v9642_v4 = vld [vmem:[%s14203_s1 + $0x1820] ss:$16 sps:$4 sm:$0xff]  }
 0x179   :  { %6854 = vmatprep.subr.bf16.mxu1 %v9599_v5  ;;  %v9645_v5 = vld [vmem:[%s14203_s1 + $0x1a20] ss:$16 sps:$4 sm:$0xff]  }
 0x17b   :  { %6812 = vmatpush2.bf16.msra.mxu0 %v9594_v46  ;;  %v9650_v46 = vld [vmem:[%s14203_s1 + $0x1804] ss:$16 sps:$4 sm:$0xff]  }
 0x17c   :  { %6855 = vmatpush2.bf16.msra.mxu1 %v9597_v47  ;;  %6813 = vmatprep.subr.bf16.mxu0 %v9602_v14  ;;  %v9653_v47 = vld [vmem:[%s14203_s1 + $0x1a04] ss:$16 sps:$4 sm:$0xff]   ;;  %v9648_v14 = vld [vmem:[%s14203_s1 + $0x1800] ss:$16 sps:$4 sm:$0xff]  }
 0x17d   :  { %6856 = vmatprep.subr.bf16.mxu1 %v9605_v15  ;;  %v9651_v15 = vld [vmem:[%s14203_s1 + $0x1a00] ss:$16 sps:$4 sm:$0xff]  }
 0x17f   :  { %6814 = vmatpush2.bf16.msra.mxu0 %v9600_v16  ;;  %v9656_v16 = vld [vmem:[%s14203_s1 + $0x19e4] ss:$16 sps:$4 sm:$0xff]  }
 0x180   :  { %6857 = vmatpush2.bf16.msra.mxu1 %v9603_v17  ;;  %6869 = vmatprep.subr.bf16.mxu0 %v9608_v18  ;;  %v9659_v17 = vld [vmem:[%s14203_s1 + $0x1be4] ss:$16 sps:$4 sm:$0xff]   ;;  %v9654_v18 = vld [vmem:[%s14203_s1 + $0x19e0] ss:$16 sps:$4 sm:$0xff]  }
 0x181   :  { %6912 = vmatprep.subr.bf16.mxu1 %v9611_v19  ;;  %v9657_v19 = vld [vmem:[%s14203_s1 + $0x1be0] ss:$16 sps:$4 sm:$0xff]  }
 0x182   :  { %6816 = vmatmul.mubr.bf16.vlgmr.msra.gmra.mxu0 %v11983_v24 }
 0x183   :  { %6859 = vmatmul.mubr.bf16.vlgmr.msra.gmra.mxu1 %v11987_v25  ;;  %6870 = vmatpush1.bf16.msra.mxu0 %v9606_v23  ;;  %v9662_v23 = vld [vmem:[%s14203_s1 + $0x19c4] ss:$16 sps:$4 sm:$0xff]  }
 0x184   :  { %6913 = vmatpush1.bf16.msra.mxu1 %v9609_v40  ;;  %6871 = vmatprep.subr.bf16.mxu0 %v9614_v28  ;;  %v9665_v40 = vld [vmem:[%s14203_s1 + $0x1bc4] ss:$16 sps:$4 sm:$0xff]   ;;  %v9660_v28 = vld [vmem:[%s14203_s1 + $0x19c0] ss:$16 sps:$4 sm:$0xff]  }
 0x185   :  { %6914 = vmatprep.subr.bf16.mxu1 %v9617_v29  ;;  %6901 = vmatprep.mubr.bf16.mxu0 %v12021_v36  ;;  %v9663_v29 = vld [vmem:[%s14203_s1 + $0x1bc0] ss:$16 sps:$4 sm:$0xff]  }
 0x186   :  { %6944 = vmatprep.mubr.bf16.mxu1 %v12025_v37  ;;  %v10044_v37 = vld [vmem:[%s14203_s1 + $0x9c8] ss:$16 sps:$4 sm:$0xff]  }
 0x187   :  { %6872 = vmatpush1.bf16.msra.mxu0 %v9612_v52  ;;  %v9668_v52 = vld [vmem:[%s14203_s1 + $0x19a4] ss:$16 sps:$4 sm:$0xff]  }
 0x188   :  { %6915 = vmatpush1.bf16.msra.mxu1 %v9615_v34  ;;  %6873 = vmatprep.subr.bf16.mxu0 %v9620_v38  ;;  %v9671_v34 = vld [vmem:[%s14203_s1 + $0x1ba4] ss:$16 sps:$4 sm:$0xff]   ;;  %v9666_v38 = vld [vmem:[%s14203_s1 + $0x19a0] ss:$16 sps:$4 sm:$0xff]  }
 0x189   :  { %6916 = vmatprep.subr.bf16.mxu1 %v9623_v39  ;;  %v9669_v39 = vld [vmem:[%s14203_s1 + $0x1ba0] ss:$16 sps:$4 sm:$0xff]  }
 0x18b   :  { %6874 = vmatpush1.bf16.msra.mxu0 %v9618_v42  ;;  %v9674_v42 = vld [vmem:[%s14203_s1 + $0x1984] ss:$16 sps:$4 sm:$0xff]  }
 0x18c   :  { %6917 = vmatpush1.bf16.msra.mxu1 %v9621_v6  ;;  %6875 = vmatprep.subr.bf16.mxu0 %v9626_v7  ;;  %v9677_v6 = vld [vmem:[%s14203_s1 + $0x1b84] ss:$16 sps:$4 sm:$0xff]   ;;  %v9672_v7 = vld [vmem:[%s14203_s1 + $0x1980] ss:$16 sps:$4 sm:$0xff]  }
 0x18d   :  { %6918 = vmatprep.subr.bf16.mxu1 %v9629_v12  ;;  %v9675_v12 = vld [vmem:[%s14203_s1 + $0x1b80] ss:$16 sps:$4 sm:$0xff]  }
 0x18f   :  { %6876 = vmatpush1.bf16.msra.mxu0 %v9624_v13  ;;  %v9680_v13 = vld [vmem:[%s14203_s1 + $0x1964] ss:$16 sps:$4 sm:$0xff]  }
 0x190   :  { %6919 = vmatpush1.bf16.msra.mxu1 %v9627_v54  ;;  %6877 = vmatprep.subr.bf16.mxu0 %v9632_v58  ;;  %v9683_v54 = vld [vmem:[%s14203_s1 + $0x1b64] ss:$16 sps:$4 sm:$0xff]   ;;  %v9678_v58 = vld [vmem:[%s14203_s1 + $0x1960] ss:$16 sps:$4 sm:$0xff]  }
 0x191   :  { %6920 = vmatprep.subr.bf16.mxu1 %v9635_v59  ;;  %v9681_v59 = vld [vmem:[%s14203_s1 + $0x1b60] ss:$16 sps:$4 sm:$0xff]  }
 0x193   :  { %6878 = vmatpush1.bf16.msra.mxu0 %v9630_v60  ;;  %v9686_v60 = vld [vmem:[%s14203_s1 + $0x1944] ss:$16 sps:$4 sm:$0xff]  }
 0x194   :  { %6921 = vmatpush1.bf16.msra.mxu1 %v9633_v61  ;;  %6879 = vmatprep.subr.bf16.mxu0 %v9638_v62  ;;  %v9689_v61 = vld [vmem:[%s14203_s1 + $0x1b44] ss:$16 sps:$4 sm:$0xff]   ;;  %v9684_v62 = vld [vmem:[%s14203_s1 + $0x1940] ss:$16 sps:$4 sm:$0xff]  }
 0x195   :  { %6922 = vmatprep.subr.bf16.mxu1 %v9641_v63  ;;  %v9687_v63 = vld [vmem:[%s14203_s1 + $0x1b40] ss:$16 sps:$4 sm:$0xff]  }
 0x197   :  { %6880 = vmatpush1.bf16.msra.mxu0 %v9636_v0  ;;  %v9692_v0 = vld [vmem:[%s14203_s1 + $0x1924] ss:$16 sps:$4 sm:$0xff]  }
 0x198   :  { %6923 = vmatpush1.bf16.msra.mxu1 %v9639_v1  ;;  %6881 = vmatprep.subr.bf16.mxu0 %v9644_v2  ;;  %v9695_v1 = vld [vmem:[%s14203_s1 + $0x1b24] ss:$16 sps:$4 sm:$0xff]   ;;  %v9690_v2 = vld [vmem:[%s14203_s1 + $0x1920] ss:$16 sps:$4 sm:$0xff]  }
 0x199   :  { %6924 = vmatprep.subr.bf16.mxu1 %v9647_v3  ;;  %v9693_v3 = vld [vmem:[%s14203_s1 + $0x1b20] ss:$16 sps:$4 sm:$0xff]  }
 0x19b   :  { %6882 = vmatpush1.bf16.msra.mxu0 %v9642_v4  ;;  %v9698_v4 = vld [vmem:[%s14203_s1 + $0x1904] ss:$16 sps:$4 sm:$0xff]  }
 0x19c   :  { %6925 = vmatpush1.bf16.msra.mxu1 %v9645_v5  ;;  %6883 = vmatprep.subr.bf16.mxu0 %v9650_v46  ;;  %v9701_v5 = vld [vmem:[%s14203_s1 + $0x1b04] ss:$16 sps:$4 sm:$0xff]   ;;  %v9696_v46 = vld [vmem:[%s14203_s1 + $0x1900] ss:$16 sps:$4 sm:$0xff]  }
 0x19d   :  { %6926 = vmatprep.subr.bf16.mxu1 %v9653_v47  ;;  %v9699_v47 = vld [vmem:[%s14203_s1 + $0x1b00] ss:$16 sps:$4 sm:$0xff]  }
 0x19f   :  { %6884 = vmatpush1.bf16.msra.mxu0 %v9648_v14  ;;  %v9704_v14 = vld [vmem:[%s14203_s1 + $0x1ce4] ss:$16 sps:$4 sm:$0xff]  }
 0x1a0   :  { %6927 = vmatpush1.bf16.msra.mxu1 %v9651_v15  ;;  %6885 = vmatprep.subr.bf16.mxu0 %v9656_v16  ;;  %v9707_v15 = vld [vmem:[%s14203_s1 + $0x1ee4] ss:$16 sps:$4 sm:$0xff]  }
 0x1a1   :  { %6928 = vmatprep.subr.bf16.mxu1 %v9659_v17  ;;  %v12208_v16 = vld [vmem:[%s14204_s0 + $0x70] sm:$0xff] }
 0x1a2   :  { %v12213_v17 = vld [vmem:[%s14204_s0 + $0xf0] sm:$0xff] }
 0x1a3   :  { %6886 = vmatpush2.bf16.msra.mxu0 %v9654_v18  ;;  %v12218_v18 = vld [vmem:[%s14204_s0 + $0x78] sm:$0xff] }
 0x1a4   :  { %6929 = vmatpush2.bf16.msra.mxu1 %v9657_v19  ;;  %6887 = vmatprep.subr.bf16.mxu0 %v9662_v23  ;;  %v12223_v19 = vld [vmem:[%s14204_s0 + $0xf8] sm:$0xff]  ;;  %v9702_v23 = vld [vmem:[%s14203_s1 + $0x1ce0] ss:$16 sps:$4 sm:$0xff]  }
 0x1a5   :  { %6930 = vmatprep.subr.bf16.mxu1 %v9665_v40  ;;  %v9705_v40 = vld [vmem:[%s14203_s1 + $0x1ee0] ss:$16 sps:$4 sm:$0xff]  }
 0x1a7   :  { %6888 = vmatpush2.bf16.msra.mxu0 %v9660_v28  ;;  %v12233_v28 = vcombine.low %v11976_v22, %v11992_v26  ;;  %v9708_v22 = vld [vmem:[%s14203_s1 + $0x1cc0] ss:$16 sps:$4 sm:$0xff]  }
 0x1a8   :  { %6931 = vmatpush2.bf16.msra.mxu1 %v9663_v29  ;;  %6889 = vmatprep.subr.bf16.mxu0 %v9668_v52  ;;  %v12237_v29 = vcombine.low %v11997_v27, %v12002_v32  ;;  %v9710_v52 = vld [vmem:[%s14203_s1 + $0x1cc4] ss:$16 sps:$4 sm:$0xff]   ;;  %v9711_v26 = vld [vmem:[%s14203_s1 + $0x1ec0] ss:$16 sps:$4 sm:$0xff]   ;;  %v12253_v27 = vcombine.high %v12208_v16, %v12213_v17  ;;  %v12257_v32 = vcombine.high %v12218_v18, %v12223_v19 }
 0x1a9   :  { %6932 = vmatprep.subr.bf16.mxu1 %v9671_v34  ;;  %14216 = vst [vmem:[#allocation3_spill] sm:$0xff] %v12233_v28  ;;  %v9713_v34 = vld [vmem:[%s14203_s1 + $0x1ec4] ss:$16 sps:$4 sm:$0xff]  }
 0x1aa   :  { %14217 = vst [vmem:[#allocation4_spill] sm:$0xff] %v12237_v29  ;;  %14218 = vst [vmem:[#allocation5_spill] sm:$0xff] %v12253_v27 }
 0x1ab   :  { %6890 = vmatpush2.bf16.msra.mxu0 %v9666_v38  ;;  %14219 = vst [vmem:[#allocation6_spill] sm:$0xff] %v12257_v32  ;;  %v9716_v38 = vld [vmem:[%s14203_s1 + $0x1ca4] ss:$16 sps:$4 sm:$0xff]  }
 0x1ac   :  { %6933 = vmatpush2.bf16.msra.mxu1 %v9669_v39  ;;  %6891 = vmatprep.subr.bf16.mxu0 %v9674_v42  ;;  %v9719_v39 = vld [vmem:[%s14203_s1 + $0x1ea4] ss:$16 sps:$4 sm:$0xff]   ;;  %v9714_v42 = vld [vmem:[%s14203_s1 + $0x1ca0] ss:$16 sps:$4 sm:$0xff]  }
 0x1ad   :  { %6934 = vmatprep.subr.bf16.mxu1 %v9677_v6  ;;  %v9717_v6 = vld [vmem:[%s14203_s1 + $0x1ea0] ss:$16 sps:$4 sm:$0xff]  }
 0x1af   :  { %6892 = vmatpush2.bf16.msra.mxu0 %v9672_v7  ;;  %v9722_v7 = vld [vmem:[%s14203_s1 + $0x1c84] ss:$16 sps:$4 sm:$0xff]  }
 0x1b0   :  { %6935 = vmatpush2.bf16.msra.mxu1 %v9675_v12  ;;  %6893 = vmatprep.subr.bf16.mxu0 %v9680_v13  ;;  %v9725_v12 = vld [vmem:[%s14203_s1 + $0x1e84] ss:$16 sps:$4 sm:$0xff]   ;;  %v9720_v13 = vld [vmem:[%s14203_s1 + $0x1c80] ss:$16 sps:$4 sm:$0xff]  }
 0x1b1   :  { %6936 = vmatprep.subr.bf16.mxu1 %v9683_v54  ;;  %v9723_v54 = vld [vmem:[%s14203_s1 + $0x1e80] ss:$16 sps:$4 sm:$0xff]  }
 0x1b3   :  { %6894 = vmatpush2.bf16.msra.mxu0 %v9678_v58  ;;  %v9728_v58 = vld [vmem:[%s14203_s1 + $0x1c64] ss:$16 sps:$4 sm:$0xff]  }
 0x1b4   :  { %6937 = vmatpush2.bf16.msra.mxu1 %v9681_v59  ;;  %6895 = vmatprep.subr.bf16.mxu0 %v9686_v60  ;;  %v9731_v59 = vld [vmem:[%s14203_s1 + $0x1e64] ss:$16 sps:$4 sm:$0xff]   ;;  %v9726_v60 = vld [vmem:[%s14203_s1 + $0x1c60] ss:$16 sps:$4 sm:$0xff]  }
 0x1b5   :  { %6938 = vmatprep.subr.bf16.mxu1 %v9689_v61  ;;  %v9729_v61 = vld [vmem:[%s14203_s1 + $0x1e60] ss:$16 sps:$4 sm:$0xff]  }
 0x1b7   :  { %6896 = vmatpush2.bf16.msra.mxu0 %v9684_v62  ;;  %v9734_v62 = vld [vmem:[%s14203_s1 + $0x1c44] ss:$16 sps:$4 sm:$0xff]  }
 0x1b8   :  { %6939 = vmatpush2.bf16.msra.mxu1 %v9687_v63  ;;  %6897 = vmatprep.subr.bf16.mxu0 %v9692_v0  ;;  %v9737_v63 = vld [vmem:[%s14203_s1 + $0x1e44] ss:$16 sps:$4 sm:$0xff]   ;;  %v9732_v0 = vld [vmem:[%s14203_s1 + $0x1c40] ss:$16 sps:$4 sm:$0xff]  }
 0x1b9   :  { %6940 = vmatprep.subr.bf16.mxu1 %v9695_v1  ;;  %v9735_v1 = vld [vmem:[%s14203_s1 + $0x1e40] ss:$16 sps:$4 sm:$0xff]  }
 0x1bb   :  { %6898 = vmatpush2.bf16.msra.mxu0 %v9690_v2  ;;  %v9740_v2 = vld [vmem:[%s14203_s1 + $0x1c24] ss:$16 sps:$4 sm:$0xff]  }
 0x1bc   :  { %6941 = vmatpush2.bf16.msra.mxu1 %v9693_v3  ;;  %6899 = vmatprep.subr.bf16.mxu0 %v9698_v4  ;;  %v9743_v3 = vld [vmem:[%s14203_s1 + $0x1e24] ss:$16 sps:$4 sm:$0xff]   ;;  %v9738_v4 = vld [vmem:[%s14203_s1 + $0x1c20] ss:$16 sps:$4 sm:$0xff]  }
 0x1bd   :  { %6942 = vmatprep.subr.bf16.mxu1 %v9701_v5  ;;  %v9741_v5 = vld [vmem:[%s14203_s1 + $0x1e20] ss:$16 sps:$4 sm:$0xff]  }
 0x1bf   :  { %6900 = vmatpush2.bf16.msra.mxu0 %v9696_v46  ;;  %v9746_v46 = vld [vmem:[%s14203_s1 + $0x1c04] ss:$16 sps:$4 sm:$0xff]  }
 0x1c0   :  { %6943 = vmatpush2.bf16.msra.mxu1 %v9699_v47  ;;  %6955 = vmatprep.subr.bf16.mxu0 %v9704_v14  ;;  %v9749_v47 = vld [vmem:[%s14203_s1 + $0x1e04] ss:$16 sps:$4 sm:$0xff]   ;;  %v9744_v14 = vld [vmem:[%s14203_s1 + $0x1c00] ss:$16 sps:$4 sm:$0xff]  }
 0x1c1   :  { %6998 = vmatprep.subr.bf16.mxu1 %v9707_v15  ;;  %v9747_v15 = vld [vmem:[%s14203_s1 + $0x1e00] ss:$16 sps:$4 sm:$0xff]  }
 0x1c2   :  { %6902 = vmatmul.mubr.bf16.vlgmr.msra.gmra.mxu0 %v12233_v28 }
 0x1c3   :  { %6945 = vmatmul.mubr.bf16.vlgmr.msra.gmra.mxu1 %v12237_v29  ;;  %6956 = vmatpush1.bf16.msra.mxu0 %v9702_v23  ;;  %v9752_v23 = vld [vmem:[%s14203_s1 + $0x1de4] ss:$16 sps:$4 sm:$0xff]  }
 0x1c4   :  { %6999 = vmatpush1.bf16.msra.mxu1 %v9705_v40  ;;  %6957 = vmatprep.subr.bf16.mxu0 %v9710_v52  ;;  %v9755_v40 = vld [vmem:[%s14203_s1 + $0x1fe4] ss:$16 sps:$4 sm:$0xff]   ;;  %v9750_v52 = vld [vmem:[%s14203_s1 + $0x1de0] ss:$16 sps:$4 sm:$0xff]  }
 0x1c5   :  { %7000 = vmatprep.subr.bf16.mxu1 %v9713_v34  ;;  %6987 = vmatprep.mubr.bf16.mxu0 %v12253_v27  ;;  %v9753_v34 = vld [vmem:[%s14203_s1 + $0x1fe0] ss:$16 sps:$4 sm:$0xff]  }
 0x1c6   :  { %7030 = vmatprep.mubr.bf16.mxu1 %v12257_v32  ;;  %v10046_v32 = vld [vmem:[%s14203_s1 + $0x9cc] ss:$16 sps:$4 sm:$0xff]  }
 0x1c7   :  { %6958 = vmatpush1.bf16.msra.mxu0 %v9708_v22  ;;  %v9758_v22 = vld [vmem:[%s14203_s1 + $0x1dc4] ss:$16 sps:$4 sm:$0xff]  }
 0x1c8   :  { %7001 = vmatpush1.bf16.msra.mxu1 %v9711_v26  ;;  %6959 = vmatprep.subr.bf16.mxu0 %v9716_v38  ;;  %v9761_v26 = vld [vmem:[%s14203_s1 + $0x1fc4] ss:$16 sps:$4 sm:$0xff]   ;;  %v9756_v38 = vld [vmem:[%s14203_s1 + $0x1dc0] ss:$16 sps:$4 sm:$0xff]  }
 0x1c9   :  { %7002 = vmatprep.subr.bf16.mxu1 %v9719_v39  ;;  %v9759_v39 = vld [vmem:[%s14203_s1 + $0x1fc0] ss:$16 sps:$4 sm:$0xff]  }
 0x1cb   :  { %6960 = vmatpush1.bf16.msra.mxu0 %v9714_v42  ;;  %v9764_v42 = vld [vmem:[%s14203_s1 + $0x1da4] ss:$16 sps:$4 sm:$0xff]  }
 0x1cc   :  { %7003 = vmatpush1.bf16.msra.mxu1 %v9717_v6  ;;  %6961 = vmatprep.subr.bf16.mxu0 %v9722_v7  ;;  %v9767_v6 = vld [vmem:[%s14203_s1 + $0x1fa4] ss:$16 sps:$4 sm:$0xff]   ;;  %v9762_v7 = vld [vmem:[%s14203_s1 + $0x1da0] ss:$16 sps:$4 sm:$0xff]  }
 0x1cd   :  { %7004 = vmatprep.subr.bf16.mxu1 %v9725_v12  ;;  %v9765_v12 = vld [vmem:[%s14203_s1 + $0x1fa0] ss:$16 sps:$4 sm:$0xff]  }
 0x1cf   :  { %6962 = vmatpush1.bf16.msra.mxu0 %v9720_v13  ;;  %v9770_v13 = vld [vmem:[%s14203_s1 + $0x1d84] ss:$16 sps:$4 sm:$0xff]  }
 0x1d0   :  { %7005 = vmatpush1.bf16.msra.mxu1 %v9723_v54  ;;  %6963 = vmatprep.subr.bf16.mxu0 %v9728_v58  ;;  %v9773_v54 = vld [vmem:[%s14203_s1 + $0x1f84] ss:$16 sps:$4 sm:$0xff]   ;;  %v9768_v58 = vld [vmem:[%s14203_s1 + $0x1d80] ss:$16 sps:$4 sm:$0xff]  }
 0x1d1   :  { %7006 = vmatprep.subr.bf16.mxu1 %v9731_v59  ;;  %v9771_v59 = vld [vmem:[%s14203_s1 + $0x1f80] ss:$16 sps:$4 sm:$0xff]  }
 0x1d3   :  { %6964 = vmatpush1.bf16.msra.mxu0 %v9726_v60  ;;  %v9776_v60 = vld [vmem:[%s14203_s1 + $0x1d64] ss:$16 sps:$4 sm:$0xff]  }
 0x1d4   :  { %7007 = vmatpush1.bf16.msra.mxu1 %v9729_v61  ;;  %6965 = vmatprep.subr.bf16.mxu0 %v9734_v62  ;;  %v9779_v61 = vld [vmem:[%s14203_s1 + $0x1f64] ss:$16 sps:$4 sm:$0xff]   ;;  %v9774_v62 = vld [vmem:[%s14203_s1 + $0x1d60] ss:$16 sps:$4 sm:$0xff]  }
 0x1d5   :  { %7008 = vmatprep.subr.bf16.mxu1 %v9737_v63  ;;  %v9777_v63 = vld [vmem:[%s14203_s1 + $0x1f60] ss:$16 sps:$4 sm:$0xff]  }
 0x1d7   :  { %6966 = vmatpush1.bf16.msra.mxu0 %v9732_v0  ;;  %v9782_v0 = vld [vmem:[%s14203_s1 + $0x1d44] ss:$16 sps:$4 sm:$0xff]  }
 0x1d8   :  { %7009 = vmatpush1.bf16.msra.mxu1 %v9735_v1  ;;  %6967 = vmatprep.subr.bf16.mxu0 %v9740_v2  ;;  %v9785_v1 = vld [vmem:[%s14203_s1 + $0x1f44] ss:$16 sps:$4 sm:$0xff]   ;;  %v9780_v2 = vld [vmem:[%s14203_s1 + $0x1d40] ss:$16 sps:$4 sm:$0xff]  }
 0x1d9   :  { %7010 = vmatprep.subr.bf16.mxu1 %v9743_v3  ;;  %v9783_v3 = vld [vmem:[%s14203_s1 + $0x1f40] ss:$16 sps:$4 sm:$0xff]  }
 0x1db   :  { %6968 = vmatpush1.bf16.msra.mxu0 %v9738_v4  ;;  %v9788_v4 = vld [vmem:[%s14203_s1 + $0x1d24] ss:$16 sps:$4 sm:$0xff]  }
 0x1dc   :  { %7011 = vmatpush1.bf16.msra.mxu1 %v9741_v5  ;;  %6969 = vmatprep.subr.bf16.mxu0 %v9746_v46  ;;  %v9791_v5 = vld [vmem:[%s14203_s1 + $0x1f24] ss:$16 sps:$4 sm:$0xff]   ;;  %v9786_v46 = vld [vmem:[%s14203_s1 + $0x1d20] ss:$16 sps:$4 sm:$0xff]  }
 0x1dd   :  { %7012 = vmatprep.subr.bf16.mxu1 %v9749_v47  ;;  %v9789_v47 = vld [vmem:[%s14203_s1 + $0x1f20] ss:$16 sps:$4 sm:$0xff]  }
 0x1df   :  { %6970 = vmatpush1.bf16.msra.mxu0 %v9744_v14  ;;  %v9794_v14 = vld [vmem:[%s14203_s1 + $0x1d04] ss:$16 sps:$4 sm:$0xff]  }
 0x1e0   :  { %7013 = vmatpush1.bf16.msra.mxu1 %v9747_v15  ;;  %6971 = vmatprep.subr.bf16.mxu0 %v9752_v23  ;;  %v9797_v15 = vld [vmem:[%s14203_s1 + $0x1f04] ss:$16 sps:$4 sm:$0xff]   ;;  %v9792_v23 = vld [vmem:[%s14203_s1 + $0x1d00] ss:$16 sps:$4 sm:$0xff]  }
 0x1e1   :  { %7014 = vmatprep.subr.bf16.mxu1 %v9755_v40  ;;  %v9795_v40 = vld [vmem:[%s14203_s1 + $0x1f00] ss:$16 sps:$4 sm:$0xff]  }
 0x1e3   :  { %6972 = vmatpush2.bf16.msra.mxu0 %v9750_v52  ;;  %v9800_v52 = vld [vmem:[%s14203_s1 + $0xec] ss:$16 sps:$4 sm:$0xff]  }
 0x1e4   :  { %7015 = vmatpush2.bf16.msra.mxu1 %v9753_v34  ;;  %6973 = vmatprep.subr.bf16.mxu0 %v9758_v22  ;;  %v9803_v34 = vld [vmem:[%s14203_s1 + $0x2ec] ss:$16 sps:$4 sm:$0xff]   ;;  %v9798_v22 = vld [vmem:[%s14203_s1 + $0xe8] ss:$16 sps:$4 sm:$0xff]  }
 0x1e5   :  { %7016 = vmatprep.subr.bf16.mxu1 %v9761_v26  ;;  %v9801_v26 = vld [vmem:[%s14203_s1 + $0x2e8] ss:$16 sps:$4 sm:$0xff]  }
 0x1e7   :  { %6974 = vmatpush2.bf16.msra.mxu0 %v9756_v38  ;;  %v12445_v38 = vcombine.low %v12208_v16, %v12213_v17  ;;  %v9804_v16 = vld [vmem:[%s14203_s1 + $0xc8] ss:$16 sps:$4 sm:$0xff]  }
 0x1e8   :  { %7017 = vmatpush2.bf16.msra.mxu1 %v9759_v39  ;;  %6975 = vmatprep.subr.bf16.mxu0 %v9764_v42  ;;  %v12449_v39 = vcombine.low %v12218_v18, %v12223_v19  ;;  %v9806_v42 = vld [vmem:[%s14203_s1 + $0xcc] ss:$16 sps:$4 sm:$0xff]   ;;  %v9807_v17 = vld [vmem:[%s14203_s1 + $0x2c8] ss:$16 sps:$4 sm:$0xff]  }
 0x1e9   :  { %7018 = vmatprep.subr.bf16.mxu1 %v9767_v6  ;;  %14220 = vst [vmem:[#allocation7_spill] sm:$0xff] %v12445_v38  ;;  %v9809_v6 = vld [vmem:[%s14203_s1 + $0x2cc] ss:$16 sps:$4 sm:$0xff]  }
 0x1ea   :  { %14221 = vst [vmem:[#allocation8_spill] sm:$0xff] %v12449_v39  ;;  %v9812_v18 = vld [vmem:[%s14203_s1 + $0xac] ss:$16 sps:$4 sm:$0xff]  }
 0x1eb   :  { %6976 = vmatpush2.bf16.msra.mxu0 %v9762_v7  ;;  %v9815_v19 = vld [vmem:[%s14203_s1 + $0x2ac] ss:$16 sps:$4 sm:$0xff]   ;;  %v9810_v7 = vld [vmem:[%s14203_s1 + $0xa8] ss:$16 sps:$4 sm:$0xff]  }
 0x1ec   :  { %7019 = vmatpush2.bf16.msra.mxu1 %v9765_v12  ;;  %6977 = vmatprep.subr.bf16.mxu0 %v9770_v13  ;;  %v9813_v12 = vld [vmem:[%s14203_s1 + $0x2a8] ss:$16 sps:$4 sm:$0xff]   ;;  %v9818_v13 = vld [vmem:[%s14203_s1 + $0x8c] ss:$16 sps:$4 sm:$0xff]  }
 0x1ed   :  { %7020 = vmatprep.subr.bf16.mxu1 %v9773_v54  ;;  %v9821_v54 = vld [vmem:[%s14203_s1 + $0x28c] ss:$16 sps:$4 sm:$0xff]  }
 0x1ef   :  { %6978 = vmatpush2.bf16.msra.mxu0 %v9768_v58  ;;  %v9824_v58 = vld [vmem:[%s14203_s1 + $0x6c] ss:$16 sps:$4 sm:$0xff]  }
 0x1f0   :  { %7021 = vmatpush2.bf16.msra.mxu1 %v9771_v59  ;;  %6979 = vmatprep.subr.bf16.mxu0 %v9776_v60  ;;  %v9827_v59 = vld [vmem:[%s14203_s1 + $0x26c] ss:$16 sps:$4 sm:$0xff]   ;;  %v9822_v60 = vld [vmem:[%s14203_s1 + $0x68] ss:$16 sps:$4 sm:$0xff]  }
 0x1f1   :  { %7022 = vmatprep.subr.bf16.mxu1 %v9779_v61  ;;  %v9825_v61 = vld [vmem:[%s14203_s1 + $0x268] ss:$16 sps:$4 sm:$0xff]  }
 0x1f3   :  { %6980 = vmatpush2.bf16.msra.mxu0 %v9774_v62  ;;  %v9830_v62 = vld [vmem:[%s14203_s1 + $0x4c] ss:$16 sps:$4 sm:$0xff]  }
 0x1f4   :  { %7023 = vmatpush2.bf16.msra.mxu1 %v9777_v63  ;;  %6981 = vmatprep.subr.bf16.mxu0 %v9782_v0  ;;  %v9833_v63 = vld [vmem:[%s14203_s1 + $0x24c] ss:$16 sps:$4 sm:$0xff]   ;;  %v9828_v0 = vld [vmem:[%s14203_s1 + $0x48] ss:$16 sps:$4 sm:$0xff]  }
 0x1f5   :  { %7024 = vmatprep.subr.bf16.mxu1 %v9785_v1  ;;  %v9831_v1 = vld [vmem:[%s14203_s1 + $0x248] ss:$16 sps:$4 sm:$0xff]  }
 0x1f7   :  { %6982 = vmatpush2.bf16.msra.mxu0 %v9780_v2  ;;  %v9836_v2 = vld [vmem:[%s14203_s1 + $0x2c] ss:$16 sps:$4 sm:$0xff]  }
 0x1f8   :  { %7025 = vmatpush2.bf16.msra.mxu1 %v9783_v3  ;;  %6983 = vmatprep.subr.bf16.mxu0 %v9788_v4  ;;  %v9839_v3 = vld [vmem:[%s14203_s1 + $0x22c] ss:$16 sps:$4 sm:$0xff]   ;;  %v9834_v4 = vld [vmem:[%s14203_s1 + $0x28] ss:$16 sps:$4 sm:$0xff]  }
 0x1f9   :  { %7026 = vmatprep.subr.bf16.mxu1 %v9791_v5  ;;  %v9837_v5 = vld [vmem:[%s14203_s1 + $0x228] ss:$16 sps:$4 sm:$0xff]  }
 0x1fb   :  { %6984 = vmatpush2.bf16.msra.mxu0 %v9786_v46  ;;  %v9842_v46 = vld [vmem:[%s14203_s1 + $0xc] ss:$16 sps:$4 sm:$0xff]  }
 0x1fc   :  { %7027 = vmatpush2.bf16.msra.mxu1 %v9789_v47  ;;  %6985 = vmatprep.subr.bf16.mxu0 %v9794_v14  ;;  %v9845_v47 = vld [vmem:[%s14203_s1 + $0x20c] ss:$16 sps:$4 sm:$0xff]   ;;  %v9840_v14 = vld [vmem:[%s14203_s1 + $0x8] ss:$16 sps:$4 sm:$0xff]  }
 0x1fd   :  { %7028 = vmatprep.subr.bf16.mxu1 %v9797_v15  ;;  %v9843_v15 = vld [vmem:[%s14203_s1 + $0x208] ss:$16 sps:$4 sm:$0xff]  }
 0x1ff   :  { %6986 = vmatpush2.bf16.msra.mxu0 %v9792_v23  ;;  %v9848_v23 = vld [vmem:[%s14203_s1 + $0x1ec] ss:$16 sps:$4 sm:$0xff]  }
 0x200   :  { %7029 = vmatpush2.bf16.msra.mxu1 %v9795_v40  ;;  %7041 = vmatprep.subr.bf16.mxu0 %v9800_v52  ;;  %v9851_v40 = vld [vmem:[%s14203_s1 + $0x3ec] ss:$16 sps:$4 sm:$0xff]   ;;  %v9846_v52 = vld [vmem:[%s14203_s1 + $0x1e8] ss:$16 sps:$4 sm:$0xff]  }
 0x201   :  { %7084 = vmatprep.subr.bf16.mxu1 %v9803_v34  ;;  %v9849_v34 = vld [vmem:[%s14203_s1 + $0x3e8] ss:$16 sps:$4 sm:$0xff]  }
 0x202   :  { %6988 = vmatmul.mubr.bf16.vlgmr.msra.gmra.mxu0 %v12445_v38  ;;  %v10041_v38 = vld [vmem:[%s14203_s1 + $0xbe8] ss:$16 sps:$4 sm:$0xff]  }
 0x203   :  { %7031 = vmatmul.mubr.bf16.vlgmr.msra.gmra.mxu1 %v12449_v39  ;;  %7042 = vmatpush1.bf16.msra.mxu0 %v9798_v22  ;;  %v9854_v22 = vld [vmem:[%s14203_s1 + $0x1cc] ss:$16 sps:$4 sm:$0xff]  }
 0x204   :  { %7085 = vmatpush1.bf16.msra.mxu1 %v9801_v26  ;;  %7043 = vmatprep.subr.bf16.mxu0 %v9806_v42  ;;  %v9857_v26 = vld [vmem:[%s14203_s1 + $0x3cc] ss:$16 sps:$4 sm:$0xff]   ;;  %v9852_v42 = vld [vmem:[%s14203_s1 + $0x1c8] ss:$16 sps:$4 sm:$0xff]  }
 0x205   :  { %7086 = vmatprep.subr.bf16.mxu1 %v9809_v6  ;;  %7073 = vmatprep.mubr.bf16.mxu0 %v10760_v53  ;;  %v9816_v53 = vld [vmem:[%s14203_s1 + $0x88] ss:$16 sps:$4 sm:$0xff]   ;;  %v10040_v39 = vld [vmem:[%s14203_s1 + $0x9ec] ss:$16 sps:$4 sm:$0xff]  }
 0x206   :  { %7116 = vmatprep.mubr.bf16.mxu1 %v10765_v55  ;;  %v9819_v55 = vld [vmem:[%s14203_s1 + $0x288] ss:$16 sps:$4 sm:$0xff]  }
 0x207   :  { %7044 = vmatpush1.bf16.msra.mxu0 %v9804_v16  ;;  %v9855_v6 = vld [vmem:[%s14203_s1 + $0x3c8] ss:$16 sps:$4 sm:$0xff]   ;;  %v9860_v16 = vld [vmem:[%s14203_s1 + $0x1ac] ss:$16 sps:$4 sm:$0xff]  }
 0x208   :  { %7087 = vmatpush1.bf16.msra.mxu1 %v9807_v17  ;;  %7045 = vmatprep.subr.bf16.mxu0 %v9812_v18  ;;  %v9863_v17 = vld [vmem:[%s14203_s1 + $0x3ac] ss:$16 sps:$4 sm:$0xff]   ;;  %v9858_v18 = vld [vmem:[%s14203_s1 + $0x1a8] ss:$16 sps:$4 sm:$0xff]  }
 0x209   :  { %7088 = vmatprep.subr.bf16.mxu1 %v9815_v19  ;;  %v9861_v19 = vld [vmem:[%s14203_s1 + $0x3a8] ss:$16 sps:$4 sm:$0xff]  }
 0x20b   :  { %7046 = vmatpush1.bf16.msra.mxu0 %v9810_v7  ;;  %v9866_v7 = vld [vmem:[%s14203_s1 + $0x18c] ss:$16 sps:$4 sm:$0xff]  }
 0x20c   :  { %7089 = vmatpush1.bf16.msra.mxu1 %v9813_v12  ;;  %7047 = vmatprep.subr.bf16.mxu0 %v9818_v13  ;;  %v9869_v12 = vld [vmem:[%s14203_s1 + $0x38c] ss:$16 sps:$4 sm:$0xff]   ;;  %v9864_v13 = vld [vmem:[%s14203_s1 + $0x188] ss:$16 sps:$4 sm:$0xff]  }
 0x20d   :  { %7090 = vmatprep.subr.bf16.mxu1 %v9821_v54  ;;  %v9867_v54 = vld [vmem:[%s14203_s1 + $0x388] ss:$16 sps:$4 sm:$0xff]  }
 0x20f   :  { %7048 = vmatpush1.bf16.msra.mxu0 %v9816_v53  ;;  %v9872_v53 = vld [vmem:[%s14203_s1 + $0x16c] ss:$16 sps:$4 sm:$0xff]  }
 0x210   :  { %7091 = vmatpush1.bf16.msra.mxu1 %v9819_v55  ;;  %7049 = vmatprep.subr.bf16.mxu0 %v9824_v58  ;;  %v9875_v55 = vld [vmem:[%s14203_s1 + $0x36c] ss:$16 sps:$4 sm:$0xff]   ;;  %v9870_v58 = vld [vmem:[%s14203_s1 + $0x168] ss:$16 sps:$4 sm:$0xff]  }
 0x211   :  { %7092 = vmatprep.subr.bf16.mxu1 %v9827_v59  ;;  %v9873_v59 = vld [vmem:[%s14203_s1 + $0x368] ss:$16 sps:$4 sm:$0xff]  }
 0x213   :  { %7050 = vmatpush1.bf16.msra.mxu0 %v9822_v60  ;;  %v9878_v60 = vld [vmem:[%s14203_s1 + $0x14c] ss:$16 sps:$4 sm:$0xff]  }
 0x214   :  { %7093 = vmatpush1.bf16.msra.mxu1 %v9825_v61  ;;  %7051 = vmatprep.subr.bf16.mxu0 %v9830_v62  ;;  %v9881_v61 = vld [vmem:[%s14203_s1 + $0x34c] ss:$16 sps:$4 sm:$0xff]   ;;  %v9876_v62 = vld [vmem:[%s14203_s1 + $0x148] ss:$16 sps:$4 sm:$0xff]  }
 0x215   :  { %7094 = vmatprep.subr.bf16.mxu1 %v9833_v63  ;;  %v9879_v63 = vld [vmem:[%s14203_s1 + $0x348] ss:$16 sps:$4 sm:$0xff]  }
 0x217   :  { %7052 = vmatpush1.bf16.msra.mxu0 %v9828_v0  ;;  %v9884_v0 = vld [vmem:[%s14203_s1 + $0x12c] ss:$16 sps:$4 sm:$0xff]  }
 0x218   :  { %7095 = vmatpush1.bf16.msra.mxu1 %v9831_v1  ;;  %7053 = vmatprep.subr.bf16.mxu0 %v9836_v2  ;;  %v9887_v1 = vld [vmem:[%s14203_s1 + $0x32c] ss:$16 sps:$4 sm:$0xff]   ;;  %v9882_v2 = vld [vmem:[%s14203_s1 + $0x128] ss:$16 sps:$4 sm:$0xff]  }
 0x219   :  { %7096 = vmatprep.subr.bf16.mxu1 %v9839_v3  ;;  %v9885_v3 = vld [vmem:[%s14203_s1 + $0x328] ss:$16 sps:$4 sm:$0xff]  }
 0x21b   :  { %7054 = vmatpush1.bf16.msra.mxu0 %v9834_v4  ;;  %v9890_v4 = vld [vmem:[%s14203_s1 + $0x10c] ss:$16 sps:$4 sm:$0xff]  }
 0x21c   :  { %7097 = vmatpush1.bf16.msra.mxu1 %v9837_v5  ;;  %7055 = vmatprep.subr.bf16.mxu0 %v9842_v46  ;;  %v9893_v5 = vld [vmem:[%s14203_s1 + $0x30c] ss:$16 sps:$4 sm:$0xff]   ;;  %v9888_v46 = vld [vmem:[%s14203_s1 + $0x108] ss:$16 sps:$4 sm:$0xff]  }
 0x21d   :  { %7098 = vmatprep.subr.bf16.mxu1 %v9845_v47  ;;  %v9891_v47 = vld [vmem:[%s14203_s1 + $0x308] ss:$16 sps:$4 sm:$0xff]  }
 0x21f   :  { %7056 = vmatpush1.bf16.msra.mxu0 %v9840_v14  ;;  %v9896_v14 = vld [vmem:[%s14203_s1 + $0x4ec] ss:$16 sps:$4 sm:$0xff]  }
 0x220   :  { %7099 = vmatpush1.bf16.msra.mxu1 %v9843_v15  ;;  %7057 = vmatprep.subr.bf16.mxu0 %v9848_v23  ;;  %v9899_v15 = vld [vmem:[%s14203_s1 + $0x6ec] ss:$16 sps:$4 sm:$0xff]   ;;  %v9894_v23 = vld [vmem:[%s14203_s1 + $0x4e8] ss:$16 sps:$4 sm:$0xff]  }
 0x221   :  { %7100 = vmatprep.subr.bf16.mxu1 %v9851_v40  ;;  %v9897_v40 = vld [vmem:[%s14203_s1 + $0x6e8] ss:$16 sps:$4 sm:$0xff]  }
 0x223   :  { %7058 = vmatpush2.bf16.msra.mxu0 %v9846_v52  ;;  %v9902_v52 = vld [vmem:[%s14203_s1 + $0x4cc] ss:$16 sps:$4 sm:$0xff]  }
 0x224   :  { %7101 = vmatpush2.bf16.msra.mxu1 %v9849_v34  ;;  %7059 = vmatprep.subr.bf16.mxu0 %v9854_v22  ;;  %v9905_v34 = vld [vmem:[%s14203_s1 + $0x6cc] ss:$16 sps:$4 sm:$0xff]   ;;  %v9900_v22 = vld [vmem:[%s14203_s1 + $0x4c8] ss:$16 sps:$4 sm:$0xff]  }
 0x225   :  { %7102 = vmatprep.subr.bf16.mxu1 %v9857_v26  ;;  %v9903_v26 = vld [vmem:[%s14203_s1 + $0x6c8] ss:$16 sps:$4 sm:$0xff]  }
 0x227   :  { %7060 = vmatpush2.bf16.msra.mxu0 %v9852_v42  ;;  %v9908_v42 = vld [vmem:[%s14203_s1 + $0x4ac] ss:$16 sps:$4 sm:$0xff]  }
 0x228   :  { %7103 = vmatpush2.bf16.msra.mxu1 %v9855_v6  ;;  %7061 = vmatprep.subr.bf16.mxu0 %v9860_v16  ;;  %v9911_v6 = vld [vmem:[%s14203_s1 + $0x6ac] ss:$16 sps:$4 sm:$0xff]   ;;  %v9906_v16 = vld [vmem:[%s14203_s1 + $0x4a8] ss:$16 sps:$4 sm:$0xff]  }
 0x229   :  { %7104 = vmatprep.subr.bf16.mxu1 %v9863_v17  ;;  %v9917_v17 = vld [vmem:[%s14203_s1 + $0x68c] ss:$16 sps:$4 sm:$0xff]  }
 0x22b   :  { %7062 = vmatpush2.bf16.msra.mxu0 %v9858_v18  ;;  %v9912_v18 = vld [vmem:[%s14203_s1 + $0x488] ss:$16 sps:$4 sm:$0xff]  }
 0x22c   :  { %7105 = vmatpush2.bf16.msra.mxu1 %v9861_v19  ;;  %7063 = vmatprep.subr.bf16.mxu0 %v9866_v7  ;;  %v9923_v19 = vld [vmem:[%s14203_s1 + $0x66c] ss:$16 sps:$4 sm:$0xff]   ;;  %v9918_v7 = vld [vmem:[%s14203_s1 + $0x468] ss:$16 sps:$4 sm:$0xff]  }
 0x22d   :  { %7106 = vmatprep.subr.bf16.mxu1 %v9869_v12  ;;  %v9921_v12 = vld [vmem:[%s14203_s1 + $0x668] ss:$16 sps:$4 sm:$0xff]  }
 0x22f   :  { %7064 = vmatpush2.bf16.msra.mxu0 %v9864_v13  ;;  %v9926_v13 = vld [vmem:[%s14203_s1 + $0x44c] ss:$16 sps:$4 sm:$0xff]  }
 0x230   :  { %7107 = vmatpush2.bf16.msra.mxu1 %v9867_v54  ;;  %7065 = vmatprep.subr.bf16.mxu0 %v9872_v53  ;;  %v9929_v54 = vld [vmem:[%s14203_s1 + $0x64c] ss:$16 sps:$4 sm:$0xff]   ;;  %v9924_v53 = vld [vmem:[%s14203_s1 + $0x448] ss:$16 sps:$4 sm:$0xff]  }
 0x231   :  { %7108 = vmatprep.subr.bf16.mxu1 %v9875_v55  ;;  %v9927_v55 = vld [vmem:[%s14203_s1 + $0x648] ss:$16 sps:$4 sm:$0xff]  }
 0x233   :  { %7066 = vmatpush2.bf16.msra.mxu0 %v9870_v58  ;;  %v9932_v58 = vld [vmem:[%s14203_s1 + $0x42c] ss:$16 sps:$4 sm:$0xff]  }
 0x234   :  { %7109 = vmatpush2.bf16.msra.mxu1 %v9873_v59  ;;  %7067 = vmatprep.subr.bf16.mxu0 %v9878_v60  ;;  %v9935_v59 = vld [vmem:[%s14203_s1 + $0x62c] ss:$16 sps:$4 sm:$0xff]   ;;  %v9930_v60 = vld [vmem:[%s14203_s1 + $0x428] ss:$16 sps:$4 sm:$0xff]  }
 0x235   :  { %7110 = vmatprep.subr.bf16.mxu1 %v9881_v61  ;;  %v9933_v61 = vld [vmem:[%s14203_s1 + $0x628] ss:$16 sps:$4 sm:$0xff]  }
 0x237   :  { %7068 = vmatpush2.bf16.msra.mxu0 %v9876_v62  ;;  %v9938_v62 = vld [vmem:[%s14203_s1 + $0x40c] ss:$16 sps:$4 sm:$0xff]  }
 0x238   :  { %7111 = vmatpush2.bf16.msra.mxu1 %v9879_v63  ;;  %7069 = vmatprep.subr.bf16.mxu0 %v9884_v0  ;;  %v9941_v63 = vld [vmem:[%s14203_s1 + $0x60c] ss:$16 sps:$4 sm:$0xff]   ;;  %v9936_v0 = vld [vmem:[%s14203_s1 + $0x408] ss:$16 sps:$4 sm:$0xff]  }
 0x239   :  { %7112 = vmatprep.subr.bf16.mxu1 %v9887_v1  ;;  %v9939_v1 = vld [vmem:[%s14203_s1 + $0x608] ss:$16 sps:$4 sm:$0xff]  }
 0x23b   :  { %7070 = vmatpush2.bf16.msra.mxu0 %v9882_v2  ;;  %v9944_v2 = vld [vmem:[%s14203_s1 + $0x5ec] ss:$16 sps:$4 sm:$0xff]  }
 0x23c   :  { %7113 = vmatpush2.bf16.msra.mxu1 %v9885_v3  ;;  %7071 = vmatprep.subr.bf16.mxu0 %v9890_v4  ;;  %v9947_v3 = vld [vmem:[%s14203_s1 + $0x7ec] ss:$16 sps:$4 sm:$0xff]   ;;  %v9942_v4 = vld [vmem:[%s14203_s1 + $0x5e8] ss:$16 sps:$4 sm:$0xff]  }
 0x23d   :  { %7114 = vmatprep.subr.bf16.mxu1 %v9893_v5  ;;  %v9945_v5 = vld [vmem:[%s14203_s1 + $0x7e8] ss:$16 sps:$4 sm:$0xff]  }
 0x23f   :  { %7072 = vmatpush2.bf16.msra.mxu0 %v9888_v46  ;;  %v12747_v46 = vpop.f32.mrf.mxu0 }
 0x240   :  { %7115 = vmatpush2.bf16.msra.mxu1 %v9891_v47  ;;  %7127 = vmatprep.subr.bf16.mxu0 %v9896_v14  ;;  %v12749_v47 = vpop.f32.mrf.mxu1  ;;  %v9950_v14 = vld [vmem:[%s14203_s1 + $0x5cc] ss:$16 sps:$4 sm:$0xff]  }
 0x241   :  { %7170 = vmatprep.subr.bf16.mxu1 %v9899_v15  ;;  %v9953_v15 = vld [vmem:[%s14203_s1 + $0x7cc] ss:$16 sps:$4 sm:$0xff]  }
 0x242   :  { %7074 = vmatmul.mubr.bf16.vlgmr.msra.gmra.mxu0 %v10817_v8  ;;  %v9909_v8 = vld [vmem:[%s14203_s1 + $0x6a8] ss:$16 sps:$4 sm:$0xff]  }
 0x243   :  { %7117 = vmatmul.mubr.bf16.vlgmr.msra.gmra.mxu1 %v10819_v9  ;;  %7128 = vmatpush1.bf16.msra.mxu0 %v9894_v23  ;;  %v9914_v9 = vld [vmem:[%s14203_s1 + $0x48c] ss:$16 sps:$4 sm:$0xff]   ;;  %v9948_v23 = vld [vmem:[%s14203_s1 + $0x5c8] ss:$16 sps:$4 sm:$0xff]  }
 0x244   :  { %7171 = vmatpush1.bf16.msra.mxu1 %v9897_v40  ;;  %7129 = vmatprep.subr.bf16.mxu0 %v9902_v52  ;;  %v9951_v40 = vld [vmem:[%s14203_s1 + $0x7c8] ss:$16 sps:$4 sm:$0xff]   ;;  %v12763_v52 = vpop.f32.mrf.mxu0 }
 0x245   :  { %7172 = vmatprep.subr.bf16.mxu1 %v9905_v34  ;;  %7159 = vmatprep.mubr.bf16.mxu0 %v10926_v41  ;;  %v9915_v41 = vld [vmem:[%s14203_s1 + $0x688] ss:$16 sps:$4 sm:$0xff]   ;;  %v12765_v34 = vpop.f32.mrf.mxu1 }
 0x246   :  { %7202 = vmatprep.mubr.bf16.mxu1 %v10933_v43  ;;  %v9920_v43 = vld [vmem:[%s14203_s1 + $0x46c] ss:$16 sps:$4 sm:$0xff]   ;;  %v6433_v29 = vadd.f32 %v12765_v34, %v12763_v52 }
 0x247   :  { %7130 = vmatpush1.bf16.msra.mxu0 %v9900_v22  ;;  %v9956_v22 = vld [vmem:[%s14203_s1 + $0x5ac] ss:$16 sps:$4 sm:$0xff]  }
 0x248   :  { %7173 = vmatpush1.bf16.msra.mxu1 %v9903_v26  ;;  %7131 = vmatprep.subr.bf16.mxu0 %v9908_v42  ;;  %v9959_v26 = vld [vmem:[%s14203_s1 + $0x7ac] ss:$16 sps:$4 sm:$0xff]   ;;  %v9954_v42 = vld [vmem:[%s14203_s1 + $0x5a8] ss:$16 sps:$4 sm:$0xff]  }
 0x249   :  { %7174 = vmatprep.subr.bf16.mxu1 %v9911_v6  ;;  %v9957_v6 = vld [vmem:[%s14203_s1 + $0x7a8] ss:$16 sps:$4 sm:$0xff]  }
 0x24b   :  { %7132 = vmatpush1.bf16.msra.mxu0 %v9906_v16  ;;  %v12779_v16 = vpop.f32.mrf.mxu0 }
 0x24c   :  { %7175 = vmatpush1.bf16.msra.mxu1 %v9909_v8  ;;  %7133 = vmatprep.subr.bf16.mxu0 %v9914_v9  ;;  %v12781_v8 = vpop.f32.mrf.mxu1  ;;  %v9962_v9 = vld [vmem:[%s14203_s1 + $0x58c] ss:$16 sps:$4 sm:$0xff]  }
 0x24d   :  { %7176 = vmatprep.subr.bf16.mxu1 %v9917_v17  ;;  %v9965_v17 = vld [vmem:[%s14203_s1 + $0x78c] ss:$16 sps:$4 sm:$0xff]   ;;  %v6435_v27 = vadd.f32 %v12781_v8, %v12779_v16 }
 0x24f   :  { %7134 = vmatpush1.bf16.msra.mxu0 %v9912_v18  ;;  %v9960_v18 = vld [vmem:[%s14203_s1 + $0x588] ss:$16 sps:$4 sm:$0xff]  }
 0x250   :  { %7177 = vmatpush1.bf16.msra.mxu1 %v9915_v41  ;;  %7135 = vmatprep.subr.bf16.mxu0 %v9920_v43  ;;  %v9963_v41 = vld [vmem:[%s14203_s1 + $0x788] ss:$16 sps:$4 sm:$0xff]   ;;  %v12795_v43 = vpop.f32.mrf.mxu0 }
 0x251   :  { %7178 = vmatprep.subr.bf16.mxu1 %v9923_v19  ;;  %v12797_v19 = vpop.f32.mrf.mxu1 }
 0x253   :  { %7136 = vmatpush1.bf16.msra.mxu0 %v9918_v7  ;;  %v9968_v7 = vld [vmem:[%s14203_s1 + $0x56c] ss:$16 sps:$4 sm:$0xff]  }
 0x254   :  { %7179 = vmatpush1.bf16.msra.mxu1 %v9921_v12  ;;  %7137 = vmatprep.subr.bf16.mxu0 %v9926_v13  ;;  %v9971_v12 = vld [vmem:[%s14203_s1 + $0x76c] ss:$16 sps:$4 sm:$0xff]   ;;  %v12805_v13 = vpop.f32.mrf.mxu0 }
 0x255   :  { %7180 = vmatprep.subr.bf16.mxu1 %v9929_v54  ;;  %v12807_v54 = vpop.f32.mrf.mxu1 }
 0x257   :  { %7138 = vmatpush1.bf16.msra.mxu0 %v9924_v53  ;;  %v9966_v53 = vld [vmem:[%s14203_s1 + $0x568] ss:$16 sps:$4 sm:$0xff]  }
 0x258   :  { %7181 = vmatpush1.bf16.msra.mxu1 %v9927_v55  ;;  %7139 = vmatprep.subr.bf16.mxu0 %v9932_v58  ;;  %v9969_v55 = vld [vmem:[%s14203_s1 + $0x768] ss:$16 sps:$4 sm:$0xff]   ;;  %v9974_v58 = vld [vmem:[%s14203_s1 + $0x54c] ss:$16 sps:$4 sm:$0xff]  }
 0x259   :  { %7182 = vmatprep.subr.bf16.mxu1 %v9935_v59  ;;  %v9977_v59 = vld [vmem:[%s14203_s1 + $0x74c] ss:$16 sps:$4 sm:$0xff]  }
 0x25b   :  { %7140 = vmatpush1.bf16.msra.mxu0 %v9930_v60  ;;  %v12821_v60 = vpop.f32.mrf.mxu0 }
 0x25c   :  { %7183 = vmatpush1.bf16.msra.mxu1 %v9933_v61  ;;  %7141 = vmatprep.subr.bf16.mxu0 %v9938_v62  ;;  %v12823_v61 = vpop.f32.mrf.mxu1  ;;  %v9972_v62 = vld [vmem:[%s14203_s1 + $0x548] ss:$16 sps:$4 sm:$0xff]  }
 0x25d   :  { %7184 = vmatprep.subr.bf16.mxu1 %v9941_v63  ;;  %v9975_v63 = vld [vmem:[%s14203_s1 + $0x748] ss:$16 sps:$4 sm:$0xff]  }
 0x25f   :  { %7142 = vmatpush1.bf16.msra.mxu0 %v9936_v0  ;;  %v9980_v0 = vld [vmem:[%s14203_s1 + $0x52c] ss:$16 sps:$4 sm:$0xff]  }
 0x260   :  { %7185 = vmatpush1.bf16.msra.mxu1 %v9939_v1  ;;  %7143 = vmatprep.subr.bf16.mxu0 %v9944_v2  ;;  %v9983_v1 = vld [vmem:[%s14203_s1 + $0x72c] ss:$16 sps:$4 sm:$0xff]   ;;  %v12837_v2 = vpop.f32.mrf.mxu0 }
 0x261   :  { %7186 = vmatprep.subr.bf16.mxu1 %v9947_v3  ;;  %v12839_v3 = vpop.f32.mrf.mxu1  ;;  %v6478_v28 = vadd.f32 %v12837_v2, %v6435_v27  ;;  %v10052_v27 = vld [vmem:[%s14203_s1 + $0x9ac] ss:$16 sps:$4 sm:$0xff]  }
 0x263   :  { %7144 = vmatpush2.bf16.msra.mxu0 %v9942_v4  ;;  %v9978_v4 = vld [vmem:[%s14203_s1 + $0x528] ss:$16 sps:$4 sm:$0xff]  }
 0x264   :  { %7187 = vmatpush2.bf16.msra.mxu1 %v9945_v5  ;;  %7145 = vmatprep.subr.bf16.mxu0 %v9950_v14  ;;  %v9981_v5 = vld [vmem:[%s14203_s1 + $0x728] ss:$16 sps:$4 sm:$0xff]   ;;  %v9986_v14 = vld [vmem:[%s14203_s1 + $0x50c] ss:$16 sps:$4 sm:$0xff]  }
 0x265   :  { %7188 = vmatprep.subr.bf16.mxu1 %v9953_v15  ;;  %v9989_v15 = vld [vmem:[%s14203_s1 + $0x70c] ss:$16 sps:$4 sm:$0xff]  }
 0x267   :  { %7146 = vmatpush2.bf16.msra.mxu0 %v9948_v23  ;;  %v12853_v23 = vpop.f32.mrf.mxu0 }
 0x268   :  { %7189 = vmatpush2.bf16.msra.mxu1 %v9951_v40  ;;  %7147 = vmatprep.subr.bf16.mxu0 %v9956_v22  ;;  %v12855_v40 = vpop.f32.mrf.mxu1  ;;  %v9984_v22 = vld [vmem:[%s14203_s1 + $0x508] ss:$16 sps:$4 sm:$0xff]  }
 0x269   :  { %7190 = vmatprep.subr.bf16.mxu1 %v9959_v26  ;;  %v9987_v26 = vld [vmem:[%s14203_s1 + $0x708] ss:$16 sps:$4 sm:$0xff]  }
 0x26b   :  { %7148 = vmatpush2.bf16.msra.mxu0 %v9954_v42  ;;  %v12863_v42 = vpop.f32.mrf.mxu0 }
 0x26c   :  { %7191 = vmatpush2.bf16.msra.mxu1 %v9957_v6  ;;  %7149 = vmatprep.subr.bf16.mxu0 %v9962_v9  ;;  %v12865_v6 = vpop.f32.mrf.mxu1  ;;  %v9992_v9 = vld [vmem:[%s14203_s1 + $0x8ec] ss:$16 sps:$4 sm:$0xff]  }
 0x26d   :  { %7192 = vmatprep.subr.bf16.mxu1 %v9965_v17  ;;  %v9995_v17 = vld [vmem:[%s14203_s1 + $0xaec] ss:$16 sps:$4 sm:$0xff]  }
 0x26f   :  { %7150 = vmatpush2.bf16.msra.mxu0 %v9960_v18  ;;  %v9990_v18 = vld [vmem:[%s14203_s1 + $0x8e8] ss:$16 sps:$4 sm:$0xff]  }
 0x270   :  { %7193 = vmatpush2.bf16.msra.mxu1 %v9963_v41  ;;  %7151 = vmatprep.subr.bf16.mxu0 %v9968_v7  ;;  %v9993_v41 = vld [vmem:[%s14203_s1 + $0xae8] ss:$16 sps:$4 sm:$0xff]   ;;  %v12879_v7 = vpop.f32.mrf.mxu0 }
 0x271   :  { %7194 = vmatprep.subr.bf16.mxu1 %v9971_v12  ;;  %v12881_v12 = vpop.f32.mrf.mxu1 }
 0x273   :  { %7152 = vmatpush2.bf16.msra.mxu0 %v9966_v53  ;;  %v9998_v53 = vld [vmem:[%s14203_s1 + $0x8cc] ss:$16 sps:$4 sm:$0xff]  }
 0x274   :  { %7195 = vmatpush2.bf16.msra.mxu1 %v9969_v55  ;;  %7153 = vmatprep.subr.bf16.mxu0 %v9974_v58  ;;  %v10001_v55 = vld [vmem:[%s14203_s1 + $0xacc] ss:$16 sps:$4 sm:$0xff]   ;;  %v9996_v58 = vld [vmem:[%s14203_s1 + $0x8c8] ss:$16 sps:$4 sm:$0xff]  }
 0x275   :  { %7196 = vmatprep.subr.bf16.mxu1 %v9977_v59  ;;  %v9999_v59 = vld [vmem:[%s14203_s1 + $0xac8] ss:$16 sps:$4 sm:$0xff]  }
 0x277   :  { %7154 = vmatpush2.bf16.msra.mxu0 %v9972_v62  ;;  %v12897_v62 = vpop.f32.mrf.mxu0 }
 0x278   :  { %7197 = vmatpush2.bf16.msra.mxu1 %v9975_v63  ;;  %7155 = vmatprep.subr.bf16.mxu0 %v9980_v0  ;;  %v12899_v63 = vpop.f32.mrf.mxu1  ;;  %v10002_v0 = vld [vmem:[%s14203_s1 + $0x8a8] ss:$16 sps:$4 sm:$0xff]  }
 0x279   :  { %7198 = vmatprep.subr.bf16.mxu1 %v9983_v1  ;;  %v10005_v1 = vld [vmem:[%s14203_s1 + $0xaa8] ss:$16 sps:$4 sm:$0xff]  }
 0x27b   :  { %7156 = vmatpush2.bf16.msra.mxu0 %v9978_v4  ;;  %v12915_v4 = vpop.f32.mrf.mxu0 }
 0x27c   :  { %7199 = vmatpush2.bf16.msra.mxu1 %v9981_v5  ;;  %7157 = vmatprep.subr.bf16.mxu0 %v9986_v14  ;;  %v12917_v5 = vpop.f32.mrf.mxu1 }
 0x27d   :  { %7200 = vmatprep.subr.bf16.mxu1 %v9989_v15  ;;  %v12925_v14 = vpop.f32.mrf.mxu0 }
 0x27e   :  { %v12927_v15 = vpop.f32.mrf.mxu1 }
 0x27f   :  { %7158 = vmatpush2.bf16.msra.mxu0 %v9984_v22  ;;  %v10008_v22 = vld [vmem:[%s14203_s1 + $0x888] ss:$16 sps:$4 sm:$0xff]  }
 0x280   :  { %7201 = vmatpush2.bf16.msra.mxu1 %v9987_v26  ;;  %7213 = vmatprep.subr.bf16.mxu0 %v9992_v9  ;;  %v10011_v26 = vld [vmem:[%s14203_s1 + $0xa88] ss:$16 sps:$4 sm:$0xff]   ;;  %v10016_v9 = vld [vmem:[%s14203_s1 + $0x86c] ss:$16 sps:$4 sm:$0xff]  }
 0x281   :  { %7256 = vmatprep.subr.bf16.mxu1 %v9995_v17  ;;  %v10019_v17 = vld [vmem:[%s14203_s1 + $0xa6c] ss:$16 sps:$4 sm:$0xff]  }
 0x282   :  { %7160 = vmatmul.mubr.bf16.vlgmr.msra.gmra.mxu0 %v11047_v20  ;;  %v10004_v20 = vld [vmem:[%s14203_s1 + $0x8ac] ss:$16 sps:$4 sm:$0xff]  }
 0x283   :  { %7203 = vmatmul.mubr.bf16.vlgmr.msra.gmra.mxu1 %v11051_v21  ;;  %7214 = vmatpush1.bf16.msra.mxu0 %v9990_v18  ;;  %v10007_v21 = vld [vmem:[%s14203_s1 + $0xaac] ss:$16 sps:$4 sm:$0xff]   ;;  %v12941_v18 = vpop.f32.mrf.mxu0 }
 0x284   :  { %7257 = vmatpush1.bf16.msra.mxu1 %v9993_v41  ;;  %7215 = vmatprep.subr.bf16.mxu0 %v9998_v53  ;;  %v12943_v41 = vpop.f32.mrf.mxu1  ;;  %v10014_v53 = vld [vmem:[%s14203_s1 + $0x868] ss:$16 sps:$4 sm:$0xff]  }
 0x285   :  { %7258 = vmatprep.subr.bf16.mxu1 %v10001_v55  ;;  %7245 = vmatprep.mubr.bf16.mxu0 %v11098_v33  ;;  %v10010_v33 = vld [vmem:[%s14203_s1 + $0x88c] ss:$16 sps:$4 sm:$0xff]   ;;  %v10017_v55 = vld [vmem:[%s14203_s1 + $0xa68] ss:$16 sps:$4 sm:$0xff]  }
 0x286   :  { %7288 = vmatprep.mubr.bf16.mxu1 %v11105_v35  ;;  %v10013_v35 = vld [vmem:[%s14203_s1 + $0xa8c] ss:$16 sps:$4 sm:$0xff]  }
 0x287   :  { %7216 = vmatpush1.bf16.msra.mxu0 %v9996_v58  ;;  %v10022_v58 = vld [vmem:[%s14203_s1 + $0x84c] ss:$16 sps:$4 sm:$0xff]  }
 0x288   :  { %7259 = vmatpush1.bf16.msra.mxu1 %v9999_v59  ;;  %7217 = vmatprep.subr.bf16.mxu0 %v10004_v20  ;;  %v10025_v59 = vld [vmem:[%s14203_s1 + $0xa4c] ss:$16 sps:$4 sm:$0xff]   ;;  %v12957_v20 = vpop.f32.mrf.mxu0 }
 0x289   :  { %7260 = vmatprep.subr.bf16.mxu1 %v10007_v21  ;;  %v12959_v21 = vpop.f32.mrf.mxu1 }
 0x28b   :  { %7218 = vmatpush1.bf16.msra.mxu0 %v10002_v0  ;;  %v10020_v0 = vld [vmem:[%s14203_s1 + $0x848] ss:$16 sps:$4 sm:$0xff]  }
 0x28c   :  { %7261 = vmatpush1.bf16.msra.mxu1 %v10005_v1  ;;  %7219 = vmatprep.subr.bf16.mxu0 %v10010_v33  ;;  %v10023_v1 = vld [vmem:[%s14203_s1 + $0xa48] ss:$16 sps:$4 sm:$0xff]   ;;  %v10028_v33 = vld [vmem:[%s14203_s1 + $0x82c] ss:$16 sps:$4 sm:$0xff]  }
 0x28d   :  { %7262 = vmatprep.subr.bf16.mxu1 %v10013_v35  ;;  %v10031_v35 = vld [vmem:[%s14203_s1 + $0xa2c] ss:$16 sps:$4 sm:$0xff]  }
 0x28f   :  { %7220 = vmatpush1.bf16.msra.mxu0 %v10008_v22  ;;  %v12973_v22 = vpop.f32.mrf.mxu0 }
 0x290   :  { %7263 = vmatpush1.bf16.msra.mxu1 %v10011_v26  ;;  %7221 = vmatprep.subr.bf16.mxu0 %v10016_v9  ;;  %v12975_v26 = vpop.f32.mrf.mxu1  ;;  %v10026_v9 = vld [vmem:[%s14203_s1 + $0x828] ss:$16 sps:$4 sm:$0xff]  }
 0x291   :  { %7264 = vmatprep.subr.bf16.mxu1 %v10019_v17  ;;  %v10029_v17 = vld [vmem:[%s14203_s1 + $0xa28] ss:$16 sps:$4 sm:$0xff]  }
 0x293   :  { %7222 = vmatpush1.bf16.msra.mxu0 %v10014_v53  ;;  %v12983_v53 = vpop.f32.mrf.mxu0 }
 0x294   :  { %7265 = vmatpush1.bf16.msra.mxu1 %v10017_v55  ;;  %7223 = vmatprep.subr.bf16.mxu0 %v10022_v58  ;;  %v12985_v55 = vpop.f32.mrf.mxu1  ;;  %v10034_v58 = vld [vmem:[%s14203_s1 + $0x80c] ss:$16 sps:$4 sm:$0xff]  }
 0x295   :  { %7266 = vmatprep.subr.bf16.mxu1 %v10025_v59  ;;  %v10037_v59 = vld [vmem:[%s14203_s1 + $0xa0c] ss:$16 sps:$4 sm:$0xff]  }
 0x297   :  { %7224 = vmatpush1.bf16.msra.mxu0 %v10020_v0  ;;  %v10032_v0 = vld [vmem:[%s14203_s1 + $0x808] ss:$16 sps:$4 sm:$0xff]  }
 0x298   :  { %7267 = vmatpush1.bf16.msra.mxu1 %v10023_v1  ;;  %7225 = vmatprep.subr.bf16.mxu0 %v10028_v33  ;;  %v10035_v1 = vld [vmem:[%s14203_s1 + $0xa08] ss:$16 sps:$4 sm:$0xff]   ;;  %v12999_v33 = vpop.f32.mrf.mxu0 }
 0x299   :  { %7268 = vmatprep.subr.bf16.mxu1 %v10031_v35  ;;  %v13001_v35 = vpop.f32.mrf.mxu1 }
 0x29b   :  { %7226 = vmatpush1.bf16.msra.mxu0 %v10026_v9  ;;  %v10043_v9 = vld [vmem:[%s14203_s1 + $0xbec] ss:$16 sps:$4 sm:$0xff]  }
 0x29c   :  { %7269 = vmatpush1.bf16.msra.mxu1 %v10029_v17  ;;  %7227 = vmatprep.subr.bf16.mxu0 %v10034_v58  ;;  %v10038_v17 = vld [vmem:[%s14203_s1 + $0x9e8] ss:$16 sps:$4 sm:$0xff]   ;;  %v13015_v58 = vpop.f32.mrf.mxu0 }
 0x29d   :  { %7270 = vmatprep.subr.bf16.mxu1 %v10037_v59  ;;  %v13017_v59 = vpop.f32.mrf.mxu1 }
 0x29e   :  { %v13042_v52 = vpop.f32.mrf.mxu0 }
 0x29f   :  { %7228 = vmatpush1.bf16.msra.mxu0 %v10032_v0  ;;  %v10049_v0 = vld [vmem:[%s14203_s1 + $0xbcc] ss:$16 sps:$4 sm:$0xff]   ;;  %v13044_v34 = vpop.f32.mrf.mxu1 }
 0x2a0   :  { %7271 = vmatpush1.bf16.msra.mxu1 %v10035_v1  ;;  %7229 = vmatprep.subr.bf16.mxu0 %v10040_v39  ;;  %v6431_v1 = vadd.f32 %v12749_v47, %v12747_v46  ;;  %v6437_v39 = vadd.f32 %v12797_v19, %v12795_v43  ;;  %v10047_v46 = vld [vmem:[%s14203_s1 + $0xbc8] ss:$16 sps:$4 sm:$0xff]   ;;  %v6476_v47 = vadd.f32 %v12821_v60, %v6433_v29  ;;  %v13053_v8 = vpop.f32.mrf.mxu0 }
 0x2a1   :  { %7272 = vmatprep.subr.bf16.mxu1 %v10043_v9  ;;  %v13055_v43 = vpop.f32.mrf.mxu1  ;;  %v6521_v19 = vadd.f32 %v12839_v3, %v6478_v28 }
 0x2a2   :  { %v6474_v9 = vadd.f32 %v12805_v13, %v6431_v1  ;;  %v6480_v16 = vadd.f32 %v12853_v23, %v6437_v39  ;;  %v10053_v13 = vld [vmem:[%s14203_s1 + $0xba8] ss:$16 sps:$4 sm:$0xff]   ;;  %v6519_v60 = vadd.f32 %v12823_v61, %v6476_v47 }
 0x2a3   :  { %7230 = vmatpush2.bf16.msra.mxu0 %v10038_v17  ;;  %v6564_v3 = vadd.f32 %v12897_v62, %v6521_v19  ;;  %v13076_v17 = vpop.f32.mrf.mxu0  ;;  %v13078_v61 = vpop.f32.mrf.mxu1  ;;  %v10056_v1 = vld [vmem:[%s14203_s1 + $0x988] ss:$16 sps:$4 sm:$0xff]  }
 0x2a4   :  { %7273 = vmatpush2.bf16.msra.mxu1 %v10041_v38  ;;  %7231 = vmatprep.subr.bf16.mxu0 %v10046_v32  ;;  %v10055_v38 = vld [vmem:[%s14203_s1 + $0xbac] ss:$16 sps:$4 sm:$0xff]   ;;  %v6517_v29 = vadd.f32 %v12807_v54, %v6474_v9  ;;  %v10050_v32 = vld [vmem:[%s14203_s1 + $0x9a8] ss:$16 sps:$4 sm:$0xff]   ;;  %v6523_v28 = vadd.f32 %v12855_v40, %v6480_v16  ;;  %v6562_v23 = vadd.f32 %v12879_v7, %v6519_v60 }
 0x2a5   :  { %7274 = vmatprep.subr.bf16.mxu1 %v10049_v0  ;;  %v10058_v54 = vld [vmem:[%s14203_s1 + $0x98c] ss:$16 sps:$4 sm:$0xff]   ;;  %v10059_v40 = vld [vmem:[%s14203_s1 + $0xb88] ss:$16 sps:$4 sm:$0xff]   ;;  %v6821_v9 = vpop.f32.mrf.mxu0 }
 0x2a6   :  { %v6560_v2 = vadd.f32 %v12863_v42, %v6517_v29  ;;  %v6566_v0 = vadd.f32 %v12915_v4, %v6523_v28  ;;  %v10064_v42 = vld [vmem:[%s14203_s1 + $0x96c] ss:$16 sps:$4 sm:$0xff]   ;;  %v6607_v4 = vadd.f32 %v12899_v63, %v6564_v3  ;;  %v6605_v39 = vadd.f32 %v12881_v12, %v6562_v23  ;;  %v10062_v16 = vld [vmem:[%s14203_s1 + $0x968] ss:$16 sps:$4 sm:$0xff]  }
 0x2a7   :  { %7232 = vmatpush2.bf16.msra.mxu0 %v10044_v37  ;;  %v10061_v37 = vld [vmem:[%s14203_s1 + $0xb8c] ss:$16 sps:$4 sm:$0xff]   ;;  %v10074_v23 = vld [vmem:[%s14203_s1 + $0x928] ss:$16 sps:$4 sm:$0xff]  }
 0x2a8   :  { %7275 = vmatpush2.bf16.msra.mxu1 %v10047_v46  ;;  %7233 = vmatprep.subr.bf16.mxu0 %v10052_v27  ;;  %v10067_v7 = vld [vmem:[%s14203_s1 + $0xb6c] ss:$16 sps:$4 sm:$0xff]   ;;  %v6603_v62 = vadd.f32 %v12865_v6, %v6560_v2  ;;  %v13096_v46 = vpop.f32.mrf.mxu1  ;;  %v6609_v47 = vadd.f32 %v12917_v5, %v6566_v0  ;;  %v10065_v6 = vld [vmem:[%s14203_s1 + $0xb68] ss:$16 sps:$4 sm:$0xff]   ;;  %v6648_v12 = vadd.f32 %v12941_v18, %v6605_v39 }
 0x2a9   :  { %7276 = vmatprep.subr.bf16.mxu1 %v10055_v38  ;;  %v6650_v38 = vadd.f32 %v12957_v20, %v6607_v4  ;;  %v10070_v63 = vld [vmem:[%s14203_s1 + $0x94c] ss:$16 sps:$4 sm:$0xff]   ;;  %v6823_v20 = vpop.f32.mrf.mxu0  ;;  %v10068_v18 = vld [vmem:[%s14203_s1 + $0x948] ss:$16 sps:$4 sm:$0xff]  }
 0x2aa   :  { %v6646_v27 = vadd.f32 %v12925_v14, %v6603_v62  ;;  %v10073_v5 = vld [vmem:[%s14203_s1 + $0xb4c] ss:$16 sps:$4 sm:$0xff]   ;;  %v6652_v14 = vadd.f32 %v12973_v22, %v6609_v47  ;;  %v6866_v29 = vpop.f32.mrf.mxu1  ;;  %v6691_v60 = vadd.f32 %v12943_v41, %v6648_v12  ;;  %v10077_v0 = vld [vmem:[%s14203_s1 + $0xb28] ss:$16 sps:$4 sm:$0xff]  }
 0x2ab   :  { %7234 = vmatpush2.bf16.msra.mxu0 %v10050_v32  ;;  %v6693_v32 = vadd.f32 %v12959_v21, %v6650_v38  ;;  %v10079_v21 = vld [vmem:[%s14203_s1 + $0xb2c] ss:$16 sps:$4 sm:$0xff]   ;;  %v10080_v4 = vld [vmem:[%s14203_s1 + $0x908] ss:$16 sps:$4 sm:$0xff]  }
 0x2ac   :  { %7277 = vmatpush2.bf16.msra.mxu1 %v10053_v13  ;;  %7235 = vmatprep.subr.bf16.mxu0 %v10058_v54  ;;  %v6689_v19 = vadd.f32 %v12927_v15, %v6646_v27  ;;  %v10071_v13 = vld [vmem:[%s14203_s1 + $0xb48] ss:$16 sps:$4 sm:$0xff]   ;;  %v6903_v54 = vpop.f32.mrf.mxu0  ;;  %v13124_v22 = vpop.f32.mrf.mxu1  ;;  %v10076_v15 = vld [vmem:[%s14203_s1 + $0x92c] ss:$16 sps:$4 sm:$0xff]   ;;  %v6734_v41 = vadd.f32 %v12999_v33, %v6691_v60 }
 0x2ad   :  { %7278 = vmatprep.subr.bf16.mxu1 %v10061_v37  ;;  %v6695_v37 = vadd.f32 %v12975_v26, %v6652_v14  ;;  %v6736_v2 = vadd.f32 %v13015_v58, %v6693_v32  ;;  %v10085_v33 = vld [vmem:[%s14203_s1 + $0xb0c] ss:$16 sps:$4 sm:$0xff]   ;;  %v10083_v39 = vld [vmem:[%s14203_s1 + $0xb08] ss:$16 sps:$4 sm:$0xff]  }
 0x2ae   :  { %v6732_v28 = vadd.f32 %v12983_v53, %v6689_v19  ;;  %v6948_v26 = vpop.f32.mrf.mxu1  ;;  %v10082_v53 = vld [vmem:[%s14203_s1 + $0x90c] ss:$16 sps:$4 sm:$0xff]   ;;  %v10089_v38 = vld [vmem:[%s14203_s1 + $0xee8] ss:$16 sps:$4 sm:$0xff]  }
 0x2af   :  { %7236 = vmatpush2.bf16.msra.mxu0 %v10056_v1  ;;  %v6738_v3 = vadd.f32 %v13042_v52, %v6695_v37  ;;  %v6905_v1 = vpop.f32.mrf.mxu0  ;;  %v6779_v52 = vadd.f32 %v13017_v59, %v6736_v2 }
 0x2b0   :  { %7279 = vmatpush2.bf16.msra.mxu1 %v10059_v40  ;;  %7237 = vmatprep.subr.bf16.mxu0 %v10064_v42  ;;  %v6775_v58 = vadd.f32 %v12985_v55, %v6732_v28  ;;  %v6777_v40 = vadd.f32 %v13001_v35, %v6734_v41  ;;  %v6950_v47 = vpop.f32.mrf.mxu1  ;;  %v10088_v35 = vld [vmem:[%s14203_s1 + $0xcec] ss:$16 sps:$4 sm:$0xff]  }
 0x2b1   :  { %7280 = vmatprep.subr.bf16.mxu1 %v10067_v7  ;;  %v6781_v42 = vadd.f32 %v13044_v34, %v6738_v3  ;;  %v6822_v62 = vadd.f32 %v6821_v9, %v6779_v52  ;;  %v6907_v59 = vpop.f32.mrf.mxu0  ;;  %v10091_v34 = vld [vmem:[%s14203_s1 + $0xeec] ss:$16 sps:$4 sm:$0xff]  }
 0x2b2   :  { %v6818_v7 = vadd.f32 %v13053_v8, %v6775_v58  ;;  %v6820_v55 = vadd.f32 %v13076_v17, %v6777_v40  ;;  %v10086_v17 = vld [vmem:[%s14203_s1 + $0xce8] ss:$16 sps:$4 sm:$0xff]   ;;  %v6952_v12 = vpop.f32.mrf.mxu1 }
 0x2b3   :  { %7238 = vmatpush2.bf16.msra.mxu0 %v10062_v16  ;;  %v6824_v8 = vadd.f32 %v6823_v20, %v6781_v42  ;;  %v6865_v27 = vadd.f32 %v13096_v46, %v6822_v62  ;;  %v10097_v46 = vld [vmem:[%s14203_s1 + $0xecc] ss:$16 sps:$4 sm:$0xff]   ;;  %v10104_v42 = vld [vmem:[%s14203_s1 + $0xc88] ss:$16 sps:$4 sm:$0xff]  }
 0x2b4   :  { %7281 = vmatpush2.bf16.msra.mxu1 %v10065_v6  ;;  %7239 = vmatprep.subr.bf16.mxu0 %v10070_v63  ;;  %v6861_v9 = vadd.f32 %v13055_v43, %v6818_v7  ;;  %v6863_v16 = vadd.f32 %v13078_v61, %v6820_v55  ;;  %v6909_v6 = vpop.f32.mrf.mxu0  ;;  %v10094_v43 = vld [vmem:[%s14203_s1 + $0xccc] ss:$16 sps:$4 sm:$0xff]   ;;  %v10107_v7 = vld [vmem:[%s14203_s1 + $0xe88] ss:$16 sps:$4 sm:$0xff]  }
 0x2b5   :  { %7282 = vmatprep.subr.bf16.mxu1 %v10073_v5  ;;  %v6867_v63 = vadd.f32 %v6866_v29, %v6824_v8  ;;  %v6908_v14 = vadd.f32 %v6907_v59, %v6865_v27  ;;  %v10095_v29 = vld [vmem:[%s14203_s1 + $0xec8] ss:$16 sps:$4 sm:$0xff]   ;;  %v10112_v62 = vld [vmem:[%s14203_s1 + $0xc6c] ss:$16 sps:$4 sm:$0xff]  }
 0x2b6   :  { %v6904_v5 = vadd.f32 %v6903_v54, %v6861_v9  ;;  %v6906_v20 = vadd.f32 %v6905_v1, %v6863_v16  ;;  %v10113_v8 = vld [vmem:[%s14203_s1 + $0xe68] ss:$16 sps:$4 sm:$0xff]   ;;  %v10118_v9 = vld [vmem:[%s14203_s1 + $0xc4c] ss:$16 sps:$4 sm:$0xff]  }
 0x2b7   :  { %7240 = vmatpush2.bf16.msra.mxu0 %v10068_v18  ;;  %v6910_v61 = vadd.f32 %v6909_v6, %v6867_v63  ;;  %v10092_v18 = vld [vmem:[%s14203_s1 + $0xcc8] ss:$16 sps:$4 sm:$0xff]   ;;  %v10121_v27 = vld [vmem:[%s14203_s1 + $0xe4c] ss:$16 sps:$4 sm:$0xff]  }
 0x2b8   :  { %7283 = vmatpush2.bf16.msra.mxu1 %v10071_v13  ;;  %7241 = vmatprep.subr.bf16.mxu0 %v10076_v15  ;;  %v6947_v54 = vadd.f32 %v13124_v22, %v6904_v5  ;;  %v6951_v15 = vadd.f32 %v6950_v47, %v6908_v14  ;;  %v10101_v22 = vld [vmem:[%s14203_s1 + $0xea8] ss:$16 sps:$4 sm:$0xff]   ;;  %v10127_v63 = vld [vmem:[%s14203_s1 + $0xe2c] ss:$16 sps:$4 sm:$0xff]  }
 0x2b9   :  { %7284 = vmatprep.subr.bf16.mxu1 %v10079_v21  ;;  %v6949_v21 = vadd.f32 %v6948_v26, %v6906_v20  ;;  %v6953_v2 = vadd.f32 %v6952_v12, %v6910_v61  ;;  %v10116_v12 = vld [vmem:[%s14203_s1 + $0xc48] ss:$16 sps:$4 sm:$0xff]  }
 0x2ba   :  { %v10125_v61 = vld [vmem:[%s14203_s1 + $0xe28] ss:$16 sps:$4 sm:$0xff]  }
 0x2bb   :  { %7242 = vmatpush2.bf16.msra.mxu0 %v10074_v23  ;;  %v10098_v23 = vld [vmem:[%s14203_s1 + $0xca8] ss:$16 sps:$4 sm:$0xff]  }
 0x2bc   :  { %7285 = vmatpush2.bf16.msra.mxu1 %v10077_v0  ;;  %7243 = vmatprep.subr.bf16.mxu0 %v10082_v53 }
 0x2bd   :  { %7286 = vmatprep.subr.bf16.mxu1 %v10085_v33 }
 0x2bf   :  { %7244 = vmatpush2.bf16.msra.mxu0 %v10080_v4  ;;  %v10115_v4 = vld [vmem:[%s14203_s1 + $0xe6c] ss:$16 sps:$4 sm:$0xff]  }
 0x2c0   :  { %7287 = vmatpush2.bf16.msra.mxu1 %v10083_v39  ;;  %7299 = vmatprep.subr.bf16.mxu0 %v10088_v35 }
 0x2c1   :  { %7342 = vmatprep.subr.bf16.mxu1 %v10091_v34  ;;  %v10110_v34 = vld [vmem:[%s14203_s1 + $0xc68] ss:$16 sps:$4 sm:$0xff]  }
 0x2c2   :  { %v6989_v19 = vpop.f32.mrf.mxu0  ;;  %7246 = vmatmul.mubr.bf16.vlgmr.msra.gmra.mxu0 %v11295_v48  ;;  %v10100_v48 = vld [vmem:[%s14203_s1 + $0xcac] ss:$16 sps:$4 sm:$0xff]  }
 0x2c3   :  { %v7032_v32 = vpop.f32.mrf.mxu1  ;;  %7289 = vmatmul.mubr.bf16.vlgmr.msra.gmra.mxu1 %v11299_v49  ;;  %7300 = vmatpush1.bf16.msra.mxu0 %v10086_v17  ;;  %v10103_v49 = vld [vmem:[%s14203_s1 + $0xeac] ss:$16 sps:$4 sm:$0xff]   ;;  %v6990_v41 = vadd.f32 %v6989_v19, %v6947_v54  ;;  %v10128_v54 = vld [vmem:[%s14203_s1 + $0xc08] ss:$16 sps:$4 sm:$0xff]  }
 0x2c4   :  { %7343 = vmatpush1.bf16.msra.mxu1 %v10089_v38  ;;  %v6991_v13 = vpop.f32.mrf.mxu0  ;;  %7301 = vmatprep.subr.bf16.mxu0 %v10094_v43  ;;  %v10119_v43 = vld [vmem:[%s14203_s1 + $0xe48] ss:$16 sps:$4 sm:$0xff]  }
 0x2c5   :  { %v7034_v60 = vpop.f32.mrf.mxu1  ;;  %7344 = vmatprep.subr.bf16.mxu1 %v10097_v46  ;;  %7331 = vmatprep.mubr.bf16.mxu0 %v11319_v30  ;;  %v10106_v30 = vld [vmem:[%s14203_s1 + $0xc8c] ss:$16 sps:$4 sm:$0xff]   ;;  %v6992_v1 = vadd.f32 %v6991_v13, %v6949_v21  ;;  %v7033_v58 = vadd.f32 %v7032_v32, %v6990_v41  ;;  %v10122_v32 = vld [vmem:[%s14203_s1 + $0xc28] ss:$16 sps:$4 sm:$0xff]  }
 0x2c6   :  { %7374 = vmatprep.mubr.bf16.mxu1 %v11323_v31  ;;  %v6993_v37 = vpop.f32.mrf.mxu0  ;;  %v10109_v31 = vld [vmem:[%s14203_s1 + $0xe8c] ss:$16 sps:$4 sm:$0xff]  }
 0x2c7   :  { %v7036_v28 = vpop.f32.mrf.mxu1  ;;  %v6994_v3 = vadd.f32 %v6993_v37, %v6951_v15  ;;  %7302 = vmatpush1.bf16.msra.mxu0 %v10092_v18  ;;  %v7035_v39 = vadd.f32 %v7034_v60, %v6992_v1  ;;  %v10124_v46 = vld [vmem:[%s14203_s1 + $0xc2c] ss:$16 sps:$4 sm:$0xff]   ;;  %v10131_v15 = vld [vmem:[%s14203_s1 + $0xe08] ss:$16 sps:$4 sm:$0xff]  }
 0x2c8   :  { %7345 = vmatpush1.bf16.msra.mxu1 %v10095_v29  ;;  %v6995_v0 = vpop.f32.mrf.mxu0  ;;  %7303 = vmatprep.subr.bf16.mxu0 %v10100_v48  ;;  %v10130_v18 = vld [vmem:[%s14203_s1 + $0xc0c] ss:$16 sps:$4 sm:$0xff]  }
 0x2c9   :  { %7346 = vmatprep.subr.bf16.mxu1 %v10103_v49  ;;  %v13211_v26 = vadd.f32 %v7036_v28, %v6994_v3  ;;  %v6996_v53 = vadd.f32 %v6995_v0, %v6953_v2  ;;  %v7038_v33 = vpop.f32.mrf.mxu1  ;;  %v10133_v29 = vld [vmem:[%s14203_s1 + $0xe0c] ss:$16 sps:$4 sm:$0xff]   ;;  %v10134_v0 = vld [vmem:[%s14203_s1 + $0xde8] ss:$16 sps:$4 sm:$0xff]  }
 0x2ca   :  { %v10136_v21 = vld [vmem:[%s14203_s1 + $0xdec] ss:$16 sps:$4 sm:$0xff]  }
 0x2cb   :  { %v7742_v52 = vmul.f32 0.0, %v13211_v26  ;;  %v13214_v40 = vadd.f32 %v7038_v33, %v6996_v53  ;;  %7304 = vmatpush1.bf16.msra.mxu0 %v10098_v23  ;;  %v10139_v37 = vld [vmem:[%s14203_s1 + $0xfec] ss:$16 sps:$4 sm:$0xff]  }
 0x2cc   :  { %7347 = vmatpush1.bf16.msra.mxu1 %v10101_v22  ;;  %7305 = vmatprep.subr.bf16.mxu0 %v10106_v30  ;;  %v10137_v30 = vld [vmem:[%s14203_s1 + $0xfe8] ss:$16 sps:$4 sm:$0xff]   ;;  %v10145_v1 = vld [vmem:[%s14203_s1 + $0xfcc] ss:$16 sps:$4 sm:$0xff]  }
 0x2cd   :  { %7348 = vmatprep.subr.bf16.mxu1 %v10109_v31  ;;  %v7746_v55 = vadd.f32 %v7742_v52, %v7033_v58  ;;  %v7743_v59 = vmul.f32 0.0, %v13214_v40  ;;  %v10142_v31 = vld [vmem:[%s14203_s1 + $0xdcc] ss:$16 sps:$4 sm:$0xff]  }
 0x2cf   :  { %v7747_v47 = vrot.slane %v7746_v55, 4  ;;  %v7753_v35 = vadd.f32 %v7743_v59, %v7035_v39  ;;  %7306 = vmatpush1.bf16.msra.mxu0 %v10104_v42  ;;  %v10140_v42 = vld [vmem:[%s14203_s1 + $0xdc8] ss:$16 sps:$4 sm:$0xff]  }
 0x2d0   :  { %7349 = vmatpush1.bf16.msra.mxu1 %v10107_v7  ;;  %7307 = vmatprep.subr.bf16.mxu0 %v10112_v62  ;;  %v10143_v7 = vld [vmem:[%s14203_s1 + $0xfc8] ss:$16 sps:$4 sm:$0xff]   ;;  %v10148_v62 = vld [vmem:[%s14203_s1 + $0xdac] ss:$16 sps:$4 sm:$0xff]  }
 0x2d1   :  { %7350 = vmatprep.subr.bf16.mxu1 %v10115_v4  ;;  %v7748_v17 = vadd.f32 %v7747_v47, %v7746_v55  ;;  %v7754_v38 = vrot.slane %v7753_v35, 4  ;;  %v10151_v4 = vld [vmem:[%s14203_s1 + $0xfac] ss:$16 sps:$4 sm:$0xff]  }
 0x2d3   :  { %v7749_v16 = vrot.slane %v7748_v17, 2  ;;  %v7755_v6 = vadd.f32 %v7754_v38, %v7753_v35  ;;  %7308 = vmatpush1.bf16.msra.mxu0 %v10110_v34  ;;  %v10146_v35 = vld [vmem:[%s14203_s1 + $0xda8] ss:$16 sps:$4 sm:$0xff]  }
 0x2d4   :  { %7351 = vmatpush1.bf16.msra.mxu1 %v10113_v8  ;;  %7309 = vmatprep.subr.bf16.mxu0 %v10118_v9  ;;  %v10149_v34 = vld [vmem:[%s14203_s1 + $0xfa8] ss:$16 sps:$4 sm:$0xff]   ;;  %v10154_v8 = vld [vmem:[%s14203_s1 + $0xd8c] ss:$16 sps:$4 sm:$0xff]  }
 0x2d5   :  { %7352 = vmatprep.subr.bf16.mxu1 %v10121_v27  ;;  %v7750_v5 = vadd.f32 %v7749_v16, %v7748_v17  ;;  %v7756_v14 = vrot.slane %v7755_v6, 2  ;;  %v10157_v9 = vld [vmem:[%s14203_s1 + $0xf8c] ss:$16 sps:$4 sm:$0xff]  }
 0x2d7   :  { %v7751_v20 = vrot.slane %v7750_v5, 1  ;;  %v7757_v19 = vadd.f32 %v7756_v14, %v7755_v6  ;;  %7310 = vmatpush1.bf16.msra.mxu0 %v10116_v12  ;;  %v10152_v6 = vld [vmem:[%s14203_s1 + $0xd88] ss:$16 sps:$4 sm:$0xff]  }
 0x2d8   :  { %7353 = vmatpush1.bf16.msra.mxu1 %v10119_v43  ;;  %7311 = vmatprep.subr.bf16.mxu0 %v10124_v46  ;;  %v10155_v12 = vld [vmem:[%s14203_s1 + $0xf88] ss:$16 sps:$4 sm:$0xff]   ;;  %v10160_v43 = vld [vmem:[%s14203_s1 + $0xd6c] ss:$16 sps:$4 sm:$0xff]  }
 0x2d9   :  { %7354 = vmatprep.subr.bf16.mxu1 %v10127_v63  ;;  %v7752_v13 = vadd.f32 %v7751_v20, %v7750_v5  ;;  %v7758_v60 = vrot.slane %v7757_v19, 1  ;;  %v10163_v46 = vld [vmem:[%s14203_s1 + $0xf6c] ss:$16 sps:$4 sm:$0xff]  }
 0x2db   :  { %v7774_v48 = vmul.f32 0.125, %v7752_v13  ;;  %v7759_v49 = vadd.f32 %v7758_v60, %v7757_v19  ;;  %7312 = vmatpush1.bf16.msra.mxu0 %v10122_v32  ;;  %v10158_v19 = vld [vmem:[%s14203_s1 + $0xd68] ss:$16 sps:$4 sm:$0xff]  }
 0x2dc   :  { %7355 = vmatpush1.bf16.msra.mxu1 %v10125_v61  ;;  %7313 = vmatprep.subr.bf16.mxu0 %v10130_v18  ;;  %v10161_v32 = vld [vmem:[%s14203_s1 + $0xf68] ss:$16 sps:$4 sm:$0xff]   ;;  %v10166_v61 = vld [vmem:[%s14203_s1 + $0xd4c] ss:$16 sps:$4 sm:$0xff]  }
 0x2dd   :  { %7356 = vmatprep.subr.bf16.mxu1 %v10133_v29  ;;  %v13277_v28 = vsub.f32 %v7033_v58, %v7774_v48  ;;  %v13280_v2 = vsub.f32 %v13211_v26, %v7774_v48  ;;  %v7775_v41 = vmul.f32 0.125, %v7759_v49  ;;  %v10169_v18 = vld [vmem:[%s14203_s1 + $0xf4c] ss:$16 sps:$4 sm:$0xff]   ;;  %v10164_v60 = vld [vmem:[%s14203_s1 + $0xd48] ss:$16 sps:$4 sm:$0xff]  }
 0x2df   :  { %v7790_v3 = vmul.f32 0.0, %v13280_v2  ;;  %v13283_v23 = vsub.f32 %v7035_v39, %v7775_v41  ;;  %v13286_v22 = vsub.f32 %v13214_v40, %v7775_v41  ;;  %7314 = vmatpush1.bf16.msra.mxu0 %v10128_v54  ;;  %v7794_v26 = vmul.f32 %v13277_v28, %v13277_v28  ;;  %v10167_v54 = vld [vmem:[%s14203_s1 + $0xf48] ss:$16 sps:$4 sm:$0xff]  }
 0x2e0   :  { %7357 = vmatpush1.bf16.msra.mxu1 %v10131_v15  ;;  %7315 = vmatprep.subr.bf16.mxu0 %v10136_v21  ;;  %v10172_v15 = vld [vmem:[%s14203_s1 + $0xd2c] ss:$16 sps:$4 sm:$0xff]  }
 0x2e1   :  { %7358 = vmatprep.subr.bf16.mxu1 %v10139_v37  ;;  %v7798_v53 = vmul.f32 %v7790_v3, %v7790_v3  ;;  %v7791_v33 = vmul.f32 0.0, %v13286_v22  ;;  %v7795_v52 = vmul.f32 %v13283_v23, %v13283_v23  ;;  %v10175_v21 = vld [vmem:[%s14203_s1 + $0xf2c] ss:$16 sps:$4 sm:$0xff]   ;;  %v7852_v37 = vlaneseq  ;;  %v10170_v3 = vld [vmem:[%s14203_s1 + $0xd28] ss:$16 sps:$4 sm:$0xff]  }
 0x2e3   :  { %v7802_v58 = vadd.f32 %v7798_v53, %v7794_v26  ;;  %v7799_v40 = vmul.f32 %v7791_v33, %v7791_v33  ;;  %7316 = vmatpush2.bf16.msra.mxu0 %v10134_v0  ;;  %v10173_v0 = vld [vmem:[%s14203_s1 + $0xf28] ss:$16 sps:$4 sm:$0xff]   ;;  %v10184_v33 = vld [vmem:[%s14203_s1 + $0x10ec] ss:$16 sps:$4 sm:$0xff]  }
 0x2e4   :  { %7359 = vmatpush2.bf16.msra.mxu1 %v10137_v30  ;;  %7317 = vmatprep.subr.bf16.mxu0 %v10142_v31  ;;  %v10178_v30 = vld [vmem:[%s14203_s1 + $0xd0c] ss:$16 sps:$4 sm:$0xff]   ;;  %v10176_v26 = vld [vmem:[%s14203_s1 + $0xd08] ss:$16 sps:$4 sm:$0xff]  }
 0x2e5   :  { %7360 = vmatprep.subr.bf16.mxu1 %v10145_v1  ;;  %v7803_v39 = vrot.slane %v7802_v58, 4  ;;  %v7809_v55 = vadd.f32 %v7799_v40, %v7795_v52  ;;  %v10181_v31 = vld [vmem:[%s14203_s1 + $0xf0c] ss:$16 sps:$4 sm:$0xff]   ;;  %v13377_v1 = vshrl.u32 %v7852_v37, 7  ;;  %v10179_v53 = vld [vmem:[%s14203_s1 + $0xf08] ss:$16 sps:$4 sm:$0xff]  }
 0x2e6   :  { %v7850_v40 = vld [vmem:[%s14205_s2] sm:$0xf] }
 0x2e7   :  { %v7804_v59 = vadd.f32 %v7803_v39, %v7802_v58  ;;  %v7810_v47 = vrot.slane %v7809_v55, 4  ;;  %7318 = vmatpush2.bf16.msra.mxu0 %v10140_v42  ;;  %v10187_v58 = vld [vmem:[%s14203_s1 + $0x12ec] ss:$16 sps:$4 sm:$0xff]   ;;  %v7854_v52 = vsub.s32 0, %v13377_v1  ;;  %v10182_v42 = vld [vmem:[%s14203_s1 + $0x10e8] ss:$16 sps:$4 sm:$0xff]  }
 0x2e8   :  { %7361 = vmatpush2.bf16.msra.mxu1 %v10143_v7  ;;  %7319 = vmatprep.subr.bf16.mxu0 %v10148_v62  ;;  %v7880_v7 = vld [vmem:[%s14206_s3] sm:$0xf]  ;;  %v7858_v62 = vsub.s32 1, %v13377_v1  ;;  %v10190_v39 = vld [vmem:[%s14203_s1 + $0x10cc] ss:$16 sps:$4 sm:$0xff]  }
 0x2e9   :  { %7362 = vmatprep.subr.bf16.mxu1 %v10151_v4  ;;  %v7805_v27 = vrot.slane %v7804_v59, 2  ;;  %v7811_v17 = vadd.f32 %v7810_v47, %v7809_v55  ;;  %v10185_v4 = vld [vmem:[%s14203_s1 + $0x12e8] ss:$16 sps:$4 sm:$0xff]   ;;  %v10193_v55 = vld [vmem:[%s14203_s1 + $0x12cc] ss:$16 sps:$4 sm:$0xff]  }
 0x2eb   :  { %v7806_v38 = vadd.f32 %v7805_v27, %v7804_v59  ;;  %v7812_v16 = vrot.slane %v7811_v17, 2  ;;  %7320 = vmatpush2.bf16.msra.mxu0 %v10146_v35  ;;  %v7855_v59 = vrot.slane %v7850_v40, %v7854_v52  ;;  %v7885_v35 = vrot.slane %v7880_v7, %v7854_v52  ;;  %v10188_v27 = vld [vmem:[%s14203_s1 + $0x10c8] ss:$16 sps:$4 sm:$0xff]  }
 0x2ec   :  { %7363 = vmatpush2.bf16.msra.mxu1 %v10149_v34  ;;  %7321 = vmatprep.subr.bf16.mxu0 %v10154_v8  ;;  %v10218_v52 = vld [vmem:[%s14203_s1 + $0x1028] ss:$16 sps:$4 sm:$0xff]  }
 0x2ed   :  { %7364 = vmatprep.subr.bf16.mxu1 %v10157_v9  ;;  %v7807_v63 = vrot.slane %v7806_v38, 1  ;;  %v7813_v5 = vadd.f32 %v7812_v16, %v7811_v17  ;;  %v7859_v9 = vrot.slane %v7850_v40, %v7858_v62  ;;  %v10221_v40 = vld [vmem:[%s14203_s1 + $0x1228] ss:$16 sps:$4 sm:$0xff]  }
 0x2ef   :  { %v7808_v14 = vadd.f32 %v7807_v63, %v7806_v38  ;;  %v7814_v20 = vrot.slane %v7813_v5, 1  ;;  %7322 = vmatpush2.bf16.msra.mxu0 %v10152_v6  ;;  %v10191_v38 = vld [vmem:[%s14203_s1 + $0x12c8] ss:$16 sps:$4 sm:$0xff]   ;;  %v10199_v6 = vld [vmem:[%s14203_s1 + $0x12ac] ss:$16 sps:$4 sm:$0xff]  }
 0x2f0   :  { %7365 = vmatpush2.bf16.msra.mxu1 %v10155_v12  ;;  %7323 = vmatprep.subr.bf16.mxu0 %v10160_v43  ;;  %v7889_v12 = vrot.slane %v7880_v7, %v7858_v62  ;;  %v10229_v7 = vld [vmem:[%s14203_s1 + $0x120c] ss:$16 sps:$4 sm:$0xff]   ;;  %v10224_v62 = vld [vmem:[%s14203_s1 + $0x1008] ss:$16 sps:$4 sm:$0xff]  }
 0x2f1   :  { %7366 = vmatprep.subr.bf16.mxu1 %v10163_v46  ;;  %v7830_v29 = vmul.f32 0.125, %v7808_v14  ;;  %v7815_v13 = vadd.f32 %v7814_v20, %v7813_v5 }
 0x2f3   :  { %v7834_v48 = vadd.f32 1e-05, %v7830_v29  ;;  %v7831_v49 = vmul.f32 0.125, %v7815_v13  ;;  %7324 = vmatpush2.bf16.msra.mxu0 %v10158_v19  ;;  %v10208_v29 = vld [vmem:[%s14203_s1 + $0x106c] ss:$16 sps:$4 sm:$0xff]  }
 0x2f4   :  { %7367 = vmatpush2.bf16.msra.mxu1 %v10161_v32  ;;  %7325 = vmatprep.subr.bf16.mxu0 %v10166_v61  ;;  %v10200_v61 = vld [vmem:[%s14203_s1 + $0x1088] ss:$16 sps:$4 sm:$0xff]  }
 0x2f5   :  { %7368 = vmatprep.subr.bf16.mxu1 %v10169_v18  ;;  %10566 = vrsqrt.f32 %v7834_v48  ;;  %v7835_v41 = vadd.f32 1e-05, %v7831_v49  ;;  %v10203_v18 = vld [vmem:[%s14203_s1 + $0x1288] ss:$16 sps:$4 sm:$0xff]   ;;  %v10211_v48 = vld [vmem:[%s14203_s1 + $0x126c] ss:$16 sps:$4 sm:$0xff]  }
 0x2f7   :  { %10568 = vrsqrt.f32 %v7835_v41  ;;  %7326 = vmatpush2.bf16.msra.mxu0 %v10164_v60 }
 0x2f8   :  { %7369 = vmatpush2.bf16.msra.mxu1 %v10167_v54  ;;  %7327 = vmatprep.subr.bf16.mxu0 %v10172_v15 }
 0x2f9   :  { %7370 = vmatprep.subr.bf16.mxu1 %v10175_v21 }
 0x2fb   :  { %7328 = vmatpush2.bf16.msra.mxu0 %v10170_v3  ;;  %v10206_v3 = vld [vmem:[%s14203_s1 + $0x1068] ss:$16 sps:$4 sm:$0xff]  }
 0x2fc   :  { %7371 = vmatpush2.bf16.msra.mxu1 %v10173_v0  ;;  %7329 = vmatprep.subr.bf16.mxu0 %v10178_v30  ;;  %v10209_v0 = vld [vmem:[%s14203_s1 + $0x1268] ss:$16 sps:$4 sm:$0xff]   ;;  %v10214_v30 = vld [vmem:[%s14203_s1 + $0x104c] ss:$16 sps:$4 sm:$0xff]  }
 0x2fd   :  { %7372 = vmatprep.subr.bf16.mxu1 %v10181_v31  ;;  %v10217_v31 = vld [vmem:[%s14203_s1 + $0x124c] ss:$16 sps:$4 sm:$0xff]  }
 0x2ff   :  { %7330 = vmatpush2.bf16.msra.mxu0 %v10176_v26  ;;  %v10212_v26 = vld [vmem:[%s14203_s1 + $0x1048] ss:$16 sps:$4 sm:$0xff]  }
 0x300   :  { %7373 = vmatpush2.bf16.msra.mxu1 %v10179_v53  ;;  %7385 = vmatprep.subr.bf16.mxu0 %v10184_v33  ;;  %v10215_v53 = vld [vmem:[%s14203_s1 + $0x1248] ss:$16 sps:$4 sm:$0xff]   ;;  %v10220_v33 = vld [vmem:[%s14203_s1 + $0x102c] ss:$16 sps:$4 sm:$0xff]  }
 0x301   :  { %7428 = vmatprep.subr.bf16.mxu1 %v10187_v58  ;;  %v10223_v58 = vld [vmem:[%s14203_s1 + $0x122c] ss:$16 sps:$4 sm:$0xff]  }
 0x302   :  { %v10567_v47 = vpop.eup %10566  ;;  %7332 = vmatmul.mubr.bf16.vlgmr.msra.gmra.mxu0 %v11527_v10  ;;  %v10196_v10 = vld [vmem:[%s14203_s1 + $0x10ac] ss:$16 sps:$4 sm:$0xff]  }
 0x303   :  { %7375 = vmatmul.mubr.bf16.vlgmr.msra.gmra.mxu1 %v11531_v11  ;;  %v7842_v34 = vmul.f32 %v10567_v47, %v13277_v28  ;;  %v7846_v8 = vmul.f32 %v10567_v47, %v13280_v2  ;;  %7386 = vmatpush1.bf16.msra.mxu0 %v10182_v42  ;;  %v10226_v42 = vld [vmem:[%s14203_s1 + $0x100c] ss:$16 sps:$4 sm:$0xff]   ;;  %v10233_v47 = vld [vmem:[%s14203_s1 + $0x13e8] ss:$16 sps:$4 sm:$0xff]  }
 0x304   :  { %7429 = vmatpush1.bf16.msra.mxu1 %v10185_v4  ;;  %v10569_v17 = vpop.eup %10568  ;;  %7387 = vmatprep.subr.bf16.mxu0 %v10190_v39  ;;  %v10227_v4 = vld [vmem:[%s14203_s1 + $0x1208] ss:$16 sps:$4 sm:$0xff]   ;;  %v10232_v39 = vld [vmem:[%s14203_s1 + $0x11ec] ss:$16 sps:$4 sm:$0xff]  }
 0x305   :  { %7430 = vmatprep.subr.bf16.mxu1 %v10193_v55  ;;  %v7872_v11 = vmul.f32 %v7855_v59, %v7842_v34  ;;  %v7876_v28 = vmul.f32 %v7855_v59, %v7846_v8  ;;  %v7843_v2 = vmul.f32 %v10569_v17, %v13283_v23  ;;  %v7847_v16 = vmul.f32 %v10569_v17, %v13286_v22  ;;  %v10194_v23 = vld [vmem:[%s14203_s1 + $0x10a8] ss:$16 sps:$4 sm:$0xff]   ;;  %v10235_v55 = vld [vmem:[%s14203_s1 + $0x13ec] ss:$16 sps:$4 sm:$0xff]  }
 0x306   :  { %7417 = vmatprep.mubr.bf16.mxu0 %v11551_v50  ;;  %7460 = vmatprep.mubr.bf16.mxu1 %v11555_v51  ;;  %v10197_v22 = vld [vmem:[%s14203_s1 + $0x12a8] ss:$16 sps:$4 sm:$0xff]   ;;  %v10202_v50 = vld [vmem:[%s14203_s1 + $0x108c] ss:$16 sps:$4 sm:$0xff]  }
 0x307   :  { %v7902_v43 = vadd.f32 %v7885_v35, %v7872_v11  ;;  %v7906_v46 = vadd.f32 %v7885_v35, %v7876_v28  ;;  %v7873_v63 = vmul.f32 %v7859_v9, %v7843_v2  ;;  %v7877_v5 = vmul.f32 %v7859_v9, %v7847_v16  ;;  %7388 = vmatpush1.bf16.msra.mxu0 %v10188_v27  ;;  %v10205_v51 = vld [vmem:[%s14203_s1 + $0x128c] ss:$16 sps:$4 sm:$0xff]   ;;  %v10230_v59 = vld [vmem:[%s14203_s1 + $0x11e8] ss:$16 sps:$4 sm:$0xff]  }
 0x308   :  { %7431 = vmatpush1.bf16.msra.mxu1 %v10191_v38  ;;  %7389 = vmatprep.subr.bf16.mxu0 %v10196_v10  ;;  %v10238_v35 = vld [vmem:[%s14203_s1 + $0x11cc] ss:$16 sps:$4 sm:$0xff]   ;;  %v10236_v8 = vld [vmem:[%s14203_s1 + $0x11c8] ss:$16 sps:$4 sm:$0xff]  }
 0x309   :  { %7432 = vmatprep.subr.bf16.mxu1 %v10199_v6  ;;  %v7918_v14 = vmul.f32 0.2, %v7902_v43  ;;  %v7922_v20 = vmul.f32 0.2, %v7906_v46  ;;  %v7903_v19 = vadd.f32 %v7889_v12, %v7873_v63  ;;  %v7907_v32 = vadd.f32 %v7889_v12, %v7877_v5  ;;  %v10241_v34 = vld [vmem:[%s14203_s1 + $0x13cc] ss:$16 sps:$4 sm:$0xff]  }
 0x30a   :  { %vm7910_vm0 = vcmp.ge.f32.partialorder %v7902_v43, 0.0  ;;  %vm7914_vm1 = vcmp.ge.f32.partialorder %v7906_v46, 0.0  ;;  %v10239_v9 = vld [vmem:[%s14203_s1 + $0x13c8] ss:$16 sps:$4 sm:$0xff]   ;;  %v10244_v27 = vld [vmem:[%s14203_s1 + $0x11ac] ss:$16 sps:$4 sm:$0xff]  }
 0x30b   :  { %7390 = vmatpush1.bf16.msra.mxu0 %v10194_v23  ;;  %vm7911_vm2 = vcmp.ge.f32.partialorder %v7903_v19, 0.0  ;;  %vm7915_vm3 = vcmp.ge.f32.partialorder %v7907_v32, 0.0  ;;  %v7919_v13 = vmul.f32 0.2, %v7903_v19  ;;  %v7923_v60 = vmul.f32 0.2, %v7907_v32 }
 0x30c   :  { %7433 = vmatpush1.bf16.msra.mxu1 %v10197_v22  ;;  %7391 = vmatprep.subr.bf16.mxu0 %v10202_v50  ;;  %v7926_v49 = vsel %vm7910_vm0, %v7902_v43, %v7918_v14  ;;  %v7930_v54 = vsel %vm7914_vm1, %v7906_v46, %v7922_v20  ;;  %v10247_v17 = vld [vmem:[%s14203_s1 + $0x13ac] ss:$16 sps:$4 sm:$0xff]   ;;  %v10242_v38 = vld [vmem:[%s14203_s1 + $0x11a8] ss:$16 sps:$4 sm:$0xff]  }
 0x30d   :  { %7434 = vmatprep.subr.bf16.mxu1 %v10205_v51  ;;  %v7927_v15 = vsel %vm7911_vm2, %v7903_v19, %v7919_v13  ;;  %v7931_v21 = vsel %vm7915_vm3, %v7907_v32, %v7923_v60  ;;  %v10245_v10 = vld [vmem:[%s14203_s1 + $0x13a8] ss:$16 sps:$4 sm:$0xff]   ;;  %v10250_v11 = vld [vmem:[%s14203_s1 + $0x118c] ss:$16 sps:$4 sm:$0xff]  }
 0x30e   :  { %v9026_v37 = vpack.c.bf16 %v7927_v15, %v7926_v49  ;;  %v9028_v41 = vpack.c.bf16 %v7931_v21, %v7930_v54  ;;  %v10253_v28 = vld [vmem:[%s14203_s1 + $0x138c] ss:$16 sps:$4 sm:$0xff]   ;;  %v10248_v2 = vld [vmem:[%s14203_s1 + $0x1188] ss:$16 sps:$4 sm:$0xff]  }
 0x30f   :  { %7392 = vmatpush1.bf16.msra.mxu0 %v10200_v61  ;;  %v10251_v16 = vld [vmem:[%s14203_s1 + $0x1388] ss:$16 sps:$4 sm:$0xff]   ;;  %v10256_v6 = vld [vmem:[%s14203_s1 + $0x116c] ss:$16 sps:$4 sm:$0xff]  }
 0x310   :  { %7435 = vmatpush1.bf16.msra.mxu1 %v10203_v18  ;;  %7393 = vmatprep.subr.bf16.mxu0 %v10208_v29  ;;  %7958 = vst [vmem:[%s14207_s4] sm:$0xff] %v9026_v37  ;;  %7960 = vst [vmem:[%s14207_s4 + $0x10] sm:$0xff] %v9028_v41  ;;  %v10259_v12 = vld [vmem:[%s14203_s1 + $0x136c] ss:$16 sps:$4 sm:$0xff]   ;;  %v10254_v43 = vld [vmem:[%s14203_s1 + $0x1168] ss:$16 sps:$4 sm:$0xff]  }
 0x311   :  { %7436 = vmatprep.subr.bf16.mxu1 %v10211_v48  ;;  %v10257_v46 = vld [vmem:[%s14203_s1 + $0x1368] ss:$16 sps:$4 sm:$0xff]   ;;  %v10262_v63 = vld [vmem:[%s14203_s1 + $0x114c] ss:$16 sps:$4 sm:$0xff]  }
 0x312   :  { %v10265_v5 = vld [vmem:[%s14203_s1 + $0x134c] ss:$16 sps:$4 sm:$0xff]   ;;  %v10260_v23 = vld [vmem:[%s14203_s1 + $0x1148] ss:$16 sps:$4 sm:$0xff]  }
 0x313   :  { %7394 = vmatpush1.bf16.msra.mxu0 %v10206_v3  ;;  %v10263_v22 = vld [vmem:[%s14203_s1 + $0x1348] ss:$16 sps:$4 sm:$0xff]   ;;  %v10268_v50 = vld [vmem:[%s14203_s1 + $0x112c] ss:$16 sps:$4 sm:$0xff]  }
 0x314   :  { %7437 = vmatpush1.bf16.msra.mxu1 %v10209_v0  ;;  %7395 = vmatprep.subr.bf16.mxu0 %v10214_v30  ;;  %v10271_v51 = vld [vmem:[%s14203_s1 + $0x132c] ss:$16 sps:$4 sm:$0xff]   ;;  %v10266_v14 = vld [vmem:[%s14203_s1 + $0x1128] ss:$16 sps:$4 sm:$0xff]  }
 0x315   :  { %7438 = vmatprep.subr.bf16.mxu1 %v10217_v31  ;;  %v10269_v20 = vld [vmem:[%s14203_s1 + $0x1328] ss:$16 sps:$4 sm:$0xff]   ;;  %v10274_v19 = vld [vmem:[%s14203_s1 + $0x110c] ss:$16 sps:$4 sm:$0xff]  }
 0x316   :  { %v10277_v32 = vld [vmem:[%s14203_s1 + $0x130c] ss:$16 sps:$4 sm:$0xff]   ;;  %v10272_v61 = vld [vmem:[%s14203_s1 + $0x1108] ss:$16 sps:$4 sm:$0xff]  }
 0x317   :  { %7396 = vmatpush1.bf16.msra.mxu0 %v10212_v26  ;;  %v10275_v18 = vld [vmem:[%s14203_s1 + $0x1308] ss:$16 sps:$4 sm:$0xff]   ;;  %v10280_v29 = vld [vmem:[%s14203_s1 + $0x14ec] ss:$16 sps:$4 sm:$0xff]  }
 0x318   :  { %7439 = vmatpush1.bf16.msra.mxu1 %v10215_v53  ;;  %7397 = vmatprep.subr.bf16.mxu0 %v10220_v33  ;;  %v10283_v13 = vld [vmem:[%s14203_s1 + $0x16ec] ss:$16 sps:$4 sm:$0xff]   ;;  %v10278_v60 = vld [vmem:[%s14203_s1 + $0x14e8] ss:$16 sps:$4 sm:$0xff]  }
 0x319   :  { %7440 = vmatprep.subr.bf16.mxu1 %v10223_v58  ;;  %v10281_v48 = vld [vmem:[%s14203_s1 + $0x16e8] ss:$16 sps:$4 sm:$0xff]   ;;  %v10286_v49 = vld [vmem:[%s14203_s1 + $0x14cc] ss:$16 sps:$4 sm:$0xff]  }
 0x31a   :  { %v10289_v54 = vld [vmem:[%s14203_s1 + $0x16cc] ss:$16 sps:$4 sm:$0xff]   ;;  %v10284_v15 = vld [vmem:[%s14203_s1 + $0x14c8] ss:$16 sps:$4 sm:$0xff]  }
 0x31b   :  { %7398 = vmatpush1.bf16.msra.mxu0 %v10218_v52  ;;  %v10287_v21 = vld [vmem:[%s14203_s1 + $0x16c8] ss:$16 sps:$4 sm:$0xff]   ;;  %v10292_v37 = vld [vmem:[%s14203_s1 + $0x14ac] ss:$16 sps:$4 sm:$0xff]  }
 0x31c   :  { %7441 = vmatpush1.bf16.msra.mxu1 %v10221_v40  ;;  %7399 = vmatprep.subr.bf16.mxu0 %v10226_v42  ;;  %v10293_v41 = vld [vmem:[%s14203_s1 + $0x16a8] ss:$16 sps:$4 sm:$0xff]   ;;  %v10298_v3 = vld [vmem:[%s14203_s1 + $0x148c] ss:$16 sps:$4 sm:$0xff]  }
 0x31d   :  { %7442 = vmatprep.subr.bf16.mxu1 %v10229_v7  ;;  %v10299_v0 = vld [vmem:[%s14203_s1 + $0x1688] ss:$16 sps:$4 sm:$0xff]   ;;  %v10304_v30 = vld [vmem:[%s14203_s1 + $0x146c] ss:$16 sps:$4 sm:$0xff]  }
 0x31e   :  { %v10307_v31 = vld [vmem:[%s14203_s1 + $0x166c] ss:$16 sps:$4 sm:$0xff]   ;;  %v10302_v26 = vld [vmem:[%s14203_s1 + $0x1468] ss:$16 sps:$4 sm:$0xff]  }
 0x31f   :  { %7400 = vmatpush1.bf16.msra.mxu0 %v10224_v62  ;;  %v10305_v53 = vld [vmem:[%s14203_s1 + $0x1668] ss:$16 sps:$4 sm:$0xff]   ;;  %v10310_v33 = vld [vmem:[%s14203_s1 + $0x144c] ss:$16 sps:$4 sm:$0xff]  }
 0x320   :  { %7443 = vmatpush1.bf16.msra.mxu1 %v10227_v4  ;;  %7401 = vmatprep.subr.bf16.mxu0 %v10232_v39  ;;  %v10313_v58 = vld [vmem:[%s14203_s1 + $0x164c] ss:$16 sps:$4 sm:$0xff]   ;;  %v10308_v52 = vld [vmem:[%s14203_s1 + $0x1448] ss:$16 sps:$4 sm:$0xff]  }
 0x321   :  { %7444 = vmatprep.subr.bf16.mxu1 %v10235_v55  ;;  %v10311_v40 = vld [vmem:[%s14203_s1 + $0x1648] ss:$16 sps:$4 sm:$0xff]   ;;  %v10316_v42 = vld [vmem:[%s14203_s1 + $0x142c] ss:$16 sps:$4 sm:$0xff]  }
 0x322   :  { %v10319_v7 = vld [vmem:[%s14203_s1 + $0x162c] ss:$16 sps:$4 sm:$0xff]   ;;  %v10314_v62 = vld [vmem:[%s14203_s1 + $0x1428] ss:$16 sps:$4 sm:$0xff]  }
 0x323   :  { %7402 = vmatpush2.bf16.msra.mxu0 %v10230_v59  ;;  %v10317_v4 = vld [vmem:[%s14203_s1 + $0x1628] ss:$16 sps:$4 sm:$0xff]   ;;  %v10322_v39 = vld [vmem:[%s14203_s1 + $0x140c] ss:$16 sps:$4 sm:$0xff]  }
 0x324   :  { %7445 = vmatpush2.bf16.msra.mxu1 %v10233_v47  ;;  %7403 = vmatprep.subr.bf16.mxu0 %v10238_v35  ;;  %v10325_v55 = vld [vmem:[%s14203_s1 + $0x160c] ss:$16 sps:$4 sm:$0xff]   ;;  %v10320_v59 = vld [vmem:[%s14203_s1 + $0x1408] ss:$16 sps:$4 sm:$0xff]  }
 0x325   :  { %7446 = vmatprep.subr.bf16.mxu1 %v10241_v34  ;;  %v10323_v47 = vld [vmem:[%s14203_s1 + $0x1608] ss:$16 sps:$4 sm:$0xff]   ;;  %v10328_v35 = vld [vmem:[%s14203_s1 + $0x15ec] ss:$16 sps:$4 sm:$0xff]  }
 0x326   :  { %v10331_v34 = vld [vmem:[%s14203_s1 + $0x17ec] ss:$16 sps:$4 sm:$0xff]  }
 0x327   :  { %7404 = vmatpush2.bf16.msra.mxu0 %v10236_v8  ;;  %v10326_v8 = vld [vmem:[%s14203_s1 + $0x15e8] ss:$16 sps:$4 sm:$0xff]  }
 0x328   :  { %7447 = vmatpush2.bf16.msra.mxu1 %v10239_v9  ;;  %7405 = vmatprep.subr.bf16.mxu0 %v10244_v27  ;;  %v10329_v9 = vld [vmem:[%s14203_s1 + $0x17e8] ss:$16 sps:$4 sm:$0xff]   ;;  %v10334_v27 = vld [vmem:[%s14203_s1 + $0x15cc] ss:$16 sps:$4 sm:$0xff]  }
 0x329   :  { %7448 = vmatprep.subr.bf16.mxu1 %v10247_v17  ;;  %v10337_v17 = vld [vmem:[%s14203_s1 + $0x17cc] ss:$16 sps:$4 sm:$0xff]  }
 0x32b   :  { %7406 = vmatpush2.bf16.msra.mxu0 %v10242_v38  ;;  %v10332_v38 = vld [vmem:[%s14203_s1 + $0x15c8] ss:$16 sps:$4 sm:$0xff]  }
 0x32c   :  { %7449 = vmatpush2.bf16.msra.mxu1 %v10245_v10  ;;  %7407 = vmatprep.subr.bf16.mxu0 %v10250_v11  ;;  %v10335_v10 = vld [vmem:[%s14203_s1 + $0x17c8] ss:$16 sps:$4 sm:$0xff]   ;;  %v10340_v11 = vld [vmem:[%s14203_s1 + $0x15ac] ss:$16 sps:$4 sm:$0xff]  }
 0x32d   :  { %7450 = vmatprep.subr.bf16.mxu1 %v10253_v28  ;;  %v10343_v28 = vld [vmem:[%s14203_s1 + $0x17ac] ss:$16 sps:$4 sm:$0xff]  }
 0x32f   :  { %7408 = vmatpush2.bf16.msra.mxu0 %v10248_v2  ;;  %v10338_v2 = vld [vmem:[%s14203_s1 + $0x15a8] ss:$16 sps:$4 sm:$0xff]  }
 0x330   :  { %7451 = vmatpush2.bf16.msra.mxu1 %v10251_v16  ;;  %7409 = vmatprep.subr.bf16.mxu0 %v10256_v6  ;;  %v10341_v16 = vld [vmem:[%s14203_s1 + $0x17a8] ss:$16 sps:$4 sm:$0xff]   ;;  %v10346_v6 = vld [vmem:[%s14203_s1 + $0x158c] ss:$16 sps:$4 sm:$0xff]  }
 0x331   :  { %7452 = vmatprep.subr.bf16.mxu1 %v10259_v12  ;;  %v10349_v12 = vld [vmem:[%s14203_s1 + $0x178c] ss:$16 sps:$4 sm:$0xff]  }
 0x333   :  { %7410 = vmatpush2.bf16.msra.mxu0 %v10254_v43  ;;  %v10344_v43 = vld [vmem:[%s14203_s1 + $0x1588] ss:$16 sps:$4 sm:$0xff]  }
 0x334   :  { %7453 = vmatpush2.bf16.msra.mxu1 %v10257_v46  ;;  %7411 = vmatprep.subr.bf16.mxu0 %v10262_v63  ;;  %v10347_v46 = vld [vmem:[%s14203_s1 + $0x1788] ss:$16 sps:$4 sm:$0xff]   ;;  %v10352_v63 = vld [vmem:[%s14203_s1 + $0x156c] ss:$16 sps:$4 sm:$0xff]  }
 0x335   :  { %7454 = vmatprep.subr.bf16.mxu1 %v10265_v5  ;;  %v10355_v5 = vld [vmem:[%s14203_s1 + $0x176c] ss:$16 sps:$4 sm:$0xff]  }
 0x337   :  { %7412 = vmatpush2.bf16.msra.mxu0 %v10260_v23  ;;  %v10350_v23 = vld [vmem:[%s14203_s1 + $0x1568] ss:$16 sps:$4 sm:$0xff]  }
 0x338   :  { %7455 = vmatpush2.bf16.msra.mxu1 %v10263_v22  ;;  %7413 = vmatprep.subr.bf16.mxu0 %v10268_v50  ;;  %v10353_v22 = vld [vmem:[%s14203_s1 + $0x1768] ss:$16 sps:$4 sm:$0xff]   ;;  %v10358_v50 = vld [vmem:[%s14203_s1 + $0x154c] ss:$16 sps:$4 sm:$0xff]  }
 0x339   :  { %7456 = vmatprep.subr.bf16.mxu1 %v10271_v51  ;;  %v10361_v51 = vld [vmem:[%s14203_s1 + $0x174c] ss:$16 sps:$4 sm:$0xff]  }
 0x33b   :  { %7414 = vmatpush2.bf16.msra.mxu0 %v10266_v14  ;;  %v10356_v14 = vld [vmem:[%s14203_s1 + $0x1548] ss:$16 sps:$4 sm:$0xff]  }
 0x33c   :  { %7457 = vmatpush2.bf16.msra.mxu1 %v10269_v20  ;;  %7415 = vmatprep.subr.bf16.mxu0 %v10274_v19  ;;  %v10359_v20 = vld [vmem:[%s14203_s1 + $0x1748] ss:$16 sps:$4 sm:$0xff]   ;;  %v10364_v19 = vld [vmem:[%s14203_s1 + $0x152c] ss:$16 sps:$4 sm:$0xff]  }
 0x33d   :  { %7458 = vmatprep.subr.bf16.mxu1 %v10277_v32  ;;  %v10367_v32 = vld [vmem:[%s14203_s1 + $0x172c] ss:$16 sps:$4 sm:$0xff]  }
 0x33f   :  { %7416 = vmatpush2.bf16.msra.mxu0 %v10272_v61  ;;  %v10362_v61 = vld [vmem:[%s14203_s1 + $0x1528] ss:$16 sps:$4 sm:$0xff]  }
 0x340   :  { %7459 = vmatpush2.bf16.msra.mxu1 %v10275_v18  ;;  %7471 = vmatprep.subr.bf16.mxu0 %v10280_v29  ;;  %v10365_v18 = vld [vmem:[%s14203_s1 + $0x1728] ss:$16 sps:$4 sm:$0xff]   ;;  %v10370_v29 = vld [vmem:[%s14203_s1 + $0x150c] ss:$16 sps:$4 sm:$0xff]  }
 0x341   :  { %7514 = vmatprep.subr.bf16.mxu1 %v10283_v13  ;;  %v10373_v13 = vld [vmem:[%s14203_s1 + $0x170c] ss:$16 sps:$4 sm:$0xff]  }
 0x342   :  { %7418 = vmatmul.mubr.bf16.vlgmr.msra.gmra.mxu0 %v11751_v44  ;;  %v10295_v44 = vld [vmem:[%s14203_s1 + $0x16ac] ss:$16 sps:$4 sm:$0xff]  }
 0x343   :  { %7461 = vmatmul.mubr.bf16.vlgmr.msra.gmra.mxu1 %v11755_v45  ;;  %7472 = vmatpush1.bf16.msra.mxu0 %v10278_v60  ;;  %v10290_v45 = vld [vmem:[%s14203_s1 + $0x14a8] ss:$16 sps:$4 sm:$0xff]  }
 0x344   :  { %7515 = vmatpush1.bf16.msra.mxu1 %v10281_v48  ;;  %7473 = vmatprep.subr.bf16.mxu0 %v10286_v49  ;;  %v10368_v60 = vld [vmem:[%s14203_s1 + $0x1508] ss:$16 sps:$4 sm:$0xff]   ;;  %v10376_v49 = vld [vmem:[%s14203_s1 + $0x18ec] ss:$16 sps:$4 sm:$0xff]  }
 0x345   :  { %7516 = vmatprep.subr.bf16.mxu1 %v10289_v54  ;;  %7503 = vmatprep.mubr.bf16.mxu0 %v11789_v56  ;;  %v10301_v56 = vld [vmem:[%s14203_s1 + $0x168c] ss:$16 sps:$4 sm:$0xff]   ;;  %v10371_v48 = vld [vmem:[%s14203_s1 + $0x1708] ss:$16 sps:$4 sm:$0xff]  }
 0x346   :  { %7546 = vmatprep.mubr.bf16.mxu1 %v11793_v57  ;;  %v10296_v57 = vld [vmem:[%s14203_s1 + $0x1488] ss:$16 sps:$4 sm:$0xff]   ;;  %v10379_v54 = vld [vmem:[%s14203_s1 + $0x1aec] ss:$16 sps:$4 sm:$0xff]  }
 0x347   :  { %7474 = vmatpush1.bf16.msra.mxu0 %v10284_v15  ;;  %v10374_v15 = vld [vmem:[%s14203_s1 + $0x18e8] ss:$16 sps:$4 sm:$0xff]  }
 0x348   :  { %7517 = vmatpush1.bf16.msra.mxu1 %v10287_v21  ;;  %7475 = vmatprep.subr.bf16.mxu0 %v10292_v37  ;;  %v10377_v21 = vld [vmem:[%s14203_s1 + $0x1ae8] ss:$16 sps:$4 sm:$0xff]   ;;  %v10382_v37 = vld [vmem:[%s14203_s1 + $0x18cc] ss:$16 sps:$4 sm:$0xff]  }
 0x349   :  { %7518 = vmatprep.subr.bf16.mxu1 %v10295_v44  ;;  %v10385_v44 = vld [vmem:[%s14203_s1 + $0x1acc] ss:$16 sps:$4 sm:$0xff]  }
 0x34b   :  { %7476 = vmatpush1.bf16.msra.mxu0 %v10290_v45  ;;  %v10380_v45 = vld [vmem:[%s14203_s1 + $0x18c8] ss:$16 sps:$4 sm:$0xff]  }
 0x34c   :  { %7519 = vmatpush1.bf16.msra.mxu1 %v10293_v41  ;;  %7477 = vmatprep.subr.bf16.mxu0 %v10298_v3  ;;  %v10383_v41 = vld [vmem:[%s14203_s1 + $0x1ac8] ss:$16 sps:$4 sm:$0xff]   ;;  %v10388_v3 = vld [vmem:[%s14203_s1 + $0x18ac] ss:$16 sps:$4 sm:$0xff]  }
 0x34d   :  { %7520 = vmatprep.subr.bf16.mxu1 %v10301_v56  ;;  %v10386_v56 = vld [vmem:[%s14203_s1 + $0x18a8] ss:$16 sps:$4 sm:$0xff]  }
 0x34f   :  { %7478 = vmatpush1.bf16.msra.mxu0 %v10296_v57  ;;  %v10389_v57 = vld [vmem:[%s14203_s1 + $0x1aa8] ss:$16 sps:$4 sm:$0xff]  }
 0x350   :  { %7521 = vmatpush1.bf16.msra.mxu1 %v10299_v0  ;;  %7479 = vmatprep.subr.bf16.mxu0 %v10304_v30  ;;  %v10394_v0 = vld [vmem:[%s14203_s1 + $0x188c] ss:$16 sps:$4 sm:$0xff]   ;;  %v10392_v30 = vld [vmem:[%s14203_s1 + $0x1888] ss:$16 sps:$4 sm:$0xff]  }
 0x351   :  { %7522 = vmatprep.subr.bf16.mxu1 %v10307_v31  ;;  %v10395_v31 = vld [vmem:[%s14203_s1 + $0x1a88] ss:$16 sps:$4 sm:$0xff]  }
 0x353   :  { %7480 = vmatpush1.bf16.msra.mxu0 %v10302_v26  ;;  %v10400_v26 = vld [vmem:[%s14203_s1 + $0x186c] ss:$16 sps:$4 sm:$0xff]  }
 0x354   :  { %7523 = vmatpush1.bf16.msra.mxu1 %v10305_v53  ;;  %7481 = vmatprep.subr.bf16.mxu0 %v10310_v33  ;;  %v10403_v53 = vld [vmem:[%s14203_s1 + $0x1a6c] ss:$16 sps:$4 sm:$0xff]   ;;  %v10398_v33 = vld [vmem:[%s14203_s1 + $0x1868] ss:$16 sps:$4 sm:$0xff]  }
 0x355   :  { %7524 = vmatprep.subr.bf16.mxu1 %v10313_v58  ;;  %v10401_v58 = vld [vmem:[%s14203_s1 + $0x1a68] ss:$16 sps:$4 sm:$0xff]  }
 0x357   :  { %7482 = vmatpush1.bf16.msra.mxu0 %v10308_v52  ;;  %v10406_v52 = vld [vmem:[%s14203_s1 + $0x184c] ss:$16 sps:$4 sm:$0xff]  }
 0x358   :  { %7525 = vmatpush1.bf16.msra.mxu1 %v10311_v40  ;;  %7483 = vmatprep.subr.bf16.mxu0 %v10316_v42  ;;  %v10409_v40 = vld [vmem:[%s14203_s1 + $0x1a4c] ss:$16 sps:$4 sm:$0xff]   ;;  %v10404_v42 = vld [vmem:[%s14203_s1 + $0x1848] ss:$16 sps:$4 sm:$0xff]  }
 0x359   :  { %7526 = vmatprep.subr.bf16.mxu1 %v10319_v7  ;;  %v10407_v7 = vld [vmem:[%s14203_s1 + $0x1a48] ss:$16 sps:$4 sm:$0xff]  }
 0x35b   :  { %7484 = vmatpush1.bf16.msra.mxu0 %v10314_v62  ;;  %v10412_v62 = vld [vmem:[%s14203_s1 + $0x182c] ss:$16 sps:$4 sm:$0xff]  }
 0x35c   :  { %7527 = vmatpush1.bf16.msra.mxu1 %v10317_v4  ;;  %7485 = vmatprep.subr.bf16.mxu0 %v10322_v39  ;;  %v10415_v4 = vld [vmem:[%s14203_s1 + $0x1a2c] ss:$16 sps:$4 sm:$0xff]   ;;  %v10410_v39 = vld [vmem:[%s14203_s1 + $0x1828] ss:$16 sps:$4 sm:$0xff]  }
 0x35d   :  { %7528 = vmatprep.subr.bf16.mxu1 %v10325_v55  ;;  %v10413_v55 = vld [vmem:[%s14203_s1 + $0x1a28] ss:$16 sps:$4 sm:$0xff]  }
 0x35f   :  { %7486 = vmatpush1.bf16.msra.mxu0 %v10320_v59  ;;  %v10418_v59 = vld [vmem:[%s14203_s1 + $0x180c] ss:$16 sps:$4 sm:$0xff]  }
 0x360   :  { %7529 = vmatpush1.bf16.msra.mxu1 %v10323_v47  ;;  %7487 = vmatprep.subr.bf16.mxu0 %v10328_v35  ;;  %v10421_v47 = vld [vmem:[%s14203_s1 + $0x1a0c] ss:$16 sps:$4 sm:$0xff]   ;;  %v10416_v35 = vld [vmem:[%s14203_s1 + $0x1808] ss:$16 sps:$4 sm:$0xff]  }
 0x361   :  { %7530 = vmatprep.subr.bf16.mxu1 %v10331_v34  ;;  %v10419_v34 = vld [vmem:[%s14203_s1 + $0x1a08] ss:$16 sps:$4 sm:$0xff]  }
 0x363   :  { %7488 = vmatpush2.bf16.msra.mxu0 %v10326_v8  ;;  %v10424_v8 = vld [vmem:[%s14203_s1 + $0x19ec] ss:$16 sps:$4 sm:$0xff]  }
 0x364   :  { %7531 = vmatpush2.bf16.msra.mxu1 %v10329_v9  ;;  %7489 = vmatprep.subr.bf16.mxu0 %v10334_v27  ;;  %v10427_v9 = vld [vmem:[%s14203_s1 + $0x1bec] ss:$16 sps:$4 sm:$0xff]   ;;  %v10422_v27 = vld [vmem:[%s14203_s1 + $0x19e8] ss:$16 sps:$4 sm:$0xff]  }
 0x365   :  { %7532 = vmatprep.subr.bf16.mxu1 %v10337_v17  ;;  %v10425_v17 = vld [vmem:[%s14203_s1 + $0x1be8] ss:$16 sps:$4 sm:$0xff]  }
 0x367   :  { %7490 = vmatpush2.bf16.msra.mxu0 %v10332_v38  ;;  %v10430_v38 = vld [vmem:[%s14203_s1 + $0x19cc] ss:$16 sps:$4 sm:$0xff]  }
 0x368   :  { %7533 = vmatpush2.bf16.msra.mxu1 %v10335_v10  ;;  %7491 = vmatprep.subr.bf16.mxu0 %v10340_v11  ;;  %v10433_v10 = vld [vmem:[%s14203_s1 + $0x1bcc] ss:$16 sps:$4 sm:$0xff]   ;;  %v10428_v11 = vld [vmem:[%s14203_s1 + $0x19c8] ss:$16 sps:$4 sm:$0xff]  }
 0x369   :  { %7534 = vmatprep.subr.bf16.mxu1 %v10343_v28  ;;  %v10431_v28 = vld [vmem:[%s14203_s1 + $0x1bc8] ss:$16 sps:$4 sm:$0xff]  }
 0x36b   :  { %7492 = vmatpush2.bf16.msra.mxu0 %v10338_v2  ;;  %v10436_v2 = vld [vmem:[%s14203_s1 + $0x19ac] ss:$16 sps:$4 sm:$0xff]  }
 0x36c   :  { %7535 = vmatpush2.bf16.msra.mxu1 %v10341_v16  ;;  %7493 = vmatprep.subr.bf16.mxu0 %v10346_v6  ;;  %v10439_v16 = vld [vmem:[%s14203_s1 + $0x1bac] ss:$16 sps:$4 sm:$0xff]   ;;  %v10434_v6 = vld [vmem:[%s14203_s1 + $0x19a8] ss:$16 sps:$4 sm:$0xff]  }
 0x36d   :  { %7536 = vmatprep.subr.bf16.mxu1 %v10349_v12  ;;  %v10437_v12 = vld [vmem:[%s14203_s1 + $0x1ba8] ss:$16 sps:$4 sm:$0xff]  }
 0x36f   :  { %7494 = vmatpush2.bf16.msra.mxu0 %v10344_v43  ;;  %v10442_v43 = vld [vmem:[%s14203_s1 + $0x198c] ss:$16 sps:$4 sm:$0xff]  }
 0x370   :  { %7537 = vmatpush2.bf16.msra.mxu1 %v10347_v46  ;;  %7495 = vmatprep.subr.bf16.mxu0 %v10352_v63  ;;  %v10445_v46 = vld [vmem:[%s14203_s1 + $0x1b8c] ss:$16 sps:$4 sm:$0xff]   ;;  %v10440_v63 = vld [vmem:[%s14203_s1 + $0x1988] ss:$16 sps:$4 sm:$0xff]  }
 0x371   :  { %7538 = vmatprep.subr.bf16.mxu1 %v10355_v5  ;;  %v10443_v5 = vld [vmem:[%s14203_s1 + $0x1b88] ss:$16 sps:$4 sm:$0xff]  }
 0x373   :  { %7496 = vmatpush2.bf16.msra.mxu0 %v10350_v23  ;;  %v10448_v23 = vld [vmem:[%s14203_s1 + $0x196c] ss:$16 sps:$4 sm:$0xff]  }
 0x374   :  { %7539 = vmatpush2.bf16.msra.mxu1 %v10353_v22  ;;  %7497 = vmatprep.subr.bf16.mxu0 %v10358_v50  ;;  %v10451_v22 = vld [vmem:[%s14203_s1 + $0x1b6c] ss:$16 sps:$4 sm:$0xff]   ;;  %v10446_v50 = vld [vmem:[%s14203_s1 + $0x1968] ss:$16 sps:$4 sm:$0xff]  }
 0x375   :  { %7540 = vmatprep.subr.bf16.mxu1 %v10361_v51  ;;  %v10449_v51 = vld [vmem:[%s14203_s1 + $0x1b68] ss:$16 sps:$4 sm:$0xff]  }
 0x377   :  { %7498 = vmatpush2.bf16.msra.mxu0 %v10356_v14  ;;  %v10454_v14 = vld [vmem:[%s14203_s1 + $0x194c] ss:$16 sps:$4 sm:$0xff]  }
 0x378   :  { %7541 = vmatpush2.bf16.msra.mxu1 %v10359_v20  ;;  %7499 = vmatprep.subr.bf16.mxu0 %v10364_v19  ;;  %v10457_v20 = vld [vmem:[%s14203_s1 + $0x1b4c] ss:$16 sps:$4 sm:$0xff]   ;;  %v10452_v19 = vld [vmem:[%s14203_s1 + $0x1948] ss:$16 sps:$4 sm:$0xff]  }
 0x379   :  { %7542 = vmatprep.subr.bf16.mxu1 %v10367_v32  ;;  %v10455_v32 = vld [vmem:[%s14203_s1 + $0x1b48] ss:$16 sps:$4 sm:$0xff]  }
 0x37b   :  { %7500 = vmatpush2.bf16.msra.mxu0 %v10362_v61  ;;  %v10460_v61 = vld [vmem:[%s14203_s1 + $0x192c] ss:$16 sps:$4 sm:$0xff]  }
 0x37c   :  { %7543 = vmatpush2.bf16.msra.mxu1 %v10365_v18  ;;  %7501 = vmatprep.subr.bf16.mxu0 %v10370_v29  ;;  %v10463_v18 = vld [vmem:[%s14203_s1 + $0x1b2c] ss:$16 sps:$4 sm:$0xff]   ;;  %v10458_v29 = vld [vmem:[%s14203_s1 + $0x1928] ss:$16 sps:$4 sm:$0xff]  }
 0x37d   :  { %7544 = vmatprep.subr.bf16.mxu1 %v10373_v13  ;;  %v10461_v13 = vld [vmem:[%s14203_s1 + $0x1b28] ss:$16 sps:$4 sm:$0xff]  }
 0x37f   :  { %7502 = vmatpush2.bf16.msra.mxu0 %v10368_v60  ;;  %v10466_v60 = vld [vmem:[%s14203_s1 + $0x190c] ss:$16 sps:$4 sm:$0xff]  }
 0x380   :  { %7545 = vmatpush2.bf16.msra.mxu1 %v10371_v48  ;;  %7557 = vmatprep.subr.bf16.mxu0 %v10376_v49  ;;  %v10469_v48 = vld [vmem:[%s14203_s1 + $0x1b0c] ss:$16 sps:$4 sm:$0xff]   ;;  %v10464_v49 = vld [vmem:[%s14203_s1 + $0x1908] ss:$16 sps:$4 sm:$0xff]  }
 0x381   :  { %7600 = vmatprep.subr.bf16.mxu1 %v10379_v54  ;;  %v10467_v54 = vld [vmem:[%s14203_s1 + $0x1b08] ss:$16 sps:$4 sm:$0xff]  }
 0x382   :  { %7504 = vmatmul.mubr.bf16.vlgmr.msra.gmra.mxu0 %v11983_v24  ;;  %v10391_v24 = vld [vmem:[%s14203_s1 + $0x1aac] ss:$16 sps:$4 sm:$0xff]  }
 0x383   :  { %7547 = vmatmul.mubr.bf16.vlgmr.msra.gmra.mxu1 %v11987_v25  ;;  %7558 = vmatpush1.bf16.msra.mxu0 %v10374_v15  ;;  %v14222_v25 = vld [vmem:[#allocation2_spill] sm:$0xff]  ;;  %v10472_v15 = vld [vmem:[%s14203_s1 + $0x1cec] ss:$16 sps:$4 sm:$0xff]  }
 0x384   :  { %7601 = vmatpush1.bf16.msra.mxu1 %v10377_v21  ;;  %7559 = vmatprep.subr.bf16.mxu0 %v10382_v37  ;;  %v10475_v21 = vld [vmem:[%s14203_s1 + $0x1eec] ss:$16 sps:$4 sm:$0xff]   ;;  %v10470_v37 = vld [vmem:[%s14203_s1 + $0x1ce8] ss:$16 sps:$4 sm:$0xff]  }
 0x385   :  { %7602 = vmatprep.subr.bf16.mxu1 %v10385_v44  ;;  %7589 = vmatprep.mubr.bf16.mxu0 %v12021_v36  ;;  %v10397_v36 = vld [vmem:[%s14203_s1 + $0x1a8c] ss:$16 sps:$4 sm:$0xff]   ;;  %v10473_v44 = vld [vmem:[%s14203_s1 + $0x1ee8] ss:$16 sps:$4 sm:$0xff]  }
 0x386   :  { %7632 = vmatprep.mubr.bf16.mxu1 %v14222_v25  ;;  %v10476_v25 = vld [vmem:[%s14203_s1 + $0x1cc8] ss:$16 sps:$4 sm:$0xff]  }
 0x387   :  { %7560 = vmatpush1.bf16.msra.mxu0 %v10380_v45  ;;  %v10478_v45 = vld [vmem:[%s14203_s1 + $0x1ccc] ss:$16 sps:$4 sm:$0xff]  }
 0x388   :  { %7603 = vmatpush1.bf16.msra.mxu1 %v10383_v41  ;;  %7561 = vmatprep.subr.bf16.mxu0 %v10388_v3  ;;  %v10481_v41 = vld [vmem:[%s14203_s1 + $0x1ecc] ss:$16 sps:$4 sm:$0xff]  }
 0x389   :  { %7604 = vmatprep.subr.bf16.mxu1 %v10391_v24  ;;  %v14223_v3 = vld [vmem:[#allocation3_spill] sm:$0xff]  ;;  %v14224_v24 = vld [vmem:[#allocation4_spill] sm:$0xff] }
 0x38b   :  { %7562 = vmatpush1.bf16.msra.mxu0 %v10386_v56  ;;  %v10479_v56 = vld [vmem:[%s14203_s1 + $0x1ec8] ss:$16 sps:$4 sm:$0xff]  }
 0x38c   :  { %7605 = vmatpush1.bf16.msra.mxu1 %v10389_v57  ;;  %7563 = vmatprep.subr.bf16.mxu0 %v10394_v0  ;;  %v10484_v57 = vld [vmem:[%s14203_s1 + $0x1cac] ss:$16 sps:$4 sm:$0xff]  }
 0x38d   :  { %7606 = vmatprep.subr.bf16.mxu1 %v10397_v36  ;;  %v10487_v0 = vld [vmem:[%s14203_s1 + $0x1eac] ss:$16 sps:$4 sm:$0xff]  }
 0x38e   :  { %v14225_v36 = vld [vmem:[#allocation5_spill] sm:$0xff] }
 0x38f   :  { %7564 = vmatpush1.bf16.msra.mxu0 %v10392_v30  ;;  %v14226_v30 = vld [vmem:[#allocation6_spill] sm:$0xff] }
 0x390   :  { %7607 = vmatpush1.bf16.msra.mxu1 %v10395_v31  ;;  %7565 = vmatprep.subr.bf16.mxu0 %v10400_v26  ;;  %v10482_v31 = vld [vmem:[%s14203_s1 + $0x1ca8] ss:$16 sps:$4 sm:$0xff]  }
 0x391   :  { %7608 = vmatprep.subr.bf16.mxu1 %v10403_v53  ;;  %v10485_v26 = vld [vmem:[%s14203_s1 + $0x1ea8] ss:$16 sps:$4 sm:$0xff]   ;;  %v10490_v53 = vld [vmem:[%s14203_s1 + $0x1c8c] ss:$16 sps:$4 sm:$0xff]  }
 0x393   :  { %7566 = vmatpush1.bf16.msra.mxu0 %v10398_v33  ;;  %v10493_v33 = vld [vmem:[%s14203_s1 + $0x1e8c] ss:$16 sps:$4 sm:$0xff]  }
 0x394   :  { %7609 = vmatpush1.bf16.msra.mxu1 %v10401_v58  ;;  %7567 = vmatprep.subr.bf16.mxu0 %v10406_v52  ;;  %v10488_v58 = vld [vmem:[%s14203_s1 + $0x1c88] ss:$16 sps:$4 sm:$0xff]  }
 0x395   :  { %7610 = vmatprep.subr.bf16.mxu1 %v10409_v40  ;;  %v10491_v52 = vld [vmem:[%s14203_s1 + $0x1e88] ss:$16 sps:$4 sm:$0xff]   ;;  %v10496_v40 = vld [vmem:[%s14203_s1 + $0x1c6c] ss:$16 sps:$4 sm:$0xff]  }
 0x397   :  { %7568 = vmatpush1.bf16.msra.mxu0 %v10404_v42  ;;  %v10499_v42 = vld [vmem:[%s14203_s1 + $0x1e6c] ss:$16 sps:$4 sm:$0xff]  }
 0x398   :  { %7611 = vmatpush1.bf16.msra.mxu1 %v10407_v7  ;;  %7569 = vmatprep.subr.bf16.mxu0 %v10412_v62  ;;  %v10494_v7 = vld [vmem:[%s14203_s1 + $0x1c68] ss:$16 sps:$4 sm:$0xff]  }
 0x399   :  { %7612 = vmatprep.subr.bf16.mxu1 %v10415_v4  ;;  %v10497_v62 = vld [vmem:[%s14203_s1 + $0x1e68] ss:$16 sps:$4 sm:$0xff]   ;;  %v10502_v4 = vld [vmem:[%s14203_s1 + $0x1c4c] ss:$16 sps:$4 sm:$0xff]  }
 0x39b   :  { %7570 = vmatpush1.bf16.msra.mxu0 %v10410_v39  ;;  %v10505_v39 = vld [vmem:[%s14203_s1 + $0x1e4c] ss:$16 sps:$4 sm:$0xff]  }
 0x39c   :  { %7613 = vmatpush1.bf16.msra.mxu1 %v10413_v55  ;;  %7571 = vmatprep.subr.bf16.mxu0 %v10418_v59  ;;  %v10500_v55 = vld [vmem:[%s14203_s1 + $0x1c48] ss:$16 sps:$4 sm:$0xff]  }
 0x39d   :  { %7614 = vmatprep.subr.bf16.mxu1 %v10421_v47  ;;  %v10503_v59 = vld [vmem:[%s14203_s1 + $0x1e48] ss:$16 sps:$4 sm:$0xff]   ;;  %v10508_v47 = vld [vmem:[%s14203_s1 + $0x1c2c] ss:$16 sps:$4 sm:$0xff]  }
 0x39f   :  { %7572 = vmatpush1.bf16.msra.mxu0 %v10416_v35  ;;  %v10511_v35 = vld [vmem:[%s14203_s1 + $0x1e2c] ss:$16 sps:$4 sm:$0xff]  }
 0x3a0   :  { %7615 = vmatpush1.bf16.msra.mxu1 %v10419_v34  ;;  %7573 = vmatprep.subr.bf16.mxu0 %v10424_v8  ;;  %v10506_v34 = vld [vmem:[%s14203_s1 + $0x1c28] ss:$16 sps:$4 sm:$0xff]  }
 0x3a1   :  { %7616 = vmatprep.subr.bf16.mxu1 %v10427_v9  ;;  %v10509_v8 = vld [vmem:[%s14203_s1 + $0x1e28] ss:$16 sps:$4 sm:$0xff]   ;;  %v10514_v9 = vld [vmem:[%s14203_s1 + $0x1c0c] ss:$16 sps:$4 sm:$0xff]  }
 0x3a3   :  { %7574 = vmatpush2.bf16.msra.mxu0 %v10422_v27  ;;  %v10517_v27 = vld [vmem:[%s14203_s1 + $0x1e0c] ss:$16 sps:$4 sm:$0xff]  }
 0x3a4   :  { %7617 = vmatpush2.bf16.msra.mxu1 %v10425_v17  ;;  %7575 = vmatprep.subr.bf16.mxu0 %v10430_v38  ;;  %v10512_v17 = vld [vmem:[%s14203_s1 + $0x1c08] ss:$16 sps:$4 sm:$0xff]  }
 0x3a5   :  { %7618 = vmatprep.subr.bf16.mxu1 %v10433_v10  ;;  %v10515_v38 = vld [vmem:[%s14203_s1 + $0x1e08] ss:$16 sps:$4 sm:$0xff]   ;;  %v10520_v10 = vld [vmem:[%s14203_s1 + $0x1dec] ss:$16 sps:$4 sm:$0xff]  }
 0x3a7   :  { %7576 = vmatpush2.bf16.msra.mxu0 %v10428_v11  ;;  %v10523_v11 = vld [vmem:[%s14203_s1 + $0x1fec] ss:$16 sps:$4 sm:$0xff]  }
 0x3a8   :  { %7619 = vmatpush2.bf16.msra.mxu1 %v10431_v28  ;;  %7577 = vmatprep.subr.bf16.mxu0 %v10436_v2  ;;  %v10518_v28 = vld [vmem:[%s14203_s1 + $0x1de8] ss:$16 sps:$4 sm:$0xff]  }
 0x3a9   :  { %7620 = vmatprep.subr.bf16.mxu1 %v10439_v16  ;;  %v10521_v2 = vld [vmem:[%s14203_s1 + $0x1fe8] ss:$16 sps:$4 sm:$0xff]   ;;  %v10526_v16 = vld [vmem:[%s14203_s1 + $0x1dcc] ss:$16 sps:$4 sm:$0xff]  }
 0x3ab   :  { %7578 = vmatpush2.bf16.msra.mxu0 %v10434_v6  ;;  %v10529_v6 = vld [vmem:[%s14203_s1 + $0x1fcc] ss:$16 sps:$4 sm:$0xff]  }
 0x3ac   :  { %7621 = vmatpush2.bf16.msra.mxu1 %v10437_v12  ;;  %7579 = vmatprep.subr.bf16.mxu0 %v10442_v43  ;;  %v10524_v12 = vld [vmem:[%s14203_s1 + $0x1dc8] ss:$16 sps:$4 sm:$0xff]  }
 0x3ad   :  { %7622 = vmatprep.subr.bf16.mxu1 %v10445_v46  ;;  %v10527_v43 = vld [vmem:[%s14203_s1 + $0x1fc8] ss:$16 sps:$4 sm:$0xff]   ;;  %v10532_v46 = vld [vmem:[%s14203_s1 + $0x1dac] ss:$16 sps:$4 sm:$0xff]  }
 0x3af   :  { %7580 = vmatpush2.bf16.msra.mxu0 %v10440_v63  ;;  %v10535_v63 = vld [vmem:[%s14203_s1 + $0x1fac] ss:$16 sps:$4 sm:$0xff]  }
 0x3b0   :  { %7623 = vmatpush2.bf16.msra.mxu1 %v10443_v5  ;;  %7581 = vmatprep.subr.bf16.mxu0 %v10448_v23  ;;  %v10530_v5 = vld [vmem:[%s14203_s1 + $0x1da8] ss:$16 sps:$4 sm:$0xff]  }
 0x3b1   :  { %7624 = vmatprep.subr.bf16.mxu1 %v10451_v22  ;;  %v10533_v23 = vld [vmem:[%s14203_s1 + $0x1fa8] ss:$16 sps:$4 sm:$0xff]   ;;  %v10538_v22 = vld [vmem:[%s14203_s1 + $0x1d8c] ss:$16 sps:$4 sm:$0xff]  }
 0x3b3   :  { %7582 = vmatpush2.bf16.msra.mxu0 %v10446_v50  ;;  %v10541_v50 = vld [vmem:[%s14203_s1 + $0x1f8c] ss:$16 sps:$4 sm:$0xff]  }
 0x3b4   :  { %7625 = vmatpush2.bf16.msra.mxu1 %v10449_v51  ;;  %7583 = vmatprep.subr.bf16.mxu0 %v10454_v14  ;;  %v10536_v51 = vld [vmem:[%s14203_s1 + $0x1d88] ss:$16 sps:$4 sm:$0xff]  }
 0x3b5   :  { %7626 = vmatprep.subr.bf16.mxu1 %v10457_v20  ;;  %v10539_v14 = vld [vmem:[%s14203_s1 + $0x1f88] ss:$16 sps:$4 sm:$0xff]   ;;  %v10544_v20 = vld [vmem:[%s14203_s1 + $0x1d6c] ss:$16 sps:$4 sm:$0xff]  }
 0x3b7   :  { %7584 = vmatpush2.bf16.msra.mxu0 %v10452_v19  ;;  %v10547_v19 = vld [vmem:[%s14203_s1 + $0x1f6c] ss:$16 sps:$4 sm:$0xff]  }
 0x3b8   :  { %7627 = vmatpush2.bf16.msra.mxu1 %v10455_v32  ;;  %7585 = vmatprep.subr.bf16.mxu0 %v10460_v61  ;;  %v10542_v32 = vld [vmem:[%s14203_s1 + $0x1d68] ss:$16 sps:$4 sm:$0xff]  }
 0x3b9   :  { %7628 = vmatprep.subr.bf16.mxu1 %v10463_v18  ;;  %v10545_v61 = vld [vmem:[%s14203_s1 + $0x1f68] ss:$16 sps:$4 sm:$0xff]   ;;  %v10550_v18 = vld [vmem:[%s14203_s1 + $0x1d4c] ss:$16 sps:$4 sm:$0xff]  }
 0x3bb   :  { %7586 = vmatpush2.bf16.msra.mxu0 %v10458_v29  ;;  %v10553_v29 = vld [vmem:[%s14203_s1 + $0x1f4c] ss:$16 sps:$4 sm:$0xff]  }
 0x3bc   :  { %7629 = vmatpush2.bf16.msra.mxu1 %v10461_v13  ;;  %7587 = vmatprep.subr.bf16.mxu0 %v10466_v60  ;;  %v10548_v13 = vld [vmem:[%s14203_s1 + $0x1d48] ss:$16 sps:$4 sm:$0xff]  }
 0x3bd   :  { %7630 = vmatprep.subr.bf16.mxu1 %v10469_v48  ;;  %v10551_v60 = vld [vmem:[%s14203_s1 + $0x1f48] ss:$16 sps:$4 sm:$0xff]   ;;  %v10556_v48 = vld [vmem:[%s14203_s1 + $0x1d2c] ss:$16 sps:$4 sm:$0xff]  }
 0x3bf   :  { %7588 = vmatpush2.bf16.msra.mxu0 %v10464_v49  ;;  %v10559_v49 = vld [vmem:[%s14203_s1 + $0x1f2c] ss:$16 sps:$4 sm:$0xff]  }
 0x3c0   :  { %7631 = vmatpush2.bf16.msra.mxu1 %v10467_v54  ;;  %7643 = vmatprep.subr.bf16.mxu0 %v10472_v15  ;;  %v10554_v54 = vld [vmem:[%s14203_s1 + $0x1d28] ss:$16 sps:$4 sm:$0xff]  }
 0x3c1   :  { %7686 = vmatprep.subr.bf16.mxu1 %v10475_v21  ;;  %v10557_v15 = vld [vmem:[%s14203_s1 + $0x1f28] ss:$16 sps:$4 sm:$0xff]   ;;  %v10562_v21 = vld [vmem:[%s14203_s1 + $0x1d0c] ss:$16 sps:$4 sm:$0xff]  }
 0x3c2   :  { %7590 = vmatmul.mubr.bf16.vlgmr.msra.gmra.mxu0 %v14223_v3  ;;  %v14228_v3 = vld [vmem:[#allocation8_spill] sm:$0xff] }
 0x3c3   :  { %7633 = vmatmul.mubr.bf16.vlgmr.msra.gmra.mxu1 %v14224_v24  ;;  %7644 = vmatpush1.bf16.msra.mxu0 %v10470_v37  ;;  %v10565_v37 = vld [vmem:[%s14203_s1 + $0x1f0c] ss:$16 sps:$4 sm:$0xff]   ;;  %v7075_v24 = vpop.f32.mrf.mxu0 }
 0x3c4   :  { %7687 = vmatpush1.bf16.msra.mxu1 %v10473_v44  ;;  %7645 = vmatprep.subr.bf16.mxu0 %v10478_v45  ;;  %v10560_v44 = vld [vmem:[%s14203_s1 + $0x1d08] ss:$16 sps:$4 sm:$0xff]  }
 0x3c5   :  { %7688 = vmatprep.subr.bf16.mxu1 %v10481_v41  ;;  %7675 = vmatprep.mubr.bf16.mxu0 %v14225_v36  ;;  %v10563_v45 = vld [vmem:[%s14203_s1 + $0x1f08] ss:$16 sps:$4 sm:$0xff]  }
 0x3c6   :  { %7718 = vmatprep.mubr.bf16.mxu1 %v14226_v30  ;;  %v14227_v41 = vld [vmem:[#allocation7_spill] sm:$0xff] }
 0x3c7   :  { %7646 = vmatpush1.bf16.msra.mxu0 %v10476_v25  ;;  %v7118_v25 = vpop.f32.mrf.mxu1 }
 0x3c8   :  { %7689 = vmatpush1.bf16.msra.mxu1 %v10479_v56  ;;  %7647 = vmatprep.subr.bf16.mxu0 %v10484_v57  ;;  %v7077_v56 = vpop.f32.mrf.mxu0 }
 0x3c9   :  { %7690 = vmatprep.subr.bf16.mxu1 %v10487_v0  ;;  %v7120_v57 = vpop.f32.mrf.mxu1 }
 0x3ca   :  { %v7079_v0 = vpop.f32.mrf.mxu0 }
 0x3cb   :  { %7648 = vmatpush1.bf16.msra.mxu0 %v10482_v31  ;;  %v7122_v36 = vpop.f32.mrf.mxu1 }
 0x3cc   :  { %7691 = vmatpush1.bf16.msra.mxu1 %v10485_v26  ;;  %7649 = vmatprep.subr.bf16.mxu0 %v10490_v53  ;;  %v7081_v30 = vpop.f32.mrf.mxu0 }
 0x3cd   :  { %7692 = vmatprep.subr.bf16.mxu1 %v10493_v33  ;;  %v7124_v31 = vpop.f32.mrf.mxu1 }
 0x3ce   :  { %v7161_v26 = vpop.f32.mrf.mxu0 }
 0x3cf   :  { %7650 = vmatpush1.bf16.msra.mxu0 %v10488_v58  ;;  %v7204_v53 = vpop.f32.mrf.mxu1 }
 0x3d0   :  { %7693 = vmatpush1.bf16.msra.mxu1 %v10491_v52  ;;  %7651 = vmatprep.subr.bf16.mxu0 %v10496_v40  ;;  %v7163_v33 = vpop.f32.mrf.mxu0 }
 0x3d1   :  { %7694 = vmatprep.subr.bf16.mxu1 %v10499_v42  ;;  %v7206_v58 = vpop.f32.mrf.mxu1 }
 0x3d2   :  { %v7165_v52 = vpop.f32.mrf.mxu0 }
 0x3d3   :  { %7652 = vmatpush1.bf16.msra.mxu0 %v10494_v7  ;;  %v7208_v40 = vpop.f32.mrf.mxu1 }
 0x3d4   :  { %7695 = vmatpush1.bf16.msra.mxu1 %v10497_v62  ;;  %7653 = vmatprep.subr.bf16.mxu0 %v10502_v4  ;;  %v7167_v42 = vpop.f32.mrf.mxu0 }
 0x3d5   :  { %7696 = vmatprep.subr.bf16.mxu1 %v10505_v39  ;;  %v7210_v7 = vpop.f32.mrf.mxu1 }
 0x3d6   :  { %v7247_v62 = vpop.f32.mrf.mxu0 }
 0x3d7   :  { %7654 = vmatpush1.bf16.msra.mxu0 %v10500_v55  ;;  %v7290_v4 = vpop.f32.mrf.mxu1 }
 0x3d8   :  { %7697 = vmatpush1.bf16.msra.mxu1 %v10503_v59  ;;  %7655 = vmatprep.subr.bf16.mxu0 %v10508_v47  ;;  %v7249_v39 = vpop.f32.mrf.mxu0 }
 0x3d9   :  { %7698 = vmatprep.subr.bf16.mxu1 %v10511_v35  ;;  %v7292_v55 = vpop.f32.mrf.mxu1 }
 0x3da   :  { %v7251_v59 = vpop.f32.mrf.mxu0 }
 0x3db   :  { %7656 = vmatpush1.bf16.msra.mxu0 %v10506_v34  ;;  %v7294_v47 = vpop.f32.mrf.mxu1 }
 0x3dc   :  { %7699 = vmatpush1.bf16.msra.mxu1 %v10509_v8  ;;  %7657 = vmatprep.subr.bf16.mxu0 %v10514_v9  ;;  %v7253_v35 = vpop.f32.mrf.mxu0 }
 0x3dd   :  { %7700 = vmatprep.subr.bf16.mxu1 %v10517_v27  ;;  %v7296_v34 = vpop.f32.mrf.mxu1 }
 0x3de   :  { %v7333_v8 = vpop.f32.mrf.mxu0 }
 0x3df   :  { %7658 = vmatpush1.bf16.msra.mxu0 %v10512_v17  ;;  %v7376_v9 = vpop.f32.mrf.mxu1 }
 0x3e0   :  { %7701 = vmatpush1.bf16.msra.mxu1 %v10515_v38  ;;  %7659 = vmatprep.subr.bf16.mxu0 %v10520_v10  ;;  %v7335_v27 = vpop.f32.mrf.mxu0 }
 0x3e1   :  { %7702 = vmatprep.subr.bf16.mxu1 %v10523_v11  ;;  %v7378_v17 = vpop.f32.mrf.mxu1 }
 0x3e2   :  { %v7337_v38 = vpop.f32.mrf.mxu0 }
 0x3e3   :  { %7660 = vmatpush2.bf16.msra.mxu0 %v10518_v28  ;;  %v7380_v10 = vpop.f32.mrf.mxu1 }
 0x3e4   :  { %7703 = vmatpush2.bf16.msra.mxu1 %v10521_v2  ;;  %7661 = vmatprep.subr.bf16.mxu0 %v10526_v16  ;;  %v7339_v11 = vpop.f32.mrf.mxu0 }
 0x3e5   :  { %7704 = vmatprep.subr.bf16.mxu1 %v10529_v6  ;;  %v7382_v28 = vpop.f32.mrf.mxu1 }
 0x3e7   :  { %7662 = vmatpush2.bf16.msra.mxu0 %v10524_v12 }
 0x3e8   :  { %7705 = vmatpush2.bf16.msra.mxu1 %v10527_v43  ;;  %7663 = vmatprep.subr.bf16.mxu0 %v10532_v46  ;;  %v7119_v46 = vadd.f32 %v7118_v25, %v7075_v24 }
 0x3e9   :  { %7706 = vmatprep.subr.bf16.mxu1 %v10535_v63  ;;  %v7123_v63 = vadd.f32 %v7122_v36, %v7079_v0 }
 0x3eb   :  { %7664 = vmatpush2.bf16.msra.mxu0 %v10530_v5 }
 0x3ec   :  { %7707 = vmatpush2.bf16.msra.mxu1 %v10533_v23  ;;  %7665 = vmatprep.subr.bf16.mxu0 %v10538_v22  ;;  %v7121_v23 = vadd.f32 %v7120_v57, %v7077_v56  ;;  %v7125_v22 = vadd.f32 %v7124_v31, %v7081_v30 }
 0x3ed   :  { %7708 = vmatprep.subr.bf16.mxu1 %v10541_v50  ;;  %v7162_v50 = vadd.f32 %v7161_v26, %v7119_v46 }
 0x3ef   :  { %7666 = vmatpush2.bf16.msra.mxu0 %v10536_v51  ;;  %v7166_v51 = vadd.f32 %v7165_v52, %v7123_v63 }
 0x3f0   :  { %7709 = vmatpush2.bf16.msra.mxu1 %v10539_v14  ;;  %7667 = vmatprep.subr.bf16.mxu0 %v10544_v20  ;;  %v7164_v20 = vadd.f32 %v7163_v33, %v7121_v23 }
 0x3f1   :  { %7710 = vmatprep.subr.bf16.mxu1 %v10547_v19  ;;  %v7168_v19 = vadd.f32 %v7167_v42, %v7125_v22 }
 0x3f3   :  { %7668 = vmatpush2.bf16.msra.mxu0 %v10542_v32 }
 0x3f4   :  { %7711 = vmatpush2.bf16.msra.mxu1 %v10545_v61  ;;  %7669 = vmatprep.subr.bf16.mxu0 %v10550_v18  ;;  %v7205_v18 = vadd.f32 %v7204_v53, %v7162_v50 }
 0x3f5   :  { %7712 = vmatprep.subr.bf16.mxu1 %v10553_v29  ;;  %v7209_v29 = vadd.f32 %v7208_v40, %v7166_v51 }
 0x3f7   :  { %7670 = vmatpush2.bf16.msra.mxu0 %v10548_v13 }
 0x3f8   :  { %7713 = vmatpush2.bf16.msra.mxu1 %v10551_v60  ;;  %7671 = vmatprep.subr.bf16.mxu0 %v10556_v48  ;;  %v7207_v60 = vadd.f32 %v7206_v58, %v7164_v20  ;;  %v7211_v48 = vadd.f32 %v7210_v7, %v7168_v19 }
 0x3f9   :  { %7714 = vmatprep.subr.bf16.mxu1 %v10559_v49  ;;  %v7248_v49 = vadd.f32 %v7247_v62, %v7205_v18 }
 0x3fb   :  { %7672 = vmatpush2.bf16.msra.mxu0 %v10554_v54  ;;  %v7252_v54 = vadd.f32 %v7251_v59, %v7209_v29 }
 0x3fc   :  { %7715 = vmatpush2.bf16.msra.mxu1 %v10557_v15  ;;  %7673 = vmatprep.subr.bf16.mxu0 %v10562_v21  ;;  %v7250_v21 = vadd.f32 %v7249_v39, %v7207_v60 }
 0x3fd   :  { %7716 = vmatprep.subr.bf16.mxu1 %v10565_v37  ;;  %v7254_v37 = vadd.f32 %v7253_v35, %v7211_v48 }
 0x3fe   :  { %v7293_v24 = vadd.f32 %v7292_v55, %v7250_v21 }
 0x3ff   :  { %7674 = vmatpush2.bf16.msra.mxu0 %v10560_v44  ;;  %v7297_v25 = vadd.f32 %v7296_v34, %v7254_v37 }
 0x400   :  { %7717 = vmatpush2.bf16.msra.mxu1 %v10563_v45  ;;  %v7291_v45 = vadd.f32 %v7290_v4, %v7248_v49  ;;  %v7336_v36 = vadd.f32 %v7335_v27, %v7293_v24 }
 0x401   :  { %v7340_v30 = vadd.f32 %v7339_v11, %v7297_v25 }
 0x402   :  { %7676 = vmatmul.mubr.bf16.vlgmr.msra.gmra.mxu0 %v14227_v41  ;;  %v7419_v2 = vpop.f32.mrf.mxu0  ;;  %v7295_v41 = vadd.f32 %v7294_v47, %v7252_v54  ;;  %v7334_v56 = vadd.f32 %v7333_v8, %v7291_v45  ;;  %v7379_v52 = vadd.f32 %v7378_v17, %v7336_v36 }
 0x403   :  { %7719 = vmatmul.mubr.bf16.vlgmr.msra.gmra.mxu1 %v14228_v3  ;;  %v7462_v16 = vpop.f32.mrf.mxu1  ;;  %v7383_v40 = vadd.f32 %v7382_v28, %v7340_v30 }
 0x404   :  { %v7421_v6 = vpop.f32.mrf.mxu0  ;;  %v7338_v57 = vadd.f32 %v7337_v38, %v7295_v41  ;;  %v7377_v26 = vadd.f32 %v7376_v9, %v7334_v56 }
 0x405   :  { %v7464_v12 = vpop.f32.mrf.mxu1  ;;  %v7422_v4 = vadd.f32 %v7421_v6, %v7379_v52 }
 0x406   :  { %v7423_v43 = vpop.f32.mrf.mxu0  ;;  %v7381_v53 = vadd.f32 %v7380_v10, %v7338_v57  ;;  %v7420_v42 = vadd.f32 %v7419_v2, %v7377_v26 }
 0x407   :  { %v7466_v5 = vpop.f32.mrf.mxu1  ;;  %v7465_v34 = vadd.f32 %v7464_v12, %v7422_v4 }
 0x408   :  { %v7425_v14 = vpop.f32.mrf.mxu0  ;;  %v7424_v7 = vadd.f32 %v7423_v43, %v7381_v53  ;;  %v7463_v55 = vadd.f32 %v7462_v16, %v7420_v42 }
 0x409   :  { %v7468_v32 = vpop.f32.mrf.mxu1  ;;  %v7426_v39 = vadd.f32 %v7425_v14, %v7383_v40 }
 0x40a   :  { %v7467_v47 = vadd.f32 %v7466_v5, %v7424_v7 }
 0x40b   :  { %v7469_v8 = vadd.f32 %v7468_v32, %v7426_v39 }
 0x442   :  { %v7505_v61 = vpop.f32.mrf.mxu0 }
 0x443   :  { %v7548_v13 = vpop.f32.mrf.mxu1  ;;  %v7506_v27 = vadd.f32 %v7505_v61, %v7463_v55 }
 0x444   :  { %v7507_v15 = vpop.f32.mrf.mxu0 }
 0x445   :  { %v7550_v44 = vpop.f32.mrf.mxu1  ;;  %v7508_v9 = vadd.f32 %v7507_v15, %v7465_v34  ;;  %v7549_v63 = vadd.f32 %v7548_v13, %v7506_v27 }
 0x446   :  { %v7509_v3 = vpop.f32.mrf.mxu0 }
 0x447   :  { %v7552_v0 = vpop.f32.mrf.mxu1  ;;  %v7510_v38 = vadd.f32 %v7509_v3, %v7467_v47  ;;  %v7551_v2 = vadd.f32 %v7550_v44, %v7508_v9 }
 0x448   :  { %v7511_v31 = vpop.f32.mrf.mxu0 }
 0x449   :  { %v7554_v33 = vpop.f32.mrf.mxu1  ;;  %v7512_v10 = vadd.f32 %v7511_v31, %v7469_v8  ;;  %v7553_v17 = vadd.f32 %v7552_v0, %v7510_v38 }
 0x44b   :  { %v7555_v43 = vadd.f32 %v7554_v33, %v7512_v10 }
 0x482   :  { %v7591_v58 = vpop.f32.mrf.mxu0 }
 0x483   :  { %v7634_v62 = vpop.f32.mrf.mxu1  ;;  %v7592_v23 = vadd.f32 %v7591_v58, %v7549_v63 }
 0x484   :  { %v7593_v59 = vpop.f32.mrf.mxu0 }
 0x485   :  { %v7636_v35 = vpop.f32.mrf.mxu1  ;;  %v7594_v16 = vadd.f32 %v7593_v59, %v7551_v2  ;;  %v7635_v14 = vadd.f32 %v7634_v62, %v7592_v23 }
 0x486   :  { %v7595_v11 = vpop.f32.mrf.mxu0 }
 0x487   :  { %v7638_v46 = vpop.f32.mrf.mxu1  ;;  %v7596_v6 = vadd.f32 %v7595_v11, %v7553_v17  ;;  %v7637_v61 = vadd.f32 %v7636_v35, %v7594_v16 }
 0x488   :  { %v7597_v28 = vpop.f32.mrf.mxu0 }
 0x489   :  { %v7640_v22 = vpop.f32.mrf.mxu1  ;;  %v7598_v5 = vadd.f32 %v7597_v28, %v7555_v43  ;;  %v7639_v20 = vadd.f32 %v7638_v46, %v7596_v6 }
 0x48b   :  { %v7641_v18 = vadd.f32 %v7640_v22, %v7598_v5 }
 0x4c2   :  { %v7677_v50 = vpop.f32.mrf.mxu0 }
 0x4c3   :  { %v7720_v51 = vpop.f32.mrf.mxu1  ;;  %v7678_v29 = vadd.f32 %v7677_v50, %v7635_v14  ;;  %v7862_v14 = vsub.s32 2, %v13377_v1 }
 0x4c4   :  { %v7679_v12 = vpop.f32.mrf.mxu0 }
 0x4c5   :  { %v7722_v19 = vpop.f32.mrf.mxu1  ;;  %v7680_v49 = vadd.f32 %v7679_v12, %v7637_v61  ;;  %v7721_v37 = vadd.f32 %v7720_v51, %v7678_v29 }
 0x4c6   :  { %v7681_v32 = vpop.f32.mrf.mxu0 }
 0x4c7   :  { %v7682_v13 = vadd.f32 %v7681_v32, %v7639_v20  ;;  %v7724_v60 = vpop.f32.mrf.mxu1  ;;  %v7723_v41 = vadd.f32 %v7722_v19, %v7680_v49  ;;  %v7866_v20 = vsub.s32 3, %v13377_v1  ;;  %v10574_v19 = vld [vmem:[%s14205_s2] sm:$0xf] }
 0x4c8   :  { %v7683_v48 = vpop.f32.mrf.mxu0  ;;  %v7863_v32 = vrot.slane %v10574_v19, %v7862_v14 }
 0x4c9   :  { %v7725_v54 = vadd.f32 %v7724_v60, %v7682_v13  ;;  %v7684_v15 = vadd.f32 %v7683_v48, %v7641_v18  ;;  %v7726_v21 = vpop.f32.mrf.mxu1  ;;  %v10575_v13 = vld [vmem:[%s14206_s3] sm:$0xf]  ;;  %v7867_v48 = vrot.slane %v10574_v19, %v7866_v20 }
 0x4ca   :  { %v7893_v60 = vrot.slane %v10575_v13, %v7862_v14  ;;  %v7897_v1 = vrot.slane %v10575_v13, %v7866_v20 }
 0x4cb   :  { %v7744_v44 = vmul.f32 0.0, %v7725_v54  ;;  %v7727_v45 = vadd.f32 %v7726_v21, %v7684_v15 }
 0x4cd   :  { %v7760_v3 = vadd.f32 %v7744_v44, %v7721_v37  ;;  %v7745_v24 = vmul.f32 0.0, %v7727_v45 }
 0x4cf   :  { %v7761_v25 = vrot.slane %v7760_v3, 4  ;;  %v7767_v56 = vadd.f32 %v7745_v24, %v7723_v41 }
 0x4d1   :  { %v7762_v57 = vadd.f32 %v7761_v25, %v7760_v3  ;;  %v7768_v0 = vrot.slane %v7767_v56, 4 }
 0x4d3   :  { %v7763_v36 = vrot.slane %v7762_v57, 2  ;;  %v7769_v30 = vadd.f32 %v7768_v0, %v7767_v56 }
 0x4d5   :  { %v7764_v31 = vadd.f32 %v7763_v36, %v7762_v57  ;;  %v7770_v26 = vrot.slane %v7769_v30, 2 }
 0x4d7   :  { %v7765_v53 = vrot.slane %v7764_v31, 1  ;;  %v7771_v33 = vadd.f32 %v7770_v26, %v7769_v30 }
 0x4d9   :  { %v7766_v58 = vadd.f32 %v7765_v53, %v7764_v31  ;;  %v7772_v52 = vrot.slane %v7771_v33, 1 }
 0x4db   :  { %v7776_v40 = vmul.f32 0.125, %v7766_v58  ;;  %v7773_v42 = vadd.f32 %v7772_v52, %v7771_v33 }
 0x4dd   :  { %v7780_v7 = vsub.f32 %v7721_v37, %v7776_v40  ;;  %v7784_v62 = vsub.f32 %v7725_v54, %v7776_v40  ;;  %v7777_v4 = vmul.f32 0.125, %v7773_v42 }
 0x4df   :  { %v7792_v39 = vmul.f32 0.0, %v7784_v62  ;;  %v7781_v59 = vsub.f32 %v7723_v41, %v7777_v4  ;;  %v7785_v55 = vsub.f32 %v7727_v45, %v7777_v4  ;;  %v7796_v47 = vmul.f32 %v7780_v7, %v7780_v7 }
 0x4e1   :  { %v7800_v35 = vmul.f32 %v7792_v39, %v7792_v39  ;;  %v7793_v34 = vmul.f32 0.0, %v7785_v55  ;;  %v7797_v27 = vmul.f32 %v7781_v59, %v7781_v59 }
 0x4e3   :  { %v7816_v8 = vadd.f32 %v7800_v35, %v7796_v47  ;;  %v7801_v38 = vmul.f32 %v7793_v34, %v7793_v34 }
 0x4e5   :  { %v7817_v11 = vrot.slane %v7816_v8, 4  ;;  %v7823_v9 = vadd.f32 %v7801_v38, %v7797_v27 }
 0x4e7   :  { %v7818_v10 = vadd.f32 %v7817_v11, %v7816_v8  ;;  %v7824_v46 = vrot.slane %v7823_v9, 4 }
 0x4e9   :  { %v7819_v63 = vrot.slane %v7818_v10, 2  ;;  %v7825_v17 = vadd.f32 %v7824_v46, %v7823_v9 }
 0x4eb   :  { %v7820_v28 = vadd.f32 %v7819_v63, %v7818_v10  ;;  %v7826_v2 = vrot.slane %v7825_v17, 2 }
 0x4ed   :  { %v7821_v43 = vrot.slane %v7820_v28, 1  ;;  %v7827_v23 = vadd.f32 %v7826_v2, %v7825_v17 }
 0x4ef   :  { %v7822_v6 = vadd.f32 %v7821_v43, %v7820_v28  ;;  %v7828_v22 = vrot.slane %v7827_v23, 1 }
 0x4f1   :  { %v7832_v50 = vmul.f32 0.125, %v7822_v6  ;;  %v7829_v16 = vadd.f32 %v7828_v22, %v7827_v23 }
 0x4f3   :  { %v7836_v5 = vadd.f32 1e-05, %v7832_v50  ;;  %v7833_v51 = vmul.f32 0.125, %v7829_v16 }
 0x4f5   :  { %10570 = vrsqrt.f32 %v7836_v5  ;;  %v7837_v12 = vadd.f32 1e-05, %v7833_v51 }
 0x4f7   :  { %10572 = vrsqrt.f32 %v7837_v12 }
 0x502   :  { %v10571_v61 = vpop.eup %10570 }
 0x503   :  { %v7844_v18 = vmul.f32 %v10571_v61, %v7780_v7  ;;  %v7848_v29 = vmul.f32 %v10571_v61, %v7784_v62 }
 0x504   :  { %v10573_v49 = vpop.eup %10572 }
 0x505   :  { %v7874_v54 = vmul.f32 %v7863_v32, %v7844_v18  ;;  %v7878_v15 = vmul.f32 %v7863_v32, %v7848_v29  ;;  %v7845_v21 = vmul.f32 %v10573_v49, %v7781_v59  ;;  %v7849_v37 = vmul.f32 %v10573_v49, %v7785_v55 }
 0x507   :  { %v7904_v44 = vadd.f32 %v7893_v60, %v7874_v54  ;;  %v7908_v45 = vadd.f32 %v7893_v60, %v7878_v15  ;;  %v7875_v41 = vmul.f32 %v7867_v48, %v7845_v21  ;;  %v7879_v3 = vmul.f32 %v7867_v48, %v7849_v37 }
 0x509   :  { %v7920_v24 = vmul.f32 0.2, %v7904_v44  ;;  %v7924_v25 = vmul.f32 0.2, %v7908_v45  ;;  %v7905_v56 = vadd.f32 %v7897_v1, %v7875_v41  ;;  %v7909_v57 = vadd.f32 %v7897_v1, %v7879_v3 }
 0x50a   :  { %vm7912_vm4 = vcmp.ge.f32.partialorder %v7904_v44, 0.0  ;;  %vm7916_vm5 = vcmp.ge.f32.partialorder %v7908_v45, 0.0 }
 0x50b   :  { %vm7913_vm6 = vcmp.ge.f32.partialorder %v7905_v56, 0.0  ;;  %vm7917_vm7 = vcmp.ge.f32.partialorder %v7909_v57, 0.0  ;;  %v7921_v0 = vmul.f32 0.2, %v7905_v56  ;;  %v7925_v36 = vmul.f32 0.2, %v7909_v57 }
 0x50c   :  { %v7928_v30 = vsel %vm7912_vm4, %v7904_v44, %v7920_v24  ;;  %v7932_v31 = vsel %vm7916_vm5, %v7908_v45, %v7924_v25 }
 0x50d   :  { %v7929_v26 = vsel %vm7913_vm6, %v7905_v56, %v7921_v0  ;;  %v7933_v53 = vsel %vm7917_vm7, %v7909_v57, %v7925_v36 }
 0x50e   :  { %v9027_v33 = vpack.c.bf16 %v7929_v26, %v7928_v30  ;;  %v9029_v58 = vpack.c.bf16 %v7933_v53, %v7932_v31 }
 0x510   :  { %7959 = vst [vmem:[%s14207_s4 + $0x8] sm:$0xff] %v9027_v33  ;;  %7961 = vst [vmem:[%s14207_s4 + $0x18] sm:$0xff] %v9029_v58 }

</bundles_post_ra>
